<compile_context>
chip_gen: v7x
topology: tpu7x:2x2x1
jax: 0.10.0
libtpu: 0.0.40
codegen_flags: <defaults>
</compile_context>

<pallas_src>
import functools

import jax
import jax.numpy as jnp
from jax import lax
from jax.experimental import pallas as pl
from jax.experimental.pallas import tpu as pltpu

LANE = 128
_VMEM_LIMIT = 32 * 1024 * 1024


def _round_up(x, m):
    return ((x + m - 1) // m) * m


# ---------------------------------------------------------------------------
# Kernel 1: fused conv tower (conv1 -> conv2 -> conv3, each + bias + ReLU),
# one image per grid step.  All weights resident in VMEM.
# ---------------------------------------------------------------------------
def _conv_tower_kernel(p1_ref, w1_ref, b1_ref, w2_ref, b2_ref, w3_ref, b3_ref,
                       o_ref):
    # ---- conv1 (8x8 s4): one matmul over the phase-ordered patch rows.
    # p1 rows are ordered p*100 + 10*h' + w'  with conv1 output (2h'+ph, 2w'+pw),
    # p = 2*ph + pw, so each phase grid is a contiguous 10x10 raster.
    y1 = jnp.dot(p1_ref[...], w1_ref[...], preferred_element_type=jnp.float32)
    y1 = jnp.maximum(y1 + b1_ref[...], 0.0)                      # (400, 128) f32

    # ---- conv2 (4x4 s2): 16 shifted contiguous-window matmuls.
    # Output kept as a 10-wide raster: acc2[10*oh + ow] is valid for oh,ow<=8;
    # the other rows are finite garbage that is never read.
    acc2 = None
    for kh in range(4):
        for kw in range(4):
            p = (kh % 2) * 2 + (kw % 2)            # phase of this tap
            s = 10 * (kh // 2) + (kw // 2)         # offset inside the phase raster
            off = p * 100 + s
            lhs = y1[off:off + 89, :].astype(jnp.bfloat16)
            t = jnp.dot(lhs, w2_ref[kh * 4 + kw],
                        preferred_element_type=jnp.float32)
            acc2 = t if acc2 is None else acc2 + t
    y2 = jnp.maximum(acc2 + b2_ref[...], 0.0)                    # (89, 128) f32

    # ---- conv3 (3x3 s1): same shifted-window trick on the 10-wide raster.
    # acc3[10*oh + ow] is valid for oh,ow<=6.
    acc3 = None
    for kh in range(3):
        for kw in range(3):
            s = 10 * kh + kw
            lhs = y2[s:s + 67, :].astype(jnp.bfloat16)
            t = jnp.dot(lhs, w3_ref[kh * 3 + kw],
                        preferred_element_type=jnp.float32)
            acc3 = t if acc3 is None else acc3 + t
    y3 = jnp.maximum(acc3 + b3_ref[...], 0.0)                    # (67, 128) f32

    # ---- compact the valid 7x7 rows / 64 real channels into the output
    # (49, 64); (H, W, C) flatten order matches the FC1 weight-row order.
    for i in range(7):
        o_ref[i * 7:(i + 1) * 7, :] = y3[10 * i:10 * i + 7, :64].astype(o_ref.dtype)


def conv_tower(p1, w1, b1, w2, b2, w3, b3):
    """p1: (B, 400, 256) bf16 phase-ordered conv1 patches -> (B, 49, 64) bf16."""
    B = p1.shape[0]
    flops = 2 * B * (400 * 256 * 128 + 16 * 89 * 128 * 128 + 9 * 67 * 128 * 128)
    bytes_accessed = (p1.size * 2 + (w1.size + w2.size + w3.size) * 2
                      + (b1.size + b2.size + b3.size) * 4 + B * 49 * 64 * 2)
    return pl.pallas_call(
        _conv_tower_kernel,
        out_shape=jax.ShapeDtypeStruct((B, 49, 64), jnp.bfloat16),
        grid=(B,),
        in_specs=[
            pl.BlockSpec((None, 400, 256), lambda b: (b, 0, 0)),   # per-image patches
            pl.BlockSpec((256, 128), lambda b: (0, 0)),            # w1 (resident)
            pl.BlockSpec((1, 128), lambda b: (0, 0)),              # b1
            pl.BlockSpec((16, 128, 128), lambda b: (0, 0, 0)),     # w2 taps
            pl.BlockSpec((1, 128), lambda b: (0, 0)),              # b2
            pl.BlockSpec((9, 128, 128), lambda b: (0, 0, 0)),      # w3 taps
            pl.BlockSpec((1, 128), lambda b: (0, 0)),              # b3
        ],
        out_specs=pl.BlockSpec((None, 49, 64), lambda b: (b, 0, 0)),
        compiler_params=pltpu.CompilerParams(
            dimension_semantics=("parallel",),
            vmem_limit_bytes=_VMEM_LIMIT,
        ),
        cost_estimate=pl.CostEstimate(flops=flops, transcendentals=0,
                                      bytes_accessed=bytes_accessed),
    )(p1, w1, b1, w2, b2, w3, b3)


# ---------------------------------------------------------------------------
# Kernel 2: FC head, q_partial = relu(x @ w4_half + b4_half) @ w5_half,
# split over 2 hidden-column halves ("parallel" -> both v7x TensorCores).
# ---------------------------------------------------------------------------
def _fc_head_kernel(x_ref, w4_ref, b4_ref, w5_ref, o_ref):
    h = jnp.dot(x_ref[...], w4_ref[...], preferred_element_type=jnp.float32)
    h = jnp.maximum(h + b4_ref[...], 0.0)
    o_ref[...] = jnp.dot(h.astype(w5_ref.dtype), w5_ref[...],
                         preferred_element_type=jnp.float32)


def fc_head_partial(x, w4, b4, w5, *, n_splits=2):
    """x: (B, 3136) bf16 -> (n_splits, B, Npad) f32 partial FC2 sums (no bias)."""
    B, K = x.shape
    _, H = w4.shape
    _, Np = w5.shape
    assert H % n_splits == 0
    Hs = H // n_splits
    flops = 2 * B * (K * H + H * Np)
    bytes_accessed = (x.size * 2 + w4.size * 2 + b4.size * 4 + w5.size * 2
                      + n_splits * B * Np * 4)
    return pl.pallas_call(
        _fc_head_kernel,
        out_shape=jax.ShapeDtypeStruct((n_splits, B, Np), jnp.float32),
        grid=(n_splits,),
        in_specs=[
            pl.BlockSpec((B, K), lambda i: (0, 0)),      # features (tiny, reloaded)
            pl.BlockSpec((K, Hs), lambda i: (0, i)),     # FC1 weight half
            pl.BlockSpec((1, Hs), lambda i: (0, i)),     # FC1 bias half
            pl.BlockSpec((Hs, Np), lambda i: (i, 0)),    # FC2 weight half (rows)
        ],
        out_specs=pl.BlockSpec((None, B, Np), lambda i: (i, 0, 0)),
        compiler_params=pltpu.CompilerParams(
            dimension_semantics=("parallel",),
            vmem_limit_bytes=_VMEM_LIMIT,
        ),
        cost_estimate=pl.CostEstimate(flops=flops, transcendentals=0,
                                      bytes_accessed=bytes_accessed),
    )(x, w4, b4, w5)


# ---------------------------------------------------------------------------
# Input-side glue: im2col for conv1 + phase-major row reordering (pure XLA,
# operates only on the network input).
# ---------------------------------------------------------------------------
def _phase_ordered_conv1_patches(x_nhwc):
    # Feature order of conv_general_dilated_patches is [cin][kh][kw] (channel
    # major), matching torch weight.reshape(Cout, -1).
    p = lax.conv_general_dilated_patches(
        x_nhwc, filter_shape=(8, 8), window_strides=(4, 4), padding="VALID",
        dimension_numbers=("NHWC", "HWIO", "NHWC"))            # (B, 20, 20, 256)
    B = p.shape[0]
    p = p.reshape(B, 10, 2, 10, 2, 256)                        # (B, h', ph, w', pw, F)
    p = p.transpose(0, 2, 4, 1, 3, 5)                          # (B, ph, pw, h', w', F)
    return p.reshape(B, 400, 256)                              # row = p*100 + 10h' + w'


# ---------------------------------------------------------------------------
# Parameters (synthetic, PyTorch-style uniform init).
# ---------------------------------------------------------------------------
def init_dqn_params(key, n_actions: int):
    ks = jax.random.split(key, 10)
    Np = _round_up(n_actions, LANE)

    def unif(k, shape, fan_in):
        s = 1.0 / (fan_in ** 0.5)
        return jax.random.uniform(k, shape, jnp.float32, -s, s)

    p = {}
    # conv1: rows [cin][kh][kw] (4*8*8), cout 32 padded to 128 lanes.
    p["w1"] = (jnp.zeros((256, LANE), jnp.float32)
               .at[:, :32].set(unif(ks[0], (256, 32), 256)).astype(jnp.bfloat16))
    p["b1"] = jnp.zeros((1, LANE), jnp.float32).at[0, :32].set(unif(ks[1], (32,), 256))
    # conv2: (kh*4+kw, cin_pad128, cout_pad128); real cin 32, cout 64.
    p["w2"] = (jnp.zeros((4, 4, 128, 128), jnp.float32)
               .at[:, :, :32, :64].set(unif(ks[2], (4, 4, 32, 64), 4 * 4 * 32))
               .reshape(16, 128, 128).astype(jnp.bfloat16))
    p["b2"] = jnp.zeros((1, LANE), jnp.float32).at[0, :64].set(unif(ks[3], (64,), 4 * 4 * 32))
    # conv3: (kh*3+kw, cin_pad128, cout_pad128); real 64 -> 64.
    p["w3"] = (jnp.zeros((3, 3, 128, 128), jnp.float32)
               .at[:, :, :64, :64].set(unif(ks[4], (3, 3, 64, 64), 3 * 3 * 64))
               .reshape(9, 128, 128).astype(jnp.bfloat16))
    p["b3"] = jnp.zeros((1, LANE), jnp.float32).at[0, :64].set(unif(ks[5], (64,), 3 * 3 * 64))
    # FC1: rows in (H, W, C) flatten order of the conv3 output (7*7*64 = 3136).
    p["w4"] = unif(ks[6], (3136, 512), 3136).astype(jnp.bfloat16)
    p["b4"] = unif(ks[7], (1, 512), 3136)
    # FC2: n_actions padded to a 128-lane multiple (zero weight columns).
    p["w5"] = (jnp.zeros((512, Np), jnp.float32)
               .at[:, :n_actions].set(unif(ks[8], (512, n_actions), 512))
               .astype(jnp.bfloat16))
    p["b5"] = unif(ks[9], (n_actions,), 512)
    return p


# ---------------------------------------------------------------------------
# DQN forward
# ---------------------------------------------------------------------------
def _dqn_apply(params, x_nchw, n_actions):
    B = x_nchw.shape[0]
    x = jnp.transpose(x_nchw.astype(jnp.bfloat16), (0, 2, 3, 1))      # bf16 NHWC
    p1 = _phase_ordered_conv1_patches(x)                              # (B, 400, 256)
    y3 = conv_tower(p1, params["w1"], params["b1"], params["w2"], params["b2"],
                    params["w3"], params["b3"])                       # (B, 49, 64)
    feat = y3.reshape(B, 49 * 64)                                     # free row-major reshape
    qp = fc_head_partial(feat, params["w4"], params["b4"], params["w5"])
    q = (qp[0] + qp[1])[:, :n_actions] + params["b5"]
    return q


def dqn_forward(params, x_nchw, *, n_actions):
    """x_nchw: (B, 4, 84, 84) float32 -> (B, n_actions) float32."""
    return _dqn_apply(params, x_nchw, n_actions)


def dqn_max_q(params, x_nchw, *, n_actions):
    """Equivalent of DQN.max_Q: max over actions, keepdim=True."""
    q = _dqn_apply(params, x_nchw, n_actions)
    return jnp.max(q, axis=-1, keepdims=True)


# ---------------------------------------------------------------------------
# Pure-XLA reference with matching bf16 casts (validates the fused kernel,
# the phase/raster indexing and the weight-layout assumptions).
# ---------------------------------------------------------------------------
def _reference_forward(params, x_nchw, n_actions):
    dn = ("NHWC", "HWIO", "NHWC")
    B = x_nchw.shape[0]
    x = jnp.transpose(x_nchw.astype(jnp.bfloat16), (0, 2, 3, 1))
    w1 = params["w1"][:, :32].reshape(4, 8, 8, 32).transpose(1, 2, 0, 3)   # HWIO
    y = lax.conv_general_dilated(x, w1, (4, 4), "VALID", dimension_numbers=dn,
                                 preferred_element_type=jnp.float32)
    y = jnp.maximum(y + params["b1"][0, :32], 0.0).astype(jnp.bfloat16)
    w2 = params["w2"].reshape(4, 4, 128, 128)[:, :, :32, :64]
    y = lax.conv_general_dilated(y, w2, (2, 2), "VALID", dimension_numbers=dn,
                                 preferred_element_type=jnp.float32)
    y = jnp.maximum(y + params["b2"][0, :64], 0.0).astype(jnp.bfloat16)
    w3 = params["w3"].reshape(3, 3, 128, 128)[:, :, :64, :64]
    y = lax.conv_general_dilated(y, w3, (1, 1), "VALID", dimension_numbers=dn,
                                 preferred_element_type=jnp.float32)
    y = jnp.maximum(y + params["b3"][0, :64], 0.0).astype(jnp.bfloat16)
    feat = y.reshape(B, 3136)                                          # (H, W, C) order
    h = jnp.dot(feat, params["w4"], preferred_element_type=jnp.float32) + params["b4"]
    h = jnp.maximum(h, 0.0).astype(jnp.bfloat16)
    q = jnp.dot(h, params["w5"][:, :n_actions],
                preferred_element_type=jnp.float32) + params["b5"]
    return q


# ---------------------------------------------------------------------------
if __name__ == "__main__":
    n_actions = 6
    batch = 2

    key = jax.random.PRNGKey(0)
    k_params, k_x = jax.random.split(key)

    params = init_dqn_params(k_params, n_actions)
    # The Linear(3136, 512) pins the spatial size to 84x84 (Atari frames).
    x = jax.random.uniform(k_x, (batch, 4, 84, 84), jnp.float32)

    fwd = jax.jit(functools.partial(dqn_forward, n_actions=n_actions))
    maxq = jax.jit(functools.partial(dqn_max_q, n_actions=n_actions))

    q = jax.block_until_ready(fwd(params, x))
    mq = jax.block_until_ready(maxq(params, x))

    assert q.shape == (batch, n_actions), q.shape
    assert mq.shape == (batch, 1), mq.shape
    assert bool(jnp.all(jnp.isfinite(q)))
    assert bool(jnp.allclose(mq[:, 0], jnp.max(q, axis=-1), rtol=1e-5, atol=1e-5))

    # Numerical validation against the pure-XLA reference (same bf16 casts,
    # differences are f32 reassociation only).
    q_ref = jax.jit(functools.partial(_reference_forward, n_actions=n_actions))(params, x)
    q_ref = jax.block_until_ready(q_ref)
    assert bool(jnp.allclose(q, q_ref, rtol=2e-2, atol=2e-3)), (
        "max abs diff vs reference: %f" % float(jnp.max(jnp.abs(q - q_ref))))

    print("KERNEL_OK")
</pallas_src>

<mosaic_0001>
module attributes {stable_mosaic.version = 11 : i64} {
  func.func @_conv_tower_kernel(%arg0: i32, %arg1: memref<1x400x256xbf16, #tpu.memory_space<vmem>>, %arg2: memref<256x128xbf16, #tpu.memory_space<vmem>>, %arg3: memref<1x128xf32, #tpu.memory_space<vmem>>, %arg4: memref<16x128x128xbf16, #tpu.memory_space<vmem>>, %arg5: memref<1x128xf32, #tpu.memory_space<vmem>>, %arg6: memref<9x128x128xbf16, #tpu.memory_space<vmem>>, %arg7: memref<1x128xf32, #tpu.memory_space<vmem>>, %arg8: memref<1x49x64xbf16, #tpu.memory_space<vmem>>) attributes {dimension_semantics = [#tpu.dimension_semantics<parallel>], iteration_bounds = array<i64: 2>, scalar_prefetch = 0 : i64, scratch_operands = 0 : i64, tpu.core_type = #tpu.core_type<tc>, window_params = [{transform_indices = @transform_0, window_bounds = array<i64: 1, 400, 256>}, {pipeline_mode = #tpu.pipeline_mode<synchronous>, transform_indices = @transform_1, window_bounds = array<i64: 256, 128>}, {pipeline_mode = #tpu.pipeline_mode<synchronous>, transform_indices = @transform_2, window_bounds = array<i64: 1, 128>}, {pipeline_mode = #tpu.pipeline_mode<synchronous>, transform_indices = @transform_3, window_bounds = array<i64: 16, 128, 128>}, {pipeline_mode = #tpu.pipeline_mode<synchronous>, transform_indices = @transform_4, window_bounds = array<i64: 1, 128>}, {pipeline_mode = #tpu.pipeline_mode<synchronous>, transform_indices = @transform_5, window_bounds = array<i64: 9, 128, 128>}, {pipeline_mode = #tpu.pipeline_mode<synchronous>, transform_indices = @transform_6, window_bounds = array<i64: 1, 128>}, {transform_indices = @transform_7, window_bounds = array<i64: 1, 49, 64>}]} {
    %c0 = arith.constant 0 : index
    %c0_0 = arith.constant 0 : index
    %c0_1 = arith.constant 0 : index
    %0 = vector.load %arg1[%c0, %c0_0, %c0_1] : memref<1x400x256xbf16, #tpu.memory_space<vmem>>, vector<1x400x256xbf16>
    %1 = vector.shape_cast %0 : vector<1x400x256xbf16> to vector<400x256xbf16>
    %c0_2 = arith.constant 0 : index
    %c0_3 = arith.constant 0 : index
    %2 = vector.load %arg2[%c0_2, %c0_3] : memref<256x128xbf16, #tpu.memory_space<vmem>>, vector<256x128xbf16>
    %cst = arith.constant dense<0.000000e+00> : vector<400x128xf32>
    %3 = tpu.matmul %1, %2, %cst {dimension_numbers = #tpu.dot_dimension_numbers<[1], [0], [0], [1], [0, 0, 1, 1], [], []>} : vector<400x256xbf16>, vector<256x128xbf16>, vector<400x128xf32> -> vector<400x128xf32>
    %c0_4 = arith.constant 0 : index
    %c0_5 = arith.constant 0 : index
    %4 = vector.load %arg3[%c0_4, %c0_5] : memref<1x128xf32, #tpu.memory_space<vmem>>, vector<1x128xf32>
    %5 = vector.broadcast %4 : vector<1x128xf32> to vector<400x128xf32>
    %6 = arith.addf %3, %5 : vector<400x128xf32>
    %cst_6 = arith.constant 0.000000e+00 : f32
    %7 = vector.broadcast %cst_6 : f32 to vector<400x128xf32>
    %8 = arith.maximumf %6, %7 : vector<400x128xf32>
    %9 = vector.extract_strided_slice %8 {offsets = [0, 0], sizes = [89, 128], strides = [1, 1]} : vector<400x128xf32> to vector<89x128xf32>
    %10 = arith.truncf %9 : vector<89x128xf32> to vector<89x128xbf16>
    %c0_7 = arith.constant 0 : index
    %c0_8 = arith.constant 0 : index
    %c0_9 = arith.constant 0 : index
    %11 = vector.load %arg4[%c0_7, %c0_8, %c0_9] : memref<16x128x128xbf16, #tpu.memory_space<vmem>>, vector<1x128x128xbf16>
    %12 = vector.shape_cast %11 : vector<1x128x128xbf16> to vector<128x128xbf16>
    %cst_10 = arith.constant dense<0.000000e+00> : vector<89x128xf32>
    %13 = tpu.matmul %10, %12, %cst_10 {dimension_numbers = #tpu.dot_dimension_numbers<[1], [0], [0], [1], [0, 0, 1, 1], [], []>} : vector<89x128xbf16>, vector<128x128xbf16>, vector<89x128xf32> -> vector<89x128xf32>
    %14 = vector.extract_strided_slice %8 {offsets = [100, 0], sizes = [89, 128], strides = [1, 1]} : vector<400x128xf32> to vector<89x128xf32>
    %15 = arith.truncf %14 : vector<89x128xf32> to vector<89x128xbf16>
    %c1 = arith.constant 1 : index
    %c0_11 = arith.constant 0 : index
    %c0_12 = arith.constant 0 : index
    %16 = vector.load %arg4[%c1, %c0_11, %c0_12] : memref<16x128x128xbf16, #tpu.memory_space<vmem>>, vector<1x128x128xbf16>
    %17 = vector.shape_cast %16 : vector<1x128x128xbf16> to vector<128x128xbf16>
    %cst_13 = arith.constant dense<0.000000e+00> : vector<89x128xf32>
    %18 = tpu.matmul %15, %17, %cst_13 {dimension_numbers = #tpu.dot_dimension_numbers<[1], [0], [0], [1], [0, 0, 1, 1], [], []>} : vector<89x128xbf16>, vector<128x128xbf16>, vector<89x128xf32> -> vector<89x128xf32>
    %19 = arith.addf %13, %18 : vector<89x128xf32>
    %20 = vector.extract_strided_slice %8 {offsets = [1, 0], sizes = [89, 128], strides = [1, 1]} : vector<400x128xf32> to vector<89x128xf32>
    %21 = arith.truncf %20 : vector<89x128xf32> to vector<89x128xbf16>
    %c2 = arith.constant 2 : index
    %c0_14 = arith.constant 0 : index
    %c0_15 = arith.constant 0 : index
    %22 = vector.load %arg4[%c2, %c0_14, %c0_15] : memref<16x128x128xbf16, #tpu.memory_space<vmem>>, vector<1x128x128xbf16>
    %23 = vector.shape_cast %22 : vector<1x128x128xbf16> to vector<128x128xbf16>
    %cst_16 = arith.constant dense<0.000000e+00> : vector<89x128xf32>
    %24 = tpu.matmul %21, %23, %cst_16 {dimension_numbers = #tpu.dot_dimension_numbers<[1], [0], [0], [1], [0, 0, 1, 1], [], []>} : vector<89x128xbf16>, vector<128x128xbf16>, vector<89x128xf32> -> vector<89x128xf32>
    %25 = arith.addf %19, %24 : vector<89x128xf32>
    %26 = vector.extract_strided_slice %8 {offsets = [101, 0], sizes = [89, 128], strides = [1, 1]} : vector<400x128xf32> to vector<89x128xf32>
    %27 = arith.truncf %26 : vector<89x128xf32> to vector<89x128xbf16>
    %c3 = arith.constant 3 : index
    %c0_17 = arith.constant 0 : index
    %c0_18 = arith.constant 0 : index
    %28 = vector.load %arg4[%c3, %c0_17, %c0_18] : memref<16x128x128xbf16, #tpu.memory_space<vmem>>, vector<1x128x128xbf16>
    %29 = vector.shape_cast %28 : vector<1x128x128xbf16> to vector<128x128xbf16>
    %cst_19 = arith.constant dense<0.000000e+00> : vector<89x128xf32>
    %30 = tpu.matmul %27, %29, %cst_19 {dimension_numbers = #tpu.dot_dimension_numbers<[1], [0], [0], [1], [0, 0, 1, 1], [], []>} : vector<89x128xbf16>, vector<128x128xbf16>, vector<89x128xf32> -> vector<89x128xf32>
    %31 = arith.addf %25, %30 : vector<89x128xf32>
    %32 = vector.extract_strided_slice %8 {offsets = [200, 0], sizes = [89, 128], strides = [1, 1]} : vector<400x128xf32> to vector<89x128xf32>
    %33 = arith.truncf %32 : vector<89x128xf32> to vector<89x128xbf16>
    %c4 = arith.constant 4 : index
    %c0_20 = arith.constant 0 : index
    %c0_21 = arith.constant 0 : index
    %34 = vector.load %arg4[%c4, %c0_20, %c0_21] : memref<16x128x128xbf16, #tpu.memory_space<vmem>>, vector<1x128x128xbf16>
    %35 = vector.shape_cast %34 : vector<1x128x128xbf16> to vector<128x128xbf16>
    %cst_22 = arith.constant dense<0.000000e+00> : vector<89x128xf32>
    %36 = tpu.matmul %33, %35, %cst_22 {dimension_numbers = #tpu.dot_dimension_numbers<[1], [0], [0], [1], [0, 0, 1, 1], [], []>} : vector<89x128xbf16>, vector<128x128xbf16>, vector<89x128xf32> -> vector<89x128xf32>
    %37 = arith.addf %31, %36 : vector<89x128xf32>
    %38 = vector.extract_strided_slice %8 {offsets = [300, 0], sizes = [89, 128], strides = [1, 1]} : vector<400x128xf32> to vector<89x128xf32>
    %39 = arith.truncf %38 : vector<89x128xf32> to vector<89x128xbf16>
    %c5 = arith.constant 5 : index
    %c0_23 = arith.constant 0 : index
    %c0_24 = arith.constant 0 : index
    %40 = vector.load %arg4[%c5, %c0_23, %c0_24] : memref<16x128x128xbf16, #tpu.memory_space<vmem>>, vector<1x128x128xbf16>
    %41 = vector.shape_cast %40 : vector<1x128x128xbf16> to vector<128x128xbf16>
    %cst_25 = arith.constant dense<0.000000e+00> : vector<89x128xf32>
    %42 = tpu.matmul %39, %41, %cst_25 {dimension_numbers = #tpu.dot_dimension_numbers<[1], [0], [0], [1], [0, 0, 1, 1], [], []>} : vector<89x128xbf16>, vector<128x128xbf16>, vector<89x128xf32> -> vector<89x128xf32>
    %43 = arith.addf %37, %42 : vector<89x128xf32>
    %44 = vector.extract_strided_slice %8 {offsets = [201, 0], sizes = [89, 128], strides = [1, 1]} : vector<400x128xf32> to vector<89x128xf32>
    %45 = arith.truncf %44 : vector<89x128xf32> to vector<89x128xbf16>
    %c6 = arith.constant 6 : index
    %c0_26 = arith.constant 0 : index
    %c0_27 = arith.constant 0 : index
    %46 = vector.load %arg4[%c6, %c0_26, %c0_27] : memref<16x128x128xbf16, #tpu.memory_space<vmem>>, vector<1x128x128xbf16>
    %47 = vector.shape_cast %46 : vector<1x128x128xbf16> to vector<128x128xbf16>
    %cst_28 = arith.constant dense<0.000000e+00> : vector<89x128xf32>
    %48 = tpu.matmul %45, %47, %cst_28 {dimension_numbers = #tpu.dot_dimension_numbers<[1], [0], [0], [1], [0, 0, 1, 1], [], []>} : vector<89x128xbf16>, vector<128x128xbf16>, vector<89x128xf32> -> vector<89x128xf32>
    %49 = arith.addf %43, %48 : vector<89x128xf32>
    %50 = vector.extract_strided_slice %8 {offsets = [301, 0], sizes = [89, 128], strides = [1, 1]} : vector<400x128xf32> to vector<89x128xf32>
    %51 = arith.truncf %50 : vector<89x128xf32> to vector<89x128xbf16>
    %c7 = arith.constant 7 : index
    %c0_29 = arith.constant 0 : index
    %c0_30 = arith.constant 0 : index
    %52 = vector.load %arg4[%c7, %c0_29, %c0_30] : memref<16x128x128xbf16, #tpu.memory_space<vmem>>, vector<1x128x128xbf16>
    %53 = vector.shape_cast %52 : vector<1x128x128xbf16> to vector<128x128xbf16>
    %cst_31 = arith.constant dense<0.000000e+00> : vector<89x128xf32>
    %54 = tpu.matmul %51, %53, %cst_31 {dimension_numbers = #tpu.dot_dimension_numbers<[1], [0], [0], [1], [0, 0, 1, 1], [], []>} : vector<89x128xbf16>, vector<128x128xbf16>, vector<89x128xf32> -> vector<89x128xf32>
    %55 = arith.addf %49, %54 : vector<89x128xf32>
    %56 = vector.extract_strided_slice %8 {offsets = [10, 0], sizes = [89, 128], strides = [1, 1]} : vector<400x128xf32> to vector<89x128xf32>
    %57 = arith.truncf %56 : vector<89x128xf32> to vector<89x128xbf16>
    %c8 = arith.constant 8 : index
    %c0_32 = arith.constant 0 : index
    %c0_33 = arith.constant 0 : index
    %58 = vector.load %arg4[%c8, %c0_32, %c0_33] : memref<16x128x128xbf16, #tpu.memory_space<vmem>>, vector<1x128x128xbf16>
    %59 = vector.shape_cast %58 : vector<1x128x128xbf16> to vector<128x128xbf16>
    %cst_34 = arith.constant dense<0.000000e+00> : vector<89x128xf32>
    %60 = tpu.matmul %57, %59, %cst_34 {dimension_numbers = #tpu.dot_dimension_numbers<[1], [0], [0], [1], [0, 0, 1, 1], [], []>} : vector<89x128xbf16>, vector<128x128xbf16>, vector<89x128xf32> -> vector<89x128xf32>
    %61 = arith.addf %55, %60 : vector<89x128xf32>
    %62 = vector.extract_strided_slice %8 {offsets = [110, 0], sizes = [89, 128], strides = [1, 1]} : vector<400x128xf32> to vector<89x128xf32>
    %63 = arith.truncf %62 : vector<89x128xf32> to vector<89x128xbf16>
    %c9 = arith.constant 9 : index
    %c0_35 = arith.constant 0 : index
    %c0_36 = arith.constant 0 : index
    %64 = vector.load %arg4[%c9, %c0_35, %c0_36] : memref<16x128x128xbf16, #tpu.memory_space<vmem>>, vector<1x128x128xbf16>
    %65 = vector.shape_cast %64 : vector<1x128x128xbf16> to vector<128x128xbf16>
    %cst_37 = arith.constant dense<0.000000e+00> : vector<89x128xf32>
    %66 = tpu.matmul %63, %65, %cst_37 {dimension_numbers = #tpu.dot_dimension_numbers<[1], [0], [0], [1], [0, 0, 1, 1], [], []>} : vector<89x128xbf16>, vector<128x128xbf16>, vector<89x128xf32> -> vector<89x128xf32>
    %67 = arith.addf %61, %66 : vector<89x128xf32>
    %68 = vector.extract_strided_slice %8 {offsets = [11, 0], sizes = [89, 128], strides = [1, 1]} : vector<400x128xf32> to vector<89x128xf32>
    %69 = arith.truncf %68 : vector<89x128xf32> to vector<89x128xbf16>
    %c10 = arith.constant 10 : index
    %c0_38 = arith.constant 0 : index
    %c0_39 = arith.constant 0 : index
    %70 = vector.load %arg4[%c10, %c0_38, %c0_39] : memref<16x128x128xbf16, #tpu.memory_space<vmem>>, vector<1x128x128xbf16>
    %71 = vector.shape_cast %70 : vector<1x128x128xbf16> to vector<128x128xbf16>
    %cst_40 = arith.constant dense<0.000000e+00> : vector<89x128xf32>
    %72 = tpu.matmul %69, %71, %cst_40 {dimension_numbers = #tpu.dot_dimension_numbers<[1], [0], [0], [1], [0, 0, 1, 1], [], []>} : vector<89x128xbf16>, vector<128x128xbf16>, vector<89x128xf32> -> vector<89x128xf32>
    %73 = arith.addf %67, %72 : vector<89x128xf32>
    %74 = vector.extract_strided_slice %8 {offsets = [111, 0], sizes = [89, 128], strides = [1, 1]} : vector<400x128xf32> to vector<89x128xf32>
    %75 = arith.truncf %74 : vector<89x128xf32> to vector<89x128xbf16>
    %c11 = arith.constant 11 : index
    %c0_41 = arith.constant 0 : index
    %c0_42 = arith.constant 0 : index
    %76 = vector.load %arg4[%c11, %c0_41, %c0_42] : memref<16x128x128xbf16, #tpu.memory_space<vmem>>, vector<1x128x128xbf16>
    %77 = vector.shape_cast %76 : vector<1x128x128xbf16> to vector<128x128xbf16>
    %cst_43 = arith.constant dense<0.000000e+00> : vector<89x128xf32>
    %78 = tpu.matmul %75, %77, %cst_43 {dimension_numbers = #tpu.dot_dimension_numbers<[1], [0], [0], [1], [0, 0, 1, 1], [], []>} : vector<89x128xbf16>, vector<128x128xbf16>, vector<89x128xf32> -> vector<89x128xf32>
    %79 = arith.addf %73, %78 : vector<89x128xf32>
    %80 = vector.extract_strided_slice %8 {offsets = [210, 0], sizes = [89, 128], strides = [1, 1]} : vector<400x128xf32> to vector<89x128xf32>
    %81 = arith.truncf %80 : vector<89x128xf32> to vector<89x128xbf16>
    %c12 = arith.constant 12 : index
    %c0_44 = arith.constant 0 : index
    %c0_45 = arith.constant 0 : index
    %82 = vector.load %arg4[%c12, %c0_44, %c0_45] : memref<16x128x128xbf16, #tpu.memory_space<vmem>>, vector<1x128x128xbf16>
    %83 = vector.shape_cast %82 : vector<1x128x128xbf16> to vector<128x128xbf16>
    %cst_46 = arith.constant dense<0.000000e+00> : vector<89x128xf32>
    %84 = tpu.matmul %81, %83, %cst_46 {dimension_numbers = #tpu.dot_dimension_numbers<[1], [0], [0], [1], [0, 0, 1, 1], [], []>} : vector<89x128xbf16>, vector<128x128xbf16>, vector<89x128xf32> -> vector<89x128xf32>
    %85 = arith.addf %79, %84 : vector<89x128xf32>
    %86 = vector.extract_strided_slice %8 {offsets = [310, 0], sizes = [89, 128], strides = [1, 1]} : vector<400x128xf32> to vector<89x128xf32>
    %87 = arith.truncf %86 : vector<89x128xf32> to vector<89x128xbf16>
    %c13 = arith.constant 13 : index
    %c0_47 = arith.constant 0 : index
    %c0_48 = arith.constant 0 : index
    %88 = vector.load %arg4[%c13, %c0_47, %c0_48] : memref<16x128x128xbf16, #tpu.memory_space<vmem>>, vector<1x128x128xbf16>
    %89 = vector.shape_cast %88 : vector<1x128x128xbf16> to vector<128x128xbf16>
    %cst_49 = arith.constant dense<0.000000e+00> : vector<89x128xf32>
    %90 = tpu.matmul %87, %89, %cst_49 {dimension_numbers = #tpu.dot_dimension_numbers<[1], [0], [0], [1], [0, 0, 1, 1], [], []>} : vector<89x128xbf16>, vector<128x128xbf16>, vector<89x128xf32> -> vector<89x128xf32>
    %91 = arith.addf %85, %90 : vector<89x128xf32>
    %92 = vector.extract_strided_slice %8 {offsets = [211, 0], sizes = [89, 128], strides = [1, 1]} : vector<400x128xf32> to vector<89x128xf32>
    %93 = arith.truncf %92 : vector<89x128xf32> to vector<89x128xbf16>
    %c14 = arith.constant 14 : index
    %c0_50 = arith.constant 0 : index
    %c0_51 = arith.constant 0 : index
    %94 = vector.load %arg4[%c14, %c0_50, %c0_51] : memref<16x128x128xbf16, #tpu.memory_space<vmem>>, vector<1x128x128xbf16>
    %95 = vector.shape_cast %94 : vector<1x128x128xbf16> to vector<128x128xbf16>
    %cst_52 = arith.constant dense<0.000000e+00> : vector<89x128xf32>
    %96 = tpu.matmul %93, %95, %cst_52 {dimension_numbers = #tpu.dot_dimension_numbers<[1], [0], [0], [1], [0, 0, 1, 1], [], []>} : vector<89x128xbf16>, vector<128x128xbf16>, vector<89x128xf32> -> vector<89x128xf32>
    %97 = arith.addf %91, %96 : vector<89x128xf32>
    %98 = vector.extract_strided_slice %8 {offsets = [311, 0], sizes = [89, 128], strides = [1, 1]} : vector<400x128xf32> to vector<89x128xf32>
    %99 = arith.truncf %98 : vector<89x128xf32> to vector<89x128xbf16>
    %c15 = arith.constant 15 : index
    %c0_53 = arith.constant 0 : index
    %c0_54 = arith.constant 0 : index
    %100 = vector.load %arg4[%c15, %c0_53, %c0_54] : memref<16x128x128xbf16, #tpu.memory_space<vmem>>, vector<1x128x128xbf16>
    %101 = vector.shape_cast %100 : vector<1x128x128xbf16> to vector<128x128xbf16>
    %cst_55 = arith.constant dense<0.000000e+00> : vector<89x128xf32>
    %102 = tpu.matmul %99, %101, %cst_55 {dimension_numbers = #tpu.dot_dimension_numbers<[1], [0], [0], [1], [0, 0, 1, 1], [], []>} : vector<89x128xbf16>, vector<128x128xbf16>, vector<89x128xf32> -> vector<89x128xf32>
    %103 = arith.addf %97, %102 : vector<89x128xf32>
    %c0_56 = arith.constant 0 : index
    %c0_57 = arith.constant 0 : index
    %104 = vector.load %arg5[%c0_56, %c0_57] : memref<1x128xf32, #tpu.memory_space<vmem>>, vector<1x128xf32>
    %105 = vector.broadcast %104 : vector<1x128xf32> to vector<89x128xf32>
    %106 = arith.addf %103, %105 : vector<89x128xf32>
    %cst_58 = arith.constant 0.000000e+00 : f32
    %107 = vector.broadcast %cst_58 : f32 to vector<89x128xf32>
    %108 = arith.maximumf %106, %107 : vector<89x128xf32>
    %109 = vector.extract_strided_slice %108 {offsets = [0, 0], sizes = [67, 128], strides = [1, 1]} : vector<89x128xf32> to vector<67x128xf32>
    %110 = arith.truncf %109 : vector<67x128xf32> to vector<67x128xbf16>
    %c0_59 = arith.constant 0 : index
    %c0_60 = arith.constant 0 : index
    %c0_61 = arith.constant 0 : index
    %111 = vector.load %arg6[%c0_59, %c0_60, %c0_61] : memref<9x128x128xbf16, #tpu.memory_space<vmem>>, vector<1x128x128xbf16>
    %112 = vector.shape_cast %111 : vector<1x128x128xbf16> to vector<128x128xbf16>
    %cst_62 = arith.constant dense<0.000000e+00> : vector<67x128xf32>
    %113 = tpu.matmul %110, %112, %cst_62 {dimension_numbers = #tpu.dot_dimension_numbers<[1], [0], [0], [1], [0, 0, 1, 1], [], []>} : vector<67x128xbf16>, vector<128x128xbf16>, vector<67x128xf32> -> vector<67x128xf32>
    %114 = vector.extract_strided_slice %108 {offsets = [1, 0], sizes = [67, 128], strides = [1, 1]} : vector<89x128xf32> to vector<67x128xf32>
    %115 = arith.truncf %114 : vector<67x128xf32> to vector<67x128xbf16>
    %c1_63 = arith.constant 1 : index
    %c0_64 = arith.constant 0 : index
    %c0_65 = arith.constant 0 : index
    %116 = vector.load %arg6[%c1_63, %c0_64, %c0_65] : memref<9x128x128xbf16, #tpu.memory_space<vmem>>, vector<1x128x128xbf16>
    %117 = vector.shape_cast %116 : vector<1x128x128xbf16> to vector<128x128xbf16>
    %cst_66 = arith.constant dense<0.000000e+00> : vector<67x128xf32>
    %118 = tpu.matmul %115, %117, %cst_66 {dimension_numbers = #tpu.dot_dimension_numbers<[1], [0], [0], [1], [0, 0, 1, 1], [], []>} : vector<67x128xbf16>, vector<128x128xbf16>, vector<67x128xf32> -> vector<67x128xf32>
    %119 = arith.addf %113, %118 : vector<67x128xf32>
    %120 = vector.extract_strided_slice %108 {offsets = [2, 0], sizes = [67, 128], strides = [1, 1]} : vector<89x128xf32> to vector<67x128xf32>
    %121 = arith.truncf %120 : vector<67x128xf32> to vector<67x128xbf16>
    %c2_67 = arith.constant 2 : index
    %c0_68 = arith.constant 0 : index
    %c0_69 = arith.constant 0 : index
    %122 = vector.load %arg6[%c2_67, %c0_68, %c0_69] : memref<9x128x128xbf16, #tpu.memory_space<vmem>>, vector<1x128x128xbf16>
    %123 = vector.shape_cast %122 : vector<1x128x128xbf16> to vector<128x128xbf16>
    %cst_70 = arith.constant dense<0.000000e+00> : vector<67x128xf32>
    %124 = tpu.matmul %121, %123, %cst_70 {dimension_numbers = #tpu.dot_dimension_numbers<[1], [0], [0], [1], [0, 0, 1, 1], [], []>} : vector<67x128xbf16>, vector<128x128xbf16>, vector<67x128xf32> -> vector<67x128xf32>
    %125 = arith.addf %119, %124 : vector<67x128xf32>
    %126 = vector.extract_strided_slice %108 {offsets = [10, 0], sizes = [67, 128], strides = [1, 1]} : vector<89x128xf32> to vector<67x128xf32>
    %127 = arith.truncf %126 : vector<67x128xf32> to vector<67x128xbf16>
    %c3_71 = arith.constant 3 : index
    %c0_72 = arith.constant 0 : index
    %c0_73 = arith.constant 0 : index
    %128 = vector.load %arg6[%c3_71, %c0_72, %c0_73] : memref<9x128x128xbf16, #tpu.memory_space<vmem>>, vector<1x128x128xbf16>
    %129 = vector.shape_cast %128 : vector<1x128x128xbf16> to vector<128x128xbf16>
    %cst_74 = arith.constant dense<0.000000e+00> : vector<67x128xf32>
    %130 = tpu.matmul %127, %129, %cst_74 {dimension_numbers = #tpu.dot_dimension_numbers<[1], [0], [0], [1], [0, 0, 1, 1], [], []>} : vector<67x128xbf16>, vector<128x128xbf16>, vector<67x128xf32> -> vector<67x128xf32>
    %131 = arith.addf %125, %130 : vector<67x128xf32>
    %132 = vector.extract_strided_slice %108 {offsets = [11, 0], sizes = [67, 128], strides = [1, 1]} : vector<89x128xf32> to vector<67x128xf32>
    %133 = arith.truncf %132 : vector<67x128xf32> to vector<67x128xbf16>
    %c4_75 = arith.constant 4 : index
    %c0_76 = arith.constant 0 : index
    %c0_77 = arith.constant 0 : index
    %134 = vector.load %arg6[%c4_75, %c0_76, %c0_77] : memref<9x128x128xbf16, #tpu.memory_space<vmem>>, vector<1x128x128xbf16>
    %135 = vector.shape_cast %134 : vector<1x128x128xbf16> to vector<128x128xbf16>
    %cst_78 = arith.constant dense<0.000000e+00> : vector<67x128xf32>
    %136 = tpu.matmul %133, %135, %cst_78 {dimension_numbers = #tpu.dot_dimension_numbers<[1], [0], [0], [1], [0, 0, 1, 1], [], []>} : vector<67x128xbf16>, vector<128x128xbf16>, vector<67x128xf32> -> vector<67x128xf32>
    %137 = arith.addf %131, %136 : vector<67x128xf32>
    %138 = vector.extract_strided_slice %108 {offsets = [12, 0], sizes = [67, 128], strides = [1, 1]} : vector<89x128xf32> to vector<67x128xf32>
    %139 = arith.truncf %138 : vector<67x128xf32> to vector<67x128xbf16>
    %c5_79 = arith.constant 5 : index
    %c0_80 = arith.constant 0 : index
    %c0_81 = arith.constant 0 : index
    %140 = vector.load %arg6[%c5_79, %c0_80, %c0_81] : memref<9x128x128xbf16, #tpu.memory_space<vmem>>, vector<1x128x128xbf16>
    %141 = vector.shape_cast %140 : vector<1x128x128xbf16> to vector<128x128xbf16>
    %cst_82 = arith.constant dense<0.000000e+00> : vector<67x128xf32>
    %142 = tpu.matmul %139, %141, %cst_82 {dimension_numbers = #tpu.dot_dimension_numbers<[1], [0], [0], [1], [0, 0, 1, 1], [], []>} : vector<67x128xbf16>, vector<128x128xbf16>, vector<67x128xf32> -> vector<67x128xf32>
    %143 = arith.addf %137, %142 : vector<67x128xf32>
    %144 = vector.extract_strided_slice %108 {offsets = [20, 0], sizes = [67, 128], strides = [1, 1]} : vector<89x128xf32> to vector<67x128xf32>
    %145 = arith.truncf %144 : vector<67x128xf32> to vector<67x128xbf16>
    %c6_83 = arith.constant 6 : index
    %c0_84 = arith.constant 0 : index
    %c0_85 = arith.constant 0 : index
    %146 = vector.load %arg6[%c6_83, %c0_84, %c0_85] : memref<9x128x128xbf16, #tpu.memory_space<vmem>>, vector<1x128x128xbf16>
    %147 = vector.shape_cast %146 : vector<1x128x128xbf16> to vector<128x128xbf16>
    %cst_86 = arith.constant dense<0.000000e+00> : vector<67x128xf32>
    %148 = tpu.matmul %145, %147, %cst_86 {dimension_numbers = #tpu.dot_dimension_numbers<[1], [0], [0], [1], [0, 0, 1, 1], [], []>} : vector<67x128xbf16>, vector<128x128xbf16>, vector<67x128xf32> -> vector<67x128xf32>
    %149 = arith.addf %143, %148 : vector<67x128xf32>
    %150 = vector.extract_strided_slice %108 {offsets = [21, 0], sizes = [67, 128], strides = [1, 1]} : vector<89x128xf32> to vector<67x128xf32>
    %151 = arith.truncf %150 : vector<67x128xf32> to vector<67x128xbf16>
    %c7_87 = arith.constant 7 : index
    %c0_88 = arith.constant 0 : index
    %c0_89 = arith.constant 0 : index
    %152 = vector.load %arg6[%c7_87, %c0_88, %c0_89] : memref<9x128x128xbf16, #tpu.memory_space<vmem>>, vector<1x128x128xbf16>
    %153 = vector.shape_cast %152 : vector<1x128x128xbf16> to vector<128x128xbf16>
    %cst_90 = arith.constant dense<0.000000e+00> : vector<67x128xf32>
    %154 = tpu.matmul %151, %153, %cst_90 {dimension_numbers = #tpu.dot_dimension_numbers<[1], [0], [0], [1], [0, 0, 1, 1], [], []>} : vector<67x128xbf16>, vector<128x128xbf16>, vector<67x128xf32> -> vector<67x128xf32>
    %155 = arith.addf %149, %154 : vector<67x128xf32>
    %156 = vector.extract_strided_slice %108 {offsets = [22, 0], sizes = [67, 128], strides = [1, 1]} : vector<89x128xf32> to vector<67x128xf32>
    %157 = arith.truncf %156 : vector<67x128xf32> to vector<67x128xbf16>
    %c8_91 = arith.constant 8 : index
    %c0_92 = arith.constant 0 : index
    %c0_93 = arith.constant 0 : index
    %158 = vector.load %arg6[%c8_91, %c0_92, %c0_93] : memref<9x128x128xbf16, #tpu.memory_space<vmem>>, vector<1x128x128xbf16>
    %159 = vector.shape_cast %158 : vector<1x128x128xbf16> to vector<128x128xbf16>
    %cst_94 = arith.constant dense<0.000000e+00> : vector<67x128xf32>
    %160 = tpu.matmul %157, %159, %cst_94 {dimension_numbers = #tpu.dot_dimension_numbers<[1], [0], [0], [1], [0, 0, 1, 1], [], []>} : vector<67x128xbf16>, vector<128x128xbf16>, vector<67x128xf32> -> vector<67x128xf32>
    %161 = arith.addf %155, %160 : vector<67x128xf32>
    %c0_95 = arith.constant 0 : index
    %c0_96 = arith.constant 0 : index
    %162 = vector.load %arg7[%c0_95, %c0_96] : memref<1x128xf32, #tpu.memory_space<vmem>>, vector<1x128xf32>
    %163 = vector.broadcast %162 : vector<1x128xf32> to vector<67x128xf32>
    %164 = arith.addf %161, %163 : vector<67x128xf32>
    %cst_97 = arith.constant 0.000000e+00 : f32
    %165 = vector.broadcast %cst_97 : f32 to vector<67x128xf32>
    %166 = arith.maximumf %164, %165 : vector<67x128xf32>
    %167 = vector.extract_strided_slice %166 {offsets = [0, 0], sizes = [7, 64], strides = [1, 1]} : vector<67x128xf32> to vector<7x64xf32>
    %168 = arith.truncf %167 : vector<7x64xf32> to vector<7x64xbf16>
    %c0_98 = arith.constant 0 : index
    %c0_99 = arith.constant 0 : index
    %c0_100 = arith.constant 0 : index
    %169 = vector.load %arg8[%c0_98, %c0_99, %c0_100] : memref<1x49x64xbf16, #tpu.memory_space<vmem>>, vector<1x7x64xbf16>
    %170 = vector.shape_cast %169 : vector<1x7x64xbf16> to vector<7x64xbf16>
    %171 = vector.shape_cast %168 : vector<7x64xbf16> to vector<1x7x64xbf16>
    tpu.vector_store %arg8[%c0_98, %c0_99, %c0_100], %171 {strides = array<i32>} : memref<1x49x64xbf16, #tpu.memory_space<vmem>>, vector<1x7x64xbf16>,
    %172 = vector.extract_strided_slice %166 {offsets = [10, 0], sizes = [7, 64], strides = [1, 1]} : vector<67x128xf32> to vector<7x64xf32>
    %173 = arith.truncf %172 : vector<7x64xf32> to vector<7x64xbf16>
    %c0_101 = arith.constant 0 : index
    %c7_102 = arith.constant 7 : index
    %c0_103 = arith.constant 0 : index
    %174 = vector.load %arg8[%c0_101, %c7_102, %c0_103] : memref<1x49x64xbf16, #tpu.memory_space<vmem>>, vector<1x7x64xbf16>
    %175 = vector.shape_cast %174 : vector<1x7x64xbf16> to vector<7x64xbf16>
    %176 = vector.shape_cast %173 : vector<7x64xbf16> to vector<1x7x64xbf16>
    tpu.vector_store %arg8[%c0_101, %c7_102, %c0_103], %176 {strides = array<i32>} : memref<1x49x64xbf16, #tpu.memory_space<vmem>>, vector<1x7x64xbf16>,
    %177 = vector.extract_strided_slice %166 {offsets = [20, 0], sizes = [7, 64], strides = [1, 1]} : vector<67x128xf32> to vector<7x64xf32>
    %178 = arith.truncf %177 : vector<7x64xf32> to vector<7x64xbf16>
    %c0_104 = arith.constant 0 : index
    %c14_105 = arith.constant 14 : index
    %c0_106 = arith.constant 0 : index
    %179 = vector.load %arg8[%c0_104, %c14_105, %c0_106] : memref<1x49x64xbf16, #tpu.memory_space<vmem>>, vector<1x7x64xbf16>
    %180 = vector.shape_cast %179 : vector<1x7x64xbf16> to vector<7x64xbf16>
    %181 = vector.shape_cast %178 : vector<7x64xbf16> to vector<1x7x64xbf16>
    tpu.vector_store %arg8[%c0_104, %c14_105, %c0_106], %181 {strides = array<i32>} : memref<1x49x64xbf16, #tpu.memory_space<vmem>>, vector<1x7x64xbf16>,
    %182 = vector.extract_strided_slice %166 {offsets = [30, 0], sizes = [7, 64], strides = [1, 1]} : vector<67x128xf32> to vector<7x64xf32>
    %183 = arith.truncf %182 : vector<7x64xf32> to vector<7x64xbf16>
    %c0_107 = arith.constant 0 : index
    %c21 = arith.constant 21 : index
    %c0_108 = arith.constant 0 : index
    %184 = vector.load %arg8[%c0_107, %c21, %c0_108] : memref<1x49x64xbf16, #tpu.memory_space<vmem>>, vector<1x7x64xbf16>
    %185 = vector.shape_cast %184 : vector<1x7x64xbf16> to vector<7x64xbf16>
    %186 = vector.shape_cast %183 : vector<7x64xbf16> to vector<1x7x64xbf16>
    tpu.vector_store %arg8[%c0_107, %c21, %c0_108], %186 {strides = array<i32>} : memref<1x49x64xbf16, #tpu.memory_space<vmem>>, vector<1x7x64xbf16>,
    %187 = vector.extract_strided_slice %166 {offsets = [40, 0], sizes = [7, 64], strides = [1, 1]} : vector<67x128xf32> to vector<7x64xf32>
    %188 = arith.truncf %187 : vector<7x64xf32> to vector<7x64xbf16>
    %c0_109 = arith.constant 0 : index
    %c28 = arith.constant 28 : index
    %c0_110 = arith.constant 0 : index
    %189 = vector.load %arg8[%c0_109, %c28, %c0_110] : memref<1x49x64xbf16, #tpu.memory_space<vmem>>, vector<1x7x64xbf16>
    %190 = vector.shape_cast %189 : vector<1x7x64xbf16> to vector<7x64xbf16>
    %191 = vector.shape_cast %188 : vector<7x64xbf16> to vector<1x7x64xbf16>
    tpu.vector_store %arg8[%c0_109, %c28, %c0_110], %191 {strides = array<i32>} : memref<1x49x64xbf16, #tpu.memory_space<vmem>>, vector<1x7x64xbf16>,
    %192 = vector.extract_strided_slice %166 {offsets = [50, 0], sizes = [7, 64], strides = [1, 1]} : vector<67x128xf32> to vector<7x64xf32>
    %193 = arith.truncf %192 : vector<7x64xf32> to vector<7x64xbf16>
    %c0_111 = arith.constant 0 : index
    %c35 = arith.constant 35 : index
    %c0_112 = arith.constant 0 : index
    %194 = vector.load %arg8[%c0_111, %c35, %c0_112] : memref<1x49x64xbf16, #tpu.memory_space<vmem>>, vector<1x7x64xbf16>
    %195 = vector.shape_cast %194 : vector<1x7x64xbf16> to vector<7x64xbf16>
    %196 = vector.shape_cast %193 : vector<7x64xbf16> to vector<1x7x64xbf16>
    tpu.vector_store %arg8[%c0_111, %c35, %c0_112], %196 {strides = array<i32>} : memref<1x49x64xbf16, #tpu.memory_space<vmem>>, vector<1x7x64xbf16>,
    %197 = vector.extract_strided_slice %166 {offsets = [60, 0], sizes = [7, 64], strides = [1, 1]} : vector<67x128xf32> to vector<7x64xf32>
    %198 = arith.truncf %197 : vector<7x64xf32> to vector<7x64xbf16>
    %c0_113 = arith.constant 0 : index
    %c42 = arith.constant 42 : index
    %c0_114 = arith.constant 0 : index
    %199 = vector.load %arg8[%c0_113, %c42, %c0_114] : memref<1x49x64xbf16, #tpu.memory_space<vmem>>, vector<1x7x64xbf16>
    %200 = vector.shape_cast %199 : vector<1x7x64xbf16> to vector<7x64xbf16>
    %201 = vector.shape_cast %198 : vector<7x64xbf16> to vector<1x7x64xbf16>
    tpu.vector_store %arg8[%c0_113, %c42, %c0_114], %201 {strides = array<i32>} : memref<1x49x64xbf16, #tpu.memory_space<vmem>>, vector<1x7x64xbf16>,
    return
  }
  func.func @transform_0(%arg0: i32) -> (i32, i32, i32) {
    %c0_i32 = arith.constant 0 : i32
    %c0_i32_0 = arith.constant 0 : i32
    %c0_i32_1 = arith.constant 0 : i32
    return %arg0, %c0_i32, %c0_i32_0 : i32, i32, i32
  }
  func.func @transform_1(%arg0: i32) -> (i32, i32) {
    %c0_i32 = arith.constant 0 : i32
    %c0_i32_0 = arith.constant 0 : i32
    %c0_i32_1 = arith.constant 0 : i32
    return %c0_i32, %c0_i32_0 : i32, i32
  }
  func.func @transform_2(%arg0: i32) -> (i32, i32) {
    %c0_i32 = arith.constant 0 : i32
    %c0_i32_0 = arith.constant 0 : i32
    %c0_i32_1 = arith.constant 0 : i32
    return %c0_i32, %c0_i32_0 : i32, i32
  }
  func.func @transform_3(%arg0: i32) -> (i32, i32, i32) {
    %c0_i32 = arith.constant 0 : i32
    %c0_i32_0 = arith.constant 0 : i32
    %c0_i32_1 = arith.constant 0 : i32
    %c0_i32_2 = arith.constant 0 : i32
    return %c0_i32, %c0_i32_0, %c0_i32_1 : i32, i32, i32
  }
  func.func @transform_4(%arg0: i32) -> (i32, i32) {
    %c0_i32 = arith.constant 0 : i32
    %c0_i32_0 = arith.constant 0 : i32
    %c0_i32_1 = arith.constant 0 : i32
    return %c0_i32, %c0_i32_0 : i32, i32
  }
  func.func @transform_5(%arg0: i32) -> (i32, i32, i32) {
    %c0_i32 = arith.constant 0 : i32
    %c0_i32_0 = arith.constant 0 : i32
    %c0_i32_1 = arith.constant 0 : i32
    %c0_i32_2 = arith.constant 0 : i32
    return %c0_i32, %c0_i32_0, %c0_i32_1 : i32, i32, i32
  }
  func.func @transform_6(%arg0: i32) -> (i32, i32) {
    %c0_i32 = arith.constant 0 : i32
    %c0_i32_0 = arith.constant 0 : i32
    %c0_i32_1 = arith.constant 0 : i32
    return %c0_i32, %c0_i32_0 : i32, i32
  }
  func.func @transform_7(%arg0: i32) -> (i32, i32, i32) {
    %c0_i32 = arith.constant 0 : i32
    %c0_i32_0 = arith.constant 0 : i32
    %c0_i32_1 = arith.constant 0 : i32
    return %arg0, %c0_i32, %c0_i32_0 : i32, i32, i32
  }
}

module attributes {stable_mosaic.version = 11 : i64} {
  func.func @_fc_head_kernel(%arg0: i32, %arg1: memref<2x3136xbf16, #tpu.memory_space<vmem>>, %arg2: memref<3136x256xbf16, #tpu.memory_space<vmem>>, %arg3: memref<1x256xf32, #tpu.memory_space<vmem>>, %arg4: memref<256x128xbf16, #tpu.memory_space<vmem>>, %arg5: memref<1x2x128xf32, #tpu.memory_space<vmem>>) attributes {dimension_semantics = [#tpu.dimension_semantics<parallel>], iteration_bounds = array<i64: 2>, scalar_prefetch = 0 : i64, scratch_operands = 0 : i64, tpu.core_type = #tpu.core_type<tc>, window_params = [{pipeline_mode = #tpu.pipeline_mode<synchronous>, transform_indices = @transform_0, window_bounds = array<i64: 2, 3136>}, {transform_indices = @transform_1, window_bounds = array<i64: 3136, 256>}, {transform_indices = @transform_2, window_bounds = array<i64: 1, 256>}, {transform_indices = @transform_3, window_bounds = array<i64: 256, 128>}, {transform_indices = @transform_4, window_bounds = array<i64: 1, 2, 128>}]} {
    %c0 = arith.constant 0 : index
    %c0_0 = arith.constant 0 : index
    %0 = vector.load %arg1[%c0, %c0_0] : memref<2x3136xbf16, #tpu.memory_space<vmem>>, vector<2x3136xbf16>
    %c0_1 = arith.constant 0 : index
    %c0_2 = arith.constant 0 : index
    %1 = vector.load %arg2[%c0_1, %c0_2] : memref<3136x256xbf16, #tpu.memory_space<vmem>>, vector<3136x256xbf16>
    %cst = arith.constant dense<0.000000e+00> : vector<2x256xf32>
    %2 = tpu.matmul %0, %1, %cst {dimension_numbers = #tpu.dot_dimension_numbers<[1], [0], [0], [1], [0, 0, 1, 1], [], []>} : vector<2x3136xbf16>, vector<3136x256xbf16>, vector<2x256xf32> -> vector<2x256xf32>
    %c0_3 = arith.constant 0 : index
    %c0_4 = arith.constant 0 : index
    %3 = vector.load %arg3[%c0_3, %c0_4] : memref<1x256xf32, #tpu.memory_space<vmem>>, vector<1x256xf32>
    %4 = vector.broadcast %3 : vector<1x256xf32> to vector<2x256xf32>
    %5 = arith.addf %2, %4 : vector<2x256xf32>
    %cst_5 = arith.constant 0.000000e+00 : f32
    %6 = vector.broadcast %cst_5 : f32 to vector<2x256xf32>
    %7 = arith.maximumf %5, %6 : vector<2x256xf32>
    %8 = arith.truncf %7 : vector<2x256xf32> to vector<2x256xbf16>
    %c0_6 = arith.constant 0 : index
    %c0_7 = arith.constant 0 : index
    %9 = vector.load %arg4[%c0_6, %c0_7] : memref<256x128xbf16, #tpu.memory_space<vmem>>, vector<256x128xbf16>
    %cst_8 = arith.constant dense<0.000000e+00> : vector<2x128xf32>
    %10 = tpu.matmul %8, %9, %cst_8 {dimension_numbers = #tpu.dot_dimension_numbers<[1], [0], [0], [1], [0, 0, 1, 1], [], []>} : vector<2x256xbf16>, vector<256x128xbf16>, vector<2x128xf32> -> vector<2x128xf32>
    %c0_9 = arith.constant 0 : index
    %c0_10 = arith.constant 0 : index
    %c0_11 = arith.constant 0 : index
    %11 = vector.load %arg5[%c0_9, %c0_10, %c0_11] : memref<1x2x128xf32, #tpu.memory_space<vmem>>, vector<1x2x128xf32>
    %12 = vector.shape_cast %11 : vector<1x2x128xf32> to vector<2x128xf32>
    %13 = vector.shape_cast %10 : vector<2x128xf32> to vector<1x2x128xf32>
    tpu.vector_store %arg5[%c0_9, %c0_10, %c0_11], %13 {strides = array<i32>} : memref<1x2x128xf32, #tpu.memory_space<vmem>>, vector<1x2x128xf32>,
    return
  }
  func.func @transform_0(%arg0: i32) -> (i32, i32) {
    %c0_i32 = arith.constant 0 : i32
    %c0_i32_0 = arith.constant 0 : i32
    %c0_i32_1 = arith.constant 0 : i32
    return %c0_i32, %c0_i32_0 : i32, i32
  }
  func.func @transform_1(%arg0: i32) -> (i32, i32) {
    %c0_i32 = arith.constant 0 : i32
    %c0_i32_0 = arith.constant 0 : i32
    return %c0_i32, %arg0 : i32, i32
  }
  func.func @transform_2(%arg0: i32) -> (i32, i32) {
    %c0_i32 = arith.constant 0 : i32
    %c0_i32_0 = arith.constant 0 : i32
    return %c0_i32, %arg0 : i32, i32
  }
  func.func @transform_3(%arg0: i32) -> (i32, i32) {
    %c0_i32 = arith.constant 0 : i32
    %c0_i32_0 = arith.constant 0 : i32
    return %arg0, %c0_i32 : i32, i32
  }
  func.func @transform_4(%arg0: i32) -> (i32, i32, i32) {
    %c0_i32 = arith.constant 0 : i32
    %c0_i32_0 = arith.constant 0 : i32
    %c0_i32_1 = arith.constant 0 : i32
    return %arg0, %c0_i32, %c0_i32_0 : i32, i32, i32
  }
}

</mosaic_0001>

<bundles_post_ra>
// kernel: dqn_forward.3
= control target key start
LH: loop header
LB: loop body
LE: loop exit
PB: predicated region body
PF: predicated region fallthrough
CT: control target
= control target key end

     0   :  { %s6367_s15 = smov 0   ;;  %s6369_s16 = smov 0   ;;  %s7769_s0 = inlined_call_operand.vmem [shape: bf16[2,3136], index: 0, kind: input, shape index: {}]   ;;  %s7770_s1 = inlined_call_operand.vmem [shape: bf16[3136,512], index: 1, kind: input, shape index: {}]   ;;  %s7771_s2 = inlined_call_operand.vmem [shape: f32[1,512], index: 2, kind: input, shape index: {}]   ;;  %s7772_s3 = inlined_call_operand.vmem [shape: bf16[512,128], index: 3, kind: input, shape index: {}]   ;;  %s7773_s4 = inlined_call_operand.vmem [shape: f32[2,2,128], index: 4, kind: output, shape index: {}]  }
   0x1   :  { %s6371_s17 = smov 0  }
   0x2 LB: > { %s6383_s18 = sadd.s32 4294967295, %s6338_s17   ;;  %s6386_s19 = sadd.s32 1, %s6338_s17   ;;  %s6338_s17 = sphi %s6371_s17, %s7776_s17   ;;  %s6334_s16 = sphi %s6369_s16, %s7775_s16   ;;  %s6330_s15 = sphi %s6367_s15, %s7774_s15  }
   0x3   : > { %s39_s20 = ssub.s32 %s6338_s17, %s6386_s19  ;;  %s42_s21 = sadd.s32 1, %s6334_s16 }
   0x4   : > { %p40_p0 = scmp.eq.s32.totalorder %s39_s20, 0  ;;  %p49_p1 = scmp.ne.s32.totalorder %s6334_s16, %s6330_s15 }
   0x5   : > { %p50_p2 = scmp.eq.s32.totalorder %s6338_s17, 0  ;;  %p5188_p4 = scmp.ge.s32.totalorder %s6338_s17, 2 }
   0x6   : > { %s6395_s22 = scalar_select %p40_p0, %s6334_s16, %s42_s21  }
   0x7   : > { %p51_p3 = por %p50_p2, %p49_p1  ;;  %156 = sbr.rel (%p5188_p4) target bundleno = 214 (0xd6), region = 20 }
   0xe   : > { %159 = sbr.rel (!%p51_p3) target bundleno = 214 (0xd6), region = 24  ;;  %s161_s23 = sand.u32 (%p51_p3), 1, %s6334_s16  }
   0xf   : > { %s5608_s24 = sshll.u32 (%p51_p3), %s6338_s17, 3  ;;  %s5679_s25 = smul.u32 (%p51_p3), 3136, %s161_s23 }
  0x10   : > { %s6403_s28 = scalar_lea.vmem (%p51_p3), %s7770_s1, %s5608_s24 }
  0x11   : > { %v976_v0 = vld [vmem:[%s6403_s28] sm:$0xff] (%p51_p3)  ;;  %v978_v1 = vld [vmem:[%s6403_s28 + $0x10] sm:$0xff] (%p51_p3)  ;;  %s6411_s29 = scalar_lea.vmem (%p51_p3), [#allocation2], %s5679_s25 }
  0x12   : > { %v980_v2 = vld [vmem:[%s6403_s28 + $0x20] sm:$0xff] (%p51_p3)  ;;  %v982_v3 = vld [vmem:[%s6403_s28 + $0x30] sm:$0xff] (%p51_p3)  ;;  %977 = vst [vmem:[%s6411_s29] sm:$0xff] (%p51_p3), %v976_v0  ;;  %979 = vst [vmem:[%s6411_s29 + $0x8] sm:$0xff] (%p51_p3), %v978_v1 }
  0x13   : > { %v984_v4 = vld [vmem:[%s6403_s28 + $0x40] sm:$0xff] (%p51_p3)  ;;  %v986_v5 = vld [vmem:[%s6403_s28 + $0x50] sm:$0xff] (%p51_p3)  ;;  %981 = vst [vmem:[%s6411_s29 + $0x10] sm:$0xff] (%p51_p3), %v980_v2  ;;  %983 = vst [vmem:[%s6411_s29 + $0x18] sm:$0xff] (%p51_p3), %v982_v3 }
  0x14   : > { %985 = vst [vmem:[%s6411_s29 + $0x20] sm:$0xff] (%p51_p3), %v984_v4  ;;  %987 = vst [vmem:[%s6411_s29 + $0x28] sm:$0xff] (%p51_p3), %v986_v5  ;;  %v988_v6 = vld [vmem:[%s6403_s28 + $0x60] sm:$0xff] (%p51_p3)  ;;  %v990_v7 = vld [vmem:[%s6403_s28 + $0x70] sm:$0xff] (%p51_p3) }
  0x15   : > { %v992_v8 = vld [vmem:[%s6403_s28 + $0x80] sm:$0xff]  ;;  %989 = vst [vmem:[%s6411_s29 + $0x30] sm:$0xff] %v988_v6  ;;  %991 = vst [vmem:[%s6411_s29 + $0x38] sm:$0xff] %v990_v7  ;;  %v994_v9 = vld [vmem:[%s6403_s28 + $0x90] sm:$0xff] }
  0x16   : > { %993 = vst [vmem:[%s6411_s29 + $0x40] sm:$0xff] %v992_v8  ;;  %v996_v10 = vld [vmem:[%s6403_s28 + $0xa0] sm:$0xff]  ;;  %v998_v11 = vld [vmem:[%s6403_s28 + $0xb0] sm:$0xff]  ;;  %995 = vst [vmem:[%s6411_s29 + $0x48] sm:$0xff] %v994_v9 }
  0x17   : > { %997 = vst [vmem:[%s6411_s29 + $0x50] sm:$0xff] %v996_v10  ;;  %999 = vst [vmem:[%s6411_s29 + $0x58] sm:$0xff] %v998_v11  ;;  %v1000_v12 = vld [vmem:[%s6403_s28 + $0xc0] sm:$0xff]  ;;  %v1002_v13 = vld [vmem:[%s6403_s28 + $0xd0] sm:$0xff] }
  0x18   : > { %v1004_v14 = vld [vmem:[%s6403_s28 + $0xe0] sm:$0xff]  ;;  %1001 = vst [vmem:[%s6411_s29 + $0x60] sm:$0xff] %v1000_v12  ;;  %1003 = vst [vmem:[%s6411_s29 + $0x68] sm:$0xff] %v1002_v13  ;;  %v1006_v15 = vld [vmem:[%s6403_s28 + $0xf0] sm:$0xff] }
  0x19   : > { %1005 = vst [vmem:[%s6411_s29 + $0x70] sm:$0xff] %v1004_v14  ;;  %v1008_v16 = vld [vmem:[%s6403_s28 + $0x100] sm:$0xff]  ;;  %v1010_v17 = vld [vmem:[%s6403_s28 + $0x110] sm:$0xff]  ;;  %1007 = vst [vmem:[%s6411_s29 + $0x78] sm:$0xff] %v1006_v15 }
  0x1a   : > { %1009 = vst [vmem:[%s6411_s29 + $0x80] sm:$0xff] %v1008_v16  ;;  %1011 = vst [vmem:[%s6411_s29 + $0x88] sm:$0xff] %v1010_v17  ;;  %v1012_v18 = vld [vmem:[%s6403_s28 + $0x120] sm:$0xff]  ;;  %v1014_v19 = vld [vmem:[%s6403_s28 + $0x130] sm:$0xff] }
  0x1b   : > { %v1016_v20 = vld [vmem:[%s6403_s28 + $0x140] sm:$0xff]  ;;  %1013 = vst [vmem:[%s6411_s29 + $0x90] sm:$0xff] %v1012_v18  ;;  %1015 = vst [vmem:[%s6411_s29 + $0x98] sm:$0xff] %v1014_v19  ;;  %v1018_v21 = vld [vmem:[%s6403_s28 + $0x150] sm:$0xff] }
  0x1c   : > { %1017 = vst [vmem:[%s6411_s29 + $0xa0] sm:$0xff] %v1016_v20  ;;  %v1020_v22 = vld [vmem:[%s6403_s28 + $0x160] sm:$0xff]  ;;  %v1022_v23 = vld [vmem:[%s6403_s28 + $0x170] sm:$0xff]  ;;  %1019 = vst [vmem:[%s6411_s29 + $0xa8] sm:$0xff] %v1018_v21 }
  0x1d   : > { %1021 = vst [vmem:[%s6411_s29 + $0xb0] sm:$0xff] %v1020_v22  ;;  %1023 = vst [vmem:[%s6411_s29 + $0xb8] sm:$0xff] %v1022_v23  ;;  %v1024_v24 = vld [vmem:[%s6403_s28 + $0x180] sm:$0xff]  ;;  %v1026_v25 = vld [vmem:[%s6403_s28 + $0x190] sm:$0xff] }
  0x1e   : > { %v1028_v26 = vld [vmem:[%s6403_s28 + $0x1a0] sm:$0xff]  ;;  %1025 = vst [vmem:[%s6411_s29 + $0xc0] sm:$0xff] %v1024_v24  ;;  %1027 = vst [vmem:[%s6411_s29 + $0xc8] sm:$0xff] %v1026_v25  ;;  %v1030_v27 = vld [vmem:[%s6403_s28 + $0x1b0] sm:$0xff] }
  0x1f   : > { %1029 = vst [vmem:[%s6411_s29 + $0xd0] sm:$0xff] %v1028_v26  ;;  %v1032_v28 = vld [vmem:[%s6403_s28 + $0x1c0] sm:$0xff]  ;;  %v1034_v29 = vld [vmem:[%s6403_s28 + $0x1d0] sm:$0xff]  ;;  %1031 = vst [vmem:[%s6411_s29 + $0xd8] sm:$0xff] %v1030_v27 }
  0x20   : > { %1033 = vst [vmem:[%s6411_s29 + $0xe0] sm:$0xff] %v1032_v28  ;;  %1035 = vst [vmem:[%s6411_s29 + $0xe8] sm:$0xff] %v1034_v29  ;;  %v1036_v30 = vld [vmem:[%s6403_s28 + $0x1e0] sm:$0xff]  ;;  %v1038_v31 = vld [vmem:[%s6403_s28 + $0x1f0] sm:$0xff] }
  0x21   : > { %v1040_v32 = vld [vmem:[%s6403_s28 + $0x200] sm:$0xff]  ;;  %1037 = vst [vmem:[%s6411_s29 + $0xf0] sm:$0xff] %v1036_v30  ;;  %1039 = vst [vmem:[%s6411_s29 + $0xf8] sm:$0xff] %v1038_v31  ;;  %v1042_v33 = vld [vmem:[%s6403_s28 + $0x210] sm:$0xff] }
  0x22   : > { %1041 = vst [vmem:[%s6411_s29 + $0x100] sm:$0xff] %v1040_v32  ;;  %v1044_v34 = vld [vmem:[%s6403_s28 + $0x220] sm:$0xff]  ;;  %v1046_v35 = vld [vmem:[%s6403_s28 + $0x230] sm:$0xff]  ;;  %1043 = vst [vmem:[%s6411_s29 + $0x108] sm:$0xff] %v1042_v33 }
  0x23   : > { %1045 = vst [vmem:[%s6411_s29 + $0x110] sm:$0xff] %v1044_v34  ;;  %1047 = vst [vmem:[%s6411_s29 + $0x118] sm:$0xff] %v1046_v35  ;;  %v1048_v36 = vld [vmem:[%s6403_s28 + $0x240] sm:$0xff]  ;;  %v1050_v37 = vld [vmem:[%s6403_s28 + $0x250] sm:$0xff] }
  0x24   : > { %v1052_v38 = vld [vmem:[%s6403_s28 + $0x260] sm:$0xff]  ;;  %1049 = vst [vmem:[%s6411_s29 + $0x120] sm:$0xff] %v1048_v36  ;;  %1051 = vst [vmem:[%s6411_s29 + $0x128] sm:$0xff] %v1050_v37  ;;  %v1054_v39 = vld [vmem:[%s6403_s28 + $0x270] sm:$0xff] }
  0x25   : > { %1053 = vst [vmem:[%s6411_s29 + $0x130] sm:$0xff] %v1052_v38  ;;  %v1056_v40 = vld [vmem:[%s6403_s28 + $0x280] sm:$0xff]  ;;  %v1058_v41 = vld [vmem:[%s6403_s28 + $0x290] sm:$0xff]  ;;  %1055 = vst [vmem:[%s6411_s29 + $0x138] sm:$0xff] %v1054_v39 }
  0x26   : > { %1057 = vst [vmem:[%s6411_s29 + $0x140] sm:$0xff] %v1056_v40  ;;  %1059 = vst [vmem:[%s6411_s29 + $0x148] sm:$0xff] %v1058_v41  ;;  %v1060_v42 = vld [vmem:[%s6403_s28 + $0x2a0] sm:$0xff]  ;;  %v1062_v43 = vld [vmem:[%s6403_s28 + $0x2b0] sm:$0xff] }
  0x27   : > { %v1064_v44 = vld [vmem:[%s6403_s28 + $0x2c0] sm:$0xff]  ;;  %1061 = vst [vmem:[%s6411_s29 + $0x150] sm:$0xff] %v1060_v42  ;;  %1063 = vst [vmem:[%s6411_s29 + $0x158] sm:$0xff] %v1062_v43  ;;  %v1066_v45 = vld [vmem:[%s6403_s28 + $0x2d0] sm:$0xff] }
  0x28   : > { %1065 = vst [vmem:[%s6411_s29 + $0x160] sm:$0xff] %v1064_v44  ;;  %v1068_v46 = vld [vmem:[%s6403_s28 + $0x2e0] sm:$0xff]  ;;  %v1070_v47 = vld [vmem:[%s6403_s28 + $0x2f0] sm:$0xff]  ;;  %1067 = vst [vmem:[%s6411_s29 + $0x168] sm:$0xff] %v1066_v45 }
  0x29   : > { %1069 = vst [vmem:[%s6411_s29 + $0x170] sm:$0xff] %v1068_v46  ;;  %1071 = vst [vmem:[%s6411_s29 + $0x178] sm:$0xff] %v1070_v47  ;;  %v1072_v48 = vld [vmem:[%s6403_s28 + $0x300] sm:$0xff]  ;;  %v1074_v49 = vld [vmem:[%s6403_s28 + $0x310] sm:$0xff] }
  0x2a   : > { %v1076_v50 = vld [vmem:[%s6403_s28 + $0x320] sm:$0xff]  ;;  %1073 = vst [vmem:[%s6411_s29 + $0x180] sm:$0xff] %v1072_v48  ;;  %1075 = vst [vmem:[%s6411_s29 + $0x188] sm:$0xff] %v1074_v49  ;;  %v1078_v51 = vld [vmem:[%s6403_s28 + $0x330] sm:$0xff] }
  0x2b   : > { %1077 = vst [vmem:[%s6411_s29 + $0x190] sm:$0xff] %v1076_v50  ;;  %v1080_v52 = vld [vmem:[%s6403_s28 + $0x340] sm:$0xff]  ;;  %v1082_v53 = vld [vmem:[%s6403_s28 + $0x350] sm:$0xff]  ;;  %1079 = vst [vmem:[%s6411_s29 + $0x198] sm:$0xff] %v1078_v51 }
  0x2c   : > { %1081 = vst [vmem:[%s6411_s29 + $0x1a0] sm:$0xff] %v1080_v52  ;;  %1083 = vst [vmem:[%s6411_s29 + $0x1a8] sm:$0xff] %v1082_v53  ;;  %v1084_v54 = vld [vmem:[%s6403_s28 + $0x360] sm:$0xff]  ;;  %v1086_v55 = vld [vmem:[%s6403_s28 + $0x370] sm:$0xff] }
  0x2d   : > { %v1088_v56 = vld [vmem:[%s6403_s28 + $0x380] sm:$0xff]  ;;  %1085 = vst [vmem:[%s6411_s29 + $0x1b0] sm:$0xff] %v1084_v54  ;;  %1087 = vst [vmem:[%s6411_s29 + $0x1b8] sm:$0xff] %v1086_v55  ;;  %v1090_v57 = vld [vmem:[%s6403_s28 + $0x390] sm:$0xff] }
  0x2e   : > { %1089 = vst [vmem:[%s6411_s29 + $0x1c0] sm:$0xff] %v1088_v56  ;;  %v1092_v58 = vld [vmem:[%s6403_s28 + $0x3a0] sm:$0xff]  ;;  %v1094_v59 = vld [vmem:[%s6403_s28 + $0x3b0] sm:$0xff]  ;;  %1091 = vst [vmem:[%s6411_s29 + $0x1c8] sm:$0xff] %v1090_v57 }
  0x2f   : > { %1093 = vst [vmem:[%s6411_s29 + $0x1d0] sm:$0xff] %v1092_v58  ;;  %1095 = vst [vmem:[%s6411_s29 + $0x1d8] sm:$0xff] %v1094_v59  ;;  %v1096_v60 = vld [vmem:[%s6403_s28 + $0x3c0] sm:$0xff]  ;;  %v1098_v61 = vld [vmem:[%s6403_s28 + $0x3d0] sm:$0xff] }
  0x30   : > { %v1100_v62 = vld [vmem:[%s6403_s28 + $0x3e0] sm:$0xff]  ;;  %1097 = vst [vmem:[%s6411_s29 + $0x1e0] sm:$0xff] %v1096_v60  ;;  %1099 = vst [vmem:[%s6411_s29 + $0x1e8] sm:$0xff] %v1098_v61  ;;  %v1102_v63 = vld [vmem:[%s6403_s28 + $0x3f0] sm:$0xff] }
  0x31   : > { %1101 = vst [vmem:[%s6411_s29 + $0x1f0] sm:$0xff] %v1100_v62  ;;  %v1104_v0 = vld [vmem:[%s6403_s28 + $0x400] sm:$0xff]  ;;  %v1106_v1 = vld [vmem:[%s6403_s28 + $0x410] sm:$0xff]  ;;  %1103 = vst [vmem:[%s6411_s29 + $0x1f8] sm:$0xff] %v1102_v63 }
  0x32   : > { %1105 = vst [vmem:[%s6411_s29 + $0x200] sm:$0xff] %v1104_v0  ;;  %1107 = vst [vmem:[%s6411_s29 + $0x208] sm:$0xff] %v1106_v1  ;;  %v1108_v2 = vld [vmem:[%s6403_s28 + $0x420] sm:$0xff]  ;;  %v1110_v3 = vld [vmem:[%s6403_s28 + $0x430] sm:$0xff] }
  0x33   : > { %v1112_v4 = vld [vmem:[%s6403_s28 + $0x440] sm:$0xff]  ;;  %1109 = vst [vmem:[%s6411_s29 + $0x210] sm:$0xff] %v1108_v2  ;;  %1111 = vst [vmem:[%s6411_s29 + $0x218] sm:$0xff] %v1110_v3  ;;  %v1114_v5 = vld [vmem:[%s6403_s28 + $0x450] sm:$0xff] }
  0x34   : > { %1113 = vst [vmem:[%s6411_s29 + $0x220] sm:$0xff] %v1112_v4  ;;  %v1116_v6 = vld [vmem:[%s6403_s28 + $0x460] sm:$0xff]  ;;  %v1118_v7 = vld [vmem:[%s6403_s28 + $0x470] sm:$0xff]  ;;  %1115 = vst [vmem:[%s6411_s29 + $0x228] sm:$0xff] %v1114_v5 }
  0x35   : > { %1117 = vst [vmem:[%s6411_s29 + $0x230] sm:$0xff] %v1116_v6  ;;  %1119 = vst [vmem:[%s6411_s29 + $0x238] sm:$0xff] %v1118_v7  ;;  %v1120_v8 = vld [vmem:[%s6403_s28 + $0x480] sm:$0xff]  ;;  %v1122_v9 = vld [vmem:[%s6403_s28 + $0x490] sm:$0xff] }
  0x36   : > { %v1124_v10 = vld [vmem:[%s6403_s28 + $0x4a0] sm:$0xff]  ;;  %1121 = vst [vmem:[%s6411_s29 + $0x240] sm:$0xff] %v1120_v8  ;;  %1123 = vst [vmem:[%s6411_s29 + $0x248] sm:$0xff] %v1122_v9  ;;  %v1126_v11 = vld [vmem:[%s6403_s28 + $0x4b0] sm:$0xff] }
  0x37   : > { %1125 = vst [vmem:[%s6411_s29 + $0x250] sm:$0xff] %v1124_v10  ;;  %v1128_v12 = vld [vmem:[%s6403_s28 + $0x4c0] sm:$0xff]  ;;  %v1130_v13 = vld [vmem:[%s6403_s28 + $0x4d0] sm:$0xff]  ;;  %1127 = vst [vmem:[%s6411_s29 + $0x258] sm:$0xff] %v1126_v11 }
  0x38   : > { %1129 = vst [vmem:[%s6411_s29 + $0x260] sm:$0xff] %v1128_v12  ;;  %1131 = vst [vmem:[%s6411_s29 + $0x268] sm:$0xff] %v1130_v13  ;;  %v1132_v14 = vld [vmem:[%s6403_s28 + $0x4e0] sm:$0xff]  ;;  %v1134_v15 = vld [vmem:[%s6403_s28 + $0x4f0] sm:$0xff] }
  0x39   : > { %v1136_v16 = vld [vmem:[%s6403_s28 + $0x500] sm:$0xff]  ;;  %1133 = vst [vmem:[%s6411_s29 + $0x270] sm:$0xff] %v1132_v14  ;;  %1135 = vst [vmem:[%s6411_s29 + $0x278] sm:$0xff] %v1134_v15  ;;  %v1138_v17 = vld [vmem:[%s6403_s28 + $0x510] sm:$0xff] }
  0x3a   : > { %1137 = vst [vmem:[%s6411_s29 + $0x280] sm:$0xff] %v1136_v16  ;;  %v1140_v18 = vld [vmem:[%s6403_s28 + $0x520] sm:$0xff]  ;;  %v1142_v19 = vld [vmem:[%s6403_s28 + $0x530] sm:$0xff]  ;;  %1139 = vst [vmem:[%s6411_s29 + $0x288] sm:$0xff] %v1138_v17 }
  0x3b   : > { %1141 = vst [vmem:[%s6411_s29 + $0x290] sm:$0xff] %v1140_v18  ;;  %1143 = vst [vmem:[%s6411_s29 + $0x298] sm:$0xff] %v1142_v19  ;;  %v1144_v20 = vld [vmem:[%s6403_s28 + $0x540] sm:$0xff]  ;;  %v1146_v21 = vld [vmem:[%s6403_s28 + $0x550] sm:$0xff] }
  0x3c   : > { %v1148_v22 = vld [vmem:[%s6403_s28 + $0x560] sm:$0xff]  ;;  %1145 = vst [vmem:[%s6411_s29 + $0x2a0] sm:$0xff] %v1144_v20  ;;  %1147 = vst [vmem:[%s6411_s29 + $0x2a8] sm:$0xff] %v1146_v21  ;;  %v1150_v23 = vld [vmem:[%s6403_s28 + $0x570] sm:$0xff] }
  0x3d   : > { %1149 = vst [vmem:[%s6411_s29 + $0x2b0] sm:$0xff] %v1148_v22  ;;  %v1152_v24 = vld [vmem:[%s6403_s28 + $0x580] sm:$0xff]  ;;  %v1154_v25 = vld [vmem:[%s6403_s28 + $0x590] sm:$0xff]  ;;  %1151 = vst [vmem:[%s6411_s29 + $0x2b8] sm:$0xff] %v1150_v23 }
  0x3e   : > { %1153 = vst [vmem:[%s6411_s29 + $0x2c0] sm:$0xff] %v1152_v24  ;;  %1155 = vst [vmem:[%s6411_s29 + $0x2c8] sm:$0xff] %v1154_v25  ;;  %v1156_v26 = vld [vmem:[%s6403_s28 + $0x5a0] sm:$0xff]  ;;  %v1158_v27 = vld [vmem:[%s6403_s28 + $0x5b0] sm:$0xff] }
  0x3f   : > { %v1160_v28 = vld [vmem:[%s6403_s28 + $0x5c0] sm:$0xff]  ;;  %1157 = vst [vmem:[%s6411_s29 + $0x2d0] sm:$0xff] %v1156_v26  ;;  %1159 = vst [vmem:[%s6411_s29 + $0x2d8] sm:$0xff] %v1158_v27  ;;  %v1162_v29 = vld [vmem:[%s6403_s28 + $0x5d0] sm:$0xff] }
  0x40   : > { %1161 = vst [vmem:[%s6411_s29 + $0x2e0] sm:$0xff] %v1160_v28  ;;  %v1164_v30 = vld [vmem:[%s6403_s28 + $0x5e0] sm:$0xff]  ;;  %v1166_v31 = vld [vmem:[%s6403_s28 + $0x5f0] sm:$0xff]  ;;  %1163 = vst [vmem:[%s6411_s29 + $0x2e8] sm:$0xff] %v1162_v29 }
  0x41   : > { %1165 = vst [vmem:[%s6411_s29 + $0x2f0] sm:$0xff] %v1164_v30  ;;  %1167 = vst [vmem:[%s6411_s29 + $0x2f8] sm:$0xff] %v1166_v31  ;;  %v1168_v32 = vld [vmem:[%s6403_s28 + $0x600] sm:$0xff]  ;;  %v1170_v33 = vld [vmem:[%s6403_s28 + $0x610] sm:$0xff] }
  0x42   : > { %v1172_v34 = vld [vmem:[%s6403_s28 + $0x620] sm:$0xff]  ;;  %1169 = vst [vmem:[%s6411_s29 + $0x300] sm:$0xff] %v1168_v32  ;;  %1171 = vst [vmem:[%s6411_s29 + $0x308] sm:$0xff] %v1170_v33  ;;  %v1174_v35 = vld [vmem:[%s6403_s28 + $0x630] sm:$0xff] }
  0x43   : > { %1173 = vst [vmem:[%s6411_s29 + $0x310] sm:$0xff] %v1172_v34  ;;  %v1176_v36 = vld [vmem:[%s6403_s28 + $0x640] sm:$0xff]  ;;  %v1178_v37 = vld [vmem:[%s6403_s28 + $0x650] sm:$0xff]  ;;  %1175 = vst [vmem:[%s6411_s29 + $0x318] sm:$0xff] %v1174_v35 }
  0x44   : > { %1177 = vst [vmem:[%s6411_s29 + $0x320] sm:$0xff] %v1176_v36  ;;  %1179 = vst [vmem:[%s6411_s29 + $0x328] sm:$0xff] %v1178_v37  ;;  %v1180_v38 = vld [vmem:[%s6403_s28 + $0x660] sm:$0xff]  ;;  %v1182_v39 = vld [vmem:[%s6403_s28 + $0x670] sm:$0xff] }
  0x45   : > { %v1184_v40 = vld [vmem:[%s6403_s28 + $0x680] sm:$0xff]  ;;  %1181 = vst [vmem:[%s6411_s29 + $0x330] sm:$0xff] %v1180_v38  ;;  %1183 = vst [vmem:[%s6411_s29 + $0x338] sm:$0xff] %v1182_v39  ;;  %v1186_v41 = vld [vmem:[%s6403_s28 + $0x690] sm:$0xff] }
  0x46   : > { %1185 = vst [vmem:[%s6411_s29 + $0x340] sm:$0xff] %v1184_v40  ;;  %v1188_v42 = vld [vmem:[%s6403_s28 + $0x6a0] sm:$0xff]  ;;  %v1190_v43 = vld [vmem:[%s6403_s28 + $0x6b0] sm:$0xff]  ;;  %1187 = vst [vmem:[%s6411_s29 + $0x348] sm:$0xff] %v1186_v41 }
  0x47   : > { %1189 = vst [vmem:[%s6411_s29 + $0x350] sm:$0xff] %v1188_v42  ;;  %1191 = vst [vmem:[%s6411_s29 + $0x358] sm:$0xff] %v1190_v43  ;;  %v1192_v44 = vld [vmem:[%s6403_s28 + $0x6c0] sm:$0xff]  ;;  %v1194_v45 = vld [vmem:[%s6403_s28 + $0x6d0] sm:$0xff] }
  0x48   : > { %v1196_v46 = vld [vmem:[%s6403_s28 + $0x6e0] sm:$0xff]  ;;  %1193 = vst [vmem:[%s6411_s29 + $0x360] sm:$0xff] %v1192_v44  ;;  %1195 = vst [vmem:[%s6411_s29 + $0x368] sm:$0xff] %v1194_v45  ;;  %v1198_v47 = vld [vmem:[%s6403_s28 + $0x6f0] sm:$0xff] }
  0x49   : > { %1197 = vst [vmem:[%s6411_s29 + $0x370] sm:$0xff] %v1196_v46  ;;  %v1200_v48 = vld [vmem:[%s6403_s28 + $0x700] sm:$0xff]  ;;  %v1202_v49 = vld [vmem:[%s6403_s28 + $0x710] sm:$0xff]  ;;  %1199 = vst [vmem:[%s6411_s29 + $0x378] sm:$0xff] %v1198_v47 }
  0x4a   : > { %1201 = vst [vmem:[%s6411_s29 + $0x380] sm:$0xff] %v1200_v48  ;;  %1203 = vst [vmem:[%s6411_s29 + $0x388] sm:$0xff] %v1202_v49  ;;  %v1204_v50 = vld [vmem:[%s6403_s28 + $0x720] sm:$0xff]  ;;  %v1206_v51 = vld [vmem:[%s6403_s28 + $0x730] sm:$0xff] }
  0x4b   : > { %v1208_v52 = vld [vmem:[%s6403_s28 + $0x740] sm:$0xff]  ;;  %1205 = vst [vmem:[%s6411_s29 + $0x390] sm:$0xff] %v1204_v50  ;;  %1207 = vst [vmem:[%s6411_s29 + $0x398] sm:$0xff] %v1206_v51  ;;  %v1210_v53 = vld [vmem:[%s6403_s28 + $0x750] sm:$0xff] }
  0x4c   : > { %1209 = vst [vmem:[%s6411_s29 + $0x3a0] sm:$0xff] %v1208_v52  ;;  %v1212_v54 = vld [vmem:[%s6403_s28 + $0x760] sm:$0xff]  ;;  %v1214_v55 = vld [vmem:[%s6403_s28 + $0x770] sm:$0xff]  ;;  %1211 = vst [vmem:[%s6411_s29 + $0x3a8] sm:$0xff] %v1210_v53 }
  0x4d   : > { %1213 = vst [vmem:[%s6411_s29 + $0x3b0] sm:$0xff] %v1212_v54  ;;  %1215 = vst [vmem:[%s6411_s29 + $0x3b8] sm:$0xff] %v1214_v55  ;;  %v1216_v56 = vld [vmem:[%s6403_s28 + $0x780] sm:$0xff]  ;;  %v1218_v57 = vld [vmem:[%s6403_s28 + $0x790] sm:$0xff] }
  0x4e   : > { %v1220_v58 = vld [vmem:[%s6403_s28 + $0x7a0] sm:$0xff]  ;;  %1217 = vst [vmem:[%s6411_s29 + $0x3c0] sm:$0xff] %v1216_v56  ;;  %1219 = vst [vmem:[%s6411_s29 + $0x3c8] sm:$0xff] %v1218_v57  ;;  %v1222_v59 = vld [vmem:[%s6403_s28 + $0x7b0] sm:$0xff] }
  0x4f   : > { %1221 = vst [vmem:[%s6411_s29 + $0x3d0] sm:$0xff] %v1220_v58  ;;  %v1224_v60 = vld [vmem:[%s6403_s28 + $0x7c0] sm:$0xff]  ;;  %v1226_v61 = vld [vmem:[%s6403_s28 + $0x7d0] sm:$0xff]  ;;  %1223 = vst [vmem:[%s6411_s29 + $0x3d8] sm:$0xff] %v1222_v59 }
  0x50   : > { %1225 = vst [vmem:[%s6411_s29 + $0x3e0] sm:$0xff] %v1224_v60  ;;  %1227 = vst [vmem:[%s6411_s29 + $0x3e8] sm:$0xff] %v1226_v61  ;;  %v1228_v62 = vld [vmem:[%s6403_s28 + $0x7e0] sm:$0xff]  ;;  %v1230_v63 = vld [vmem:[%s6403_s28 + $0x7f0] sm:$0xff] }
  0x51   : > { %v1232_v0 = vld [vmem:[%s6403_s28 + $0x800] sm:$0xff]  ;;  %1229 = vst [vmem:[%s6411_s29 + $0x3f0] sm:$0xff] %v1228_v62  ;;  %1231 = vst [vmem:[%s6411_s29 + $0x3f8] sm:$0xff] %v1230_v63  ;;  %v1234_v1 = vld [vmem:[%s6403_s28 + $0x810] sm:$0xff] }
  0x52   : > { %1233 = vst [vmem:[%s6411_s29 + $0x400] sm:$0xff] %v1232_v0  ;;  %v1236_v2 = vld [vmem:[%s6403_s28 + $0x820] sm:$0xff]  ;;  %v1238_v3 = vld [vmem:[%s6403_s28 + $0x830] sm:$0xff]  ;;  %1235 = vst [vmem:[%s6411_s29 + $0x408] sm:$0xff] %v1234_v1 }
  0x53   : > { %1237 = vst [vmem:[%s6411_s29 + $0x410] sm:$0xff] %v1236_v2  ;;  %1239 = vst [vmem:[%s6411_s29 + $0x418] sm:$0xff] %v1238_v3  ;;  %v1240_v4 = vld [vmem:[%s6403_s28 + $0x840] sm:$0xff]  ;;  %v1242_v5 = vld [vmem:[%s6403_s28 + $0x850] sm:$0xff] }
  0x54   : > { %v1244_v6 = vld [vmem:[%s6403_s28 + $0x860] sm:$0xff]  ;;  %1241 = vst [vmem:[%s6411_s29 + $0x420] sm:$0xff] %v1240_v4  ;;  %1243 = vst [vmem:[%s6411_s29 + $0x428] sm:$0xff] %v1242_v5  ;;  %v1246_v7 = vld [vmem:[%s6403_s28 + $0x870] sm:$0xff] }
  0x55   : > { %1245 = vst [vmem:[%s6411_s29 + $0x430] sm:$0xff] %v1244_v6  ;;  %v1248_v8 = vld [vmem:[%s6403_s28 + $0x880] sm:$0xff]  ;;  %v1250_v9 = vld [vmem:[%s6403_s28 + $0x890] sm:$0xff]  ;;  %1247 = vst [vmem:[%s6411_s29 + $0x438] sm:$0xff] %v1246_v7 }
  0x56   : > { %1249 = vst [vmem:[%s6411_s29 + $0x440] sm:$0xff] %v1248_v8  ;;  %1251 = vst [vmem:[%s6411_s29 + $0x448] sm:$0xff] %v1250_v9  ;;  %v1252_v10 = vld [vmem:[%s6403_s28 + $0x8a0] sm:$0xff]  ;;  %v1254_v11 = vld [vmem:[%s6403_s28 + $0x8b0] sm:$0xff] }
  0x57   : > { %v1256_v12 = vld [vmem:[%s6403_s28 + $0x8c0] sm:$0xff]  ;;  %1253 = vst [vmem:[%s6411_s29 + $0x450] sm:$0xff] %v1252_v10  ;;  %1255 = vst [vmem:[%s6411_s29 + $0x458] sm:$0xff] %v1254_v11  ;;  %v1258_v13 = vld [vmem:[%s6403_s28 + $0x8d0] sm:$0xff] }
  0x58   : > { %1257 = vst [vmem:[%s6411_s29 + $0x460] sm:$0xff] %v1256_v12  ;;  %v1260_v14 = vld [vmem:[%s6403_s28 + $0x8e0] sm:$0xff]  ;;  %v1262_v15 = vld [vmem:[%s6403_s28 + $0x8f0] sm:$0xff]  ;;  %1259 = vst [vmem:[%s6411_s29 + $0x468] sm:$0xff] %v1258_v13 }
  0x59   : > { %1261 = vst [vmem:[%s6411_s29 + $0x470] sm:$0xff] %v1260_v14  ;;  %1263 = vst [vmem:[%s6411_s29 + $0x478] sm:$0xff] %v1262_v15  ;;  %v1264_v16 = vld [vmem:[%s6403_s28 + $0x900] sm:$0xff]  ;;  %v1266_v17 = vld [vmem:[%s6403_s28 + $0x910] sm:$0xff] }
  0x5a   : > { %v1268_v18 = vld [vmem:[%s6403_s28 + $0x920] sm:$0xff]  ;;  %1265 = vst [vmem:[%s6411_s29 + $0x480] sm:$0xff] %v1264_v16  ;;  %1267 = vst [vmem:[%s6411_s29 + $0x488] sm:$0xff] %v1266_v17  ;;  %v1270_v19 = vld [vmem:[%s6403_s28 + $0x930] sm:$0xff] }
  0x5b   : > { %1269 = vst [vmem:[%s6411_s29 + $0x490] sm:$0xff] %v1268_v18  ;;  %v1272_v20 = vld [vmem:[%s6403_s28 + $0x940] sm:$0xff]  ;;  %v1274_v21 = vld [vmem:[%s6403_s28 + $0x950] sm:$0xff]  ;;  %1271 = vst [vmem:[%s6411_s29 + $0x498] sm:$0xff] %v1270_v19 }
  0x5c   : > { %1273 = vst [vmem:[%s6411_s29 + $0x4a0] sm:$0xff] %v1272_v20  ;;  %1275 = vst [vmem:[%s6411_s29 + $0x4a8] sm:$0xff] %v1274_v21  ;;  %v1276_v22 = vld [vmem:[%s6403_s28 + $0x960] sm:$0xff]  ;;  %v1278_v23 = vld [vmem:[%s6403_s28 + $0x970] sm:$0xff] }
  0x5d   : > { %v1280_v24 = vld [vmem:[%s6403_s28 + $0x980] sm:$0xff]  ;;  %1277 = vst [vmem:[%s6411_s29 + $0x4b0] sm:$0xff] %v1276_v22  ;;  %1279 = vst [vmem:[%s6411_s29 + $0x4b8] sm:$0xff] %v1278_v23  ;;  %v1282_v25 = vld [vmem:[%s6403_s28 + $0x990] sm:$0xff] }
  0x5e   : > { %1281 = vst [vmem:[%s6411_s29 + $0x4c0] sm:$0xff] %v1280_v24  ;;  %v1284_v26 = vld [vmem:[%s6403_s28 + $0x9a0] sm:$0xff]  ;;  %v1286_v27 = vld [vmem:[%s6403_s28 + $0x9b0] sm:$0xff]  ;;  %1283 = vst [vmem:[%s6411_s29 + $0x4c8] sm:$0xff] %v1282_v25 }
  0x5f   : > { %1285 = vst [vmem:[%s6411_s29 + $0x4d0] sm:$0xff] %v1284_v26  ;;  %1287 = vst [vmem:[%s6411_s29 + $0x4d8] sm:$0xff] %v1286_v27  ;;  %v1288_v28 = vld [vmem:[%s6403_s28 + $0x9c0] sm:$0xff]  ;;  %v1290_v29 = vld [vmem:[%s6403_s28 + $0x9d0] sm:$0xff] }
  0x60   : > { %v1292_v30 = vld [vmem:[%s6403_s28 + $0x9e0] sm:$0xff]  ;;  %1289 = vst [vmem:[%s6411_s29 + $0x4e0] sm:$0xff] %v1288_v28  ;;  %1291 = vst [vmem:[%s6411_s29 + $0x4e8] sm:$0xff] %v1290_v29  ;;  %v1294_v31 = vld [vmem:[%s6403_s28 + $0x9f0] sm:$0xff] }
  0x61   : > { %1293 = vst [vmem:[%s6411_s29 + $0x4f0] sm:$0xff] %v1292_v30  ;;  %v1296_v32 = vld [vmem:[%s6403_s28 + $0xa00] sm:$0xff]  ;;  %v1298_v33 = vld [vmem:[%s6403_s28 + $0xa10] sm:$0xff]  ;;  %1295 = vst [vmem:[%s6411_s29 + $0x4f8] sm:$0xff] %v1294_v31 }
  0x62   : > { %1297 = vst [vmem:[%s6411_s29 + $0x500] sm:$0xff] %v1296_v32  ;;  %1299 = vst [vmem:[%s6411_s29 + $0x508] sm:$0xff] %v1298_v33  ;;  %v1300_v34 = vld [vmem:[%s6403_s28 + $0xa20] sm:$0xff]  ;;  %v1302_v35 = vld [vmem:[%s6403_s28 + $0xa30] sm:$0xff] }
  0x63   : > { %v1304_v36 = vld [vmem:[%s6403_s28 + $0xa40] sm:$0xff]  ;;  %1301 = vst [vmem:[%s6411_s29 + $0x510] sm:$0xff] %v1300_v34  ;;  %1303 = vst [vmem:[%s6411_s29 + $0x518] sm:$0xff] %v1302_v35  ;;  %v1306_v37 = vld [vmem:[%s6403_s28 + $0xa50] sm:$0xff] }
  0x64   : > { %1305 = vst [vmem:[%s6411_s29 + $0x520] sm:$0xff] %v1304_v36  ;;  %v1308_v38 = vld [vmem:[%s6403_s28 + $0xa60] sm:$0xff]  ;;  %v1310_v39 = vld [vmem:[%s6403_s28 + $0xa70] sm:$0xff]  ;;  %1307 = vst [vmem:[%s6411_s29 + $0x528] sm:$0xff] %v1306_v37 }
  0x65   : > { %1309 = vst [vmem:[%s6411_s29 + $0x530] sm:$0xff] %v1308_v38  ;;  %1311 = vst [vmem:[%s6411_s29 + $0x538] sm:$0xff] %v1310_v39  ;;  %v1312_v40 = vld [vmem:[%s6403_s28 + $0xa80] sm:$0xff]  ;;  %v1314_v41 = vld [vmem:[%s6403_s28 + $0xa90] sm:$0xff] }
  0x66   : > { %v1316_v42 = vld [vmem:[%s6403_s28 + $0xaa0] sm:$0xff]  ;;  %1313 = vst [vmem:[%s6411_s29 + $0x540] sm:$0xff] %v1312_v40  ;;  %1315 = vst [vmem:[%s6411_s29 + $0x548] sm:$0xff] %v1314_v41  ;;  %v1318_v43 = vld [vmem:[%s6403_s28 + $0xab0] sm:$0xff] }
  0x67   : > { %1317 = vst [vmem:[%s6411_s29 + $0x550] sm:$0xff] %v1316_v42  ;;  %v1320_v44 = vld [vmem:[%s6403_s28 + $0xac0] sm:$0xff]  ;;  %v1322_v45 = vld [vmem:[%s6403_s28 + $0xad0] sm:$0xff]  ;;  %1319 = vst [vmem:[%s6411_s29 + $0x558] sm:$0xff] %v1318_v43 }
  0x68   : > { %1321 = vst [vmem:[%s6411_s29 + $0x560] sm:$0xff] %v1320_v44  ;;  %1323 = vst [vmem:[%s6411_s29 + $0x568] sm:$0xff] %v1322_v45  ;;  %v1324_v46 = vld [vmem:[%s6403_s28 + $0xae0] sm:$0xff]  ;;  %v1326_v47 = vld [vmem:[%s6403_s28 + $0xaf0] sm:$0xff] }
  0x69   : > { %v1328_v48 = vld [vmem:[%s6403_s28 + $0xb00] sm:$0xff]  ;;  %1325 = vst [vmem:[%s6411_s29 + $0x570] sm:$0xff] %v1324_v46  ;;  %1327 = vst [vmem:[%s6411_s29 + $0x578] sm:$0xff] %v1326_v47  ;;  %v1330_v49 = vld [vmem:[%s6403_s28 + $0xb10] sm:$0xff] }
  0x6a   : > { %1329 = vst [vmem:[%s6411_s29 + $0x580] sm:$0xff] %v1328_v48  ;;  %v1332_v50 = vld [vmem:[%s6403_s28 + $0xb20] sm:$0xff]  ;;  %v1334_v51 = vld [vmem:[%s6403_s28 + $0xb30] sm:$0xff]  ;;  %1331 = vst [vmem:[%s6411_s29 + $0x588] sm:$0xff] %v1330_v49 }
  0x6b   : > { %1333 = vst [vmem:[%s6411_s29 + $0x590] sm:$0xff] %v1332_v50  ;;  %1335 = vst [vmem:[%s6411_s29 + $0x598] sm:$0xff] %v1334_v51  ;;  %v1336_v52 = vld [vmem:[%s6403_s28 + $0xb40] sm:$0xff]  ;;  %v1338_v53 = vld [vmem:[%s6403_s28 + $0xb50] sm:$0xff] }
  0x6c   : > { %v1340_v54 = vld [vmem:[%s6403_s28 + $0xb60] sm:$0xff]  ;;  %1337 = vst [vmem:[%s6411_s29 + $0x5a0] sm:$0xff] %v1336_v52  ;;  %1339 = vst [vmem:[%s6411_s29 + $0x5a8] sm:$0xff] %v1338_v53  ;;  %v1342_v55 = vld [vmem:[%s6403_s28 + $0xb70] sm:$0xff] }
  0x6d   : > { %1341 = vst [vmem:[%s6411_s29 + $0x5b0] sm:$0xff] %v1340_v54  ;;  %v1344_v56 = vld [vmem:[%s6403_s28 + $0xb80] sm:$0xff]  ;;  %v1346_v57 = vld [vmem:[%s6403_s28 + $0xb90] sm:$0xff]  ;;  %1343 = vst [vmem:[%s6411_s29 + $0x5b8] sm:$0xff] %v1342_v55 }
  0x6e   : > { %1345 = vst [vmem:[%s6411_s29 + $0x5c0] sm:$0xff] %v1344_v56  ;;  %1347 = vst [vmem:[%s6411_s29 + $0x5c8] sm:$0xff] %v1346_v57  ;;  %v1348_v58 = vld [vmem:[%s6403_s28 + $0xba0] sm:$0xff]  ;;  %v1350_v59 = vld [vmem:[%s6403_s28 + $0xbb0] sm:$0xff] }
  0x6f   : > { %v1352_v60 = vld [vmem:[%s6403_s28 + $0xbc0] sm:$0xff]  ;;  %1349 = vst [vmem:[%s6411_s29 + $0x5d0] sm:$0xff] %v1348_v58  ;;  %1351 = vst [vmem:[%s6411_s29 + $0x5d8] sm:$0xff] %v1350_v59  ;;  %v1354_v61 = vld [vmem:[%s6403_s28 + $0xbd0] sm:$0xff] }
  0x70   : > { %1353 = vst [vmem:[%s6411_s29 + $0x5e0] sm:$0xff] %v1352_v60  ;;  %v1356_v62 = vld [vmem:[%s6403_s28 + $0xbe0] sm:$0xff]  ;;  %v1358_v63 = vld [vmem:[%s6403_s28 + $0xbf0] sm:$0xff]  ;;  %1355 = vst [vmem:[%s6411_s29 + $0x5e8] sm:$0xff] %v1354_v61 }
  0x71   : > { %1357 = vst [vmem:[%s6411_s29 + $0x5f0] sm:$0xff] %v1356_v62  ;;  %1359 = vst [vmem:[%s6411_s29 + $0x5f8] sm:$0xff] %v1358_v63  ;;  %v1360_v0 = vld [vmem:[%s6403_s28 + $0xc00] sm:$0xff]  ;;  %v1362_v1 = vld [vmem:[%s6403_s28 + $0xc10] sm:$0xff] }
  0x72   : > { %v1364_v2 = vld [vmem:[%s6403_s28 + $0xc20] sm:$0xff]  ;;  %1361 = vst [vmem:[%s6411_s29 + $0x600] sm:$0xff] %v1360_v0  ;;  %1363 = vst [vmem:[%s6411_s29 + $0x608] sm:$0xff] %v1362_v1  ;;  %v1366_v3 = vld [vmem:[%s6403_s28 + $0xc30] sm:$0xff] }
  0x73   : > { %1365 = vst [vmem:[%s6411_s29 + $0x610] sm:$0xff] %v1364_v2  ;;  %v1368_v4 = vld [vmem:[%s6403_s28 + $0xc40] sm:$0xff]  ;;  %v1370_v5 = vld [vmem:[%s6403_s28 + $0xc50] sm:$0xff]  ;;  %1367 = vst [vmem:[%s6411_s29 + $0x618] sm:$0xff] %v1366_v3 }
  0x74   : > { %1369 = vst [vmem:[%s6411_s29 + $0x620] sm:$0xff] %v1368_v4  ;;  %1371 = vst [vmem:[%s6411_s29 + $0x628] sm:$0xff] %v1370_v5  ;;  %v1372_v6 = vld [vmem:[%s6403_s28 + $0xc60] sm:$0xff]  ;;  %v1374_v7 = vld [vmem:[%s6403_s28 + $0xc70] sm:$0xff] }
  0x75   : > { %v1376_v8 = vld [vmem:[%s6403_s28 + $0xc80] sm:$0xff]  ;;  %1373 = vst [vmem:[%s6411_s29 + $0x630] sm:$0xff] %v1372_v6  ;;  %1375 = vst [vmem:[%s6411_s29 + $0x638] sm:$0xff] %v1374_v7  ;;  %v1378_v9 = vld [vmem:[%s6403_s28 + $0xc90] sm:$0xff] }
  0x76   : > { %1377 = vst [vmem:[%s6411_s29 + $0x640] sm:$0xff] %v1376_v8  ;;  %v1380_v10 = vld [vmem:[%s6403_s28 + $0xca0] sm:$0xff]  ;;  %v1382_v11 = vld [vmem:[%s6403_s28 + $0xcb0] sm:$0xff]  ;;  %1379 = vst [vmem:[%s6411_s29 + $0x648] sm:$0xff] %v1378_v9 }
  0x77   : > { %1381 = vst [vmem:[%s6411_s29 + $0x650] sm:$0xff] %v1380_v10  ;;  %1383 = vst [vmem:[%s6411_s29 + $0x658] sm:$0xff] %v1382_v11  ;;  %v1384_v12 = vld [vmem:[%s6403_s28 + $0xcc0] sm:$0xff]  ;;  %v1386_v13 = vld [vmem:[%s6403_s28 + $0xcd0] sm:$0xff] }
  0x78   : > { %v1388_v14 = vld [vmem:[%s6403_s28 + $0xce0] sm:$0xff]  ;;  %1385 = vst [vmem:[%s6411_s29 + $0x660] sm:$0xff] %v1384_v12  ;;  %1387 = vst [vmem:[%s6411_s29 + $0x668] sm:$0xff] %v1386_v13  ;;  %v1390_v15 = vld [vmem:[%s6403_s28 + $0xcf0] sm:$0xff] }
  0x79   : > { %1389 = vst [vmem:[%s6411_s29 + $0x670] sm:$0xff] %v1388_v14  ;;  %v1392_v16 = vld [vmem:[%s6403_s28 + $0xd00] sm:$0xff]  ;;  %v1394_v17 = vld [vmem:[%s6403_s28 + $0xd10] sm:$0xff]  ;;  %1391 = vst [vmem:[%s6411_s29 + $0x678] sm:$0xff] %v1390_v15 }
  0x7a   : > { %1393 = vst [vmem:[%s6411_s29 + $0x680] sm:$0xff] %v1392_v16  ;;  %1395 = vst [vmem:[%s6411_s29 + $0x688] sm:$0xff] %v1394_v17  ;;  %v1396_v18 = vld [vmem:[%s6403_s28 + $0xd20] sm:$0xff]  ;;  %v1398_v19 = vld [vmem:[%s6403_s28 + $0xd30] sm:$0xff] }
  0x7b   : > { %v1400_v20 = vld [vmem:[%s6403_s28 + $0xd40] sm:$0xff]  ;;  %1397 = vst [vmem:[%s6411_s29 + $0x690] sm:$0xff] %v1396_v18  ;;  %1399 = vst [vmem:[%s6411_s29 + $0x698] sm:$0xff] %v1398_v19  ;;  %v1402_v21 = vld [vmem:[%s6403_s28 + $0xd50] sm:$0xff] }
  0x7c   : > { %1401 = vst [vmem:[%s6411_s29 + $0x6a0] sm:$0xff] %v1400_v20  ;;  %v1404_v22 = vld [vmem:[%s6403_s28 + $0xd60] sm:$0xff]  ;;  %v1406_v23 = vld [vmem:[%s6403_s28 + $0xd70] sm:$0xff]  ;;  %1403 = vst [vmem:[%s6411_s29 + $0x6a8] sm:$0xff] %v1402_v21 }
  0x7d   : > { %1405 = vst [vmem:[%s6411_s29 + $0x6b0] sm:$0xff] %v1404_v22  ;;  %1407 = vst [vmem:[%s6411_s29 + $0x6b8] sm:$0xff] %v1406_v23  ;;  %v1408_v24 = vld [vmem:[%s6403_s28 + $0xd80] sm:$0xff]  ;;  %v1410_v25 = vld [vmem:[%s6403_s28 + $0xd90] sm:$0xff] }
  0x7e   : > { %v1412_v26 = vld [vmem:[%s6403_s28 + $0xda0] sm:$0xff]  ;;  %1409 = vst [vmem:[%s6411_s29 + $0x6c0] sm:$0xff] %v1408_v24  ;;  %1411 = vst [vmem:[%s6411_s29 + $0x6c8] sm:$0xff] %v1410_v25  ;;  %v1414_v27 = vld [vmem:[%s6403_s28 + $0xdb0] sm:$0xff] }
  0x7f   : > { %1413 = vst [vmem:[%s6411_s29 + $0x6d0] sm:$0xff] %v1412_v26  ;;  %v1416_v28 = vld [vmem:[%s6403_s28 + $0xdc0] sm:$0xff]  ;;  %v1418_v29 = vld [vmem:[%s6403_s28 + $0xdd0] sm:$0xff]  ;;  %1415 = vst [vmem:[%s6411_s29 + $0x6d8] sm:$0xff] %v1414_v27 }
  0x80   : > { %1417 = vst [vmem:[%s6411_s29 + $0x6e0] sm:$0xff] %v1416_v28  ;;  %1419 = vst [vmem:[%s6411_s29 + $0x6e8] sm:$0xff] %v1418_v29  ;;  %v1420_v30 = vld [vmem:[%s6403_s28 + $0xde0] sm:$0xff]  ;;  %v1422_v31 = vld [vmem:[%s6403_s28 + $0xdf0] sm:$0xff] }
  0x81   : > { %v1424_v32 = vld [vmem:[%s6403_s28 + $0xe00] sm:$0xff]  ;;  %1421 = vst [vmem:[%s6411_s29 + $0x6f0] sm:$0xff] %v1420_v30  ;;  %1423 = vst [vmem:[%s6411_s29 + $0x6f8] sm:$0xff] %v1422_v31  ;;  %v1426_v33 = vld [vmem:[%s6403_s28 + $0xe10] sm:$0xff] }
  0x82   : > { %1425 = vst [vmem:[%s6411_s29 + $0x700] sm:$0xff] %v1424_v32  ;;  %v1428_v34 = vld [vmem:[%s6403_s28 + $0xe20] sm:$0xff]  ;;  %v1430_v35 = vld [vmem:[%s6403_s28 + $0xe30] sm:$0xff]  ;;  %1427 = vst [vmem:[%s6411_s29 + $0x708] sm:$0xff] %v1426_v33 }
  0x83   : > { %1429 = vst [vmem:[%s6411_s29 + $0x710] sm:$0xff] %v1428_v34  ;;  %1431 = vst [vmem:[%s6411_s29 + $0x718] sm:$0xff] %v1430_v35  ;;  %v1432_v36 = vld [vmem:[%s6403_s28 + $0xe40] sm:$0xff]  ;;  %v1434_v37 = vld [vmem:[%s6403_s28 + $0xe50] sm:$0xff] }
  0x84   : > { %v1436_v38 = vld [vmem:[%s6403_s28 + $0xe60] sm:$0xff]  ;;  %1433 = vst [vmem:[%s6411_s29 + $0x720] sm:$0xff] %v1432_v36  ;;  %1435 = vst [vmem:[%s6411_s29 + $0x728] sm:$0xff] %v1434_v37  ;;  %v1438_v39 = vld [vmem:[%s6403_s28 + $0xe70] sm:$0xff] }
  0x85   : > { %1437 = vst [vmem:[%s6411_s29 + $0x730] sm:$0xff] %v1436_v38  ;;  %v1440_v40 = vld [vmem:[%s6403_s28 + $0xe80] sm:$0xff]  ;;  %v1442_v41 = vld [vmem:[%s6403_s28 + $0xe90] sm:$0xff]  ;;  %1439 = vst [vmem:[%s6411_s29 + $0x738] sm:$0xff] %v1438_v39 }
  0x86   : > { %1441 = vst [vmem:[%s6411_s29 + $0x740] sm:$0xff] %v1440_v40  ;;  %1443 = vst [vmem:[%s6411_s29 + $0x748] sm:$0xff] %v1442_v41  ;;  %v1444_v42 = vld [vmem:[%s6403_s28 + $0xea0] sm:$0xff]  ;;  %v1446_v43 = vld [vmem:[%s6403_s28 + $0xeb0] sm:$0xff] }
  0x87   : > { %v1448_v44 = vld [vmem:[%s6403_s28 + $0xec0] sm:$0xff]  ;;  %1445 = vst [vmem:[%s6411_s29 + $0x750] sm:$0xff] %v1444_v42  ;;  %1447 = vst [vmem:[%s6411_s29 + $0x758] sm:$0xff] %v1446_v43  ;;  %v1450_v45 = vld [vmem:[%s6403_s28 + $0xed0] sm:$0xff] }
  0x88   : > { %1449 = vst [vmem:[%s6411_s29 + $0x760] sm:$0xff] %v1448_v44  ;;  %v1452_v46 = vld [vmem:[%s6403_s28 + $0xee0] sm:$0xff]  ;;  %v1454_v47 = vld [vmem:[%s6403_s28 + $0xef0] sm:$0xff]  ;;  %1451 = vst [vmem:[%s6411_s29 + $0x768] sm:$0xff] %v1450_v45 }
  0x89   : > { %1453 = vst [vmem:[%s6411_s29 + $0x770] sm:$0xff] %v1452_v46  ;;  %1455 = vst [vmem:[%s6411_s29 + $0x778] sm:$0xff] %v1454_v47  ;;  %v1456_v48 = vld [vmem:[%s6403_s28 + $0xf00] sm:$0xff]  ;;  %v1458_v49 = vld [vmem:[%s6403_s28 + $0xf10] sm:$0xff] }
  0x8a   : > { %v1460_v50 = vld [vmem:[%s6403_s28 + $0xf20] sm:$0xff]  ;;  %1457 = vst [vmem:[%s6411_s29 + $0x780] sm:$0xff] %v1456_v48  ;;  %1459 = vst [vmem:[%s6411_s29 + $0x788] sm:$0xff] %v1458_v49  ;;  %v1462_v51 = vld [vmem:[%s6403_s28 + $0xf30] sm:$0xff] }
  0x8b   : > { %1461 = vst [vmem:[%s6411_s29 + $0x790] sm:$0xff] %v1460_v50  ;;  %v1464_v52 = vld [vmem:[%s6403_s28 + $0xf40] sm:$0xff]  ;;  %v1466_v53 = vld [vmem:[%s6403_s28 + $0xf50] sm:$0xff]  ;;  %1463 = vst [vmem:[%s6411_s29 + $0x798] sm:$0xff] %v1462_v51 }
  0x8c   : > { %1465 = vst [vmem:[%s6411_s29 + $0x7a0] sm:$0xff] %v1464_v52  ;;  %1467 = vst [vmem:[%s6411_s29 + $0x7a8] sm:$0xff] %v1466_v53  ;;  %v1468_v54 = vld [vmem:[%s6403_s28 + $0xf60] sm:$0xff]  ;;  %v1470_v55 = vld [vmem:[%s6403_s28 + $0xf70] sm:$0xff] }
  0x8d   : > { %v1472_v56 = vld [vmem:[%s6403_s28 + $0xf80] sm:$0xff]  ;;  %1469 = vst [vmem:[%s6411_s29 + $0x7b0] sm:$0xff] %v1468_v54  ;;  %1471 = vst [vmem:[%s6411_s29 + $0x7b8] sm:$0xff] %v1470_v55  ;;  %v1474_v57 = vld [vmem:[%s6403_s28 + $0xf90] sm:$0xff] }
  0x8e   : > { %1473 = vst [vmem:[%s6411_s29 + $0x7c0] sm:$0xff] %v1472_v56  ;;  %v1476_v58 = vld [vmem:[%s6403_s28 + $0xfa0] sm:$0xff]  ;;  %v1478_v59 = vld [vmem:[%s6403_s28 + $0xfb0] sm:$0xff]  ;;  %1475 = vst [vmem:[%s6411_s29 + $0x7c8] sm:$0xff] %v1474_v57 }
  0x8f   : > { %1477 = vst [vmem:[%s6411_s29 + $0x7d0] sm:$0xff] %v1476_v58  ;;  %1479 = vst [vmem:[%s6411_s29 + $0x7d8] sm:$0xff] %v1478_v59  ;;  %v1480_v60 = vld [vmem:[%s6403_s28 + $0xfc0] sm:$0xff]  ;;  %v1482_v61 = vld [vmem:[%s6403_s28 + $0xfd0] sm:$0xff] }
  0x90   : > { %v1484_v62 = vld [vmem:[%s6403_s28 + $0xfe0] sm:$0xff]  ;;  %1481 = vst [vmem:[%s6411_s29 + $0x7e0] sm:$0xff] %v1480_v60  ;;  %1483 = vst [vmem:[%s6411_s29 + $0x7e8] sm:$0xff] %v1482_v61  ;;  %v1486_v63 = vld [vmem:[%s6403_s28 + $0xff0] sm:$0xff] }
  0x91   : > { %1485 = vst [vmem:[%s6411_s29 + $0x7f0] sm:$0xff] %v1484_v62  ;;  %v1488_v0 = vld [vmem:[%s6403_s28 + $0x1000] sm:$0xff]  ;;  %v1490_v1 = vld [vmem:[%s6403_s28 + $0x1010] sm:$0xff]  ;;  %1487 = vst [vmem:[%s6411_s29 + $0x7f8] sm:$0xff] %v1486_v63 }
  0x92   : > { %1489 = vst [vmem:[%s6411_s29 + $0x800] sm:$0xff] %v1488_v0  ;;  %1491 = vst [vmem:[%s6411_s29 + $0x808] sm:$0xff] %v1490_v1  ;;  %v1492_v2 = vld [vmem:[%s6403_s28 + $0x1020] sm:$0xff]  ;;  %v1494_v3 = vld [vmem:[%s6403_s28 + $0x1030] sm:$0xff] }
  0x93   : > { %v1496_v4 = vld [vmem:[%s6403_s28 + $0x1040] sm:$0xff]  ;;  %1493 = vst [vmem:[%s6411_s29 + $0x810] sm:$0xff] %v1492_v2  ;;  %1495 = vst [vmem:[%s6411_s29 + $0x818] sm:$0xff] %v1494_v3  ;;  %v1498_v5 = vld [vmem:[%s6403_s28 + $0x1050] sm:$0xff] }
  0x94   : > { %1497 = vst [vmem:[%s6411_s29 + $0x820] sm:$0xff] %v1496_v4  ;;  %v1500_v6 = vld [vmem:[%s6403_s28 + $0x1060] sm:$0xff]  ;;  %v1502_v7 = vld [vmem:[%s6403_s28 + $0x1070] sm:$0xff]  ;;  %1499 = vst [vmem:[%s6411_s29 + $0x828] sm:$0xff] %v1498_v5 }
  0x95   : > { %1501 = vst [vmem:[%s6411_s29 + $0x830] sm:$0xff] %v1500_v6  ;;  %1503 = vst [vmem:[%s6411_s29 + $0x838] sm:$0xff] %v1502_v7  ;;  %v1504_v8 = vld [vmem:[%s6403_s28 + $0x1080] sm:$0xff]  ;;  %v1506_v9 = vld [vmem:[%s6403_s28 + $0x1090] sm:$0xff] }
  0x96   : > { %v1508_v10 = vld [vmem:[%s6403_s28 + $0x10a0] sm:$0xff]  ;;  %1505 = vst [vmem:[%s6411_s29 + $0x840] sm:$0xff] %v1504_v8  ;;  %1507 = vst [vmem:[%s6411_s29 + $0x848] sm:$0xff] %v1506_v9  ;;  %v1510_v11 = vld [vmem:[%s6403_s28 + $0x10b0] sm:$0xff] }
  0x97   : > { %1509 = vst [vmem:[%s6411_s29 + $0x850] sm:$0xff] %v1508_v10  ;;  %v1512_v12 = vld [vmem:[%s6403_s28 + $0x10c0] sm:$0xff]  ;;  %v1514_v13 = vld [vmem:[%s6403_s28 + $0x10d0] sm:$0xff]  ;;  %1511 = vst [vmem:[%s6411_s29 + $0x858] sm:$0xff] %v1510_v11 }
  0x98   : > { %1513 = vst [vmem:[%s6411_s29 + $0x860] sm:$0xff] %v1512_v12  ;;  %1515 = vst [vmem:[%s6411_s29 + $0x868] sm:$0xff] %v1514_v13  ;;  %v1516_v14 = vld [vmem:[%s6403_s28 + $0x10e0] sm:$0xff]  ;;  %v1518_v15 = vld [vmem:[%s6403_s28 + $0x10f0] sm:$0xff] }
  0x99   : > { %v1520_v16 = vld [vmem:[%s6403_s28 + $0x1100] sm:$0xff]  ;;  %1517 = vst [vmem:[%s6411_s29 + $0x870] sm:$0xff] %v1516_v14  ;;  %1519 = vst [vmem:[%s6411_s29 + $0x878] sm:$0xff] %v1518_v15  ;;  %v1522_v17 = vld [vmem:[%s6403_s28 + $0x1110] sm:$0xff] }
  0x9a   : > { %1521 = vst [vmem:[%s6411_s29 + $0x880] sm:$0xff] %v1520_v16  ;;  %v1524_v18 = vld [vmem:[%s6403_s28 + $0x1120] sm:$0xff]  ;;  %v1526_v19 = vld [vmem:[%s6403_s28 + $0x1130] sm:$0xff]  ;;  %1523 = vst [vmem:[%s6411_s29 + $0x888] sm:$0xff] %v1522_v17 }
  0x9b   : > { %1525 = vst [vmem:[%s6411_s29 + $0x890] sm:$0xff] %v1524_v18  ;;  %1527 = vst [vmem:[%s6411_s29 + $0x898] sm:$0xff] %v1526_v19  ;;  %v1528_v20 = vld [vmem:[%s6403_s28 + $0x1140] sm:$0xff]  ;;  %v1530_v21 = vld [vmem:[%s6403_s28 + $0x1150] sm:$0xff] }
  0x9c   : > { %v1532_v22 = vld [vmem:[%s6403_s28 + $0x1160] sm:$0xff]  ;;  %1529 = vst [vmem:[%s6411_s29 + $0x8a0] sm:$0xff] %v1528_v20  ;;  %1531 = vst [vmem:[%s6411_s29 + $0x8a8] sm:$0xff] %v1530_v21  ;;  %v1534_v23 = vld [vmem:[%s6403_s28 + $0x1170] sm:$0xff] }
  0x9d   : > { %1533 = vst [vmem:[%s6411_s29 + $0x8b0] sm:$0xff] %v1532_v22  ;;  %v1536_v24 = vld [vmem:[%s6403_s28 + $0x1180] sm:$0xff]  ;;  %v1538_v25 = vld [vmem:[%s6403_s28 + $0x1190] sm:$0xff]  ;;  %1535 = vst [vmem:[%s6411_s29 + $0x8b8] sm:$0xff] %v1534_v23 }
  0x9e   : > { %1537 = vst [vmem:[%s6411_s29 + $0x8c0] sm:$0xff] %v1536_v24  ;;  %1539 = vst [vmem:[%s6411_s29 + $0x8c8] sm:$0xff] %v1538_v25  ;;  %v1540_v26 = vld [vmem:[%s6403_s28 + $0x11a0] sm:$0xff]  ;;  %v1542_v27 = vld [vmem:[%s6403_s28 + $0x11b0] sm:$0xff] }
  0x9f   : > { %v1544_v28 = vld [vmem:[%s6403_s28 + $0x11c0] sm:$0xff]  ;;  %1541 = vst [vmem:[%s6411_s29 + $0x8d0] sm:$0xff] %v1540_v26  ;;  %1543 = vst [vmem:[%s6411_s29 + $0x8d8] sm:$0xff] %v1542_v27  ;;  %v1546_v29 = vld [vmem:[%s6403_s28 + $0x11d0] sm:$0xff] }
  0xa0   : > { %1545 = vst [vmem:[%s6411_s29 + $0x8e0] sm:$0xff] %v1544_v28  ;;  %v1548_v30 = vld [vmem:[%s6403_s28 + $0x11e0] sm:$0xff]  ;;  %v1550_v31 = vld [vmem:[%s6403_s28 + $0x11f0] sm:$0xff]  ;;  %1547 = vst [vmem:[%s6411_s29 + $0x8e8] sm:$0xff] %v1546_v29 }
  0xa1   : > { %1549 = vst [vmem:[%s6411_s29 + $0x8f0] sm:$0xff] %v1548_v30  ;;  %1551 = vst [vmem:[%s6411_s29 + $0x8f8] sm:$0xff] %v1550_v31  ;;  %v1552_v32 = vld [vmem:[%s6403_s28 + $0x1200] sm:$0xff]  ;;  %v1554_v33 = vld [vmem:[%s6403_s28 + $0x1210] sm:$0xff] }
  0xa2   : > { %v1556_v34 = vld [vmem:[%s6403_s28 + $0x1220] sm:$0xff]  ;;  %1553 = vst [vmem:[%s6411_s29 + $0x900] sm:$0xff] %v1552_v32  ;;  %1555 = vst [vmem:[%s6411_s29 + $0x908] sm:$0xff] %v1554_v33  ;;  %v1558_v35 = vld [vmem:[%s6403_s28 + $0x1230] sm:$0xff] }
  0xa3   : > { %1557 = vst [vmem:[%s6411_s29 + $0x910] sm:$0xff] %v1556_v34  ;;  %v1560_v36 = vld [vmem:[%s6403_s28 + $0x1240] sm:$0xff]  ;;  %v1562_v37 = vld [vmem:[%s6403_s28 + $0x1250] sm:$0xff]  ;;  %1559 = vst [vmem:[%s6411_s29 + $0x918] sm:$0xff] %v1558_v35 }
  0xa4   : > { %1561 = vst [vmem:[%s6411_s29 + $0x920] sm:$0xff] %v1560_v36  ;;  %1563 = vst [vmem:[%s6411_s29 + $0x928] sm:$0xff] %v1562_v37  ;;  %v1564_v38 = vld [vmem:[%s6403_s28 + $0x1260] sm:$0xff]  ;;  %v1566_v39 = vld [vmem:[%s6403_s28 + $0x1270] sm:$0xff] }
  0xa5   : > { %v1568_v40 = vld [vmem:[%s6403_s28 + $0x1280] sm:$0xff]  ;;  %1565 = vst [vmem:[%s6411_s29 + $0x930] sm:$0xff] %v1564_v38  ;;  %1567 = vst [vmem:[%s6411_s29 + $0x938] sm:$0xff] %v1566_v39  ;;  %v1570_v41 = vld [vmem:[%s6403_s28 + $0x1290] sm:$0xff] }
  0xa6   : > { %1569 = vst [vmem:[%s6411_s29 + $0x940] sm:$0xff] %v1568_v40  ;;  %v1572_v42 = vld [vmem:[%s6403_s28 + $0x12a0] sm:$0xff]  ;;  %v1574_v43 = vld [vmem:[%s6403_s28 + $0x12b0] sm:$0xff]  ;;  %1571 = vst [vmem:[%s6411_s29 + $0x948] sm:$0xff] %v1570_v41 }
  0xa7   : > { %1573 = vst [vmem:[%s6411_s29 + $0x950] sm:$0xff] %v1572_v42  ;;  %1575 = vst [vmem:[%s6411_s29 + $0x958] sm:$0xff] %v1574_v43  ;;  %v1576_v44 = vld [vmem:[%s6403_s28 + $0x12c0] sm:$0xff]  ;;  %v1578_v45 = vld [vmem:[%s6403_s28 + $0x12d0] sm:$0xff] }
  0xa8   : > { %v1580_v46 = vld [vmem:[%s6403_s28 + $0x12e0] sm:$0xff]  ;;  %1577 = vst [vmem:[%s6411_s29 + $0x960] sm:$0xff] %v1576_v44  ;;  %1579 = vst [vmem:[%s6411_s29 + $0x968] sm:$0xff] %v1578_v45  ;;  %v1582_v47 = vld [vmem:[%s6403_s28 + $0x12f0] sm:$0xff] }
  0xa9   : > { %1581 = vst [vmem:[%s6411_s29 + $0x970] sm:$0xff] %v1580_v46  ;;  %v1584_v48 = vld [vmem:[%s6403_s28 + $0x1300] sm:$0xff]  ;;  %v1586_v49 = vld [vmem:[%s6403_s28 + $0x1310] sm:$0xff]  ;;  %1583 = vst [vmem:[%s6411_s29 + $0x978] sm:$0xff] %v1582_v47 }
  0xaa   : > { %1585 = vst [vmem:[%s6411_s29 + $0x980] sm:$0xff] %v1584_v48  ;;  %1587 = vst [vmem:[%s6411_s29 + $0x988] sm:$0xff] %v1586_v49  ;;  %v1588_v50 = vld [vmem:[%s6403_s28 + $0x1320] sm:$0xff]  ;;  %v1590_v51 = vld [vmem:[%s6403_s28 + $0x1330] sm:$0xff] }
  0xab   : > { %v1592_v52 = vld [vmem:[%s6403_s28 + $0x1340] sm:$0xff]  ;;  %1589 = vst [vmem:[%s6411_s29 + $0x990] sm:$0xff] %v1588_v50  ;;  %1591 = vst [vmem:[%s6411_s29 + $0x998] sm:$0xff] %v1590_v51  ;;  %v1594_v53 = vld [vmem:[%s6403_s28 + $0x1350] sm:$0xff] }
  0xac   : > { %1593 = vst [vmem:[%s6411_s29 + $0x9a0] sm:$0xff] %v1592_v52  ;;  %v1596_v54 = vld [vmem:[%s6403_s28 + $0x1360] sm:$0xff]  ;;  %v1598_v55 = vld [vmem:[%s6403_s28 + $0x1370] sm:$0xff]  ;;  %1595 = vst [vmem:[%s6411_s29 + $0x9a8] sm:$0xff] %v1594_v53 }
  0xad   : > { %1597 = vst [vmem:[%s6411_s29 + $0x9b0] sm:$0xff] %v1596_v54  ;;  %1599 = vst [vmem:[%s6411_s29 + $0x9b8] sm:$0xff] %v1598_v55  ;;  %v1600_v56 = vld [vmem:[%s6403_s28 + $0x1380] sm:$0xff]  ;;  %v1602_v57 = vld [vmem:[%s6403_s28 + $0x1390] sm:$0xff] }
  0xae   : > { %v1604_v58 = vld [vmem:[%s6403_s28 + $0x13a0] sm:$0xff]  ;;  %1601 = vst [vmem:[%s6411_s29 + $0x9c0] sm:$0xff] %v1600_v56  ;;  %1603 = vst [vmem:[%s6411_s29 + $0x9c8] sm:$0xff] %v1602_v57  ;;  %v1606_v59 = vld [vmem:[%s6403_s28 + $0x13b0] sm:$0xff] }
  0xaf   : > { %1605 = vst [vmem:[%s6411_s29 + $0x9d0] sm:$0xff] %v1604_v58  ;;  %v1608_v60 = vld [vmem:[%s6403_s28 + $0x13c0] sm:$0xff]  ;;  %v1610_v61 = vld [vmem:[%s6403_s28 + $0x13d0] sm:$0xff]  ;;  %1607 = vst [vmem:[%s6411_s29 + $0x9d8] sm:$0xff] %v1606_v59 }
  0xb0   : > { %1609 = vst [vmem:[%s6411_s29 + $0x9e0] sm:$0xff] %v1608_v60  ;;  %1611 = vst [vmem:[%s6411_s29 + $0x9e8] sm:$0xff] %v1610_v61  ;;  %v1612_v62 = vld [vmem:[%s6403_s28 + $0x13e0] sm:$0xff]  ;;  %v1614_v63 = vld [vmem:[%s6403_s28 + $0x13f0] sm:$0xff] }
  0xb1   : > { %v1616_v0 = vld [vmem:[%s6403_s28 + $0x1400] sm:$0xff]  ;;  %1613 = vst [vmem:[%s6411_s29 + $0x9f0] sm:$0xff] %v1612_v62  ;;  %1615 = vst [vmem:[%s6411_s29 + $0x9f8] sm:$0xff] %v1614_v63  ;;  %v1618_v1 = vld [vmem:[%s6403_s28 + $0x1410] sm:$0xff] }
  0xb2   : > { %1617 = vst [vmem:[%s6411_s29 + $0xa00] sm:$0xff] %v1616_v0  ;;  %v1620_v2 = vld [vmem:[%s6403_s28 + $0x1420] sm:$0xff]  ;;  %v1622_v3 = vld [vmem:[%s6403_s28 + $0x1430] sm:$0xff]  ;;  %1619 = vst [vmem:[%s6411_s29 + $0xa08] sm:$0xff] %v1618_v1 }
  0xb3   : > { %1621 = vst [vmem:[%s6411_s29 + $0xa10] sm:$0xff] %v1620_v2  ;;  %1623 = vst [vmem:[%s6411_s29 + $0xa18] sm:$0xff] %v1622_v3  ;;  %v1624_v4 = vld [vmem:[%s6403_s28 + $0x1440] sm:$0xff]  ;;  %v1626_v5 = vld [vmem:[%s6403_s28 + $0x1450] sm:$0xff] }
  0xb4   : > { %v1628_v6 = vld [vmem:[%s6403_s28 + $0x1460] sm:$0xff]  ;;  %1625 = vst [vmem:[%s6411_s29 + $0xa20] sm:$0xff] %v1624_v4  ;;  %1627 = vst [vmem:[%s6411_s29 + $0xa28] sm:$0xff] %v1626_v5  ;;  %v1630_v7 = vld [vmem:[%s6403_s28 + $0x1470] sm:$0xff] }
  0xb5   : > { %1629 = vst [vmem:[%s6411_s29 + $0xa30] sm:$0xff] %v1628_v6  ;;  %v1632_v8 = vld [vmem:[%s6403_s28 + $0x1480] sm:$0xff]  ;;  %v1634_v9 = vld [vmem:[%s6403_s28 + $0x1490] sm:$0xff]  ;;  %1631 = vst [vmem:[%s6411_s29 + $0xa38] sm:$0xff] %v1630_v7 }
  0xb6   : > { %1633 = vst [vmem:[%s6411_s29 + $0xa40] sm:$0xff] %v1632_v8  ;;  %1635 = vst [vmem:[%s6411_s29 + $0xa48] sm:$0xff] %v1634_v9  ;;  %v1636_v10 = vld [vmem:[%s6403_s28 + $0x14a0] sm:$0xff]  ;;  %v1638_v11 = vld [vmem:[%s6403_s28 + $0x14b0] sm:$0xff] }
  0xb7   : > { %v1640_v12 = vld [vmem:[%s6403_s28 + $0x14c0] sm:$0xff]  ;;  %1637 = vst [vmem:[%s6411_s29 + $0xa50] sm:$0xff] %v1636_v10  ;;  %1639 = vst [vmem:[%s6411_s29 + $0xa58] sm:$0xff] %v1638_v11  ;;  %v1642_v13 = vld [vmem:[%s6403_s28 + $0x14d0] sm:$0xff] }
  0xb8   : > { %1641 = vst [vmem:[%s6411_s29 + $0xa60] sm:$0xff] %v1640_v12  ;;  %v1644_v14 = vld [vmem:[%s6403_s28 + $0x14e0] sm:$0xff]  ;;  %v1646_v15 = vld [vmem:[%s6403_s28 + $0x14f0] sm:$0xff]  ;;  %1643 = vst [vmem:[%s6411_s29 + $0xa68] sm:$0xff] %v1642_v13 }
  0xb9   : > { %1645 = vst [vmem:[%s6411_s29 + $0xa70] sm:$0xff] %v1644_v14  ;;  %1647 = vst [vmem:[%s6411_s29 + $0xa78] sm:$0xff] %v1646_v15  ;;  %v1648_v16 = vld [vmem:[%s6403_s28 + $0x1500] sm:$0xff]  ;;  %v1650_v17 = vld [vmem:[%s6403_s28 + $0x1510] sm:$0xff] }
  0xba   : > { %v1652_v18 = vld [vmem:[%s6403_s28 + $0x1520] sm:$0xff]  ;;  %1649 = vst [vmem:[%s6411_s29 + $0xa80] sm:$0xff] %v1648_v16  ;;  %1651 = vst [vmem:[%s6411_s29 + $0xa88] sm:$0xff] %v1650_v17  ;;  %v1654_v19 = vld [vmem:[%s6403_s28 + $0x1530] sm:$0xff] }
  0xbb   : > { %1653 = vst [vmem:[%s6411_s29 + $0xa90] sm:$0xff] %v1652_v18  ;;  %v1656_v20 = vld [vmem:[%s6403_s28 + $0x1540] sm:$0xff]  ;;  %v1658_v21 = vld [vmem:[%s6403_s28 + $0x1550] sm:$0xff]  ;;  %1655 = vst [vmem:[%s6411_s29 + $0xa98] sm:$0xff] %v1654_v19 }
  0xbc   : > { %1657 = vst [vmem:[%s6411_s29 + $0xaa0] sm:$0xff] %v1656_v20  ;;  %1659 = vst [vmem:[%s6411_s29 + $0xaa8] sm:$0xff] %v1658_v21  ;;  %v1660_v22 = vld [vmem:[%s6403_s28 + $0x1560] sm:$0xff]  ;;  %v1662_v23 = vld [vmem:[%s6403_s28 + $0x1570] sm:$0xff] }
  0xbd   : > { %v1664_v24 = vld [vmem:[%s6403_s28 + $0x1580] sm:$0xff]  ;;  %1661 = vst [vmem:[%s6411_s29 + $0xab0] sm:$0xff] %v1660_v22  ;;  %1663 = vst [vmem:[%s6411_s29 + $0xab8] sm:$0xff] %v1662_v23  ;;  %v1666_v25 = vld [vmem:[%s6403_s28 + $0x1590] sm:$0xff] }
  0xbe   : > { %1665 = vst [vmem:[%s6411_s29 + $0xac0] sm:$0xff] %v1664_v24  ;;  %v1668_v26 = vld [vmem:[%s6403_s28 + $0x15a0] sm:$0xff]  ;;  %v1670_v27 = vld [vmem:[%s6403_s28 + $0x15b0] sm:$0xff]  ;;  %1667 = vst [vmem:[%s6411_s29 + $0xac8] sm:$0xff] %v1666_v25 }
  0xbf   : > { %1669 = vst [vmem:[%s6411_s29 + $0xad0] sm:$0xff] %v1668_v26  ;;  %1671 = vst [vmem:[%s6411_s29 + $0xad8] sm:$0xff] %v1670_v27  ;;  %v1672_v28 = vld [vmem:[%s6403_s28 + $0x15c0] sm:$0xff]  ;;  %v1674_v29 = vld [vmem:[%s6403_s28 + $0x15d0] sm:$0xff] }
  0xc0   : > { %v1676_v30 = vld [vmem:[%s6403_s28 + $0x15e0] sm:$0xff]  ;;  %1673 = vst [vmem:[%s6411_s29 + $0xae0] sm:$0xff] %v1672_v28  ;;  %1675 = vst [vmem:[%s6411_s29 + $0xae8] sm:$0xff] %v1674_v29  ;;  %v1678_v31 = vld [vmem:[%s6403_s28 + $0x15f0] sm:$0xff] }
  0xc1   : > { %1677 = vst [vmem:[%s6411_s29 + $0xaf0] sm:$0xff] %v1676_v30  ;;  %v1680_v32 = vld [vmem:[%s6403_s28 + $0x1600] sm:$0xff]  ;;  %v1682_v33 = vld [vmem:[%s6403_s28 + $0x1610] sm:$0xff]  ;;  %1679 = vst [vmem:[%s6411_s29 + $0xaf8] sm:$0xff] %v1678_v31 }
  0xc2   : > { %1681 = vst [vmem:[%s6411_s29 + $0xb00] sm:$0xff] %v1680_v32  ;;  %1683 = vst [vmem:[%s6411_s29 + $0xb08] sm:$0xff] %v1682_v33  ;;  %v1684_v34 = vld [vmem:[%s6403_s28 + $0x1620] sm:$0xff]  ;;  %v1686_v35 = vld [vmem:[%s6403_s28 + $0x1630] sm:$0xff] }
  0xc3   : > { %v1688_v36 = vld [vmem:[%s6403_s28 + $0x1640] sm:$0xff]  ;;  %1685 = vst [vmem:[%s6411_s29 + $0xb10] sm:$0xff] %v1684_v34  ;;  %1687 = vst [vmem:[%s6411_s29 + $0xb18] sm:$0xff] %v1686_v35  ;;  %v1690_v37 = vld [vmem:[%s6403_s28 + $0x1650] sm:$0xff] }
  0xc4   : > { %1689 = vst [vmem:[%s6411_s29 + $0xb20] sm:$0xff] %v1688_v36  ;;  %v1692_v38 = vld [vmem:[%s6403_s28 + $0x1660] sm:$0xff]  ;;  %v1694_v39 = vld [vmem:[%s6403_s28 + $0x1670] sm:$0xff]  ;;  %1691 = vst [vmem:[%s6411_s29 + $0xb28] sm:$0xff] %v1690_v37 }
  0xc5   : > { %1693 = vst [vmem:[%s6411_s29 + $0xb30] sm:$0xff] %v1692_v38  ;;  %1695 = vst [vmem:[%s6411_s29 + $0xb38] sm:$0xff] %v1694_v39  ;;  %v1696_v40 = vld [vmem:[%s6403_s28 + $0x1680] sm:$0xff]  ;;  %v1698_v41 = vld [vmem:[%s6403_s28 + $0x1690] sm:$0xff] }
  0xc6   : > { %v1700_v42 = vld [vmem:[%s6403_s28 + $0x16a0] sm:$0xff]  ;;  %1697 = vst [vmem:[%s6411_s29 + $0xb40] sm:$0xff] %v1696_v40  ;;  %1699 = vst [vmem:[%s6411_s29 + $0xb48] sm:$0xff] %v1698_v41  ;;  %v1702_v43 = vld [vmem:[%s6403_s28 + $0x16b0] sm:$0xff] }
  0xc7   : > { %1701 = vst [vmem:[%s6411_s29 + $0xb50] sm:$0xff] %v1700_v42  ;;  %v1704_v44 = vld [vmem:[%s6403_s28 + $0x16c0] sm:$0xff]  ;;  %v1706_v45 = vld [vmem:[%s6403_s28 + $0x16d0] sm:$0xff]  ;;  %1703 = vst [vmem:[%s6411_s29 + $0xb58] sm:$0xff] %v1702_v43 }
  0xc8   : > { %1705 = vst [vmem:[%s6411_s29 + $0xb60] sm:$0xff] %v1704_v44  ;;  %1707 = vst [vmem:[%s6411_s29 + $0xb68] sm:$0xff] %v1706_v45  ;;  %v1708_v46 = vld [vmem:[%s6403_s28 + $0x16e0] sm:$0xff]  ;;  %v1710_v47 = vld [vmem:[%s6403_s28 + $0x16f0] sm:$0xff] }
  0xc9   : > { %v1712_v48 = vld [vmem:[%s6403_s28 + $0x1700] sm:$0xff]  ;;  %1709 = vst [vmem:[%s6411_s29 + $0xb70] sm:$0xff] %v1708_v46  ;;  %1711 = vst [vmem:[%s6411_s29 + $0xb78] sm:$0xff] %v1710_v47  ;;  %v1714_v49 = vld [vmem:[%s6403_s28 + $0x1710] sm:$0xff] }
  0xca   : > { %1713 = vst [vmem:[%s6411_s29 + $0xb80] sm:$0xff] %v1712_v48  ;;  %v1716_v50 = vld [vmem:[%s6403_s28 + $0x1720] sm:$0xff]  ;;  %v1718_v51 = vld [vmem:[%s6403_s28 + $0x1730] sm:$0xff]  ;;  %1715 = vst [vmem:[%s6411_s29 + $0xb88] sm:$0xff] %v1714_v49 }
  0xcb   : > { %1717 = vst [vmem:[%s6411_s29 + $0xb90] sm:$0xff] %v1716_v50  ;;  %1719 = vst [vmem:[%s6411_s29 + $0xb98] sm:$0xff] %v1718_v51  ;;  %v1720_v52 = vld [vmem:[%s6403_s28 + $0x1740] sm:$0xff]  ;;  %v1722_v53 = vld [vmem:[%s6403_s28 + $0x1750] sm:$0xff] }
  0xcc   : > { %v1724_v54 = vld [vmem:[%s6403_s28 + $0x1760] sm:$0xff]  ;;  %1721 = vst [vmem:[%s6411_s29 + $0xba0] sm:$0xff] %v1720_v52  ;;  %1723 = vst [vmem:[%s6411_s29 + $0xba8] sm:$0xff] %v1722_v53  ;;  %v1726_v55 = vld [vmem:[%s6403_s28 + $0x1770] sm:$0xff] }
  0xcd   : > { %1725 = vst [vmem:[%s6411_s29 + $0xbb0] sm:$0xff] %v1724_v54  ;;  %v1728_v56 = vld [vmem:[%s6403_s28 + $0x1780] sm:$0xff]  ;;  %v1730_v57 = vld [vmem:[%s6403_s28 + $0x1790] sm:$0xff]  ;;  %1727 = vst [vmem:[%s6411_s29 + $0xbb8] sm:$0xff] %v1726_v55 }
  0xce   : > { %1729 = vst [vmem:[%s6411_s29 + $0xbc0] sm:$0xff] %v1728_v56  ;;  %1731 = vst [vmem:[%s6411_s29 + $0xbc8] sm:$0xff] %v1730_v57  ;;  %v1732_v58 = vld [vmem:[%s6403_s28 + $0x17a0] sm:$0xff]  ;;  %v1734_v59 = vld [vmem:[%s6403_s28 + $0x17b0] sm:$0xff] }
  0xcf   : > { %v1736_v60 = vld [vmem:[%s6403_s28 + $0x17c0] sm:$0xff]  ;;  %1733 = vst [vmem:[%s6411_s29 + $0xbd0] sm:$0xff] %v1732_v58  ;;  %1735 = vst [vmem:[%s6411_s29 + $0xbd8] sm:$0xff] %v1734_v59  ;;  %v1738_v61 = vld [vmem:[%s6403_s28 + $0x17d0] sm:$0xff] }
  0xd0   : > { %1737 = vst [vmem:[%s6411_s29 + $0xbe0] sm:$0xff] %v1736_v60  ;;  %v1740_v62 = vld [vmem:[%s6403_s28 + $0x17e0] sm:$0xff]  ;;  %v1742_v63 = vld [vmem:[%s6403_s28 + $0x17f0] sm:$0xff]  ;;  %1739 = vst [vmem:[%s6411_s29 + $0xbe8] sm:$0xff] %v1738_v61 }
  0xd1   : > { %1741 = vst [vmem:[%s6411_s29 + $0xbf0] sm:$0xff] %v1740_v62  ;;  %1743 = vst [vmem:[%s6411_s29 + $0xbf8] sm:$0xff] %v1742_v63  ;;  %v1744_v0 = vld [vmem:[%s6403_s28 + $0x1800] sm:$0xff]  ;;  %v1746_v1 = vld [vmem:[%s6403_s28 + $0x1810] sm:$0xff] }
  0xd2   : > { %v1748_v2 = vld [vmem:[%s6403_s28 + $0x1820] sm:$0xff]  ;;  %1745 = vst [vmem:[%s6411_s29 + $0xc00] sm:$0xff] %v1744_v0  ;;  %1747 = vst [vmem:[%s6411_s29 + $0xc08] sm:$0xff] %v1746_v1  ;;  %v1750_v3 = vld [vmem:[%s6403_s28 + $0x1830] sm:$0xff] }
  0xd3   : > { %1749 = vst [vmem:[%s6411_s29 + $0xc10] sm:$0xff] %v1748_v2  ;;  %v1752_v4 = vld [vmem:[%s6403_s28 + $0x1840] sm:$0xff]  ;;  %v1754_v5 = vld [vmem:[%s6403_s28 + $0x1850] sm:$0xff]  ;;  %1751 = vst [vmem:[%s6411_s29 + $0xc18] sm:$0xff] %v1750_v3 }
  0xd4   : > { %1753 = vst [vmem:[%s6411_s29 + $0xc20] sm:$0xff] %v1752_v4  ;;  %1755 = vst [vmem:[%s6411_s29 + $0xc28] sm:$0xff] %v1754_v5  ;;  %v1756_v6 = vld [vmem:[%s6403_s28 + $0x1860] sm:$0xff]  ;;  %v1758_v7 = vld [vmem:[%s6403_s28 + $0x1870] sm:$0xff] }
  0xd5   : > { %1757 = vst [vmem:[%s6411_s29 + $0xc30] sm:$0xff] %v1756_v6  ;;  %1759 = vst [vmem:[%s6411_s29 + $0xc38] sm:$0xff] %v1758_v7 }
  0xd6 PF: > { %p5191_p5 = scmp.ge.s32.totalorder %s6338_s17, 1  ;;  %p1781_p6 = scmp.lt.s32.totalorder %s6338_s17, 3 }
  0xd8   : > { %p1782_p7 = pnand %p5191_p5, %p1781_p6 }
  0xd9   : > { %s1788_s30 = sand.u32 (!%p1782_p7), 1, %s6330_s15   ;;  %v2236_v8 = vlaneseq (!%p1782_p7)  ;;  %v1839_v9 = vld [vmem:[%s7769_s0 + $0x8] sm:$0xff] (!%p1782_p7)  ;;  %v6340_v10 = vmov (!%p1782_p7), 1966171168   ;;  %v7202_v13 = vld [vmem:[%s7769_s0] sm:$0xff] (!%p1782_p7)  ;;  %s5193_s15 = sshll.u32 (!%p1782_p7), %s6383_s18, 5 }
  0xda   : > { %1785 = sbr.rel (%p1782_p7) target bundleno = 1060 (0x424), region = 70  ;;  %v2252_v11 = vunpack.c.l.s4 (!%p1782_p7), %v6340_v10  ;;  %v2299_v15 = vcombine.high (!%p1782_p7), %v1839_v9, %v1839_v9  ;;  %p1828_p8 = scmp.lt.s32.totalorder (!%p1782_p7), %s5193_s15, 63  ;;  %vm4395_vm0 = vcmask (!%p1782_p7), 523264  }
  0xdb   : > { %s5680_s7 = smul.u32 (!%p1782_p7), 3136, %s1788_s30  ;;  %v7197_v12 = vshrl.u32 (!%p1782_p7), %v2236_v8, 7  ;;  %s5192_s26 = sshll.u32 (!%p1782_p7), %s6383_s18, 1 }
  0xdc   : > { %v2253_v14 = vunpack.c.0.s8 (!%p1782_p7), %v2252_v11  ;;  %p1823_p9 = scmp.lt.s32.totalorder (!%p1782_p7), %s5192_s26, 3  ;;  %p1833_p10 = scmp.lt.s32.totalorder (!%p1782_p7), %s6383_s18, 1 }
  0xdd   : > { %s7204_s10 = scalar_lea.vmem (!%p1782_p7), [#allocation2], %s5680_s7 }
  0xde   : > { %v5707_v16 = vld [vmem:[%s7204_s10 + $0x4] ss:$8 sps:$4 sm:$0xff] (!%p1782_p7)   ;;  %v7209_v18 = vsub.s32 (!%p1782_p7), %v2253_v14, %v7197_v12  ;;  %v5711_v19 = vld [vmem:[%s7204_s10] ss:$8 sps:$4 sm:$0xff] (!%p1782_p7)   ;;  %v5713_v21 = vld [vmem:[%s7204_s10 + $0x14] ss:$8 sps:$4 sm:$0xff] (!%p1782_p7)  }
  0xdf   : > { %v5709_v17 = vld [vmem:[%s7204_s10 + $0x604] ss:$8 sps:$4 sm:$0xff] (!%p1782_p7)   ;;  %4399 = vmatprep.subr.bf16.mxu1 (!%p1782_p7), %v5707_v16  ;;  %v5712_v20 = vld [vmem:[%s7204_s10 + $0x600] ss:$8 sps:$4 sm:$0xff] (!%p1782_p7)   ;;  %v5715_v24 = vld [vmem:[%s7204_s10 + $0x614] ss:$8 sps:$4 sm:$0xff] (!%p1782_p7)  }
  0xe0   : > { %4645 = vmatprep.subr.bf16.mxu0 (!%p1782_p7), %v5709_v17  ;;  %v7216_v22 = vrot.slane (!%p1782_p7), %v7202_v13, %v7209_v18  ;;  %v7219_v23 = vrot.slane (!%p1782_p7), %v2299_v15, %v7209_v18  ;;  %4400 = vmatpush1.bf16.msra.mxu1 (!%p1782_p7), %v5711_v19  ;;  %v5717_v25 = vld [vmem:[%s7204_s10 + $0x10] ss:$8 sps:$4 sm:$0xff] (!%p1782_p7)   ;;  %v5719_v29 = vld [vmem:[%s7204_s10 + $0x24] ss:$8 sps:$4 sm:$0xff] (!%p1782_p7)   ;;  %v5723_v31 = vld [vmem:[%s7204_s10 + $0x20] ss:$8 sps:$4 sm:$0xff] (!%p1782_p7)  }
  0xe1   : > { %4646 = vmatpush1.bf16.msra.mxu0 %v5712_v20  ;;  %4401 = vmatprep.subr.bf16.mxu1 %v5713_v21  ;;  %v5718_v26 = vld [vmem:[%s7204_s10 + $0x610] ss:$8 sps:$4 sm:$0xff]   ;;  %v5721_v30 = vld [vmem:[%s7204_s10 + $0x624] ss:$8 sps:$4 sm:$0xff]   ;;  %v5724_v32 = vld [vmem:[%s7204_s10 + $0x620] ss:$8 sps:$4 sm:$0xff]  }
  0xe2   : > { %v2265_v27 = vcombine.high %v7216_v22, %v7216_v22  ;;  %v2315_v28 = vcombine.high %v7219_v23, %v7219_v23  ;;  %4647 = vmatprep.subr.bf16.mxu0 %v5715_v24  ;;  %v5725_v35 = vld [vmem:[%s7204_s10 + $0x34] ss:$8 sps:$4 sm:$0xff]   ;;  %v5729_v37 = vld [vmem:[%s7204_s10 + $0x30] ss:$8 sps:$4 sm:$0xff]   ;;  %v5731_v39 = vld [vmem:[%s7204_s10 + $0x44] ss:$8 sps:$4 sm:$0xff]  }
  0xe3   : > { %v5727_v36 = vld [vmem:[%s7204_s10 + $0x634] ss:$8 sps:$4 sm:$0xff]   ;;  %v5730_v38 = vld [vmem:[%s7204_s10 + $0x630] ss:$8 sps:$4 sm:$0xff]   ;;  %v5733_v40 = vld [vmem:[%s7204_s10 + $0x644] ss:$8 sps:$4 sm:$0xff]  }
  0xe4   : > { %v7233_v33 = vrot.slane %v2265_v27, %v7209_v18  ;;  %v7236_v34 = vrot.slane %v2315_v28, %v7209_v18  ;;  %4402 = vmatpush1.bf16.msra.mxu1 %v5717_v25  ;;  %v5735_v41 = vld [vmem:[%s7204_s10 + $0x40] ss:$8 sps:$4 sm:$0xff]   ;;  %v5737_v43 = vld [vmem:[%s7204_s10 + $0x54] ss:$8 sps:$4 sm:$0xff]   ;;  %v5741_v45 = vld [vmem:[%s7204_s10 + $0x50] ss:$8 sps:$4 sm:$0xff]  }
  0xe5   : > { %4648 = vmatpush1.bf16.msra.mxu0 %v5718_v26  ;;  %4403 = vmatprep.subr.bf16.mxu1 %v5719_v29  ;;  %v5736_v42 = vld [vmem:[%s7204_s10 + $0x640] ss:$8 sps:$4 sm:$0xff]   ;;  %v5739_v44 = vld [vmem:[%s7204_s10 + $0x654] ss:$8 sps:$4 sm:$0xff]   ;;  %v5742_v46 = vld [vmem:[%s7204_s10 + $0x650] ss:$8 sps:$4 sm:$0xff]  }
  0xe6   : > { %4649 = vmatprep.subr.bf16.mxu0 %v5721_v30  ;;  %4431 = vmatprep.mubr.bf16.mxu1 %v7233_v33  ;;  %v5743_v47 = vld [vmem:[%s7204_s10 + $0x64] ss:$8 sps:$4 sm:$0xff]   ;;  %v5747_v49 = vld [vmem:[%s7204_s10 + $0x60] ss:$8 sps:$4 sm:$0xff]   ;;  %v5749_v51 = vld [vmem:[%s7204_s10 + $0x74] ss:$8 sps:$4 sm:$0xff]  }
  0xe7   : > { %4677 = vmatprep.mubr.bf16.mxu0 %v7236_v34  ;;  %v5745_v48 = vld [vmem:[%s7204_s10 + $0x664] ss:$8 sps:$4 sm:$0xff]   ;;  %v5748_v50 = vld [vmem:[%s7204_s10 + $0x660] ss:$8 sps:$4 sm:$0xff]   ;;  %v5751_v52 = vld [vmem:[%s7204_s10 + $0x674] ss:$8 sps:$4 sm:$0xff]  }
  0xe8   : > { %4404 = vmatpush1.bf16.msra.mxu1 %v5723_v31  ;;  %v5753_v53 = vld [vmem:[%s7204_s10 + $0x70] ss:$8 sps:$4 sm:$0xff]   ;;  %v5755_v55 = vld [vmem:[%s7204_s10 + $0x84] ss:$8 sps:$4 sm:$0xff]   ;;  %v5759_v57 = vld [vmem:[%s7204_s10 + $0x80] ss:$8 sps:$4 sm:$0xff]  }
  0xe9   : > { %4650 = vmatpush1.bf16.msra.mxu0 %v5724_v32  ;;  %4405 = vmatprep.subr.bf16.mxu1 %v5725_v35  ;;  %v5754_v54 = vld [vmem:[%s7204_s10 + $0x670] ss:$8 sps:$4 sm:$0xff]   ;;  %v5757_v56 = vld [vmem:[%s7204_s10 + $0x684] ss:$8 sps:$4 sm:$0xff]   ;;  %v5760_v58 = vld [vmem:[%s7204_s10 + $0x680] ss:$8 sps:$4 sm:$0xff]   ;;  %v7298_v32 = vrot.slane %v7216_v22, %v7209_v18  ;;  %v7302_v35 = vrot.slane %v7219_v23, %v7209_v18  ;;  %v2347_v22 = vcombine.high %v7236_v34, %v7236_v34 }
  0xea   : > { %4651 = vmatprep.subr.bf16.mxu0 %v5727_v36  ;;  %v5761_v59 = vld [vmem:[%s7204_s10 + $0x94] ss:$8 sps:$4 sm:$0xff]   ;;  %v5765_v61 = vld [vmem:[%s7204_s10 + $0x90] ss:$8 sps:$4 sm:$0xff]   ;;  %v5767_v63 = vld [vmem:[%s7204_s10 + $0xa4] ss:$8 sps:$4 sm:$0xff]  }
  0xeb   : > { %v5763_v60 = vld [vmem:[%s7204_s10 + $0x694] ss:$8 sps:$4 sm:$0xff]   ;;  %v5766_v62 = vld [vmem:[%s7204_s10 + $0x690] ss:$8 sps:$4 sm:$0xff]   ;;  %v5769_v0 = vld [vmem:[%s7204_s10 + $0x6a4] ss:$8 sps:$4 sm:$0xff]  }
  0xec   : > { %4406 = vmatpush1.bf16.msra.mxu1 %v5729_v37  ;;  %v5771_v1 = vld [vmem:[%s7204_s10 + $0xa0] ss:$8 sps:$4 sm:$0xff]   ;;  %v5773_v3 = vld [vmem:[%s7204_s10 + $0xb4] ss:$8 sps:$4 sm:$0xff]   ;;  %v5777_v5 = vld [vmem:[%s7204_s10 + $0xb0] ss:$8 sps:$4 sm:$0xff]  }
  0xed   : > { %4652 = vmatpush1.bf16.msra.mxu0 %v5730_v38  ;;  %4407 = vmatprep.subr.bf16.mxu1 %v5731_v39  ;;  %v5772_v2 = vld [vmem:[%s7204_s10 + $0x6a0] ss:$8 sps:$4 sm:$0xff]   ;;  %v5775_v4 = vld [vmem:[%s7204_s10 + $0x6b4] ss:$8 sps:$4 sm:$0xff]   ;;  %v5778_v6 = vld [vmem:[%s7204_s10 + $0x6b0] ss:$8 sps:$4 sm:$0xff]   ;;  %v2297_v38 = vcombine.high %v7233_v33, %v7233_v33 }
  0xee   : > { %4653 = vmatprep.subr.bf16.mxu0 %v5733_v40  ;;  %v5779_v7 = vld [vmem:[%s7204_s10 + $0xc4] ss:$8 sps:$4 sm:$0xff]   ;;  %v5783_v9 = vld [vmem:[%s7204_s10 + $0xc0] ss:$8 sps:$4 sm:$0xff]   ;;  %v5785_v11 = vld [vmem:[%s7204_s10 + $0xd4] ss:$8 sps:$4 sm:$0xff]  }
  0xef   : > { %v5781_v8 = vld [vmem:[%s7204_s10 + $0x6c4] ss:$8 sps:$4 sm:$0xff]   ;;  %v5784_v10 = vld [vmem:[%s7204_s10 + $0x6c0] ss:$8 sps:$4 sm:$0xff]   ;;  %v5787_v14 = vld [vmem:[%s7204_s10 + $0x6d4] ss:$8 sps:$4 sm:$0xff]  }
  0xf0   : > { %4408 = vmatpush1.bf16.msra.mxu1 %v5735_v41  ;;  %v5789_v15 = vld [vmem:[%s7204_s10 + $0xd0] ss:$8 sps:$4 sm:$0xff]   ;;  %v5791_v17 = vld [vmem:[%s7204_s10 + $0xe4] ss:$8 sps:$4 sm:$0xff]   ;;  %v5795_v20 = vld [vmem:[%s7204_s10 + $0xe0] ss:$8 sps:$4 sm:$0xff]  }
  0xf1   : > { %4654 = vmatpush1.bf16.msra.mxu0 %v5736_v42  ;;  %4409 = vmatprep.subr.bf16.mxu1 %v5737_v43  ;;  %v5790_v16 = vld [vmem:[%s7204_s10 + $0x6d0] ss:$8 sps:$4 sm:$0xff]   ;;  %v5793_v19 = vld [vmem:[%s7204_s10 + $0x6e4] ss:$8 sps:$4 sm:$0xff]   ;;  %v5796_v21 = vld [vmem:[%s7204_s10 + $0x6e0] ss:$8 sps:$4 sm:$0xff]  }
  0xf2   : > { %4655 = vmatprep.subr.bf16.mxu0 %v5739_v44  ;;  %v5797_v24 = vld [vmem:[%s7204_s10 + $0xf4] ss:$8 sps:$4 sm:$0xff]   ;;  %v5801_v26 = vld [vmem:[%s7204_s10 + $0xf0] ss:$8 sps:$4 sm:$0xff]   ;;  %v5806_v28 = vld [vmem:[%s7204_s10 + $0x104] ss:$8 sps:$4 sm:$0xff]  }
  0xf3   : > { %v5799_v25 = vld [vmem:[%s7204_s10 + $0x6f4] ss:$8 sps:$4 sm:$0xff]   ;;  %v5802_v27 = vld [vmem:[%s7204_s10 + $0x6f0] ss:$8 sps:$4 sm:$0xff]   ;;  %v5810_v29 = vld [vmem:[%s7204_s10 + $0x704] ss:$8 sps:$4 sm:$0xff]  }
  0xf4   : > { %4410 = vmatpush1.bf16.msra.mxu1 %v5741_v45  ;;  %v5804_v30 = vld [vmem:[%s7204_s10 + $0x100] ss:$8 sps:$4 sm:$0xff]   ;;  %v5813_v36 = vld [vmem:[%s7204_s10 + $0x114] ss:$8 sps:$4 sm:$0xff]   ;;  %v5811_v23 = vld [vmem:[%s7204_s10 + $0x110] ss:$8 sps:$4 sm:$0xff]  }
  0xf5   : > { %4656 = vmatpush1.bf16.msra.mxu0 %v5742_v46  ;;  %4411 = vmatprep.subr.bf16.mxu1 %v5743_v47  ;;  %v5808_v31 = vld [vmem:[%s7204_s10 + $0x700] ss:$8 sps:$4 sm:$0xff]   ;;  %v5816_v37 = vld [vmem:[%s7204_s10 + $0x714] ss:$8 sps:$4 sm:$0xff]   ;;  %v5814_v39 = vld [vmem:[%s7204_s10 + $0x710] ss:$8 sps:$4 sm:$0xff]  }
  0xf6   : > { %4657 = vmatprep.subr.bf16.mxu0 %v5745_v48  ;;  %v5819_v40 = vld [vmem:[%s7204_s10 + $0x124] ss:$8 sps:$4 sm:$0xff]   ;;  %v5817_v34 = vld [vmem:[%s7204_s10 + $0x120] ss:$8 sps:$4 sm:$0xff]   ;;  %v5825_v42 = vld [vmem:[%s7204_s10 + $0x134] ss:$8 sps:$4 sm:$0xff]  }
  0xf7   : > { %v5822_v33 = vld [vmem:[%s7204_s10 + $0x724] ss:$8 sps:$4 sm:$0xff]   ;;  %v5820_v41 = vld [vmem:[%s7204_s10 + $0x720] ss:$8 sps:$4 sm:$0xff]   ;;  %v5828_v43 = vld [vmem:[%s7204_s10 + $0x734] ss:$8 sps:$4 sm:$0xff]  }
  0xf8   : > { %4412 = vmatpush1.bf16.msra.mxu1 %v5747_v49  ;;  %v5823_v44 = vld [vmem:[%s7204_s10 + $0x130] ss:$8 sps:$4 sm:$0xff]   ;;  %v5831_v46 = vld [vmem:[%s7204_s10 + $0x144] ss:$8 sps:$4 sm:$0xff]   ;;  %v5829_v48 = vld [vmem:[%s7204_s10 + $0x140] ss:$8 sps:$4 sm:$0xff]  }
  0xf9   : > { %4658 = vmatpush1.bf16.msra.mxu0 %v5748_v50  ;;  %4413 = vmatprep.subr.bf16.mxu1 %v5749_v51  ;;  %v5826_v45 = vld [vmem:[%s7204_s10 + $0x730] ss:$8 sps:$4 sm:$0xff]   ;;  %v5834_v47 = vld [vmem:[%s7204_s10 + $0x744] ss:$8 sps:$4 sm:$0xff]   ;;  %v5832_v49 = vld [vmem:[%s7204_s10 + $0x740] ss:$8 sps:$4 sm:$0xff]  }
  0xfa   : > { %4659 = vmatprep.subr.bf16.mxu0 %v5751_v52  ;;  %v5837_v50 = vld [vmem:[%s7204_s10 + $0x154] ss:$8 sps:$4 sm:$0xff]   ;;  %v5835_v52 = vld [vmem:[%s7204_s10 + $0x150] ss:$8 sps:$4 sm:$0xff]   ;;  %s7778_s15 = smov (!%p1828_p8, %s5193_s15), 63  ;;  %s7780_s26 = smov (!%p1823_p9, %s5192_s26), 3 }
  0xfb   : > { %v5840_v51 = vld [vmem:[%s7204_s10 + $0x754] ss:$8 sps:$4 sm:$0xff]   ;;  %s5194_s17 = sshll.u32 %s7778_s15, 2  ;;  %s1825_s29 = scalar_lea.vmem %s7771_s2, %s7780_s26 }
  0xfc   : > { %4414 = vmatpush1.bf16.msra.mxu1 %v5753_v53  ;;  %v5838_v53 = vld [vmem:[%s7204_s10 + $0x750] ss:$8 sps:$4 sm:$0xff]   ;;  %s7602_s23 = scalar_lea.vmem %s7772_s3, %s5194_s17  ;;  %s7782_s18 = smov (!%p1833_p10, %s6383_s18), 1 }
  0xfd   : > { %4660 = vmatpush1.bf16.msra.mxu0 %v5754_v54  ;;  %4415 = vmatprep.subr.bf16.mxu1 %v5755_v55  ;;  %v5843_v54 = vld [vmem:[%s7204_s10 + $0x164] ss:$8 sps:$4 sm:$0xff]   ;;  %s5195_s30 = sshll.u32 %s7782_s18, 1 }
  0xfe   : > { %4661 = vmatprep.subr.bf16.mxu0 %v5757_v56  ;;  %v5846_v55 = vld [vmem:[%s7204_s10 + $0x764] ss:$8 sps:$4 sm:$0xff]   ;;  %v5841_v56 = vld [vmem:[%s7204_s10 + $0x160] ss:$8 sps:$4 sm:$0xff]   ;;  %s1836_s7 = scalar_lea.vmem %s7773_s4, %s5195_s30 }
 0x100   : > { %4416 = vmatpush1.bf16.msra.mxu1 %v5759_v57  ;;  %v5844_v57 = vld [vmem:[%s7204_s10 + $0x760] ss:$8 sps:$4 sm:$0xff]  }
 0x101   : > { %4662 = vmatpush1.bf16.msra.mxu0 %v5760_v58  ;;  %4417 = vmatprep.subr.bf16.mxu1 %v5761_v59  ;;  %v5849_v58 = vld [vmem:[%s7204_s10 + $0x174] ss:$8 sps:$4 sm:$0xff]  }
 0x102   : > { %4663 = vmatprep.subr.bf16.mxu0 %v5763_v60  ;;  %v5852_v59 = vld [vmem:[%s7204_s10 + $0x774] ss:$8 sps:$4 sm:$0xff]   ;;  %v5847_v60 = vld [vmem:[%s7204_s10 + $0x170] ss:$8 sps:$4 sm:$0xff]  }
 0x104   : > { %4418 = vmatpush1.bf16.msra.mxu1 %v5765_v61  ;;  %v5850_v61 = vld [vmem:[%s7204_s10 + $0x770] ss:$8 sps:$4 sm:$0xff]  }
 0x105   : > { %4664 = vmatpush1.bf16.msra.mxu0 %v5766_v62  ;;  %4419 = vmatprep.subr.bf16.mxu1 %v5767_v63  ;;  %v5855_v62 = vld [vmem:[%s7204_s10 + $0x184] ss:$8 sps:$4 sm:$0xff]  }
 0x106   : > { %4665 = vmatprep.subr.bf16.mxu0 %v5769_v0  ;;  %v5858_v63 = vld [vmem:[%s7204_s10 + $0x784] ss:$8 sps:$4 sm:$0xff]   ;;  %v5853_v0 = vld [vmem:[%s7204_s10 + $0x180] ss:$8 sps:$4 sm:$0xff]  }
 0x108   : > { %4420 = vmatpush1.bf16.msra.mxu1 %v5771_v1  ;;  %v5856_v1 = vld [vmem:[%s7204_s10 + $0x780] ss:$8 sps:$4 sm:$0xff]  }
 0x109   : > { %4666 = vmatpush1.bf16.msra.mxu0 %v5772_v2  ;;  %4421 = vmatprep.subr.bf16.mxu1 %v5773_v3  ;;  %v5861_v2 = vld [vmem:[%s7204_s10 + $0x194] ss:$8 sps:$4 sm:$0xff]  }
 0x10a   : > { %4667 = vmatprep.subr.bf16.mxu0 %v5775_v4  ;;  %v5864_v3 = vld [vmem:[%s7204_s10 + $0x794] ss:$8 sps:$4 sm:$0xff]   ;;  %v5859_v4 = vld [vmem:[%s7204_s10 + $0x190] ss:$8 sps:$4 sm:$0xff]  }
 0x10c   : > { %4422 = vmatpush1.bf16.msra.mxu1 %v5777_v5  ;;  %v5862_v5 = vld [vmem:[%s7204_s10 + $0x790] ss:$8 sps:$4 sm:$0xff]  }
 0x10d   : > { %4668 = vmatpush1.bf16.msra.mxu0 %v5778_v6  ;;  %4423 = vmatprep.subr.bf16.mxu1 %v5779_v7  ;;  %v5867_v6 = vld [vmem:[%s7204_s10 + $0x1a4] ss:$8 sps:$4 sm:$0xff]  }
 0x10e   : > { %4669 = vmatprep.subr.bf16.mxu0 %v5781_v8  ;;  %v5870_v7 = vld [vmem:[%s7204_s10 + $0x7a4] ss:$8 sps:$4 sm:$0xff]   ;;  %v5865_v8 = vld [vmem:[%s7204_s10 + $0x1a0] ss:$8 sps:$4 sm:$0xff]  }
 0x110   : > { %4424 = vmatpush1.bf16.msra.mxu1 %v5783_v9  ;;  %v5868_v9 = vld [vmem:[%s7204_s10 + $0x7a0] ss:$8 sps:$4 sm:$0xff]  }
 0x111   : > { %4670 = vmatpush1.bf16.msra.mxu0 %v5784_v10  ;;  %4425 = vmatprep.subr.bf16.mxu1 %v5785_v11  ;;  %v5873_v10 = vld [vmem:[%s7204_s10 + $0x1b4] ss:$8 sps:$4 sm:$0xff]  }
 0x112   : > { %4671 = vmatprep.subr.bf16.mxu0 %v5787_v14  ;;  %v5876_v11 = vld [vmem:[%s7204_s10 + $0x7b4] ss:$8 sps:$4 sm:$0xff]   ;;  %v5871_v14 = vld [vmem:[%s7204_s10 + $0x1b0] ss:$8 sps:$4 sm:$0xff]  }
 0x114   : > { %4426 = vmatpush1.bf16.msra.mxu1 %v5789_v15  ;;  %v5874_v15 = vld [vmem:[%s7204_s10 + $0x7b0] ss:$8 sps:$4 sm:$0xff]  }
 0x115   : > { %4672 = vmatpush1.bf16.msra.mxu0 %v5790_v16  ;;  %4427 = vmatprep.subr.bf16.mxu1 %v5791_v17  ;;  %v5879_v16 = vld [vmem:[%s7204_s10 + $0x1c4] ss:$8 sps:$4 sm:$0xff]  }
 0x116   : > { %4673 = vmatprep.subr.bf16.mxu0 %v5793_v19  ;;  %v5882_v17 = vld [vmem:[%s7204_s10 + $0x7c4] ss:$8 sps:$4 sm:$0xff]   ;;  %v5877_v19 = vld [vmem:[%s7204_s10 + $0x1c0] ss:$8 sps:$4 sm:$0xff]  }
 0x118   : > { %4428 = vmatpush1.bf16.msra.mxu1 %v5795_v20  ;;  %v5880_v20 = vld [vmem:[%s7204_s10 + $0x7c0] ss:$8 sps:$4 sm:$0xff]  }
 0x119   : > { %4674 = vmatpush1.bf16.msra.mxu0 %v5796_v21  ;;  %4429 = vmatprep.subr.bf16.mxu1 %v5797_v24  ;;  %v5885_v21 = vld [vmem:[%s7204_s10 + $0x1d4] ss:$8 sps:$4 sm:$0xff]  }
 0x11a   : > { %4675 = vmatprep.subr.bf16.mxu0 %v5799_v25  ;;  %v5888_v24 = vld [vmem:[%s7204_s10 + $0x7d4] ss:$8 sps:$4 sm:$0xff]   ;;  %v5883_v25 = vld [vmem:[%s7204_s10 + $0x1d0] ss:$8 sps:$4 sm:$0xff]  }
 0x11c   : > { %4430 = vmatpush1.bf16.msra.mxu1 %v5801_v26  ;;  %v5886_v26 = vld [vmem:[%s7204_s10 + $0x7d0] ss:$8 sps:$4 sm:$0xff]  }
 0x11d   : > { %4676 = vmatpush1.bf16.msra.mxu0 %v5802_v27  ;;  %4440 = vmatprep.subr.bf16.mxu1 %v5806_v28  ;;  %v5891_v27 = vld [vmem:[%s7204_s10 + $0x1e4] ss:$8 sps:$4 sm:$0xff]  }
 0x11e   : > { %4686 = vmatprep.subr.bf16.mxu0 %v5810_v29  ;;  %v5894_v28 = vld [vmem:[%s7204_s10 + $0x7e4] ss:$8 sps:$4 sm:$0xff]   ;;  %v2250_v29 = vcombine.high %v7202_v13, %v7202_v13 }
 0x11f   : > { %4432 = vmatmul.mubr.bf16.vlgmr.msra.gmra.mrb[0].mxu1 %v7298_v32  ;;  %v5903_v13 = vld [vmem:[%s7204_s10 + $0x204] ss:$8 sps:$4 sm:$0xff]  }
 0x120   : > { %4678 = vmatmul.mubr.bf16.vlgmr.msra.gmra.mrb[0].mxu0 %v7302_v35  ;;  %4441 = vmatpush1.bf16.msra.mxu1 %v5804_v30  ;;  %v5889_v30 = vld [vmem:[%s7204_s10 + $0x1e0] ss:$8 sps:$4 sm:$0xff]  }
 0x121   : > { %4687 = vmatpush1.bf16.msra.mxu0 %v5808_v31  ;;  %4442 = vmatprep.subr.bf16.mxu1 %v5813_v36  ;;  %v5892_v31 = vld [vmem:[%s7204_s10 + $0x7e0] ss:$8 sps:$4 sm:$0xff]   ;;  %v5897_v36 = vld [vmem:[%s7204_s10 + $0x1f4] ss:$8 sps:$4 sm:$0xff]  }
 0x122   : > { %4688 = vmatprep.subr.bf16.mxu0 %v5816_v37  ;;  %4472 = vmatprep.mubr.bf16.mxu1 %v2297_v38  ;;  %v5900_v37 = vld [vmem:[%s7204_s10 + $0x7f4] ss:$8 sps:$4 sm:$0xff]   ;;  %v7371_v38 = vrot.slane %v2250_v29, %v7209_v18  ;;  %v5967_v29 = vld [vmem:[%s7204_s10 + $0x2b0] ss:$8 sps:$4 sm:$0xff]  }
 0x123   : > { %4718 = vmatprep.mubr.bf16.mxu0 %v2347_v22  ;;  %v5895_v22 = vld [vmem:[%s7204_s10 + $0x1f0] ss:$8 sps:$4 sm:$0xff]  }
 0x124   : > { %4443 = vmatpush1.bf16.msra.mxu1 %v5811_v23  ;;  %v5898_v23 = vld [vmem:[%s7204_s10 + $0x7f0] ss:$8 sps:$4 sm:$0xff]  }
 0x125   : > { %4689 = vmatpush1.bf16.msra.mxu0 %v5814_v39  ;;  %4444 = vmatprep.subr.bf16.mxu1 %v5819_v40  ;;  %v5906_v39 = vld [vmem:[%s7204_s10 + $0x804] ss:$8 sps:$4 sm:$0xff]   ;;  %v2266_v40 = vcombine.high %v7371_v38, %v7371_v38 }
 0x126   : > { %4690 = vmatprep.subr.bf16.mxu0 %v5822_v33  ;;  %v2295_v33 = vcombine.high %v7298_v32, %v7298_v32 }
 0x127   : > { %v7393_v32 = vrot.slane %v2266_v40, %v7209_v18  ;;  %v5982_v40 = vld [vmem:[%s7204_s10 + $0x8d0] ss:$8 sps:$4 sm:$0xff]  }
 0x128   : > { %4445 = vmatpush1.bf16.msra.mxu1 %v5817_v34  ;;  %v2345_v34 = vcombine.high %v7302_v35, %v7302_v35 }
 0x129   : > { %4691 = vmatpush1.bf16.msra.mxu0 %v5820_v41  ;;  %4446 = vmatprep.subr.bf16.mxu1 %v5825_v42  ;;  %v5901_v41 = vld [vmem:[%s7204_s10 + $0x200] ss:$8 sps:$4 sm:$0xff]  }
 0x12a   : > { %4692 = vmatprep.subr.bf16.mxu0 %v5828_v43  ;;  %v5904_v42 = vld [vmem:[%s7204_s10 + $0x800] ss:$8 sps:$4 sm:$0xff]   ;;  %v5909_v43 = vld [vmem:[%s7204_s10 + $0x214] ss:$8 sps:$4 sm:$0xff]  }
 0x12c   : > { %4447 = vmatpush1.bf16.msra.mxu1 %v5823_v44  ;;  %v5912_v44 = vld [vmem:[%s7204_s10 + $0x814] ss:$8 sps:$4 sm:$0xff]  }
 0x12d   : > { %4693 = vmatpush1.bf16.msra.mxu0 %v5826_v45  ;;  %4448 = vmatprep.subr.bf16.mxu1 %v5831_v46  ;;  %v7390_v45 = vld [vmem:[%s7769_s0 + $0x10] sm:$0xff] }
 0x12e   : > { %4694 = vmatprep.subr.bf16.mxu0 %v5834_v47  ;;  %v7397_v35 = vrot.slane %v7390_v45, %v7209_v18  ;;  %v5907_v46 = vld [vmem:[%s7204_s10 + $0x210] ss:$8 sps:$4 sm:$0xff]  }
 0x12f   : > { %v5910_v47 = vld [vmem:[%s7204_s10 + $0x810] ss:$8 sps:$4 sm:$0xff]  }
 0x130   : > { %4449 = vmatpush1.bf16.msra.mxu1 %v5829_v48  ;;  %v2363_v48 = vcombine.high %v7397_v35, %v7397_v35 }
 0x131   : > { %4695 = vmatpush1.bf16.msra.mxu0 %v5832_v49  ;;  %4450 = vmatprep.subr.bf16.mxu1 %v5837_v50  ;;  %v5915_v49 = vld [vmem:[%s7204_s10 + $0x224] ss:$8 sps:$4 sm:$0xff]  }
 0x132   : > { %4696 = vmatprep.subr.bf16.mxu0 %v5840_v51  ;;  %v5918_v50 = vld [vmem:[%s7204_s10 + $0x824] ss:$8 sps:$4 sm:$0xff]   ;;  %v7407_v51 = vrot.slane %v2363_v48, %v7209_v18 }
 0x133   : > { %v5999_v48 = vld [vmem:[%s7204_s10 + $0x304] ss:$8 sps:$4 sm:$0xff]  }
 0x134   : > { %4451 = vmatpush1.bf16.msra.mxu1 %v5835_v52  ;;  %v5913_v52 = vld [vmem:[%s7204_s10 + $0x220] ss:$8 sps:$4 sm:$0xff]  }
 0x135   : > { %4697 = vmatpush1.bf16.msra.mxu0 %v5838_v53  ;;  %4452 = vmatprep.subr.bf16.mxu1 %v5843_v54  ;;  %v5916_v53 = vld [vmem:[%s7204_s10 + $0x820] ss:$8 sps:$4 sm:$0xff]   ;;  %v5921_v54 = vld [vmem:[%s7204_s10 + $0x234] ss:$8 sps:$4 sm:$0xff]  }
 0x136   : > { %4698 = vmatprep.subr.bf16.mxu0 %v5846_v55  ;;  %v5924_v55 = vld [vmem:[%s7204_s10 + $0x834] ss:$8 sps:$4 sm:$0xff]  }
 0x138   : > { %4453 = vmatpush1.bf16.msra.mxu1 %v5841_v56  ;;  %v5919_v56 = vld [vmem:[%s7204_s10 + $0x230] ss:$8 sps:$4 sm:$0xff]  }
 0x139   : > { %4699 = vmatpush1.bf16.msra.mxu0 %v5844_v57  ;;  %4454 = vmatprep.subr.bf16.mxu1 %v5849_v58  ;;  %v5922_v57 = vld [vmem:[%s7204_s10 + $0x830] ss:$8 sps:$4 sm:$0xff]   ;;  %v5927_v58 = vld [vmem:[%s7204_s10 + $0x244] ss:$8 sps:$4 sm:$0xff]  }
 0x13a   : > { %4700 = vmatprep.subr.bf16.mxu0 %v5852_v59  ;;  %v5930_v59 = vld [vmem:[%s7204_s10 + $0x844] ss:$8 sps:$4 sm:$0xff]  }
 0x13c   : > { %4455 = vmatpush1.bf16.msra.mxu1 %v5847_v60  ;;  %v5925_v60 = vld [vmem:[%s7204_s10 + $0x240] ss:$8 sps:$4 sm:$0xff]  }
 0x13d   : > { %4701 = vmatpush1.bf16.msra.mxu0 %v5850_v61  ;;  %4456 = vmatprep.subr.bf16.mxu1 %v5855_v62  ;;  %v5928_v61 = vld [vmem:[%s7204_s10 + $0x840] ss:$8 sps:$4 sm:$0xff]   ;;  %v5933_v62 = vld [vmem:[%s7204_s10 + $0x254] ss:$8 sps:$4 sm:$0xff]  }
 0x13e   : > { %4702 = vmatprep.subr.bf16.mxu0 %v5858_v63  ;;  %v5936_v63 = vld [vmem:[%s7204_s10 + $0x854] ss:$8 sps:$4 sm:$0xff]  }
 0x140   : > { %4457 = vmatpush1.bf16.msra.mxu1 %v5853_v0  ;;  %v5931_v0 = vld [vmem:[%s7204_s10 + $0x250] ss:$8 sps:$4 sm:$0xff]  }
 0x141   : > { %4703 = vmatpush1.bf16.msra.mxu0 %v5856_v1  ;;  %4458 = vmatprep.subr.bf16.mxu1 %v5861_v2  ;;  %v5934_v1 = vld [vmem:[%s7204_s10 + $0x850] ss:$8 sps:$4 sm:$0xff]   ;;  %v5939_v2 = vld [vmem:[%s7204_s10 + $0x264] ss:$8 sps:$4 sm:$0xff]  }
 0x142   : > { %4704 = vmatprep.subr.bf16.mxu0 %v5864_v3  ;;  %v5942_v3 = vld [vmem:[%s7204_s10 + $0x864] ss:$8 sps:$4 sm:$0xff]  }
 0x144   : > { %4459 = vmatpush1.bf16.msra.mxu1 %v5859_v4  ;;  %v5937_v4 = vld [vmem:[%s7204_s10 + $0x260] ss:$8 sps:$4 sm:$0xff]  }
 0x145   : > { %4705 = vmatpush1.bf16.msra.mxu0 %v5862_v5  ;;  %4460 = vmatprep.subr.bf16.mxu1 %v5867_v6  ;;  %v5940_v5 = vld [vmem:[%s7204_s10 + $0x860] ss:$8 sps:$4 sm:$0xff]   ;;  %v5945_v6 = vld [vmem:[%s7204_s10 + $0x274] ss:$8 sps:$4 sm:$0xff]  }
 0x146   : > { %4706 = vmatprep.subr.bf16.mxu0 %v5870_v7  ;;  %v5948_v7 = vld [vmem:[%s7204_s10 + $0x874] ss:$8 sps:$4 sm:$0xff]  }
 0x148   : > { %4461 = vmatpush1.bf16.msra.mxu1 %v5865_v8  ;;  %v5943_v8 = vld [vmem:[%s7204_s10 + $0x270] ss:$8 sps:$4 sm:$0xff]  }
 0x149   : > { %4707 = vmatpush1.bf16.msra.mxu0 %v5868_v9  ;;  %4462 = vmatprep.subr.bf16.mxu1 %v5873_v10  ;;  %v5946_v9 = vld [vmem:[%s7204_s10 + $0x870] ss:$8 sps:$4 sm:$0xff]   ;;  %v5951_v10 = vld [vmem:[%s7204_s10 + $0x284] ss:$8 sps:$4 sm:$0xff]  }
 0x14a   : > { %4708 = vmatprep.subr.bf16.mxu0 %v5876_v11  ;;  %v5954_v11 = vld [vmem:[%s7204_s10 + $0x884] ss:$8 sps:$4 sm:$0xff]  }
 0x14c   : > { %4463 = vmatpush1.bf16.msra.mxu1 %v5871_v14  ;;  %v5949_v14 = vld [vmem:[%s7204_s10 + $0x280] ss:$8 sps:$4 sm:$0xff]  }
 0x14d   : > { %4709 = vmatpush1.bf16.msra.mxu0 %v5874_v15  ;;  %4464 = vmatprep.subr.bf16.mxu1 %v5879_v16  ;;  %v5952_v15 = vld [vmem:[%s7204_s10 + $0x880] ss:$8 sps:$4 sm:$0xff]   ;;  %v5957_v16 = vld [vmem:[%s7204_s10 + $0x294] ss:$8 sps:$4 sm:$0xff]  }
 0x14e   : > { %4710 = vmatprep.subr.bf16.mxu0 %v5882_v17  ;;  %v5960_v17 = vld [vmem:[%s7204_s10 + $0x894] ss:$8 sps:$4 sm:$0xff]  }
 0x150   : > { %4465 = vmatpush1.bf16.msra.mxu1 %v5877_v19  ;;  %v5955_v19 = vld [vmem:[%s7204_s10 + $0x290] ss:$8 sps:$4 sm:$0xff]  }
 0x151   : > { %4711 = vmatpush1.bf16.msra.mxu0 %v5880_v20  ;;  %4466 = vmatprep.subr.bf16.mxu1 %v5885_v21  ;;  %v5958_v20 = vld [vmem:[%s7204_s10 + $0x890] ss:$8 sps:$4 sm:$0xff]   ;;  %v5963_v21 = vld [vmem:[%s7204_s10 + $0x2a4] ss:$8 sps:$4 sm:$0xff]  }
 0x152   : > { %4712 = vmatprep.subr.bf16.mxu0 %v5888_v24  ;;  %v5966_v24 = vld [vmem:[%s7204_s10 + $0x8a4] ss:$8 sps:$4 sm:$0xff]  }
 0x154   : > { %4467 = vmatpush1.bf16.msra.mxu1 %v5883_v25  ;;  %v5961_v25 = vld [vmem:[%s7204_s10 + $0x2a0] ss:$8 sps:$4 sm:$0xff]  }
 0x155   : > { %4713 = vmatpush1.bf16.msra.mxu0 %v5886_v26  ;;  %4468 = vmatprep.subr.bf16.mxu1 %v5891_v27  ;;  %v5964_v26 = vld [vmem:[%s7204_s10 + $0x8a0] ss:$8 sps:$4 sm:$0xff]   ;;  %v5969_v27 = vld [vmem:[%s7204_s10 + $0x2b4] ss:$8 sps:$4 sm:$0xff]  }
 0x156   : > { %4714 = vmatprep.subr.bf16.mxu0 %v5894_v28  ;;  %v5972_v28 = vld [vmem:[%s7204_s10 + $0x8b4] ss:$8 sps:$4 sm:$0xff]  }
 0x158   : > { %4469 = vmatpush1.bf16.msra.mxu1 %v5889_v30  ;;  %v5970_v30 = vld [vmem:[%s7204_s10 + $0x8b0] ss:$8 sps:$4 sm:$0xff]  }
 0x159   : > { %4715 = vmatpush1.bf16.msra.mxu0 %v5892_v31  ;;  %4470 = vmatprep.subr.bf16.mxu1 %v5897_v36  ;;  %v5975_v31 = vld [vmem:[%s7204_s10 + $0x2c4] ss:$8 sps:$4 sm:$0xff]  }
 0x15a   : > { %4716 = vmatprep.subr.bf16.mxu0 %v5900_v37  ;;  %v5978_v36 = vld [vmem:[%s7204_s10 + $0x8c4] ss:$8 sps:$4 sm:$0xff]   ;;  %v5973_v37 = vld [vmem:[%s7204_s10 + $0x2c0] ss:$8 sps:$4 sm:$0xff]  }
 0x15c   : > { %4471 = vmatpush1.bf16.msra.mxu1 %v5895_v22  ;;  %v5976_v22 = vld [vmem:[%s7204_s10 + $0x8c0] ss:$8 sps:$4 sm:$0xff]  }
 0x15d   : > { %4717 = vmatpush1.bf16.msra.mxu0 %v5898_v23  ;;  %4481 = vmatprep.subr.bf16.mxu1 %v5903_v13  ;;  %v5981_v23 = vld [vmem:[%s7204_s10 + $0x2d4] ss:$8 sps:$4 sm:$0xff]  }
 0x15e   : > { %4727 = vmatprep.subr.bf16.mxu0 %v5906_v39  ;;  %v5984_v13 = vld [vmem:[%s7204_s10 + $0x8d4] ss:$8 sps:$4 sm:$0xff]   ;;  %v5979_v39 = vld [vmem:[%s7204_s10 + $0x2d0] ss:$8 sps:$4 sm:$0xff]  }
 0x15f   : > { %4473 = vmatmul.mubr.bf16.vlgmr.msra.gmra.mrb[0].mxu1 %v2295_v33  ;;  %v5987_v33 = vld [vmem:[%s7204_s10 + $0x2e4] ss:$8 sps:$4 sm:$0xff]  }
 0x160   : > { %4719 = vmatmul.mubr.bf16.vlgmr.msra.gmra.mrb[0].mxu0 %v2345_v34  ;;  %4482 = vmatpush1.bf16.msra.mxu1 %v5901_v41  ;;  %v5990_v34 = vld [vmem:[%s7204_s10 + $0x8e4] ss:$8 sps:$4 sm:$0xff]   ;;  %v5985_v41 = vld [vmem:[%s7204_s10 + $0x2e0] ss:$8 sps:$4 sm:$0xff]  }
 0x161   : > { %4728 = vmatpush1.bf16.msra.mxu0 %v5904_v42  ;;  %4483 = vmatprep.subr.bf16.mxu1 %v5909_v43  ;;  %v5988_v42 = vld [vmem:[%s7204_s10 + $0x8e0] ss:$8 sps:$4 sm:$0xff]   ;;  %v5993_v43 = vld [vmem:[%s7204_s10 + $0x2f4] ss:$8 sps:$4 sm:$0xff]  }
 0x162   : > { %4729 = vmatprep.subr.bf16.mxu0 %v5912_v44  ;;  %4513 = vmatprep.mubr.bf16.mxu1 %v7393_v32  ;;  %v5996_v44 = vld [vmem:[%s7204_s10 + $0x8f4] ss:$8 sps:$4 sm:$0xff]  }
 0x163   : > { %4759 = vmatprep.mubr.bf16.mxu0 %v7407_v51 }
 0x164   : > { %4484 = vmatpush1.bf16.msra.mxu1 %v5907_v46  ;;  %v5991_v46 = vld [vmem:[%s7204_s10 + $0x2f0] ss:$8 sps:$4 sm:$0xff]  }
 0x165   : > { %4730 = vmatpush1.bf16.msra.mxu0 %v5910_v47  ;;  %4485 = vmatprep.subr.bf16.mxu1 %v5915_v49  ;;  %v5994_v47 = vld [vmem:[%s7204_s10 + $0x8f0] ss:$8 sps:$4 sm:$0xff]   ;;  %v6002_v49 = vld [vmem:[%s7204_s10 + $0x904] ss:$8 sps:$4 sm:$0xff]  }
 0x166   : > { %4731 = vmatprep.subr.bf16.mxu0 %v5918_v50  ;;  %v5997_v50 = vld [vmem:[%s7204_s10 + $0x300] ss:$8 sps:$4 sm:$0xff]  }
 0x168   : > { %4486 = vmatpush1.bf16.msra.mxu1 %v5913_v52  ;;  %v7469_v52 = vrot.slane %v7371_v38, %v7209_v18  ;;  %v2395_v38 = vcombine.high %v7407_v51, %v7407_v51  ;;  %v6009_v51 = vld [vmem:[%s7204_s10 + $0x320] ss:$8 sps:$4 sm:$0xff]  }
 0x169   : > { %4732 = vmatpush1.bf16.msra.mxu0 %v5916_v53  ;;  %4487 = vmatprep.subr.bf16.mxu1 %v5921_v54  ;;  %v7473_v53 = vrot.slane %v7397_v35, %v7209_v18  ;;  %v6000_v54 = vld [vmem:[%s7204_s10 + $0x900] ss:$8 sps:$4 sm:$0xff]   ;;  %v6003_v35 = vld [vmem:[%s7204_s10 + $0x310] ss:$8 sps:$4 sm:$0xff]  }
 0x16a   : > { %4733 = vmatprep.subr.bf16.mxu0 %v5924_v55  ;;  %v6005_v55 = vld [vmem:[%s7204_s10 + $0x314] ss:$8 sps:$4 sm:$0xff]  }
 0x16c   : > { %4488 = vmatpush1.bf16.msra.mxu1 %v5919_v56  ;;  %v6008_v56 = vld [vmem:[%s7204_s10 + $0x914] ss:$8 sps:$4 sm:$0xff]  }
 0x16d   : > { %4734 = vmatpush1.bf16.msra.mxu0 %v5922_v57  ;;  %4489 = vmatprep.subr.bf16.mxu1 %v5927_v58  ;;  %v2298_v57 = vcombine.high %v7393_v32, %v7393_v32  ;;  %v6006_v58 = vld [vmem:[%s7204_s10 + $0x910] ss:$8 sps:$4 sm:$0xff]   ;;  %v6014_v32 = vld [vmem:[%s7204_s10 + $0x924] ss:$8 sps:$4 sm:$0xff]  }
 0x16e   : > { %4735 = vmatprep.subr.bf16.mxu0 %v5930_v59  ;;  %v6011_v59 = vld [vmem:[%s7204_s10 + $0x324] ss:$8 sps:$4 sm:$0xff]  }
 0x170   : > { %4490 = vmatpush1.bf16.msra.mxu1 %v5925_v60  ;;  %v6012_v60 = vld [vmem:[%s7204_s10 + $0x920] ss:$8 sps:$4 sm:$0xff]  }
 0x171   : > { %4736 = vmatpush1.bf16.msra.mxu0 %v5928_v61  ;;  %4491 = vmatprep.subr.bf16.mxu1 %v5933_v62  ;;  %v6017_v61 = vld [vmem:[%s7204_s10 + $0x334] ss:$8 sps:$4 sm:$0xff]  }
 0x172   : > { %4737 = vmatprep.subr.bf16.mxu0 %v5936_v63  ;;  %v6020_v62 = vld [vmem:[%s7204_s10 + $0x934] ss:$8 sps:$4 sm:$0xff]   ;;  %v6015_v63 = vld [vmem:[%s7204_s10 + $0x330] ss:$8 sps:$4 sm:$0xff]  }
 0x174   : > { %4492 = vmatpush1.bf16.msra.mxu1 %v5931_v0  ;;  %v6018_v0 = vld [vmem:[%s7204_s10 + $0x930] ss:$8 sps:$4 sm:$0xff]  }
 0x175   : > { %4738 = vmatpush1.bf16.msra.mxu0 %v5934_v1  ;;  %4493 = vmatprep.subr.bf16.mxu1 %v5939_v2  ;;  %v6023_v1 = vld [vmem:[%s7204_s10 + $0x344] ss:$8 sps:$4 sm:$0xff]  }
 0x176   : > { %4739 = vmatprep.subr.bf16.mxu0 %v5942_v3  ;;  %v6026_v2 = vld [vmem:[%s7204_s10 + $0x944] ss:$8 sps:$4 sm:$0xff]   ;;  %v6021_v3 = vld [vmem:[%s7204_s10 + $0x340] ss:$8 sps:$4 sm:$0xff]  }
 0x178   : > { %4494 = vmatpush1.bf16.msra.mxu1 %v5937_v4  ;;  %v6024_v4 = vld [vmem:[%s7204_s10 + $0x940] ss:$8 sps:$4 sm:$0xff]  }
 0x179   : > { %4740 = vmatpush1.bf16.msra.mxu0 %v5940_v5  ;;  %4495 = vmatprep.subr.bf16.mxu1 %v5945_v6  ;;  %v6029_v5 = vld [vmem:[%s7204_s10 + $0x354] ss:$8 sps:$4 sm:$0xff]  }
 0x17a   : > { %4741 = vmatprep.subr.bf16.mxu0 %v5948_v7  ;;  %v6032_v6 = vld [vmem:[%s7204_s10 + $0x954] ss:$8 sps:$4 sm:$0xff]   ;;  %v6027_v7 = vld [vmem:[%s7204_s10 + $0x350] ss:$8 sps:$4 sm:$0xff]  }
 0x17c   : > { %4496 = vmatpush1.bf16.msra.mxu1 %v5943_v8  ;;  %v6030_v8 = vld [vmem:[%s7204_s10 + $0x950] ss:$8 sps:$4 sm:$0xff]  }
 0x17d   : > { %4742 = vmatpush1.bf16.msra.mxu0 %v5946_v9  ;;  %4497 = vmatprep.subr.bf16.mxu1 %v5951_v10  ;;  %v6035_v9 = vld [vmem:[%s7204_s10 + $0x364] ss:$8 sps:$4 sm:$0xff]  }
 0x17e   : > { %4743 = vmatprep.subr.bf16.mxu0 %v5954_v11  ;;  %v6038_v10 = vld [vmem:[%s7204_s10 + $0x964] ss:$8 sps:$4 sm:$0xff]   ;;  %v6033_v11 = vld [vmem:[%s7204_s10 + $0x360] ss:$8 sps:$4 sm:$0xff]  }
 0x180   : > { %4498 = vmatpush1.bf16.msra.mxu1 %v5949_v14  ;;  %v6036_v14 = vld [vmem:[%s7204_s10 + $0x960] ss:$8 sps:$4 sm:$0xff]  }
 0x181   : > { %4744 = vmatpush1.bf16.msra.mxu0 %v5952_v15  ;;  %4499 = vmatprep.subr.bf16.mxu1 %v5957_v16  ;;  %v6041_v15 = vld [vmem:[%s7204_s10 + $0x374] ss:$8 sps:$4 sm:$0xff]  }
 0x182   : > { %4745 = vmatprep.subr.bf16.mxu0 %v5960_v17  ;;  %v6044_v16 = vld [vmem:[%s7204_s10 + $0x974] ss:$8 sps:$4 sm:$0xff]   ;;  %v6039_v17 = vld [vmem:[%s7204_s10 + $0x370] ss:$8 sps:$4 sm:$0xff]  }
 0x184   : > { %4500 = vmatpush1.bf16.msra.mxu1 %v5955_v19  ;;  %v6042_v19 = vld [vmem:[%s7204_s10 + $0x970] ss:$8 sps:$4 sm:$0xff]  }
 0x185   : > { %4746 = vmatpush1.bf16.msra.mxu0 %v5958_v20  ;;  %4501 = vmatprep.subr.bf16.mxu1 %v5963_v21  ;;  %v6047_v20 = vld [vmem:[%s7204_s10 + $0x384] ss:$8 sps:$4 sm:$0xff]  }
 0x186   : > { %4747 = vmatprep.subr.bf16.mxu0 %v5966_v24  ;;  %v6050_v21 = vld [vmem:[%s7204_s10 + $0x984] ss:$8 sps:$4 sm:$0xff]   ;;  %v6045_v24 = vld [vmem:[%s7204_s10 + $0x380] ss:$8 sps:$4 sm:$0xff]  }
 0x188   : > { %4502 = vmatpush1.bf16.msra.mxu1 %v5961_v25  ;;  %v6048_v25 = vld [vmem:[%s7204_s10 + $0x980] ss:$8 sps:$4 sm:$0xff]  }
 0x189   : > { %4748 = vmatpush1.bf16.msra.mxu0 %v5964_v26  ;;  %4503 = vmatprep.subr.bf16.mxu1 %v5969_v27  ;;  %v6053_v26 = vld [vmem:[%s7204_s10 + $0x394] ss:$8 sps:$4 sm:$0xff]  }
 0x18a   : > { %4749 = vmatprep.subr.bf16.mxu0 %v5972_v28  ;;  %v6056_v27 = vld [vmem:[%s7204_s10 + $0x994] ss:$8 sps:$4 sm:$0xff]   ;;  %v6051_v28 = vld [vmem:[%s7204_s10 + $0x390] ss:$8 sps:$4 sm:$0xff]  }
 0x18c   : > { %4504 = vmatpush1.bf16.msra.mxu1 %v5967_v29  ;;  %v6054_v29 = vld [vmem:[%s7204_s10 + $0x990] ss:$8 sps:$4 sm:$0xff]  }
 0x18d   : > { %4750 = vmatpush1.bf16.msra.mxu0 %v5970_v30  ;;  %4505 = vmatprep.subr.bf16.mxu1 %v5975_v31  ;;  %v6059_v30 = vld [vmem:[%s7204_s10 + $0x3a4] ss:$8 sps:$4 sm:$0xff]  }
 0x18e   : > { %4751 = vmatprep.subr.bf16.mxu0 %v5978_v36  ;;  %v6062_v31 = vld [vmem:[%s7204_s10 + $0x9a4] ss:$8 sps:$4 sm:$0xff]   ;;  %v6057_v36 = vld [vmem:[%s7204_s10 + $0x3a0] ss:$8 sps:$4 sm:$0xff]  }
 0x190   : > { %4506 = vmatpush1.bf16.msra.mxu1 %v5973_v37  ;;  %v6060_v37 = vld [vmem:[%s7204_s10 + $0x9a0] ss:$8 sps:$4 sm:$0xff]  }
 0x191   : > { %4752 = vmatpush1.bf16.msra.mxu0 %v5976_v22  ;;  %4507 = vmatprep.subr.bf16.mxu1 %v5981_v23  ;;  %v6065_v22 = vld [vmem:[%s7204_s10 + $0x3b4] ss:$8 sps:$4 sm:$0xff]  }
 0x192   : > { %4753 = vmatprep.subr.bf16.mxu0 %v5984_v13  ;;  %v6068_v23 = vld [vmem:[%s7204_s10 + $0x9b4] ss:$8 sps:$4 sm:$0xff]   ;;  %v6063_v13 = vld [vmem:[%s7204_s10 + $0x3b0] ss:$8 sps:$4 sm:$0xff]  }
 0x194   : > { %4508 = vmatpush1.bf16.msra.mxu1 %v5979_v39  ;;  %v6066_v39 = vld [vmem:[%s7204_s10 + $0x9b0] ss:$8 sps:$4 sm:$0xff]  }
 0x195   : > { %4754 = vmatpush1.bf16.msra.mxu0 %v5982_v40  ;;  %4509 = vmatprep.subr.bf16.mxu1 %v5987_v33  ;;  %v6071_v40 = vld [vmem:[%s7204_s10 + $0x3c4] ss:$8 sps:$4 sm:$0xff]  }
 0x196   : > { %4755 = vmatprep.subr.bf16.mxu0 %v5990_v34  ;;  %v6074_v33 = vld [vmem:[%s7204_s10 + $0x9c4] ss:$8 sps:$4 sm:$0xff]   ;;  %v6069_v34 = vld [vmem:[%s7204_s10 + $0x3c0] ss:$8 sps:$4 sm:$0xff]  }
 0x198   : > { %4510 = vmatpush1.bf16.msra.mxu1 %v5985_v41  ;;  %v6072_v41 = vld [vmem:[%s7204_s10 + $0x9c0] ss:$8 sps:$4 sm:$0xff]  }
 0x199   : > { %4756 = vmatpush1.bf16.msra.mxu0 %v5988_v42  ;;  %4511 = vmatprep.subr.bf16.mxu1 %v5993_v43  ;;  %v6077_v42 = vld [vmem:[%s7204_s10 + $0x3d4] ss:$8 sps:$4 sm:$0xff]  }
 0x19a   : > { %4757 = vmatprep.subr.bf16.mxu0 %v5996_v44  ;;  %v6080_v43 = vld [vmem:[%s7204_s10 + $0x9d4] ss:$8 sps:$4 sm:$0xff]   ;;  %v6075_v44 = vld [vmem:[%s7204_s10 + $0x3d0] ss:$8 sps:$4 sm:$0xff]  }
 0x19c   : > { %4512 = vmatpush1.bf16.msra.mxu1 %v5991_v46  ;;  %v6078_v46 = vld [vmem:[%s7204_s10 + $0x9d0] ss:$8 sps:$4 sm:$0xff]  }
 0x19d   : > { %4758 = vmatpush1.bf16.msra.mxu0 %v5994_v47  ;;  %4522 = vmatprep.subr.bf16.mxu1 %v5999_v48  ;;  %v6083_v47 = vld [vmem:[%s7204_s10 + $0x3e4] ss:$8 sps:$4 sm:$0xff]  }
 0x19e   : > { %4768 = vmatprep.subr.bf16.mxu0 %v6002_v49  ;;  %v6086_v48 = vld [vmem:[%s7204_s10 + $0x9e4] ss:$8 sps:$4 sm:$0xff]   ;;  %v2348_v49 = vcombine.high %v7390_v45, %v7390_v45  ;;  %v6087_v45 = vld [vmem:[%s7204_s10 + $0x3f0] ss:$8 sps:$4 sm:$0xff]  }
 0x19f   : > { %4514 = vmatmul.mubr.bf16.vlgmr.msra.gmra.mrb[0].mxu1 %v7469_v52 }
 0x1a0   : > { %4760 = vmatmul.mubr.bf16.vlgmr.msra.gmra.mrb[0].mxu0 %v7473_v53  ;;  %4523 = vmatpush1.bf16.msra.mxu1 %v5997_v50  ;;  %v6081_v50 = vld [vmem:[%s7204_s10 + $0x3e0] ss:$8 sps:$4 sm:$0xff]  }
 0x1a1   : > { %4769 = vmatpush1.bf16.msra.mxu0 %v6000_v54  ;;  %4524 = vmatprep.subr.bf16.mxu1 %v6005_v55  ;;  %v6084_v54 = vld [vmem:[%s7204_s10 + $0x9e0] ss:$8 sps:$4 sm:$0xff]   ;;  %v6089_v55 = vld [vmem:[%s7204_s10 + $0x3f4] ss:$8 sps:$4 sm:$0xff]  }
 0x1a2   : > { %4770 = vmatprep.subr.bf16.mxu0 %v6008_v56  ;;  %4554 = vmatprep.mubr.bf16.mxu1 %v2298_v57  ;;  %v6092_v56 = vld [vmem:[%s7204_s10 + $0x9f4] ss:$8 sps:$4 sm:$0xff]   ;;  %v7545_v57 = vld.sshfl [vmem:[%s7769_s0 + $0x8] sm:$0xff pattern:$0x75316420] }
 0x1a3   : > { %4800 = vmatprep.mubr.bf16.mxu0 %v2395_v38  ;;  %v7548_v38 = vrot.slane %v2348_v49, %v7209_v18  ;;  %v6162_v49 = vld [vmem:[%s7204_s10 + $0xab0] ss:$8 sps:$4 sm:$0xff]  }
 0x1a4   : > { %4525 = vmatpush1.bf16.msra.mxu1 %v6003_v35  ;;  %v6090_v35 = vld [vmem:[%s7204_s10 + $0x9f0] ss:$8 sps:$4 sm:$0xff]  }
 0x1a5   : > { %4771 = vmatpush1.bf16.msra.mxu0 %v6006_v58  ;;  %4526 = vmatprep.subr.bf16.mxu1 %v6011_v59  ;;  %v6095_v58 = vld [vmem:[%s7204_s10 + $0x404] ss:$8 sps:$4 sm:$0xff]  }
 0x1a6   : > { %4772 = vmatprep.subr.bf16.mxu0 %v6014_v32  ;;  %v6098_v59 = vld [vmem:[%s7204_s10 + $0xa04] ss:$8 sps:$4 sm:$0xff]   ;;  %v6093_v32 = vld [vmem:[%s7204_s10 + $0x400] ss:$8 sps:$4 sm:$0xff]  }
 0x1a8   : > { %4527 = vmatpush1.bf16.msra.mxu1 %v6009_v51  ;;  %v2314_v51 = vcombine.high %v7545_v57, %v7545_v57 }
 0x1a9   : > { %4773 = vmatpush1.bf16.msra.mxu0 %v6012_v60  ;;  %4528 = vmatprep.subr.bf16.mxu1 %v6017_v61  ;;  %v2364_v60 = vcombine.high %v7548_v38, %v7548_v38  ;;  %v6096_v61 = vld [vmem:[%s7204_s10 + $0xa00] ss:$8 sps:$4 sm:$0xff]  }
 0x1aa   : > { %4774 = vmatprep.subr.bf16.mxu0 %v6020_v62  ;;  %v2296_v62 = vcombine.high %v7469_v52, %v7469_v52  ;;  %v6099_v52 = vld [vmem:[%s7204_s10 + $0x410] ss:$8 sps:$4 sm:$0xff]  }
 0x1ac   : > { %4529 = vmatpush1.bf16.msra.mxu1 %v6015_v63  ;;  %v2393_v63 = vcombine.high %v7473_v53, %v7473_v53  ;;  %v6102_v53 = vld [vmem:[%s7204_s10 + $0xa10] ss:$8 sps:$4 sm:$0xff]  }
 0x1ad   : > { %4775 = vmatpush1.bf16.msra.mxu0 %v6018_v0  ;;  %4530 = vmatprep.subr.bf16.mxu1 %v6023_v1  ;;  %v6101_v0 = vld [vmem:[%s7204_s10 + $0x414] ss:$8 sps:$4 sm:$0xff]  }
 0x1ae   : > { %4776 = vmatprep.subr.bf16.mxu0 %v6026_v2  ;;  %v6104_v1 = vld [vmem:[%s7204_s10 + $0xa14] ss:$8 sps:$4 sm:$0xff]   ;;  %v7567_v2 = vrot.slane %v2314_v51, %v7209_v18  ;;  %v6182_v51 = vld [vmem:[%s7204_s10 + $0xae4] ss:$8 sps:$4 sm:$0xff]  }
 0x1b0   : > { %4531 = vmatpush1.bf16.msra.mxu1 %v6021_v3  ;;  %v7570_v3 = vrot.slane %v2364_v60, %v7209_v18  ;;  %v6177_v60 = vld [vmem:[%s7204_s10 + $0x4e0] ss:$8 sps:$4 sm:$0xff]  }
 0x1b1   : > { %4777 = vmatpush1.bf16.msra.mxu0 %v6024_v4  ;;  %4532 = vmatprep.subr.bf16.mxu1 %v6029_v5  ;;  %v6107_v4 = vld [vmem:[%s7204_s10 + $0x424] ss:$8 sps:$4 sm:$0xff]  }
 0x1b2   : > { %4778 = vmatprep.subr.bf16.mxu0 %v6032_v6  ;;  %v6110_v5 = vld [vmem:[%s7204_s10 + $0xa24] ss:$8 sps:$4 sm:$0xff]   ;;  %v6105_v6 = vld [vmem:[%s7204_s10 + $0x420] ss:$8 sps:$4 sm:$0xff]  }
 0x1b4   : > { %4533 = vmatpush1.bf16.msra.mxu1 %v6027_v7  ;;  %v6108_v7 = vld [vmem:[%s7204_s10 + $0xa20] ss:$8 sps:$4 sm:$0xff]  }
 0x1b5   : > { %4779 = vmatpush1.bf16.msra.mxu0 %v6030_v8  ;;  %4534 = vmatprep.subr.bf16.mxu1 %v6035_v9  ;;  %v6113_v8 = vld [vmem:[%s7204_s10 + $0x434] ss:$8 sps:$4 sm:$0xff]  }
 0x1b6   : > { %4780 = vmatprep.subr.bf16.mxu0 %v6038_v10  ;;  %v6116_v9 = vld [vmem:[%s7204_s10 + $0xa34] ss:$8 sps:$4 sm:$0xff]   ;;  %v6111_v10 = vld [vmem:[%s7204_s10 + $0x430] ss:$8 sps:$4 sm:$0xff]  }
 0x1b8   : > { %4535 = vmatpush1.bf16.msra.mxu1 %v6033_v11  ;;  %v6114_v11 = vld [vmem:[%s7204_s10 + $0xa30] ss:$8 sps:$4 sm:$0xff]  }
 0x1b9   : > { %4781 = vmatpush1.bf16.msra.mxu0 %v6036_v14  ;;  %4536 = vmatprep.subr.bf16.mxu1 %v6041_v15  ;;  %v6119_v14 = vld [vmem:[%s7204_s10 + $0x444] ss:$8 sps:$4 sm:$0xff]  }
 0x1ba   : > { %4782 = vmatprep.subr.bf16.mxu0 %v6044_v16  ;;  %v6122_v15 = vld [vmem:[%s7204_s10 + $0xa44] ss:$8 sps:$4 sm:$0xff]   ;;  %v6117_v16 = vld [vmem:[%s7204_s10 + $0x440] ss:$8 sps:$4 sm:$0xff]  }
 0x1bc   : > { %4537 = vmatpush1.bf16.msra.mxu1 %v6039_v17  ;;  %v6120_v17 = vld [vmem:[%s7204_s10 + $0xa40] ss:$8 sps:$4 sm:$0xff]  }
 0x1bd   : > { %4783 = vmatpush1.bf16.msra.mxu0 %v6042_v19  ;;  %4538 = vmatprep.subr.bf16.mxu1 %v6047_v20  ;;  %v6125_v19 = vld [vmem:[%s7204_s10 + $0x454] ss:$8 sps:$4 sm:$0xff]  }
 0x1be   : > { %4784 = vmatprep.subr.bf16.mxu0 %v6050_v21  ;;  %v6128_v20 = vld [vmem:[%s7204_s10 + $0xa54] ss:$8 sps:$4 sm:$0xff]   ;;  %v6123_v21 = vld [vmem:[%s7204_s10 + $0x450] ss:$8 sps:$4 sm:$0xff]  }
 0x1c0   : > { %4539 = vmatpush1.bf16.msra.mxu1 %v6045_v24  ;;  %v6126_v24 = vld [vmem:[%s7204_s10 + $0xa50] ss:$8 sps:$4 sm:$0xff]  }
 0x1c1   : > { %4785 = vmatpush1.bf16.msra.mxu0 %v6048_v25  ;;  %4540 = vmatprep.subr.bf16.mxu1 %v6053_v26  ;;  %v6131_v25 = vld [vmem:[%s7204_s10 + $0x464] ss:$8 sps:$4 sm:$0xff]  }
 0x1c2   : > { %4786 = vmatprep.subr.bf16.mxu0 %v6056_v27  ;;  %v6134_v26 = vld [vmem:[%s7204_s10 + $0xa64] ss:$8 sps:$4 sm:$0xff]   ;;  %v6129_v27 = vld [vmem:[%s7204_s10 + $0x460] ss:$8 sps:$4 sm:$0xff]  }
 0x1c4   : > { %4541 = vmatpush1.bf16.msra.mxu1 %v6051_v28  ;;  %v6132_v28 = vld [vmem:[%s7204_s10 + $0xa60] ss:$8 sps:$4 sm:$0xff]  }
 0x1c5   : > { %4787 = vmatpush1.bf16.msra.mxu0 %v6054_v29  ;;  %4542 = vmatprep.subr.bf16.mxu1 %v6059_v30  ;;  %v6137_v29 = vld [vmem:[%s7204_s10 + $0x474] ss:$8 sps:$4 sm:$0xff]  }
 0x1c6   : > { %4788 = vmatprep.subr.bf16.mxu0 %v6062_v31  ;;  %v6140_v30 = vld [vmem:[%s7204_s10 + $0xa74] ss:$8 sps:$4 sm:$0xff]   ;;  %v6135_v31 = vld [vmem:[%s7204_s10 + $0x470] ss:$8 sps:$4 sm:$0xff]  }
 0x1c8   : > { %4543 = vmatpush1.bf16.msra.mxu1 %v6057_v36  ;;  %v6138_v36 = vld [vmem:[%s7204_s10 + $0xa70] ss:$8 sps:$4 sm:$0xff]  }
 0x1c9   : > { %4789 = vmatpush1.bf16.msra.mxu0 %v6060_v37  ;;  %4544 = vmatprep.subr.bf16.mxu1 %v6065_v22  ;;  %v6143_v37 = vld [vmem:[%s7204_s10 + $0x484] ss:$8 sps:$4 sm:$0xff]  }
 0x1ca   : > { %4790 = vmatprep.subr.bf16.mxu0 %v6068_v23  ;;  %v6146_v22 = vld [vmem:[%s7204_s10 + $0xa84] ss:$8 sps:$4 sm:$0xff]   ;;  %v6141_v23 = vld [vmem:[%s7204_s10 + $0x480] ss:$8 sps:$4 sm:$0xff]  }
 0x1cc   : > { %4545 = vmatpush1.bf16.msra.mxu1 %v6063_v13  ;;  %v6144_v13 = vld [vmem:[%s7204_s10 + $0xa80] ss:$8 sps:$4 sm:$0xff]  }
 0x1cd   : > { %4791 = vmatpush1.bf16.msra.mxu0 %v6066_v39  ;;  %4546 = vmatprep.subr.bf16.mxu1 %v6071_v40  ;;  %v6149_v39 = vld [vmem:[%s7204_s10 + $0x494] ss:$8 sps:$4 sm:$0xff]  }
 0x1ce   : > { %4792 = vmatprep.subr.bf16.mxu0 %v6074_v33  ;;  %v6152_v40 = vld [vmem:[%s7204_s10 + $0xa94] ss:$8 sps:$4 sm:$0xff]   ;;  %v6147_v33 = vld [vmem:[%s7204_s10 + $0x490] ss:$8 sps:$4 sm:$0xff]  }
 0x1d0   : > { %4547 = vmatpush1.bf16.msra.mxu1 %v6069_v34  ;;  %v6150_v34 = vld [vmem:[%s7204_s10 + $0xa90] ss:$8 sps:$4 sm:$0xff]  }
 0x1d1   : > { %4793 = vmatpush1.bf16.msra.mxu0 %v6072_v41  ;;  %4548 = vmatprep.subr.bf16.mxu1 %v6077_v42  ;;  %v6155_v41 = vld [vmem:[%s7204_s10 + $0x4a4] ss:$8 sps:$4 sm:$0xff]  }
 0x1d2   : > { %4794 = vmatprep.subr.bf16.mxu0 %v6080_v43  ;;  %v6158_v42 = vld [vmem:[%s7204_s10 + $0xaa4] ss:$8 sps:$4 sm:$0xff]   ;;  %v6153_v43 = vld [vmem:[%s7204_s10 + $0x4a0] ss:$8 sps:$4 sm:$0xff]  }
 0x1d4   : > { %4549 = vmatpush1.bf16.msra.mxu1 %v6075_v44  ;;  %v6156_v44 = vld [vmem:[%s7204_s10 + $0xaa0] ss:$8 sps:$4 sm:$0xff]  }
 0x1d5   : > { %4795 = vmatpush1.bf16.msra.mxu0 %v6078_v46  ;;  %4550 = vmatprep.subr.bf16.mxu1 %v6083_v47  ;;  %v6161_v46 = vld [vmem:[%s7204_s10 + $0x4b4] ss:$8 sps:$4 sm:$0xff]  }
 0x1d6   : > { %4796 = vmatprep.subr.bf16.mxu0 %v6086_v48  ;;  %v6164_v47 = vld [vmem:[%s7204_s10 + $0xab4] ss:$8 sps:$4 sm:$0xff]   ;;  %v6159_v48 = vld [vmem:[%s7204_s10 + $0x4b0] ss:$8 sps:$4 sm:$0xff]  }
 0x1d8   : > { %4551 = vmatpush1.bf16.msra.mxu1 %v6081_v50  ;;  %v6167_v50 = vld [vmem:[%s7204_s10 + $0x4c4] ss:$8 sps:$4 sm:$0xff]  }
 0x1d9   : > { %4797 = vmatpush1.bf16.msra.mxu0 %v6084_v54  ;;  %4552 = vmatprep.subr.bf16.mxu1 %v6089_v55  ;;  %v6170_v54 = vld [vmem:[%s7204_s10 + $0xac4] ss:$8 sps:$4 sm:$0xff]   ;;  %v6165_v55 = vld [vmem:[%s7204_s10 + $0x4c0] ss:$8 sps:$4 sm:$0xff]  }
 0x1da   : > { %4798 = vmatprep.subr.bf16.mxu0 %v6092_v56  ;;  %v6168_v56 = vld [vmem:[%s7204_s10 + $0xac0] ss:$8 sps:$4 sm:$0xff]  }
 0x1dc   : > { %4553 = vmatpush1.bf16.msra.mxu1 %v6087_v45  ;;  %v6173_v45 = vld [vmem:[%s7204_s10 + $0x4d4] ss:$8 sps:$4 sm:$0xff]  }
 0x1dd   : > { %4799 = vmatpush1.bf16.msra.mxu0 %v6090_v35  ;;  %4563 = vmatprep.subr.bf16.mxu1 %v6095_v58  ;;  %v6176_v35 = vld [vmem:[%s7204_s10 + $0xad4] ss:$8 sps:$4 sm:$0xff]   ;;  %v6171_v58 = vld [vmem:[%s7204_s10 + $0x4d0] ss:$8 sps:$4 sm:$0xff]  }
 0x1de   : > { %4809 = vmatprep.subr.bf16.mxu0 %v6098_v59  ;;  %v6174_v59 = vld [vmem:[%s7204_s10 + $0xad0] ss:$8 sps:$4 sm:$0xff]  }
 0x1df   : > { %4555 = vmatmul.mubr.bf16.vlgmr.msra.gmra.mrb[0].mxu1 %v2296_v62  ;;  %v6185_v62 = vld [vmem:[%s7204_s10 + $0x4f4] ss:$8 sps:$4 sm:$0xff]  }
 0x1e0   : > { %4801 = vmatmul.mubr.bf16.vlgmr.msra.gmra.mrb[0].mxu0 %v2393_v63  ;;  %4564 = vmatpush1.bf16.msra.mxu1 %v6093_v32  ;;  %v6179_v32 = vld [vmem:[%s7204_s10 + $0x4e4] ss:$8 sps:$4 sm:$0xff]   ;;  %v6188_v63 = vld [vmem:[%s7204_s10 + $0xaf4] ss:$8 sps:$4 sm:$0xff]  }
 0x1e1   : > { %4810 = vmatpush1.bf16.msra.mxu0 %v6096_v61  ;;  %4565 = vmatprep.subr.bf16.mxu1 %v6101_v0  ;;  %v6180_v61 = vld [vmem:[%s7204_s10 + $0xae0] ss:$8 sps:$4 sm:$0xff]   ;;  %v6183_v0 = vld [vmem:[%s7204_s10 + $0x4f0] ss:$8 sps:$4 sm:$0xff]  }
 0x1e2   : > { %4811 = vmatprep.subr.bf16.mxu0 %v6104_v1  ;;  %4595 = vmatprep.mubr.bf16.mxu1 %v7567_v2  ;;  %v6186_v1 = vld [vmem:[%s7204_s10 + $0xaf0] ss:$8 sps:$4 sm:$0xff]  }
 0x1e3   : > { %4841 = vmatprep.mubr.bf16.mxu0 %v7570_v3 }
 0x1e4   : > { %4566 = vmatpush1.bf16.msra.mxu1 %v6099_v52  ;;  %v6191_v52 = vld [vmem:[%s7204_s10 + $0x504] ss:$8 sps:$4 sm:$0xff]  }
 0x1e5   : > { %4812 = vmatpush1.bf16.msra.mxu0 %v6102_v53  ;;  %4567 = vmatprep.subr.bf16.mxu1 %v6107_v4  ;;  %v6195_v53 = vld [vmem:[%s7204_s10 + $0xb04] ss:$8 sps:$4 sm:$0xff]   ;;  %v7642_v4 = vrot.slane %v7545_v57, %v7209_v18  ;;  %v2346_v57 = vcombine.high %v7567_v2, %v7567_v2 }
 0x1e6   : > { %4813 = vmatprep.subr.bf16.mxu0 %v6110_v5  ;;  %v7646_v5 = vrot.slane %v7548_v38, %v7209_v18  ;;  %v6196_v38 = vld [vmem:[%s7204_s10 + $0x510] ss:$8 sps:$4 sm:$0xff]   ;;  %v6204_v2 = vld [vmem:[%s7204_s10 + $0x524] ss:$8 sps:$4 sm:$0xff]  }
 0x1e8   : > { %4568 = vmatpush1.bf16.msra.mxu1 %v6105_v6  ;;  %v6189_v6 = vld [vmem:[%s7204_s10 + $0x500] ss:$8 sps:$4 sm:$0xff]  }
 0x1e9   : > { %4814 = vmatpush1.bf16.msra.mxu0 %v6108_v7  ;;  %4569 = vmatprep.subr.bf16.mxu1 %v6113_v8  ;;  %v6193_v7 = vld [vmem:[%s7204_s10 + $0xb00] ss:$8 sps:$4 sm:$0xff]   ;;  %v6198_v8 = vld [vmem:[%s7204_s10 + $0x514] ss:$8 sps:$4 sm:$0xff]  }
 0x1ea   : > { %4815 = vmatprep.subr.bf16.mxu0 %v6116_v9  ;;  %v6201_v9 = vld [vmem:[%s7204_s10 + $0xb14] ss:$8 sps:$4 sm:$0xff]  }
 0x1ec   : > { %4570 = vmatpush1.bf16.msra.mxu1 %v6111_v10  ;;  %v2396_v10 = vcombine.high %v7570_v3, %v7570_v3  ;;  %v6202_v3 = vld [vmem:[%s7204_s10 + $0x520] ss:$8 sps:$4 sm:$0xff]  }
 0x1ed   : > { %4816 = vmatpush1.bf16.msra.mxu0 %v6114_v11  ;;  %4571 = vmatprep.subr.bf16.mxu1 %v6119_v14  ;;  %v6199_v11 = vld [vmem:[%s7204_s10 + $0xb10] ss:$8 sps:$4 sm:$0xff]   ;;  %v6207_v14 = vld [vmem:[%s7204_s10 + $0xb24] ss:$8 sps:$4 sm:$0xff]  }
 0x1ee   : > { %4817 = vmatprep.subr.bf16.mxu0 %v6122_v15  ;;  %v6205_v15 = vld [vmem:[%s7204_s10 + $0xb20] ss:$8 sps:$4 sm:$0xff]  }
 0x1f0   : > { %4572 = vmatpush1.bf16.msra.mxu1 %v6117_v16  ;;  %v6210_v16 = vld [vmem:[%s7204_s10 + $0x534] ss:$8 sps:$4 sm:$0xff]  }
 0x1f1   : > { %4818 = vmatpush1.bf16.msra.mxu0 %v6120_v17  ;;  %4573 = vmatprep.subr.bf16.mxu1 %v6125_v19  ;;  %v6213_v17 = vld [vmem:[%s7204_s10 + $0xb34] ss:$8 sps:$4 sm:$0xff]   ;;  %v6208_v19 = vld [vmem:[%s7204_s10 + $0x530] ss:$8 sps:$4 sm:$0xff]  }
 0x1f2   : > { %4819 = vmatprep.subr.bf16.mxu0 %v6128_v20  ;;  %v6211_v20 = vld [vmem:[%s7204_s10 + $0xb30] ss:$8 sps:$4 sm:$0xff]  }
 0x1f4   : > { %4574 = vmatpush1.bf16.msra.mxu1 %v6123_v21  ;;  %v6216_v21 = vld [vmem:[%s7204_s10 + $0x544] ss:$8 sps:$4 sm:$0xff]  }
 0x1f5   : > { %4820 = vmatpush1.bf16.msra.mxu0 %v6126_v24  ;;  %4575 = vmatprep.subr.bf16.mxu1 %v6131_v25  ;;  %v6219_v24 = vld [vmem:[%s7204_s10 + $0xb44] ss:$8 sps:$4 sm:$0xff]   ;;  %v6214_v25 = vld [vmem:[%s7204_s10 + $0x540] ss:$8 sps:$4 sm:$0xff]  }
 0x1f6   : > { %4821 = vmatprep.subr.bf16.mxu0 %v6134_v26  ;;  %v6217_v26 = vld [vmem:[%s7204_s10 + $0xb40] ss:$8 sps:$4 sm:$0xff]  }
 0x1f8   : > { %4576 = vmatpush1.bf16.msra.mxu1 %v6129_v27  ;;  %v6222_v27 = vld [vmem:[%s7204_s10 + $0x554] ss:$8 sps:$4 sm:$0xff]  }
 0x1f9   : > { %4822 = vmatpush1.bf16.msra.mxu0 %v6132_v28  ;;  %4577 = vmatprep.subr.bf16.mxu1 %v6137_v29  ;;  %v6225_v28 = vld [vmem:[%s7204_s10 + $0xb54] ss:$8 sps:$4 sm:$0xff]   ;;  %v6220_v29 = vld [vmem:[%s7204_s10 + $0x550] ss:$8 sps:$4 sm:$0xff]  }
 0x1fa   : > { %4823 = vmatprep.subr.bf16.mxu0 %v6140_v30  ;;  %v6223_v30 = vld [vmem:[%s7204_s10 + $0xb50] ss:$8 sps:$4 sm:$0xff]  }
 0x1fc   : > { %4578 = vmatpush1.bf16.msra.mxu1 %v6135_v31  ;;  %v6228_v31 = vld [vmem:[%s7204_s10 + $0x564] ss:$8 sps:$4 sm:$0xff]  }
 0x1fd   : > { %4824 = vmatpush1.bf16.msra.mxu0 %v6138_v36  ;;  %4579 = vmatprep.subr.bf16.mxu1 %v6143_v37  ;;  %v6231_v36 = vld [vmem:[%s7204_s10 + $0xb64] ss:$8 sps:$4 sm:$0xff]   ;;  %v6226_v37 = vld [vmem:[%s7204_s10 + $0x560] ss:$8 sps:$4 sm:$0xff]  }
 0x1fe   : > { %4825 = vmatprep.subr.bf16.mxu0 %v6146_v22  ;;  %v6229_v22 = vld [vmem:[%s7204_s10 + $0xb60] ss:$8 sps:$4 sm:$0xff]  }
 0x200   : > { %4580 = vmatpush1.bf16.msra.mxu1 %v6141_v23  ;;  %v6234_v23 = vld [vmem:[%s7204_s10 + $0x574] ss:$8 sps:$4 sm:$0xff]  }
 0x201   : > { %4826 = vmatpush1.bf16.msra.mxu0 %v6144_v13  ;;  %4581 = vmatprep.subr.bf16.mxu1 %v6149_v39  ;;  %v6237_v13 = vld [vmem:[%s7204_s10 + $0xb74] ss:$8 sps:$4 sm:$0xff]   ;;  %v6232_v39 = vld [vmem:[%s7204_s10 + $0x570] ss:$8 sps:$4 sm:$0xff]  }
 0x202   : > { %4827 = vmatprep.subr.bf16.mxu0 %v6152_v40  ;;  %v6235_v40 = vld [vmem:[%s7204_s10 + $0xb70] ss:$8 sps:$4 sm:$0xff]  }
 0x204   : > { %4582 = vmatpush1.bf16.msra.mxu1 %v6147_v33  ;;  %v6240_v33 = vld [vmem:[%s7204_s10 + $0x584] ss:$8 sps:$4 sm:$0xff]  }
 0x205   : > { %4828 = vmatpush1.bf16.msra.mxu0 %v6150_v34  ;;  %4583 = vmatprep.subr.bf16.mxu1 %v6155_v41  ;;  %v6243_v34 = vld [vmem:[%s7204_s10 + $0xb84] ss:$8 sps:$4 sm:$0xff]   ;;  %v6238_v41 = vld [vmem:[%s7204_s10 + $0x580] ss:$8 sps:$4 sm:$0xff]  }
 0x206   : > { %4829 = vmatprep.subr.bf16.mxu0 %v6158_v42  ;;  %v6241_v42 = vld [vmem:[%s7204_s10 + $0xb80] ss:$8 sps:$4 sm:$0xff]  }
 0x208   : > { %4584 = vmatpush1.bf16.msra.mxu1 %v6153_v43  ;;  %v6246_v43 = vld [vmem:[%s7204_s10 + $0x594] ss:$8 sps:$4 sm:$0xff]  }
 0x209   : > { %4830 = vmatpush1.bf16.msra.mxu0 %v6156_v44  ;;  %4585 = vmatprep.subr.bf16.mxu1 %v6161_v46  ;;  %v6249_v44 = vld [vmem:[%s7204_s10 + $0xb94] ss:$8 sps:$4 sm:$0xff]   ;;  %v6244_v46 = vld [vmem:[%s7204_s10 + $0x590] ss:$8 sps:$4 sm:$0xff]  }
 0x20a   : > { %4831 = vmatprep.subr.bf16.mxu0 %v6164_v47  ;;  %v6247_v47 = vld [vmem:[%s7204_s10 + $0xb90] ss:$8 sps:$4 sm:$0xff]  }
 0x20c   : > { %4586 = vmatpush1.bf16.msra.mxu1 %v6159_v48  ;;  %v6252_v48 = vld [vmem:[%s7204_s10 + $0x5a4] ss:$8 sps:$4 sm:$0xff]  }
 0x20d   : > { %4832 = vmatpush1.bf16.msra.mxu0 %v6162_v49  ;;  %4587 = vmatprep.subr.bf16.mxu1 %v6167_v50  ;;  %v6255_v49 = vld [vmem:[%s7204_s10 + $0xba4] ss:$8 sps:$4 sm:$0xff]   ;;  %v6250_v50 = vld [vmem:[%s7204_s10 + $0x5a0] ss:$8 sps:$4 sm:$0xff]  }
 0x20e   : > { %4833 = vmatprep.subr.bf16.mxu0 %v6170_v54  ;;  %v6253_v54 = vld [vmem:[%s7204_s10 + $0xba0] ss:$8 sps:$4 sm:$0xff]  }
 0x210   : > { %4588 = vmatpush1.bf16.msra.mxu1 %v6165_v55  ;;  %v6258_v55 = vld [vmem:[%s7204_s10 + $0x5b4] ss:$8 sps:$4 sm:$0xff]  }
 0x211   : > { %4834 = vmatpush1.bf16.msra.mxu0 %v6168_v56  ;;  %4589 = vmatprep.subr.bf16.mxu1 %v6173_v45  ;;  %v6261_v56 = vld [vmem:[%s7204_s10 + $0xbb4] ss:$8 sps:$4 sm:$0xff]   ;;  %v6256_v45 = vld [vmem:[%s7204_s10 + $0x5b0] ss:$8 sps:$4 sm:$0xff]  }
 0x212   : > { %4835 = vmatprep.subr.bf16.mxu0 %v6176_v35  ;;  %v6259_v35 = vld [vmem:[%s7204_s10 + $0xbb0] ss:$8 sps:$4 sm:$0xff]  }
 0x214   : > { %4590 = vmatpush1.bf16.msra.mxu1 %v6171_v58  ;;  %v6264_v58 = vld [vmem:[%s7204_s10 + $0x5c4] ss:$8 sps:$4 sm:$0xff]  }
 0x215   : > { %4836 = vmatpush1.bf16.msra.mxu0 %v6174_v59  ;;  %4591 = vmatprep.subr.bf16.mxu1 %v6179_v32  ;;  %v6267_v59 = vld [vmem:[%s7204_s10 + $0xbc4] ss:$8 sps:$4 sm:$0xff]   ;;  %v6262_v32 = vld [vmem:[%s7204_s10 + $0x5c0] ss:$8 sps:$4 sm:$0xff]  }
 0x216   : > { %4837 = vmatprep.subr.bf16.mxu0 %v6182_v51  ;;  %v6265_v51 = vld [vmem:[%s7204_s10 + $0xbc0] ss:$8 sps:$4 sm:$0xff]  }
 0x218   : > { %4592 = vmatpush1.bf16.msra.mxu1 %v6177_v60  ;;  %v6270_v60 = vld [vmem:[%s7204_s10 + $0x5d4] ss:$8 sps:$4 sm:$0xff]  }
 0x219   : > { %4838 = vmatpush1.bf16.msra.mxu0 %v6180_v61  ;;  %4593 = vmatprep.subr.bf16.mxu1 %v6185_v62  ;;  %v6273_v61 = vld [vmem:[%s7204_s10 + $0xbd4] ss:$8 sps:$4 sm:$0xff]   ;;  %v6268_v62 = vld [vmem:[%s7204_s10 + $0x5d0] ss:$8 sps:$4 sm:$0xff]  }
 0x21a   : > { %4839 = vmatprep.subr.bf16.mxu0 %v6188_v63  ;;  %v6271_v63 = vld [vmem:[%s7204_s10 + $0xbd0] ss:$8 sps:$4 sm:$0xff]  }
 0x21c   : > { %4594 = vmatpush1.bf16.msra.mxu1 %v6183_v0  ;;  %v6276_v0 = vld [vmem:[%s7204_s10 + $0x5e4] ss:$8 sps:$4 sm:$0xff]  }
 0x21d   : > { %4840 = vmatpush1.bf16.msra.mxu0 %v6186_v1  ;;  %4604 = vmatprep.subr.bf16.mxu1 %v6191_v52  ;;  %v6279_v1 = vld [vmem:[%s7204_s10 + $0xbe4] ss:$8 sps:$4 sm:$0xff]   ;;  %v6274_v52 = vld [vmem:[%s7204_s10 + $0x5e0] ss:$8 sps:$4 sm:$0xff]  }
 0x21e   : > { %4850 = vmatprep.subr.bf16.mxu0 %v6195_v53  ;;  %v6277_v53 = vld [vmem:[%s7204_s10 + $0xbe0] ss:$8 sps:$4 sm:$0xff]  }
 0x21f   : > { %4596 = vmatmul.mubr.bf16.vlgmr.msra.gmra.mrb[0].mxu1 %v7642_v4 }
 0x220   : > { %4842 = vmatmul.mubr.bf16.vlgmr.msra.gmra.mrb[0].mxu0 %v7646_v5  ;;  %4605 = vmatpush1.bf16.msra.mxu1 %v6189_v6  ;;  %v6282_v6 = vld [vmem:[%s7204_s10 + $0x5f4] ss:$8 sps:$4 sm:$0xff]  }
 0x221   : > { %4851 = vmatpush1.bf16.msra.mxu0 %v6193_v7  ;;  %4606 = vmatprep.subr.bf16.mxu1 %v6198_v8  ;;  %v6285_v7 = vld [vmem:[%s7204_s10 + $0xbf4] ss:$8 sps:$4 sm:$0xff]   ;;  %v6280_v8 = vld [vmem:[%s7204_s10 + $0x5f0] ss:$8 sps:$4 sm:$0xff]  }
 0x222   : > { %4852 = vmatprep.subr.bf16.mxu0 %v6201_v9  ;;  %4636 = vmatprep.mubr.bf16.mxu1 %v2346_v57  ;;  %v6283_v9 = vld [vmem:[%s7204_s10 + $0xbf0] ss:$8 sps:$4 sm:$0xff]   ;;  %v6288_v57 = vld [vmem:[%s7204_s10 + $0xc04] ss:$8 sps:$4 sm:$0xff]  }
 0x223   : > { %4882 = vmatprep.mubr.bf16.mxu0 %v2396_v10  ;;  %v6298_v10 = vld [vmem:[%s7602_s23 + $0x40] sm:$0xff]  }
 0x224   : > { %4607 = vmatpush1.bf16.msra.mxu1 %v6196_v38  ;;  %v2344_v38 = vcombine.high %v7642_v4, %v7642_v4  ;;  %v6289_v4 = vld [vmem:[%s7204_s10 + $0xc10] ss:$8 sps:$4 sm:$0xff]  }
 0x225   : > { %4853 = vmatpush1.bf16.msra.mxu0 %v6199_v11  ;;  %4608 = vmatprep.subr.bf16.mxu1 %v6204_v2  ;;  %v2394_v11 = vcombine.high %v7646_v5, %v7646_v5  ;;  %v6286_v2 = vld [vmem:[%s7204_s10 + $0xc00] ss:$8 sps:$4 sm:$0xff]   ;;  %v6294_v5 = vld [vmem:[%s7204_s10 + $0xc24] ss:$8 sps:$4 sm:$0xff]  }
 0x226   : > { %4854 = vmatprep.subr.bf16.mxu0 %v6207_v14  ;;  %v6291_v14 = vld [vmem:[%s7204_s10 + $0xc14] ss:$8 sps:$4 sm:$0xff]  }
 0x228   : > { %4609 = vmatpush1.bf16.msra.mxu1 %v6202_v3  ;;  %v6299_v3 = vld [vmem:[%s7602_s23] sm:$0xff]  }
 0x229   : > { %4855 = vmatpush1.bf16.msra.mxu0 %v6205_v15  ;;  %4610 = vmatprep.subr.bf16.mxu1 %v6210_v16  ;;  %v6300_v15 = vld [vmem:[%s7602_s23 + $0x48] sm:$0xff]   ;;  %v6341_v16 = vmov 0  }
 0x22a   : > { %4856 = vmatprep.subr.bf16.mxu0 %v6213_v17  ;;  %v6301_v17 = vld [vmem:[%s7602_s23 + $0x8] sm:$0xff]  }
 0x22c   : > { %4611 = vmatpush1.bf16.msra.mxu1 %v6208_v19  ;;  %v6292_v19 = vld [vmem:[%s7204_s10 + $0xc20] ss:$8 sps:$4 sm:$0xff]  }
 0x22d   : > { %4857 = vmatpush1.bf16.msra.mxu0 %v6211_v20  ;;  %4612 = vmatprep.subr.bf16.mxu1 %v6216_v21  ;;  %v6297_v20 = vld [vmem:[%s7204_s10 + $0xc34] ss:$8 sps:$4 sm:$0xff]   ;;  %v6295_v21 = vld [vmem:[%s7204_s10 + $0xc30] ss:$8 sps:$4 sm:$0xff]  }
 0x22e   : > { %4858 = vmatprep.subr.bf16.mxu0 %v6219_v24  ;;  %v5196_v24 = vld.sshfl [vmem:[%s7769_s0 + $0x18] sm:$0x1 pattern:$0x75316420] }
 0x230   : > { %4613 = vmatpush1.bf16.msra.mxu1 %v6214_v25  ;;  %v2410_v25 = vrot.slane %v5196_v24, %v7209_v18  ;;  %v6308_v18 = vld [vmem:[%s7602_s23 + $0x68] sm:$0xff]  }
 0x231   : > { %4859 = vmatpush1.bf16.msra.mxu0 %v6217_v26  ;;  %4614 = vmatprep.subr.bf16.mxu1 %v6222_v27  ;;  %v6302_v26 = vld [vmem:[%s7602_s23 + $0x50] sm:$0xff]  }
 0x232   : > { %4860 = vmatprep.subr.bf16.mxu0 %v6225_v28  ;;  %v6303_v27 = vld [vmem:[%s7602_s23 + $0x10] sm:$0xff]   ;;  %v6304_v28 = vld [vmem:[%s7602_s23 + $0x58] sm:$0xff]  }
 0x234   : > { %4615 = vmatpush1.bf16.msra.mxu1 %v6220_v29  ;;  %v6305_v29 = vld [vmem:[%s7602_s23 + $0x18] sm:$0xff]  }
 0x235   : > { %4861 = vmatpush1.bf16.msra.mxu0 %v6223_v30  ;;  %4616 = vmatprep.subr.bf16.mxu1 %v6228_v31  ;;  %v6306_v30 = vld [vmem:[%s7602_s23 + $0x60] sm:$0xff]  }
 0x236   : > { %4862 = vmatprep.subr.bf16.mxu0 %v6231_v36  ;;  %v6307_v31 = vld [vmem:[%s7602_s23 + $0x20] sm:$0xff]   ;;  %v6309_v36 = vld [vmem:[%s7602_s23 + $0x28] sm:$0xff]  }
 0x238   : > { %4617 = vmatpush1.bf16.msra.mxu1 %v6226_v37  ;;  %v6310_v37 = vld [vmem:[%s7602_s23 + $0x70] sm:$0xff]  }
 0x239   : > { %4863 = vmatpush1.bf16.msra.mxu0 %v6229_v22  ;;  %4618 = vmatprep.subr.bf16.mxu1 %v6234_v23  ;;  %v6311_v22 = vld [vmem:[%s7602_s23 + $0x30] sm:$0xff]   ;;  %v6312_v23 = vld [vmem:[%s7602_s23 + $0x78] sm:$0xff]  }
 0x23a   : > { %4864 = vmatprep.subr.bf16.mxu0 %v6237_v13  ;;  %v6313_v13 = vld [vmem:[%s7602_s23 + $0x38] sm:$0xff]  }
 0x23c   : > { %4619 = vmatpush1.bf16.msra.mxu1 %v6232_v39 }
 0x23d   : > { %4865 = vmatpush1.bf16.msra.mxu0 %v6235_v40  ;;  %4620 = vmatprep.subr.bf16.mxu1 %v6240_v33 }
 0x23e   : > { %4866 = vmatprep.subr.bf16.mxu0 %v6243_v34 }
 0x240   : > { %4621 = vmatpush1.bf16.msra.mxu1 %v6238_v41  ;;  %v2238_v41 = vsub.s32 0, %v7197_v12 }
 0x241   : > { %4867 = vmatpush1.bf16.msra.mxu0 %v6241_v42  ;;  %4622 = vmatprep.subr.bf16.mxu1 %v6246_v43  ;;  %v2234_v42 = vld [vmem:[%s1825_s29] sm:$0x3]  ;;  %v2242_v43 = vsub.s32 1, %v7197_v12 }
 0x242   : > { %4868 = vmatprep.subr.bf16.mxu0 %v6249_v44  ;;  %v2239_v44 = vrot.slane %v2234_v42, %v2238_v41 }
 0x244   : > { %4623 = vmatpush1.bf16.msra.mxu1 %v6244_v46  ;;  %v2243_v46 = vrot.slane %v2234_v42, %v2242_v43 }
 0x245   : > { %4869 = vmatpush1.bf16.msra.mxu0 %v6247_v47  ;;  %4624 = vmatprep.subr.bf16.mxu1 %v6252_v48 }
 0x246   : > { %4870 = vmatprep.subr.bf16.mxu0 %v6255_v49 }
 0x248   : > { %4625 = vmatpush1.bf16.msra.mxu1 %v6250_v50 }
 0x249   : > { %4871 = vmatpush1.bf16.msra.mxu0 %v6253_v54  ;;  %4626 = vmatprep.subr.bf16.mxu1 %v6258_v55 }
 0x24a   : > { %4872 = vmatprep.subr.bf16.mxu0 %v6261_v56 }
 0x24c   : > { %4627 = vmatpush1.bf16.msra.mxu1 %v6256_v45 }
 0x24d   : > { %4873 = vmatpush1.bf16.msra.mxu0 %v6259_v35  ;;  %4628 = vmatprep.subr.bf16.mxu1 %v6264_v58 }
 0x24e   : > { %4874 = vmatprep.subr.bf16.mxu0 %v6267_v59 }
 0x250   : > { %4629 = vmatpush1.bf16.msra.mxu1 %v6262_v32 }
 0x251   : > { %4875 = vmatpush1.bf16.msra.mxu0 %v6265_v51  ;;  %4630 = vmatprep.subr.bf16.mxu1 %v6270_v60 }
 0x252   : > { %4876 = vmatprep.subr.bf16.mxu0 %v6273_v61 }
 0x254   : > { %4631 = vmatpush1.bf16.msra.mxu1 %v6268_v62 }
 0x255   : > { %4877 = vmatpush1.bf16.msra.mxu0 %v6271_v63  ;;  %4632 = vmatprep.subr.bf16.mxu1 %v6276_v0 }
 0x256   : > { %4878 = vmatprep.subr.bf16.mxu0 %v6279_v1 }
 0x258   : > { %4633 = vmatpush1.bf16.msra.mxu1 %v6274_v52 }
 0x259   : > { %4879 = vmatpush1.bf16.msra.mxu0 %v6277_v53  ;;  %4634 = vmatprep.subr.bf16.mxu1 %v6282_v6 }
 0x25a   : > { %4880 = vmatprep.subr.bf16.mxu0 %v6285_v7 }
 0x25c   : > { %4635 = vmatpush1.bf16.msra.mxu1 %v6280_v8 }
 0x25d   : > { %4881 = vmatpush1.bf16.msra.mxu0 %v6283_v9  ;;  %5609 = vmatprep.subr.bf16.mxu1 %v6298_v10 }
 0x25e   : > { %4891 = vmatprep.subr.bf16.mxu0 %v6288_v57 }
 0x25f   : > { %4637 = vmatmul.mubr.bf16.vlgmr.msra.gmra.mrb[0].mxu1 %v2344_v38 }
 0x260   : > { %4883 = vmatmul.mubr.bf16.vlgmr.msra.gmra.mrb[0].mxu0 %v2394_v11  ;;  %5610 = vmatpush3.bf16.msra.mxu1 %v6299_v3 }
 0x261   : > { %4892 = vmatpush1.bf16.msra.mxu0 %v6286_v2  ;;  %4923 = vmatprep.mubr.bf16.mxu0 %v6341_v16 }
 0x262   : > { %4893 = vmatprep.subr.bf16.mxu0 %v6291_v14  ;;  %5611 = vmatprep.subr.bf16.mxu1 %v6300_v15 }
 0x264   : > { %5612 = vmatpush3.bf16.msra.mxu1 %v6301_v17 }
 0x265   : > { %4894 = vmatpush1.bf16.msra.mxu0 %v6289_v4  ;;  %5613 = vmatprep.subr.bf16.mxu1 %v6302_v26 }
 0x266   : > { %4895 = vmatprep.subr.bf16.mxu0 %v6294_v5 }
 0x268   : > { %5614 = vmatpush3.bf16.msra.mxu1 %v6303_v27 }
 0x269   : > { %4896 = vmatpush1.bf16.msra.mxu0 %v6292_v19  ;;  %5615 = vmatprep.subr.bf16.mxu1 %v6304_v28 }
 0x26a   : > { %4897 = vmatprep.subr.bf16.mxu0 %v6297_v20 }
 0x26c   : > { %5616 = vmatpush3.bf16.msra.mxu1 %v6305_v29 }
 0x26d   : > { %4898 = vmatpush1.bf16.msra.mxu0 %v6295_v21  ;;  %5617 = vmatprep.subr.bf16.mxu1 %v6306_v30 }
 0x270   : > { %5589 = vmatmul.mubr.msk.bf16.vlgmr.msra.gmra.mrb[0].mxu0 %vm4395_vm0, %v2410_v25  ;;  %5618 = vmatpush3.bf16.msra.mxu1 %v6307_v31 }
 0x271   : > { %5619 = vmatprep.subr.bf16.mxu1 %v6308_v18 }
 0x274   : > { %5620 = vmatpush3.bf16.msra.mxu1 %v6309_v36 }
 0x275   : > { %5621 = vmatprep.subr.bf16.mxu1 %v6310_v37 }
 0x278   : > { %5622 = vmatpush3.bf16.msra.mxu1 %v6311_v22 }
 0x279   : > { %5623 = vmatprep.subr.bf16.mxu1 %v6312_v23 }
 0x27c   : > { %5624 = vmatpush3.bf16.msra.mxu1 %v6313_v13 }
 0x332   : > { %v4638_v39 = vpop.f32.mrb[0].mxu1 }
 0x333   : > { %v4640_v40 = vpop.f32.mrb[1].mxu1  ;;  %v5631_v47 = vadd.f32 %v4638_v39, %v2239_v44 }
 0x334   : > { %v4642_v33 = vpop.f32.mrb[2].mxu1  ;;  %v5633_v48 = vadd.f32 %v4640_v40, %v2243_v46 }
 0x335   : > { %v4643_v34 = vpop.f32.mrb[3].mxu1 }
 0x343   : > { %v4925_v49 = vpop.f32.mrb[0].mxu0 }
 0x344   : > { %v5632_v50 = vadd.f32 %v5631_v47, %v4925_v49  ;;  %v4927_v54 = vpop.f32.mrb[1].mxu0 }
 0x345   : > { %v5634_v55 = vadd.f32 %v5633_v48, %v4927_v54  ;;  %v4929_v56 = vpop.f32.mrb[2].mxu0 }
 0x346   : > { %v4932_v45 = vmax.f32 %v5632_v50, 0.0  ;;  %v4930_v35 = vpop.f32.mrb[3].mxu0 }
 0x347   : > { %v4933_v58 = vmax.f32 %v5634_v55, 0.0 }
 0x348   : > { %v4934_v32 = vpack.c.bf16 %v4932_v45, %v4932_v45 }
 0x349   : > { %v4935_v59 = vpack.c.bf16 %v4933_v58, %v4933_v58 }
 0x34b   : > { %5096 = vmatprep.mubr.bf16.mxu1 %v4935_v59 }
 0x34c   : > { %5097 = vmatmul.mubr.bf16.vlgmr.msra.gmra.mrb[4].mxu1 %v4934_v32 }
 0x41f   : > { %v5625_v12 = vpop.f32.mrb[4].mxu1 }
 0x420   : > { %v5626_v51 = vpop.f32.mrb[5].mxu1 }
 0x421   : > { %v5627_v60 = vadd.f32 %v5626_v51, %v5625_v12  ;;  %v5628_v61 = vpop.f32.mrb[6].mxu1 }
 0x422   : > { %v5629_v62 = vpop.f32.mrb[7].mxu1 }
 0x423   : > { %5104 = vst [vmem:[%s1836_s7] sm:$0x3] %v5627_v60 }
 0x424 PF: > { %p11_p11 = scmp.ge.s32.totalorder %s6386_s19, 4   ;;  %s7774_s15 = smov %s6334_s16 }
 0x425   : > { %s7775_s16 = smov %s6395_s22  ;;  %s7776_s17 = smov %s6386_s19 }
 0x426   :  { %13 = sbr.rel (!%p11_p11) target bundleno = 2 (0x2), region = 115 }

// kernel: dqn_forward.2
= control target key start
LH: loop header
LB: loop body
LE: loop exit
PB: predicated region body
PF: predicated region fallthrough
CT: control target
= control target key end

     0   :  { %s8270_s24 = smov 0   ;;  %s10035_s0 = inlined_call_operand.vmem [shape: bf16[2,400,256], index: 0, kind: input, shape index: {}]   ;;  %s10036_s1 = inlined_call_operand.vmem [shape: bf16[256,128], index: 1, kind: input, shape index: {}]   ;;  %s10037_s2 = inlined_call_operand.vmem [shape: f32[1,128], index: 2, kind: input, shape index: {}]   ;;  %s10038_s3 = inlined_call_operand.vmem [shape: bf16[16,128,128], index: 3, kind: input, shape index: {}]   ;;  %s10039_s4 = inlined_call_operand.vmem [shape: f32[1,128], index: 4, kind: input, shape index: {}]   ;;  %s10040_s5 = inlined_call_operand.vmem [shape: bf16[9,128,128], index: 5, kind: input, shape index: {}]   ;;  %s10041_s6 = inlined_call_operand.vmem [shape: f32[1,128], index: 6, kind: input, shape index: {}]   ;;  %s10042_s7 = inlined_call_operand.vmem [shape: bf16[2,49,64], index: 7, kind: output, shape index: {}]  }
   0x1 LB: > { %s5952_s25 = sadd.s32 4294967295, %s8225_s24   ;;  %p5956_p0 = scmp.ge.s32.totalorder %s8225_s24, 1  ;;  %s8225_s24 = sphi %s8270_s24, %s17_s24  }
   0x2   : > { %p237_p1 = scmp.lt.s32.totalorder %s8225_s24, 3 }
   0x4   : > { %p238_p2 = pnand %p5956_p0, %p237_p1 }
   0x6   : > { %241 = sbr.rel (%p238_p2) target bundleno = 1615 (0x64f), region = 48 }
   0xd   : > { %v7927_v0 = vld [vmem:[%s10036_s1] sm:$0xff]   ;;  %v8227_v1 = vmov 0   ;;  %v7928_v2 = vld [vmem:[%s10036_s1 + $0x8] sm:$0xff]   ;;  %p269_p3 = scmp.lt.s32.totalorder %s5952_s25, 1  ;;  %v7929_v3 = vld [vmem:[%s10036_s1 + $0x10] sm:$0xff]   ;;  %vm2563_vm1 = vcmask 1046528  }
   0xe   : > { %715 = vmatprep.subr.bf16.mxu0 %v8227_v1  ;;  %v7930_v4 = vld [vmem:[%s10036_s1 + $0x18] sm:$0xff]   ;;  %v7931_v5 = vld [vmem:[%s10036_s1 + $0x20] sm:$0xff]   ;;  %v7932_v7 = vld [vmem:[%s10036_s1 + $0x28] sm:$0xff]   ;;  %vm1342_vm0 = vsmask.f32 7424  ;;  %vm1049_vm3 = vcmask 1045504  }
   0xf   : > { %716 = vmatpush1.bf16.msra.mxu0 %v7927_v0  ;;  %s10107_s25 = smov (!%p269_p3, %s5952_s25), 1  ;;  %v7933_v8 = vld [vmem:[%s10036_s1 + $0x30] sm:$0xff]   ;;  %v7934_v9 = vld [vmem:[%s10036_s1 + $0x38] sm:$0xff]   ;;  %v7935_v10 = vld [vmem:[%s10036_s1 + $0x40] sm:$0xff]   ;;  %vm2927_vm2 = vsmask.f32 6400 }
  0x10   : > { %717 = vmatprep.subr.bf16.mxu0 %v8227_v1  ;;  %s7914_s11 = smul.u32 400, %s10107_s25  ;;  %v7936_v11 = vld [vmem:[%s10036_s1 + $0x48] sm:$0xff]   ;;  %v7937_v12 = vld [vmem:[%s10036_s1 + $0x50] sm:$0xff]   ;;  %v7938_v13 = vld [vmem:[%s10036_s1 + $0x58] sm:$0xff]   ;;  %vm1554_vm4 = vsmask.f32 5376 }
  0x11   : > { %v7939_v14 = vld [vmem:[%s10036_s1 + $0x60] sm:$0xff]   ;;  %v7940_v15 = vld [vmem:[%s10036_s1 + $0x68] sm:$0xff]   ;;  %v7941_v16 = vld [vmem:[%s10036_s1 + $0x70] sm:$0xff]   ;;  %vm2751_vm5 = vcmask 1044480   ;;  %vm3145_vm6 = vsmask.f32 4352 }
  0x12   : > { %s8299_s16 = scalar_lea.vmem %s10035_s0, %s7914_s11  ;;  %v7942_v17 = vld [vmem:[%s10036_s1 + $0x78] sm:$0xff]   ;;  %v8018_v52 = vld [vmem:[%s10038_s3 + $0x40] sm:$0xff]   ;;  %v8019_v53 = vld [vmem:[%s10038_s3 + $0x48] sm:$0xff]   ;;  %vm8229_vm7 = vmmov 0   ;;  %s7915_s28 = smul.u32 28, %s10107_s25  ;;  %vm5729_vm8 = vcmask 519168  }
  0x13   : > { %718 = vmatpush1.bf16.msra.mxu0 %v7928_v2  ;;  %v7945_v6 = vld [vmem:[%s8299_s16 + $0x4] ss:$8 sps:$4 sm:$0xff]   ;;  %v7943_v18 = vld [vmem:[%s8299_s16] ss:$8 sps:$4 sm:$0xff]   ;;  %v7946_v19 = vld [vmem:[%s8299_s16 + $0x14] ss:$8 sps:$4 sm:$0xff]   ;;  %6962 = vmatprep.subr.bf16.mxu1 %v8018_v52 }
  0x14   : > { %719 = vmatprep.subr.bf16.mxu0 %v8227_v1  ;;  %747 = vmatprep.mubr.bf16.mxu0 %v7945_v6  ;;  %v7948_v20 = vld [vmem:[%s8299_s16 + $0x10] ss:$8 sps:$4 sm:$0xff]   ;;  %v7949_v21 = vld [vmem:[%s8299_s16 + $0x24] ss:$8 sps:$4 sm:$0xff]   ;;  %v7951_v22 = vld [vmem:[%s8299_s16 + $0x20] ss:$8 sps:$4 sm:$0xff]   ;;  %s9937_s10 = scalar_lea.vmem %s10042_s7, %s7915_s28 }
  0x15   : > { %v7952_v23 = vld [vmem:[%s8299_s16 + $0x34] ss:$8 sps:$4 sm:$0xff]   ;;  %v7954_v24 = vld [vmem:[%s8299_s16 + $0x30] ss:$8 sps:$4 sm:$0xff]   ;;  %v7955_v25 = vld [vmem:[%s8299_s16 + $0x44] ss:$8 sps:$4 sm:$0xff]   ;;  %6963 = vmatpush3.bf16.msra.mxu1 %v8018_v52 }
  0x16   : > { %v7957_v26 = vld [vmem:[%s8299_s16 + $0x40] ss:$8 sps:$4 sm:$0xff]   ;;  %v7958_v27 = vld [vmem:[%s8299_s16 + $0x54] ss:$8 sps:$4 sm:$0xff]   ;;  %v7960_v28 = vld [vmem:[%s8299_s16 + $0x50] ss:$8 sps:$4 sm:$0xff]   ;;  %6964 = vmatprep.subr.bf16.mxu1 %v8019_v53 }
  0x17   : > { %720 = vmatpush1.bf16.msra.mxu0 %v7929_v3  ;;  %v7961_v29 = vld [vmem:[%s8299_s16 + $0x64] ss:$8 sps:$4 sm:$0xff]   ;;  %v7963_v30 = vld [vmem:[%s8299_s16 + $0x60] ss:$8 sps:$4 sm:$0xff]   ;;  %v7964_v31 = vld [vmem:[%s8299_s16 + $0x74] ss:$8 sps:$4 sm:$0xff]  }
  0x18   : > { %721 = vmatprep.subr.bf16.mxu0 %v8227_v1  ;;  %v7966_v32 = vld [vmem:[%s8299_s16 + $0x70] ss:$8 sps:$4 sm:$0xff]   ;;  %v7967_v33 = vld [vmem:[%s8299_s16 + $0x84] ss:$8 sps:$4 sm:$0xff]   ;;  %v7969_v34 = vld [vmem:[%s8299_s16 + $0x80] ss:$8 sps:$4 sm:$0xff]  }
  0x19   : > { %v7970_v35 = vld [vmem:[%s8299_s16 + $0x94] ss:$8 sps:$4 sm:$0xff]   ;;  %v7972_v36 = vld [vmem:[%s8299_s16 + $0x90] ss:$8 sps:$4 sm:$0xff]   ;;  %v7973_v37 = vld [vmem:[%s8299_s16 + $0xa4] ss:$8 sps:$4 sm:$0xff]   ;;  %6965 = vmatpush3.bf16.msra.mxu1 %v8019_v53 }
  0x1a   : > { %v7975_v38 = vld [vmem:[%s8299_s16 + $0xa0] ss:$8 sps:$4 sm:$0xff]   ;;  %v7976_v39 = vld [vmem:[%s8299_s16 + $0xb4] ss:$8 sps:$4 sm:$0xff]   ;;  %v7978_v40 = vld [vmem:[%s8299_s16 + $0xb0] ss:$8 sps:$4 sm:$0xff]  }
  0x1b   : > { %722 = vmatpush1.bf16.msra.mxu0 %v7930_v4  ;;  %v7979_v41 = vld [vmem:[%s8299_s16 + $0xc4] ss:$8 sps:$4 sm:$0xff]   ;;  %v7981_v42 = vld [vmem:[%s8299_s16 + $0xc0] ss:$8 sps:$4 sm:$0xff]   ;;  %v7982_v43 = vld [vmem:[%s8299_s16 + $0xd4] ss:$8 sps:$4 sm:$0xff]  }
  0x1c   : > { %723 = vmatprep.subr.bf16.mxu0 %v8227_v1  ;;  %v7984_v44 = vld [vmem:[%s8299_s16 + $0xd0] ss:$8 sps:$4 sm:$0xff]   ;;  %v7985_v45 = vld [vmem:[%s8299_s16 + $0xe4] ss:$8 sps:$4 sm:$0xff]   ;;  %v7987_v46 = vld [vmem:[%s8299_s16 + $0xe0] ss:$8 sps:$4 sm:$0xff]  }
  0x1d   : > { %v7988_v47 = vld [vmem:[%s8299_s16 + $0xf4] ss:$8 sps:$4 sm:$0xff]   ;;  %v7990_v48 = vld [vmem:[%s8299_s16 + $0xf0] ss:$8 sps:$4 sm:$0xff]   ;;  %v7991_v49 = vld [vmem:[%s8299_s16 + $0x104] ss:$8 sps:$4 sm:$0xff]  }
  0x1e   : > { %v7993_v50 = vld [vmem:[%s8299_s16 + $0x100] ss:$8 sps:$4 sm:$0xff]   ;;  %v7994_v51 = vld [vmem:[%s8299_s16 + $0x114] ss:$8 sps:$4 sm:$0xff]   ;;  %v7996_v54 = vld [vmem:[%s8299_s16 + $0x110] ss:$8 sps:$4 sm:$0xff]  }
  0x1f   : > { %724 = vmatpush1.bf16.msra.mxu0 %v7931_v5  ;;  %v7997_v55 = vld [vmem:[%s8299_s16 + $0x124] ss:$8 sps:$4 sm:$0xff]   ;;  %v8020_v56 = vld [vmem:[%s10038_s3 + $0x50] sm:$0xff]   ;;  %v8021_v57 = vld [vmem:[%s10038_s3 + $0x58] sm:$0xff]   ;;  %vm5730_vm9 = vsmask.f32 3328 }
  0x20   : > { %725 = vmatprep.subr.bf16.mxu0 %v8227_v1  ;;  %6966 = vmatprep.subr.bf16.mxu1 %v8020_v56  ;;  %v7999_v58 = vld [vmem:[%s8299_s16 + $0x120] ss:$8 sps:$4 sm:$0xff]   ;;  %v8000_v59 = vld [vmem:[%s8299_s16 + $0x134] ss:$8 sps:$4 sm:$0xff]   ;;  %v8002_v62 = vld [vmem:[%s8299_s16 + $0x130] ss:$8 sps:$4 sm:$0xff]  }
  0x21   : > { %6967 = vmatpush3.bf16.msra.mxu1 %v8020_v56  ;;  %v8022_v60 = vld [vmem:[%s10038_s3 + $0x60] sm:$0xff]   ;;  %v8023_v61 = vld [vmem:[%s10038_s3 + $0x68] sm:$0xff]   ;;  %v8024_v0 = vld [vmem:[%s10038_s3 + $0x70] sm:$0xff]   ;;  %vm5760_vm11 = vcmask 519171   ;;  %vm5761_vm12 = vsmask.f32 7950 }
  0x22   : > { %6968 = vmatprep.subr.bf16.mxu1 %v8021_v57  ;;  %v8003_v63 = vld [vmem:[%s8299_s16 + $0x144] ss:$8 sps:$4 sm:$0xff]   ;;  %v8005_v2 = vld [vmem:[%s8299_s16 + $0x140] ss:$8 sps:$4 sm:$0xff]   ;;  %v8006_v3 = vld [vmem:[%s8299_s16 + $0x154] ss:$8 sps:$4 sm:$0xff]  }
  0x23   : > { %726 = vmatpush1.bf16.msra.mxu0 %v7932_v7  ;;  %v8404_v4 = vld [vmem:[%s10038_s3] sm:$0xff]   ;;  %v8008_v5 = vld [vmem:[%s8299_s16 + $0x150] ss:$8 sps:$4 sm:$0xff]   ;;  %vm5731_vm10 = vmand %vm5729_vm8, %vm5730_vm9  ;;  %vm5741_vm13 = vsmask.f32 2304  ;;  %vm5774_vm15 = vcmask 1040384  }
  0x24   : > { %727 = vmatprep.subr.bf16.mxu0 %v8227_v1  ;;  %v8009_v6 = vld [vmem:[%s8299_s16 + $0x164] ss:$8 sps:$4 sm:$0xff]   ;;  %v8011_v7 = vld [vmem:[%s8299_s16 + $0x160] ss:$8 sps:$4 sm:$0xff]   ;;  %vm5742_vm14 = vsmask.f32 6416 }
  0x25   : > { %6969 = vmatpush3.bf16.msra.mxu1 %v8021_v57  ;;  %vm5819_vm8 = vcmask 519170  }
  0x26   : > { %6970 = vmatprep.subr.bf16.mxu1 %v8022_v60 }
  0x27   : > { %728 = vmatpush1.bf16.msra.mxu0 %v7933_v8  ;;  %v8012_v8 = vld [vmem:[%s8299_s16 + $0x174] ss:$8 sps:$4 sm:$0xff]  }
  0x28   : > { %729 = vmatprep.subr.bf16.mxu0 %v8227_v1 }
  0x29   : > { %6971 = vmatpush3.bf16.msra.mxu1 %v8022_v60 }
  0x2a   : > { %6972 = vmatprep.subr.bf16.mxu1 %v8023_v61 }
  0x2b   : > { %730 = vmatpush1.bf16.msra.mxu0 %v7934_v9  ;;  %v8014_v9 = vld [vmem:[%s8299_s16 + $0x170] ss:$8 sps:$4 sm:$0xff]  }
  0x2c   : > { %731 = vmatprep.subr.bf16.mxu0 %v8227_v1 }
  0x2d   : > { %6973 = vmatpush3.bf16.msra.mxu1 %v8023_v61 }
  0x2e   : > { %6974 = vmatprep.subr.bf16.mxu1 %v8024_v0 }
  0x2f   : > { %732 = vmatpush1.bf16.msra.mxu0 %v7935_v10  ;;  %v8015_v10 = vld [vmem:[%s8299_s16 + $0x184] ss:$8 sps:$4 sm:$0xff]  }
  0x30   : > { %733 = vmatprep.subr.bf16.mxu0 %v8227_v1 }
  0x31   : > { %6975 = vmatpush3.bf16.msra.mxu1 %v8024_v0 }
  0x33   : > { %734 = vmatpush1.bf16.msra.mxu0 %v7936_v11  ;;  %v8017_v11 = vld [vmem:[%s8299_s16 + $0x180] ss:$8 sps:$4 sm:$0xff]  }
  0x34   : > { %735 = vmatprep.subr.bf16.mxu0 %v8227_v1 }
  0x37   : > { %736 = vmatpush1.bf16.msra.mxu0 %v7937_v12  ;;  %v8417_v12 = vld [vmem:[%s10037_s2] ss:$0 sm:$0xff] }
  0x38   : > { %737 = vmatprep.subr.bf16.mxu0 %v8227_v1 }
  0x3b   : > { %738 = vmatpush1.bf16.msra.mxu0 %v7938_v13 }
  0x3c   : > { %739 = vmatprep.subr.bf16.mxu0 %v8227_v1 }
  0x3f   : > { %740 = vmatpush1.bf16.msra.mxu0 %v7939_v14 }
  0x40   : > { %741 = vmatprep.subr.bf16.mxu0 %v8227_v1 }
  0x43   : > { %742 = vmatpush1.bf16.msra.mxu0 %v7940_v15 }
  0x44   : > { %743 = vmatprep.subr.bf16.mxu0 %v8227_v1 }
  0x47   : > { %744 = vmatpush1.bf16.msra.mxu0 %v7941_v16 }
  0x48   : > { %745 = vmatprep.subr.bf16.mxu0 %v8227_v1  ;;  %v8025_v1 = vld [vmem:[%s10038_s3 + $0x78] sm:$0xff]  }
  0x49   : > { %6976 = vmatprep.subr.bf16.mxu1 %v8025_v1 }
  0x4a   : > { %6977 = vmatpush3.bf16.msra.mxu1 %v8025_v1 }
  0x4b   : > { %746 = vmatpush1.bf16.msra.mxu0 %v7942_v17  ;;  %6990 = vmatprep.subr.bf16.mxu1 %v8404_v4 }
  0x4e   : > { %748 = vmatmul.mubr.bf16.vlgmr.msra.gmra.mrb[0].mxu0 %v7943_v18 }
  0x4f   : > { %755 = vmatprep.mubr.bf16.mxu0 %v7946_v19 }
  0x56   : > { %756 = vmatmul.mubr.bf16.gmra.mrb[4].mxu0 %v7948_v20 }
  0x57   : > { %763 = vmatprep.mubr.bf16.mxu0 %v7949_v21 }
  0x5e   : > { %764 = vmatmul.mubr.bf16.gmra.mrb[8].mxu0 %v7951_v22 }
  0x5f   : > { %771 = vmatprep.mubr.bf16.mxu0 %v7952_v23 }
  0x66   : > { %772 = vmatmul.mubr.bf16.gmra.mrb[12].mxu0 %v7954_v24 }
  0x67   : > { %779 = vmatprep.mubr.bf16.mxu0 %v7955_v25 }
  0x6e   : > { %780 = vmatmul.mubr.bf16.gmra.mrb[16].mxu0 %v7957_v26 }
  0x6f   : > { %787 = vmatprep.mubr.bf16.mxu0 %v7958_v27 }
  0x76   : > { %788 = vmatmul.mubr.bf16.gmra.mrb[20].mxu0 %v7960_v28 }
  0x77   : > { %795 = vmatprep.mubr.bf16.mxu0 %v7961_v29 }
  0x7e   : > { %796 = vmatmul.mubr.bf16.gmra.mrb[24].mxu0 %v7963_v30 }
  0x7f   : > { %803 = vmatprep.mubr.bf16.mxu0 %v7964_v31 }
  0x86   : > { %804 = vmatmul.mubr.bf16.gmra.mrb[28].mxu0 %v7966_v32 }
  0x87   : > { %811 = vmatprep.mubr.bf16.mxu0 %v7967_v33 }
  0x8e   : > { %812 = vmatmul.mubr.bf16.gmra.mrb[32].mxu0 %v7969_v34 }
  0x8f   : > { %819 = vmatprep.mubr.bf16.mxu0 %v7970_v35 }
  0x96   : > { %820 = vmatmul.mubr.bf16.gmra.mrb[36].mxu0 %v7972_v36 }
  0x97   : > { %827 = vmatprep.mubr.bf16.mxu0 %v7973_v37 }
  0x9e   : > { %828 = vmatmul.mubr.bf16.gmra.mrb[40].mxu0 %v7975_v38 }
  0x9f   : > { %835 = vmatprep.mubr.bf16.mxu0 %v7976_v39 }
  0xa6   : > { %836 = vmatmul.mubr.bf16.gmra.mrb[44].mxu0 %v7978_v40 }
  0xa7   : > { %843 = vmatprep.mubr.bf16.mxu0 %v7979_v41 }
  0xae   : > { %844 = vmatmul.mubr.bf16.gmra.mrb[48].mxu0 %v7981_v42 }
  0xaf   : > { %851 = vmatprep.mubr.bf16.mxu0 %v7982_v43 }
  0xb6   : > { %852 = vmatmul.mubr.bf16.gmra.mrb[52].mxu0 %v7984_v44 }
  0xb7   : > { %859 = vmatprep.mubr.bf16.mxu0 %v7985_v45 }
  0xbe   : > { %860 = vmatmul.mubr.bf16.gmra.mrb[56].mxu0 %v7987_v46 }
  0xbf   : > { %867 = vmatprep.mubr.bf16.mxu0 %v7988_v47 }
  0xc6   : > { %868 = vmatmul.mubr.bf16.gmra.mrb[60].mxu0 %v7990_v48 }
  0xc7   : > { %875 = vmatprep.mubr.bf16.mxu0 %v7991_v49 }
  0xce   : > { %876 = vmatmul.mubr.bf16.gmra.mrb[64].mxu0 %v7993_v50 }
  0xcf   : > { %883 = vmatprep.mubr.bf16.mxu0 %v7994_v51 }
  0xd6   : > { %884 = vmatmul.mubr.bf16.gmra.mrb[68].mxu0 %v7996_v54 }
  0xd7   : > { %891 = vmatprep.mubr.bf16.mxu0 %v7997_v55 }
  0xde   : > { %892 = vmatmul.mubr.bf16.gmra.mrb[72].mxu0 %v7999_v58 }
  0xdf   : > { %899 = vmatprep.mubr.bf16.mxu0 %v8000_v59 }
  0xe6   : > { %900 = vmatmul.mubr.bf16.gmra.mrb[76].mxu0 %v8002_v62 }
  0xe7   : > { %907 = vmatprep.mubr.bf16.mxu0 %v8003_v63 }
  0xee   : > { %908 = vmatmul.mubr.bf16.gmra.mrb[80].mxu0 %v8005_v2 }
  0xef   : > { %915 = vmatprep.mubr.bf16.mxu0 %v8006_v3 }
  0xf6   : > { %916 = vmatmul.mubr.bf16.gmra.mrb[84].mxu0 %v8008_v5 }
  0xf7   : > { %923 = vmatprep.mubr.bf16.mxu0 %v8009_v6 }
  0xfe   : > { %924 = vmatmul.mubr.bf16.gmra.mrb[88].mxu0 %v8011_v7 }
  0xff   : > { %931 = vmatprep.mubr.bf16.mxu0 %v8012_v8 }
 0x106   : > { %932 = vmatmul.mubr.bf16.gmra.mrb[92].mxu0 %v8014_v9 }
 0x107   : > { %939 = vmatprep.mubr.bf16.mxu0 %v8015_v10 }
 0x10e   : > { %940 = vmatmul.mubr.bf16.gmra.mrb[96].mxu0 %v8017_v11 }
 0x121   : > { %v749_v13 = vpop.f32.mrb[0].mxu0 }
 0x122   : > { %v750_v14 = vadd.f32 %v8417_v12, %v749_v13  ;;  %v751_v15 = vpop.f32.mrb[1].mxu0 }
 0x123   : > { %v752_v16 = vpop.f32.mrb[2].mxu0 }
 0x124   : > { %v753_v17 = vadd.f32 %v8417_v12, %v752_v16  ;;  %v754_v18 = vpop.f32.mrb[3].mxu0  ;;  %v948_v19 = vmax.f32 %v750_v14, 0.0 }
 0x126   : > { %v949_v20 = vmax.f32 %v753_v17, 0.0 }
 0x128   : > { %v8421_v21 = vpack.c.bf16 %v949_v20, %v948_v19 }
 0x129   : > { %v757_v22 = vpop.f32.mrb[4].mxu0 }
 0x12a   : > { %v758_v23 = vadd.f32 %v8417_v12, %v757_v22  ;;  %v759_v24 = vpop.f32.mrb[5].mxu0  ;;  %v1346_v29 = vshll.u32 %v8421_v21, 16  ;;  %v1344_v40 = vshrl.u32 %v8421_v21, 16 }
 0x12b   : > { %v760_v25 = vpop.f32.mrb[6].mxu0 }
 0x12c   : > { %v950_v26 = vmax.f32 %v758_v23, 0.0  ;;  %v761_v27 = vadd.f32 %v8417_v12, %v760_v25  ;;  %v762_v28 = vpop.f32.mrb[7].mxu0  ;;  %v1348_v34 = vrot.slane %v1346_v29, 1 }
 0x12e   : > { %v2534_v30 = vpack.c.bf16 %v950_v26, %v949_v20  ;;  %v951_v31 = vmax.f32 %v761_v27, 0.0  ;;  %v1349_v45 = vor.u32 %v1348_v34, %v1344_v40 }
 0x130   : > { %v8426_v32 = vpack.c.bf16 %v951_v31, %v950_v26  ;;  %v2929_v37 = vshrl.u32 %v2534_v30, 16  ;;  %v2932_v38 = vshll.u32 %v2534_v30, 16  ;;  %v2564_v57 = vrot.slane %v2534_v30, 1 }
 0x131   : > { %v765_v33 = vpop.f32.mrb[8].mxu0 }
 0x132   : > { %v766_v35 = vadd.f32 %v8417_v12, %v765_v33  ;;  %v767_v36 = vpop.f32.mrb[9].mxu0  ;;  %v1351_v41 = vshll.u32 %v8426_v32, 16  ;;  %v2931_v49 = vrot.slane %v2929_v37, 1  ;;  %v2934_v50 = vrot.slane %v2932_v38, 2 }
 0x133   : > { %v768_v39 = vpop.f32.mrb[10].mxu0  ;;  %v1355_v58 = vshrl.u32 %v8426_v32, 16 }
 0x134   : > { %v952_v42 = vmax.f32 %v766_v35, 0.0  ;;  %v769_v43 = vadd.f32 %v8417_v12, %v768_v39  ;;  %v770_v44 = vpop.f32.mrb[11].mxu0  ;;  %v1353_v46 = vrot.slane %v1351_v41, 1  ;;  %v2935_v2 = vor.u32 %v2934_v50, %v2931_v49 }
 0x136   : > { %v2535_v47 = vpack.c.bf16 %v952_v42, %v951_v31  ;;  %v953_v48 = vmax.f32 %v769_v43, 0.0  ;;  %v8433_v51 = vsel %vm1342_vm0, %v1349_v45, %v1353_v46  ;;  %v1357_v7 = vor.u32 %v1355_v58, %v1353_v46 }
 0x138   : > { %v2937_v52 = vshrl.u32 %v2535_v47, 16  ;;  %v2940_v53 = vshll.u32 %v2535_v47, 16  ;;  %v8435_v54 = vpack.c.bf16 %v953_v48, %v952_v42  ;;  %v2565_v55 = vrot.slane %v2535_v47, 1 }
 0x139   : > { %v773_v56 = vpop.f32.mrb[12].mxu0 }
 0x13a   : > { %v2939_v59 = vrot.slane %v2937_v52, 1  ;;  %v2942_v60 = vrot.slane %v2940_v53, 2  ;;  %v1359_v61 = vshll.u32 %v8435_v54, 16  ;;  %v775_v62 = vpop.f32.mrb[13].mxu0  ;;  %v774_v63 = vadd.f32 %v8417_v12, %v773_v56 }
 0x13b   : > { %v776_v0 = vpop.f32.mrb[14].mxu0  ;;  %v8441_v1 = vsel %vm2563_vm1, %v2564_v57, %v2565_v55  ;;  %v1363_v20 = vshrl.u32 %v8435_v54, 16 }
 0x13c   : > { %v1361_v3 = vrot.slane %v1359_v61, 1  ;;  %v777_v5 = vadd.f32 %v8417_v12, %v776_v0  ;;  %v778_v6 = vpop.f32.mrb[15].mxu0  ;;  %v2943_v8 = vor.u32 %v2942_v60, %v2939_v59  ;;  %v954_v9 = vmax.f32 %v774_v63, 0.0 }
 0x13e   : > { %v955_v10 = vmax.f32 %v777_v5, 0.0  ;;  %v8445_v11 = vsel %vm1342_vm0, %v1357_v7, %v1361_v3  ;;  %v8448_v13 = vsel %vm2927_vm2, %v2935_v2, %v2943_v8  ;;  %v2536_v14 = vpack.c.bf16 %v954_v9, %v953_v48 }
 0x13f   : > { %v1365_v33 = vor.u32 %v1363_v20, %v1361_v3 }
 0x140   : > { %v8450_v15 = vpack.c.bf16 %v955_v10, %v954_v9  ;;  %v2567_v16 = vrot.slane %v2536_v14, 1  ;;  %v2946_v17 = vshrl.u32 %v2536_v14, 16  ;;  %v2949_v18 = vshll.u32 %v2536_v14, 16 }
 0x141   : > { %v781_v19 = vpop.f32.mrb[16].mxu0 }
 0x142   : > { %v782_v22 = vadd.f32 %v8417_v12, %v781_v19  ;;  %v783_v23 = vpop.f32.mrb[17].mxu0  ;;  %v1367_v24 = vshll.u32 %v8450_v15, 16  ;;  %v2948_v25 = vrot.slane %v2946_v17, 1  ;;  %v2951_v26 = vrot.slane %v2949_v18, 2 }
 0x143   : > { %v784_v27 = vpop.f32.mrb[18].mxu0  ;;  %v8456_v28 = vsel %vm2563_vm1, %v2565_v55, %v2567_v16  ;;  %v1371_v49 = vshrl.u32 %v8450_v15, 16 }
 0x144   : > { %v956_v29 = vmax.f32 %v782_v22, 0.0  ;;  %v785_v30 = vadd.f32 %v8417_v12, %v784_v27  ;;  %v786_v31 = vpop.f32.mrb[19].mxu0  ;;  %v1369_v34 = vrot.slane %v1367_v24, 1  ;;  %v2952_v35 = vor.u32 %v2951_v26, %v2948_v25 }
 0x146   : > { %v2537_v36 = vpack.c.bf16 %v956_v29, %v955_v10  ;;  %v957_v37 = vmax.f32 %v785_v30, 0.0  ;;  %v8460_v38 = vsel %vm1342_vm0, %v1365_v33, %v1369_v34  ;;  %v8463_v39 = vsel %vm2927_vm2, %v2943_v8, %v2952_v35 }
 0x147   : > { %v1373_v59 = vor.u32 %v1371_v49, %v1369_v34 }
 0x148   : > { %v2955_v40 = vshrl.u32 %v2537_v36, 16  ;;  %v2958_v41 = vshll.u32 %v2537_v36, 16  ;;  %v8465_v42 = vpack.c.bf16 %v957_v37, %v956_v29  ;;  %v2569_v43 = vrot.slane %v2537_v36, 1 }
 0x149   : > { %v789_v44 = vpop.f32.mrb[20].mxu0 }
 0x14a   : > { %v2957_v45 = vrot.slane %v2955_v40, 1  ;;  %v2960_v46 = vrot.slane %v2958_v41, 2  ;;  %v790_v47 = vadd.f32 %v8417_v12, %v789_v44  ;;  %v791_v48 = vpop.f32.mrb[21].mxu0  ;;  %v1375_v52 = vshll.u32 %v8465_v42, 16 }
 0x14b   : > { %v792_v50 = vpop.f32.mrb[22].mxu0  ;;  %v8471_v53 = vsel %vm2563_vm1, %v2567_v16, %v2569_v43  ;;  %v1379_v7 = vshrl.u32 %v8465_v42, 16 }
 0x14c   : > { %v958_v55 = vmax.f32 %v790_v47, 0.0  ;;  %v793_v56 = vadd.f32 %v8417_v12, %v792_v50  ;;  %v794_v57 = vpop.f32.mrb[23].mxu0  ;;  %v2961_v58 = vor.u32 %v2960_v46, %v2957_v45  ;;  %v1377_v60 = vrot.slane %v1375_v52, 1 }
 0x14e   : > { %v2538_v61 = vpack.c.bf16 %v958_v55, %v957_v37  ;;  %v959_v62 = vmax.f32 %v793_v56, 0.0  ;;  %v8475_v63 = vsel %vm2927_vm2, %v2952_v35, %v2961_v58  ;;  %v8478_v0 = vsel %vm1342_vm0, %v1373_v59, %v1377_v60 }
 0x14f   : > { %v1381_v19 = vor.u32 %v1379_v7, %v1377_v60 }
 0x150   : > { %v2964_v2 = vshrl.u32 %v2538_v61, 16  ;;  %v2967_v3 = vshll.u32 %v2538_v61, 16  ;;  %v8480_v5 = vpack.c.bf16 %v959_v62, %v958_v55  ;;  %v2571_v6 = vrot.slane %v2538_v61, 1 }
 0x151   : > { %v797_v8 = vpop.f32.mrb[24].mxu0 }
 0x152   : > { %v2966_v9 = vrot.slane %v2964_v2, 1  ;;  %v2969_v10 = vrot.slane %v2967_v3, 2  ;;  %v798_v14 = vadd.f32 %v8417_v12, %v797_v8  ;;  %v799_v16 = vpop.f32.mrb[25].mxu0  ;;  %v1383_v17 = vshll.u32 %v8480_v5, 16 }
 0x153   : > { %v800_v18 = vpop.f32.mrb[26].mxu0  ;;  %v8486_v20 = vsel %vm2563_vm1, %v2569_v43, %v2571_v6 }
 0x154   : > { %v960_v22 = vmax.f32 %v798_v14, 0.0  ;;  %v801_v23 = vadd.f32 %v8417_v12, %v800_v18  ;;  %v802_v24 = vpop.f32.mrb[27].mxu0  ;;  %v8489_v25 = vrot.slane %v1383_v17, 1  ;;  %v2970_v26 = vor.u32 %v2969_v10, %v2966_v9 }
 0x156   : > { %v8491_v27 = vpack.c.bf16 %v960_v22, %v959_v62  ;;  %v961_v29 = vmax.f32 %v801_v23, 0.0  ;;  %v8495_v30 = vsel %vm1342_vm0, %v1381_v19, %v8489_v25  ;;  %v8498_v31 = vsel %vm2927_vm2, %v2961_v58, %v2970_v26 }
 0x158   : > { %v2973_v33 = vshrl.u32 %v8491_v27, 16  ;;  %v2976_v34 = vshll.u32 %v8491_v27, 16  ;;  %v1020_v35 = vpack.c.bf16 %v961_v29, %v960_v22  ;;  %v10044_v36 = vrot.slane %v8491_v27, 1 }
 0x159   : > { %v805_v37 = vpop.f32.mrb[28].mxu0 }
 0x15a   : > { %v2975_v40 = vrot.slane %v2973_v33, 1  ;;  %v2978_v41 = vrot.slane %v2976_v34, 2  ;;  %v807_v43 = vpop.f32.mrb[29].mxu0  ;;  %v806_v44 = vadd.f32 %v8417_v12, %v805_v37  ;;  %v8507_v46 = vsel %vm2563_vm1, %v2571_v6, %v10044_v36 }
 0x15b   : > { %v808_v45 = vpop.f32.mrb[30].mxu0  ;;  %v1556_v50 = vshrl.u32 %v1020_v35, 16  ;;  %v1559_v52 = vshll.u32 %v1020_v35, 16  ;;  %v1050_v16 = vrot.slane %v1020_v35, 2 }
 0x15c   : > { %v809_v47 = vadd.f32 %v8417_v12, %v808_v45  ;;  %v810_v48 = vpop.f32.mrb[31].mxu0  ;;  %v8510_v49 = vor.u32 %v2978_v41, %v2975_v40  ;;  %v962_v55 = vmax.f32 %v806_v44, 0.0 }
 0x15d   : > { %v1558_v60 = vrot.slane %v1556_v50, 2  ;;  %v1561_v61 = vrot.slane %v1559_v52, 3 }
 0x15e   : > { %v963_v56 = vmax.f32 %v809_v47, 0.0  ;;  %v8514_v57 = vsel %vm2927_vm2, %v2970_v26, %v8510_v49  ;;  %v2722_v58 = vpack.c.bf16 %v962_v55, %v961_v29 }
 0x15f   : > { %v1562_v33 = vor.u32 %v1561_v61, %v1558_v60 }
 0x160   : > { %v1021_v59 = vpack.c.bf16 %v963_v56, %v962_v55  ;;  %v3147_v9 = vshrl.u32 %v2722_v58, 16  ;;  %v3150_v10 = vshll.u32 %v2722_v58, 16  ;;  %v2752_v47 = vrot.slane %v2722_v58, 3 }
 0x161   : > { %v813_v62 = vpop.f32.mrb[32].mxu0 }
 0x162   : > { %v1564_v2 = vshrl.u32 %v1021_v59, 16  ;;  %v1567_v3 = vshll.u32 %v1021_v59, 16  ;;  %v814_v6 = vadd.f32 %v8417_v12, %v813_v62  ;;  %v815_v7 = vpop.f32.mrb[33].mxu0  ;;  %v1051_v8 = vrot.slane %v1021_v59, 2 }
 0x163   : > { %v816_v14 = vpop.f32.mrb[34].mxu0  ;;  %v3149_v37 = vrot.slane %v3147_v9, 3  ;;  %v3152_v40 = vrot.slane %v3150_v10, 4  ;;  %v8027_v10 = vld [vmem:[%s10038_s3 + $0x8] sm:$0xff]  }
 0x164   : > { %v1566_v17 = vrot.slane %v1564_v2, 2  ;;  %v1569_v18 = vrot.slane %v1567_v3, 3  ;;  %v964_v19 = vmax.f32 %v814_v6, 0.0  ;;  %v817_v22 = vadd.f32 %v8417_v12, %v816_v14  ;;  %v818_v23 = vpop.f32.mrb[35].mxu0 }
 0x165   : > { %v1052_v24 = vsel %vm1049_vm3, %v1050_v16, %v1051_v8  ;;  %v3153_v3 = vor.u32 %v3152_v40, %v3149_v37 }
 0x166   : > { %v2723_v26 = vpack.c.bf16 %v964_v19, %v963_v56  ;;  %v965_v29 = vmax.f32 %v817_v22, 0.0  ;;  %6978 = vmatprep.mubr.bf16.mxu1 %v1052_v24  ;;  %v1570_v34 = vor.u32 %v1569_v18, %v1566_v17 }
 0x168   : > { %v3155_v41 = vshrl.u32 %v2723_v26, 16  ;;  %v3158_v43 = vshll.u32 %v2723_v26, 16  ;;  %v1022_v35 = vpack.c.bf16 %v965_v29, %v964_v19  ;;  %v8520_v44 = vsel %vm1554_vm4, %v1562_v33, %v1570_v34 }
 0x169   : > { %v821_v45 = vpop.f32.mrb[36].mxu0  ;;  %v2753_v48 = vrot.slane %v2723_v26, 3  ;;  %v8028_v26 = vld [vmem:[%s10038_s3 + $0x10] sm:$0xff]  }
 0x16a   : > { %v3157_v50 = vrot.slane %v3155_v41, 3  ;;  %v3160_v52 = vrot.slane %v3158_v43, 4  ;;  %v1573_v55 = vshrl.u32 %v1022_v35, 16  ;;  %v1576_v56 = vshll.u32 %v1022_v35, 16  ;;  %v823_v59 = vpop.f32.mrb[37].mxu0 }
 0x16b   : > { %v822_v60 = vadd.f32 %v8417_v12, %v821_v45  ;;  %v824_v61 = vpop.f32.mrb[38].mxu0  ;;  %v1053_v62 = vrot.slane %v1022_v35, 2  ;;  %v8524_v2 = vsel %vm2751_vm5, %v2752_v47, %v2753_v48 }
 0x16c   : > { %v1575_v6 = vrot.slane %v1573_v55, 2  ;;  %v1578_v7 = vrot.slane %v1576_v56, 3  ;;  %v825_v9 = vadd.f32 %v8417_v12, %v824_v61  ;;  %v826_v58 = vpop.f32.mrb[39].mxu0  ;;  %v3161_v14 = vor.u32 %v3160_v52, %v3157_v50 }
 0x16d   : > { %v966_v16 = vmax.f32 %v822_v60, 0.0  ;;  %v1054_v17 = vsel %vm1049_vm3, %v1051_v8, %v1053_v62 }
 0x16e   : > { %v1579_v18 = vor.u32 %v1578_v7, %v1575_v6  ;;  %v967_v19 = vmax.f32 %v825_v9, 0.0  ;;  %6979 = vmatmul.mubr.bf16.vlgmr.msra.gmra.mrb[0].mxu1 %v1054_v17  ;;  %v8532_v22 = vsel %vm3145_vm6, %v3153_v3, %v3161_v14  ;;  %v8029_v3 = vld [vmem:[%s10038_s3 + $0x18] sm:$0xff]  }
 0x16f   : > { %10049 = vst [vmem:[#allocation2_spill] sm:$0xff] %v8532_v22  ;;  %v2724_v23 = vpack.c.bf16 %v966_v16, %v965_v29  ;;  %6991 = vmatpush3.bf16.msra.mxu1 %v8404_v4 }
 0x170   : > { %v1023_v24 = vpack.c.bf16 %v967_v19, %v966_v16  ;;  %6992 = vmatprep.subr.bf16.mxu1 %v8027_v10  ;;  %v8539_v33 = vsel %vm1554_vm4, %v1570_v34, %v1579_v18 }
 0x171   : > { %v2755_v37 = vrot.slane %v2724_v23, 3  ;;  %v3164_v8 = vshrl.u32 %v2724_v23, 16  ;;  %v3167_v40 = vshll.u32 %v2724_v23, 16  ;;  %v829_v41 = vpop.f32.mrb[40].mxu0 }
 0x172   : > { %v1582_v43 = vshrl.u32 %v1023_v24, 16  ;;  %v1585_v35 = vshll.u32 %v1023_v24, 16  ;;  %v830_v45 = vadd.f32 %v8417_v12, %v829_v41  ;;  %v831_v29 = vpop.f32.mrb[41].mxu0  ;;  %v1055_v47 = vrot.slane %v1023_v24, 2  ;;  %v8030_v24 = vld [vmem:[%s10038_s3 + $0x20] sm:$0xff]  }
 0x173   : > { %v3166_v4 = vrot.slane %v3164_v8, 3  ;;  %v3169_v50 = vrot.slane %v3167_v40, 4  ;;  %6993 = vmatpush3.bf16.msra.mxu1 %v8027_v10  ;;  %v832_v52 = vpop.f32.mrb[42].mxu0  ;;  %v8543_v55 = vsel %vm2751_vm5, %v2753_v48, %v2755_v37 }
 0x174   : > { %v1584_v56 = vrot.slane %v1582_v43, 2  ;;  %v1587_v34 = vrot.slane %v1585_v35, 3  ;;  %v968_v59 = vmax.f32 %v830_v45, 0.0  ;;  %v833_v60 = vadd.f32 %v8417_v12, %v832_v52  ;;  %v834_v61 = vpop.f32.mrb[43].mxu0  ;;  %6994 = vmatprep.subr.bf16.mxu1 %v8028_v26 }
 0x175   : > { %v3170_v6 = vor.u32 %v3169_v50, %v3166_v4  ;;  %v1056_v7 = vsel %vm1049_vm3, %v1053_v62, %v1055_v47 }
 0x176   : > { %v2725_v9 = vpack.c.bf16 %v968_v59, %v967_v19  ;;  %v969_v58 = vmax.f32 %v833_v60, 0.0  ;;  %6982 = vmatprep.mubr.bf16.mxu1 %v1056_v7  ;;  %v1588_v10 = vor.u32 %v1587_v34, %v1584_v56  ;;  %v8031_v34 = vld [vmem:[%s10038_s3 + $0x28] sm:$0xff]  }
 0x177   : > { %6995 = vmatpush3.bf16.msra.mxu1 %v8028_v26  ;;  %v8551_v48 = vsel %vm3145_vm6, %v3161_v14, %v3170_v6 }
 0x178   : > { %10050 = vst [vmem:[#allocation3_spill] sm:$0xff] %v8551_v48  ;;  %v3173_v16 = vshrl.u32 %v2725_v9, 16  ;;  %v3176_v17 = vshll.u32 %v2725_v9, 16  ;;  %v1024_v23 = vpack.c.bf16 %v969_v58, %v968_v59  ;;  %6996 = vmatprep.subr.bf16.mxu1 %v8029_v3  ;;  %v8557_v8 = vsel %vm1554_vm4, %v1579_v18, %v1588_v10 }
 0x179   : > { %v837_v62 = vpop.f32.mrb[44].mxu0  ;;  %v2757_v19 = vrot.slane %v2725_v9, 3 }
 0x17a   : > { %v3175_v40 = vrot.slane %v3173_v16, 3  ;;  %v3178_v41 = vrot.slane %v3176_v17, 4  ;;  %v1591_v43 = vshrl.u32 %v1024_v23, 16  ;;  %v1594_v26 = vshll.u32 %v1024_v23, 16  ;;  %v839_v35 = vpop.f32.mrb[45].mxu0  ;;  %v8032_v17 = vld [vmem:[%s10038_s3 + $0x30] sm:$0xff]  }
 0x17b   : > { %v838_v14 = vadd.f32 %v8417_v12, %v837_v62  ;;  %6997 = vmatpush3.bf16.msra.mxu1 %v8029_v3  ;;  %v840_v45 = vpop.f32.mrb[46].mxu0  ;;  %v1057_v29 = vrot.slane %v1024_v23, 2  ;;  %v8561_v4 = vsel %vm2751_vm5, %v2755_v37, %v2757_v19 }
 0x17c   : > { %v1593_v50 = vrot.slane %v1591_v43, 2  ;;  %v1596_v52 = vrot.slane %v1594_v26, 3  ;;  %v841_v18 = vadd.f32 %v8417_v12, %v840_v45  ;;  %v842_v56 = vpop.f32.mrb[47].mxu0  ;;  %6998 = vmatprep.subr.bf16.mxu1 %v8030_v24  ;;  %v3179_v59 = vor.u32 %v3178_v41, %v3175_v40 }
 0x17d   : > { %v970_v60 = vmax.f32 %v838_v14, 0.0  ;;  %v1058_v61 = vsel %vm1049_vm3, %v1055_v47, %v1057_v29 }
 0x17e   : > { %v971_v3 = vmax.f32 %v841_v18, 0.0  ;;  %6983 = vmatmul.mubr.bf16.gmra.mrb[4].mxu1 %v1058_v61  ;;  %v1597_v7 = vor.u32 %v1596_v52, %v1593_v50  ;;  %v8569_v37 = vsel %vm3145_vm6, %v3170_v6, %v3179_v59 }
 0x17f   : > { %10051 = vst [vmem:[#allocation4_spill] sm:$0xff] %v8569_v37  ;;  %v2726_v9 = vpack.c.bf16 %v970_v60, %v969_v58  ;;  %6999 = vmatpush3.bf16.msra.mxu1 %v8030_v24 }
 0x180   : > { %v1025_v16 = vpack.c.bf16 %v971_v3, %v970_v60  ;;  %7000 = vmatprep.subr.bf16.mxu1 %v8031_v34  ;;  %v8575_v23 = vsel %vm1554_vm4, %v1588_v10, %v1597_v7  ;;  %v8033_v60 = vld [vmem:[%s10038_s3 + $0x38] sm:$0xff]  }
 0x181   : > { %v3182_v62 = vshrl.u32 %v2726_v9, 16  ;;  %v3185_v40 = vshll.u32 %v2726_v9, 16  ;;  %v845_v47 = vpop.f32.mrb[48].mxu0  ;;  %v2759_v41 = vrot.slane %v2726_v9, 3 }
 0x182   : > { %v1600_v43 = vshrl.u32 %v1025_v16, 16  ;;  %v1603_v26 = vshll.u32 %v1025_v16, 16  ;;  %v846_v6 = vadd.f32 %v8417_v12, %v845_v47  ;;  %v1059_v35 = vrot.slane %v1025_v16, 2  ;;  %v847_v58 = vpop.f32.mrb[49].mxu0  ;;  %v8034_v47 = vld [vmem:[%s10038_s3 + $0x80] sm:$0xff]  }
 0x183   : > { %v3184_v24 = vrot.slane %v3182_v62, 3  ;;  %v3187_v14 = vrot.slane %v3185_v40, 4  ;;  %7001 = vmatpush3.bf16.msra.mxu1 %v8031_v34  ;;  %v848_v45 = vpop.f32.mrb[50].mxu0  ;;  %v8579_v50 = vsel %vm2751_vm5, %v2757_v19, %v2759_v41 }
 0x184   : > { %v1602_v52 = vrot.slane %v1600_v43, 2  ;;  %v1605_v10 = vrot.slane %v1603_v26, 3  ;;  %v972_v18 = vmax.f32 %v846_v6, 0.0  ;;  %v1060_v56 = vsel %vm1049_vm3, %v1057_v29, %v1059_v35  ;;  %7002 = vmatprep.subr.bf16.mxu1 %v8032_v17  ;;  %v850_v61 = vpop.f32.mrb[51].mxu0 }
 0x185   : > { %6986 = vmatprep.mubr.bf16.mxu1 %v1060_v56  ;;  %v849_v9 = vadd.f32 %v8417_v12, %v848_v45  ;;  %v3188_v16 = vor.u32 %v3187_v14, %v3184_v24 }
 0x186   : > { %v8586_v34 = vpack.c.bf16 %v972_v18, %v971_v3  ;;  %6987 = vmatmul.mubr.bf16.gmra.mrb[8].mxu1 %v1059_v35  ;;  %v8588_v19 = vor.u32 %v1605_v10, %v1602_v52 }
 0x187   : > { %7003 = vmatpush3.bf16.msra.mxu1 %v8032_v17  ;;  %7006 = vmatprep.mubr.bf16.mxu1 %v8421_v21  ;;  %v8592_v29 = vsel %vm3145_vm6, %v3179_v59, %v3188_v16  ;;  %v973_v43 = vmax.f32 %v849_v9, 0.0 }
 0x188   : > { %10052 = vst [vmem:[#allocation5_spill] sm:$0xff] %v8592_v29  ;;  %v3191_v62 = vshrl.u32 %v8586_v34, 16  ;;  %v3194_v40 = vshll.u32 %v8586_v34, 16  ;;  %7004 = vmatprep.subr.bf16.mxu1 %v8033_v60  ;;  %v8601_v3 = vsel %vm1554_vm4, %v1597_v7, %v8588_v19  ;;  %v10043_v17 = vrot.slane %v8586_v34, 3  ;;  %v8035_v7 = vld [vmem:[%s10038_s3 + $0x88] sm:$0xff]  }
 0x189   : > { %v853_v21 = vpop.f32.mrb[52].mxu0 }
 0x18a   : > { %v3193_v26 = vrot.slane %v3191_v62, 3  ;;  %v3196_v59 = vrot.slane %v3194_v40, 4  ;;  %v854_v6 = vadd.f32 %v8417_v12, %v853_v21  ;;  %v855_v35 = vpop.f32.mrb[53].mxu0  ;;  %v8608_v58 = vsel %vm2751_vm5, %v2759_v41, %v10043_v17 }
 0x18b   : > { %7005 = vmatpush3.bf16.msra.mxu1 %v8033_v60  ;;  %v856_v24 = vpop.f32.mrb[54].mxu0  ;;  %v8036_v60 = vld [vmem:[%s10038_s3 + $0x90] sm:$0xff]  }
 0x18c   : > { %7018 = vmatprep.subr.bf16.mxu1 %v8034_v47  ;;  %v974_v14 = vmax.f32 %v854_v6, 0.0  ;;  %v857_v45 = vadd.f32 %v8417_v12, %v856_v24  ;;  %v858_v52 = vpop.f32.mrb[55].mxu0  ;;  %v8614_v10 = vor.u32 %v3196_v59, %v3193_v26 }
 0x18d   : > { %v8038_v52 = vld [vmem:[%s10038_s3 + $0xa0] sm:$0xff]  }
 0x18e   : > { %10053 = vst [vmem:[#allocation6_spill] sm:$0xff] %v8614_v10  ;;  %7007 = vmatmul.mubr.bf16.vlgmr.msra.gmra.mrb[0].mxu1 %v8426_v32  ;;  %v8617_v18 = vpack.c.bf16 %v974_v14, %v973_v43  ;;  %v975_v56 = vmax.f32 %v857_v45, 0.0  ;;  %v8621_v41 = vsel %vm3145_vm6, %v3188_v16, %v8614_v10 }
 0x18f   : > { %10054 = vst [vmem:[#allocation7_spill] sm:$0xff] %v8621_v41  ;;  %7019 = vmatpush3.bf16.msra.mxu1 %v8034_v47  ;;  %7010 = vmatprep.mubr.bf16.mxu1 %v8435_v54  ;;  %v8037_v54 = vld [vmem:[%s10038_s3 + $0x98] sm:$0xff]  }
 0x190   : > { %7020 = vmatprep.subr.bf16.mxu1 %v8035_v7  ;;  %v3346_v61 = vpack.c.bf16 %v975_v56, %v974_v14  ;;  %v2126_v9 = vshll.u32 %v8617_v18, 16  ;;  %v2124_v6 = vshrl.u32 %v8617_v18, 16 }
 0x191   : > { %v861_v62 = vpop.f32.mrb[56].mxu0 }
 0x192   : > { %v862_v32 = vadd.f32 %v8417_v12, %v861_v62  ;;  %v863_v40 = vpop.f32.mrb[57].mxu0  ;;  %v3738_v43 = vshrl.u32 %v3346_v61, 16  ;;  %v3741_v21 = vshll.u32 %v3346_v61, 16  ;;  %v2128_v35 = vrot.slane %v2126_v9, 1 }
 0x193   : > { %7021 = vmatpush3.bf16.msra.mxu1 %v8035_v7  ;;  %v864_v16 = vpop.f32.mrb[58].mxu0 }
 0x194   : > { %7022 = vmatprep.subr.bf16.mxu1 %v8036_v60  ;;  %v976_v47 = vmax.f32 %v862_v32, 0.0  ;;  %v865_v26 = vadd.f32 %v8417_v12, %v864_v16  ;;  %v866_v59 = vpop.f32.mrb[59].mxu0  ;;  %v3740_v14 = vrot.slane %v3738_v43, 1  ;;  %v3743_v45 = vrot.slane %v3741_v21, 2 }
 0x195   : > { %v2129_v9 = vor.u32 %v2128_v35, %v2124_v6  ;;  %v3375_v16 = vrot.slane %v3346_v61, 1 }
 0x196   : > { %7011 = vmatmul.mubr.bf16.gmra.mrb[4].mxu1 %v8450_v15  ;;  %v8635_v24 = vpack.c.bf16 %v976_v47, %v975_v56  ;;  %v977_v7 = vmax.f32 %v865_v26, 0.0  ;;  %v3744_v17 = vor.u32 %v3743_v45, %v3740_v14 }
 0x197   : > { %7023 = vmatpush3.bf16.msra.mxu1 %v8036_v60  ;;  %7014 = vmatprep.mubr.bf16.mxu1 %v8465_v42 }
 0x198   : > { %7024 = vmatprep.subr.bf16.mxu1 %v8037_v54  ;;  %v3347_v62 = vpack.c.bf16 %v977_v7, %v976_v47  ;;  %v2131_v32 = vshll.u32 %v8635_v24, 16  ;;  %v2135_v42 = vshrl.u32 %v8635_v24, 16  ;;  %v8039_v47 = vld [vmem:[%s10038_s3 + $0xa8] sm:$0xff]  }
 0x199   : > { %v869_v40 = vpop.f32.mrb[60].mxu0 }
 0x19a   : > { %v3746_v15 = vshrl.u32 %v3347_v62, 16  ;;  %v3749_v56 = vshll.u32 %v3347_v62, 16  ;;  %v870_v26 = vadd.f32 %v8417_v12, %v869_v40  ;;  %v871_v60 = vpop.f32.mrb[61].mxu0  ;;  %v2133_v59 = vrot.slane %v2131_v32, 1 }
 0x19b   : > { %7025 = vmatpush3.bf16.msra.mxu1 %v8037_v54  ;;  %v872_v43 = vpop.f32.mrb[62].mxu0  ;;  %v3376_v21 = vrot.slane %v3347_v62, 1 }
 0x19c   : > { %7026 = vmatprep.subr.bf16.mxu1 %v8038_v52  ;;  %v3748_v36 = vrot.slane %v3746_v15, 1  ;;  %v3751_v6 = vrot.slane %v3749_v56, 2  ;;  %v978_v61 = vmax.f32 %v870_v26, 0.0  ;;  %v873_v35 = vadd.f32 %v8417_v12, %v872_v43  ;;  %v874_v10 = vpop.f32.mrb[63].mxu0 }
 0x19d   : > { %v8649_v40 = vsel %vm1342_vm0, %v2129_v9, %v2133_v59  ;;  %v8652_v54 = vsel %vm2563_vm1, %v3375_v16, %v3376_v21  ;;  %v8040_v10 = vld [vmem:[%s10038_s3 + $0xb0] sm:$0xff]   ;;  %v2137_v15 = vor.u32 %v2135_v42, %v2133_v59 }
 0x19e   : > { %10055 = vst [vmem:[#allocation8_spill] sm:$0xff] %v8652_v54  ;;  %7015 = vmatmul.mubr.bf16.gmra.mrb[8].mxu1 %v8480_v5  ;;  %v8655_v14 = vpack.c.bf16 %v978_v61, %v977_v7  ;;  %v979_v45 = vmax.f32 %v873_v35, 0.0  ;;  %v3752_v62 = vor.u32 %v3751_v6, %v3748_v36  ;;  %v8041_v6 = vld [vmem:[%s10038_s3 + $0xb8] sm:$0xff]  }
 0x19f   : > { %7027 = vmatpush3.bf16.msra.mxu1 %v8038_v52  ;;  %7034 = vmatprep.mubr.bf16.mxu1 %v8433_v51 }
 0x1a0   : > { %7028 = vmatprep.subr.bf16.mxu1 %v8039_v47  ;;  %v2139_v32 = vshll.u32 %v8655_v14, 16  ;;  %v3348_v9 = vpack.c.bf16 %v979_v45, %v978_v61  ;;  %v8663_v16 = vsel %vm2927_vm2, %v3744_v17, %v3752_v62 }
 0x1a1   : > { %10056 = vst [vmem:[#allocation9_spill] sm:$0xff] %v8663_v16  ;;  %v877_v56 = vpop.f32.mrb[64].mxu0 }
 0x1a2   : > { %v2141_v7 = vrot.slane %v2139_v32, 1  ;;  %v3378_v26 = vrot.slane %v3348_v9, 1  ;;  %v3755_v60 = vshrl.u32 %v3348_v9, 16  ;;  %v3758_v36 = vshll.u32 %v3348_v9, 16  ;;  %v879_v52 = vpop.f32.mrb[65].mxu0 }
 0x1a3   : > { %7029 = vmatpush3.bf16.msra.mxu1 %v8039_v47  ;;  %v878_v51 = vadd.f32 %v8417_v12, %v877_v56  ;;  %v880_v43 = vpop.f32.mrb[66].mxu0  ;;  %v2143_v32 = vshrl.u32 %v8655_v14, 16 }
 0x1a4   : > { %7030 = vmatprep.subr.bf16.mxu1 %v8040_v10  ;;  %v3757_v61 = vrot.slane %v3755_v60, 1  ;;  %v3760_v59 = vrot.slane %v3758_v36, 2  ;;  %v881_v17 = vadd.f32 %v8417_v12, %v880_v43  ;;  %v882_v42 = vpop.f32.mrb[67].mxu0  ;;  %v8671_v35 = vsel %vm1342_vm0, %v2137_v15, %v2141_v7  ;;  %v8042_v60 = vld [vmem:[%s10038_s3 + $0xc0] sm:$0xff]  }
 0x1a5   : > { %v980_v9 = vmax.f32 %v878_v51, 0.0  ;;  %v8675_v47 = vsel %vm2563_vm1, %v3376_v21, %v3378_v26  ;;  %v2145_v42 = vor.u32 %v2143_v32, %v2141_v7 }
 0x1a6   : > { %10057 = vst [vmem:[#allocation10_spill] sm:$0xff] %v8675_v47  ;;  %v3761_v56 = vor.u32 %v3760_v59, %v3757_v61  ;;  %v981_v52 = vmax.f32 %v881_v17, 0.0 }
 0x1a7   : > { %7031 = vmatpush3.bf16.msra.mxu1 %v8040_v10  ;;  %v8677_v16 = vpack.c.bf16 %v980_v9, %v979_v45 }
 0x1a8   : > { %7032 = vmatprep.subr.bf16.mxu1 %v8041_v6  ;;  %v3349_v36 = vpack.c.bf16 %v981_v52, %v980_v9  ;;  %v8683_v15 = vsel %vm2927_vm2, %v3752_v62, %v3761_v56  ;;  %v8043_v9 = vld [vmem:[%s10038_s3 + $0xc8] sm:$0xff]  }
 0x1a9   : > { %10058 = vst [vmem:[#allocation11_spill] sm:$0xff] %v8683_v15  ;;  %v885_v43 = vpop.f32.mrb[68].mxu0  ;;  %v2147_v51 = vshll.u32 %v8677_v16, 16  ;;  %v2151_v41 = vshrl.u32 %v8677_v16, 16 }
 0x1aa   : > { %v3764_v21 = vshrl.u32 %v3349_v36, 16  ;;  %v3767_v47 = vshll.u32 %v3349_v36, 16  ;;  %v886_v61 = vadd.f32 %v8417_v12, %v885_v43  ;;  %v887_v10 = vpop.f32.mrb[69].mxu0  ;;  %v3380_v45 = vrot.slane %v3349_v36, 1 }
 0x1ab   : > { %7033 = vmatpush3.bf16.msra.mxu1 %v8041_v6  ;;  %v888_v59 = vpop.f32.mrb[70].mxu0  ;;  %v2149_v17 = vrot.slane %v2147_v51, 1 }
 0x1ac   : > { %7046 = vmatprep.subr.bf16.mxu1 %v8042_v60  ;;  %v3766_v62 = vrot.slane %v3764_v21, 1  ;;  %v3769_v15 = vrot.slane %v3767_v47, 2  ;;  %v982_v54 = vmax.f32 %v886_v61, 0.0  ;;  %v889_v7 = vadd.f32 %v8417_v12, %v888_v59  ;;  %v890_v32 = vpop.f32.mrb[71].mxu0  ;;  %v8044_v47 = vld [vmem:[%s10038_s3 + $0xd0] sm:$0xff]  }
 0x1ad   : > { %v8693_v43 = vsel %vm1342_vm0, %v2145_v42, %v2149_v17  ;;  %v8696_v6 = vsel %vm2563_vm1, %v3378_v26, %v3380_v45 }
 0x1ae   : > { %10059 = vst [vmem:[#allocation12_spill] sm:$0xff] %v8696_v6  ;;  %7035 = vmatmul.mubr.bf16.vlgmr.msra.gmra.mrb[0].mxu1 %v8445_v11  ;;  %v8699_v36 = vpack.c.bf16 %v982_v54, %v981_v52  ;;  %v983_v51 = vmax.f32 %v889_v7, 0.0  ;;  %v3770_v10 = vor.u32 %v3769_v15, %v3766_v62  ;;  %v2153_v11 = vor.u32 %v2151_v41, %v2149_v17 }
 0x1af   : > { %7038 = vmatprep.mubr.bf16.mxu1 %v8460_v38  ;;  %7047 = vmatpush3.bf16.msra.mxu1 %v8042_v60 }
 0x1b0   : > { %7048 = vmatprep.subr.bf16.mxu1 %v8043_v9  ;;  %v3350_v21 = vpack.c.bf16 %v983_v51, %v982_v54  ;;  %v2155_v42 = vshll.u32 %v8699_v36, 16  ;;  %v8707_v26 = vsel %vm2927_vm2, %v3761_v56, %v3770_v10  ;;  %v8045_v54 = vld [vmem:[%s10038_s3 + $0xd8] sm:$0xff]   ;;  %v2159_v17 = vshrl.u32 %v8699_v36, 16 }
 0x1b1   : > { %10060 = vst [vmem:[#allocation13_spill] sm:$0xff] %v8707_v26  ;;  %v893_v61 = vpop.f32.mrb[72].mxu0 }
 0x1b2   : > { %v3773_v52 = vshrl.u32 %v3350_v21, 16  ;;  %v3776_v59 = vshll.u32 %v3350_v21, 16  ;;  %v894_v15 = vadd.f32 %v8417_v12, %v893_v61  ;;  %v895_v62 = vpop.f32.mrb[73].mxu0  ;;  %v2157_v38 = vrot.slane %v2155_v42, 1 }
 0x1b3   : > { %7049 = vmatpush3.bf16.msra.mxu1 %v8043_v9  ;;  %v896_v60 = vpop.f32.mrb[74].mxu0  ;;  %v3382_v7 = vrot.slane %v3350_v21, 1 }
 0x1b4   : > { %7050 = vmatprep.subr.bf16.mxu1 %v8044_v47  ;;  %v3775_v32 = vrot.slane %v3773_v52, 1  ;;  %v3778_v6 = vrot.slane %v3776_v59, 2  ;;  %v984_v56 = vmax.f32 %v894_v15, 0.0  ;;  %v897_v26 = vadd.f32 %v8417_v12, %v896_v60  ;;  %v898_v41 = vpop.f32.mrb[75].mxu0  ;;  %v8046_v52 = vld [vmem:[%s10038_s3 + $0xe0] sm:$0xff]  }
 0x1b5   : > { %v8716_v61 = vsel %vm1342_vm0, %v2153_v11, %v2157_v38  ;;  %v8719_v9 = vsel %vm2563_vm1, %v3380_v45, %v3382_v7 }
 0x1b6   : > { %10061 = vst [vmem:[#allocation14_spill] sm:$0xff] %v8719_v9  ;;  %7039 = vmatmul.mubr.bf16.gmra.mrb[4].mxu1 %v8478_v0  ;;  %v8722_v21 = vpack.c.bf16 %v984_v56, %v983_v51  ;;  %v985_v42 = vmax.f32 %v897_v26, 0.0  ;;  %v3779_v62 = vor.u32 %v3778_v6, %v3775_v32  ;;  %v1387_v0 = vshrl.u32 %v8480_v5, 16  ;;  %v8047_v5 = vld [vmem:[%s10038_s3 + $0xe8] sm:$0xff]  }
 0x1b7   : > { %7042 = vmatprep.mubr.bf16.mxu1 %v8495_v30  ;;  %7051 = vmatpush3.bf16.msra.mxu1 %v8044_v47  ;;  %v2161_v26 = vor.u32 %v2159_v17, %v2157_v38 }
 0x1b8   : > { %7052 = vmatprep.subr.bf16.mxu1 %v8045_v54  ;;  %v8728_v59 = vpack.c.bf16 %v985_v42, %v984_v56  ;;  %v2163_v11 = vshll.u32 %v8722_v21, 16  ;;  %v8732_v45 = vsel %vm2927_vm2, %v3770_v10, %v3779_v62  ;;  %v1389_v32 = vor.u32 %v1387_v0, %v8489_v25 }
 0x1b9   : > { %10063 = vst [vmem:[#allocation16_spill] sm:$0xff] %v8732_v45  ;;  %v901_v51 = vpop.f32.mrb[76].mxu0 }
 0x1ba   : > { %10062 = vst [vmem:[#allocation15_spill] sm:$0xff] %v8728_v59  ;;  %v3782_v6 = vshrl.u32 %v8728_v59, 16  ;;  %v3785_v30 = vshll.u32 %v8728_v59, 16  ;;  %v902_v47 = vadd.f32 %v8417_v12, %v901_v51  ;;  %v903_v15 = vpop.f32.mrb[77].mxu0  ;;  %v8738_v60 = vrot.slane %v2163_v11, 1 }
 0x1bb   : > { %7053 = vmatpush3.bf16.msra.mxu1 %v8045_v54  ;;  %v904_v56 = vpop.f32.mrb[78].mxu0  ;;  %v10046_v10 = vrot.slane %v8728_v59, 1  ;;  %v8748_v12 = vld [vmem:[%s10037_s2] ss:$0 sm:$0xff] }
 0x1bc   : > { %7054 = vmatprep.subr.bf16.mxu1 %v8046_v52  ;;  %v3784_v38 = vrot.slane %v3782_v6, 1  ;;  %v3787_v41 = vrot.slane %v3785_v30, 2  ;;  %v986_v17 = vmax.f32 %v902_v47, 0.0  ;;  %v905_v54 = vadd.f32 %v8748_v12, %v904_v56  ;;  %v906_v11 = vpop.f32.mrb[79].mxu0  ;;  %v8048_v47 = vld [vmem:[%s10038_s3 + $0xf0] sm:$0xff]  }
 0x1bd   : > { %v8753_v25 = vsel %vm1342_vm0, %v2161_v26, %v8738_v60  ;;  %v8758_v0 = vsel %vm2563_vm1, %v3382_v7, %v10046_v10 }
 0x1be   : > { %10064 = vst [vmem:[#allocation17_spill] sm:$0xff] %v8758_v0  ;;  %7043 = vmatmul.mubr.bf16.gmra.mrb[8].mxu1 %v1389_v32  ;;  %v1919_v51 = vpack.c.bf16 %v986_v17, %v985_v42  ;;  %v987_v6 = vmax.f32 %v905_v54, 0.0  ;;  %v8760_v30 = vor.u32 %v3787_v41, %v3784_v38 }
 0x1bf   : > { %7055 = vmatpush3.bf16.msra.mxu1 %v8046_v52  ;;  %7062 = vmatprep.mubr.bf16.mxu1 %v8520_v44  ;;  %v8049_v44 = vld [vmem:[%s10038_s3 + $0xf8] sm:$0xff]  }
 0x1c0   : > { %10065 = vst [vmem:[#allocation18_spill] sm:$0xff] %v8760_v30  ;;  %7056 = vmatprep.subr.bf16.mxu1 %v8047_v5  ;;  %v3533_v26 = vpack.c.bf16 %v987_v6, %v986_v17  ;;  %v8768_v56 = vsel %vm2927_vm2, %v3779_v62, %v8760_v30  ;;  %v2335_v42 = vshrl.u32 %v1919_v51, 16  ;;  %v2338_v32 = vshll.u32 %v1919_v51, 16 }
 0x1c1   : > { %v909_v15 = vpop.f32.mrb[80].mxu0  ;;  %10066 = vst [vmem:[#allocation19_spill] sm:$0xff] %v8768_v56  ;;  %v1948_v56 = vrot.slane %v1919_v51, 2 }
 0x1c2   : > { %v911_v7 = vpop.f32.mrb[81].mxu0  ;;  %v910_v38 = vadd.f32 %v8748_v12, %v909_v15  ;;  %v3955_v41 = vshrl.u32 %v3533_v26, 16  ;;  %v3958_v11 = vshll.u32 %v3533_v26, 16  ;;  %v8050_v15 = vld [vmem:[%s10038_s3 + $0x100] sm:$0xff]   ;;  %v3562_v0 = vrot.slane %v3533_v26, 3  ;;  %v8051_v26 = vld [vmem:[%s10038_s3 + $0x108] sm:$0xff]  }
 0x1c3   : > { %7057 = vmatpush3.bf16.msra.mxu1 %v8047_v5  ;;  %v912_v52 = vpop.f32.mrb[82].mxu0  ;;  %v2337_v7 = vrot.slane %v2335_v42, 2  ;;  %v2340_v5 = vrot.slane %v2338_v32, 3 }
 0x1c4   : > { %7058 = vmatprep.subr.bf16.mxu1 %v8048_v47  ;;  %v913_v17 = vadd.f32 %v8748_v12, %v912_v52  ;;  %v914_v54 = vpop.f32.mrb[83].mxu0  ;;  %v988_v10 = vmax.f32 %v910_v38, 0.0  ;;  %v3957_v45 = vrot.slane %v3955_v41, 3  ;;  %v3960_v9 = vrot.slane %v3958_v11, 4 }
 0x1c6   : > { %v989_v62 = vmax.f32 %v913_v17, 0.0  ;;  %v1920_v30 = vpack.c.bf16 %v988_v10, %v987_v6 }
 0x1c7   : > { %7059 = vmatpush3.bf16.msra.mxu1 %v8048_v47 }
 0x1c8   : > { %7060 = vmatprep.subr.bf16.mxu1 %v8049_v44  ;;  %v3534_v59 = vpack.c.bf16 %v989_v62, %v988_v10  ;;  %v2343_v29 = vshrl.u32 %v1920_v30, 16  ;;  %v2346_v52 = vshll.u32 %v1920_v30, 16  ;;  %v1949_v37 = vrot.slane %v1920_v30, 2 }
 0x1c9   : > { %v917_v54 = vpop.f32.mrb[84].mxu0  ;;  %v2341_v10 = vor.u32 %v2340_v5, %v2337_v7 }
 0x1ca   : > { %v3963_v38 = vshrl.u32 %v3534_v59, 16  ;;  %v3966_v17 = vshll.u32 %v3534_v59, 16  ;;  %v918_v47 = vadd.f32 %v8748_v12, %v917_v54  ;;  %v919_v42 = vpop.f32.mrb[85].mxu0  ;;  %v3563_v6 = vrot.slane %v3534_v59, 3 }
 0x1cb   : > { %7061 = vmatpush3.bf16.msra.mxu1 %v8049_v44  ;;  %v2345_v51 = vrot.slane %v2343_v29, 2  ;;  %v2348_v32 = vrot.slane %v2346_v52, 3  ;;  %v920_v48 = vpop.f32.mrb[86].mxu0  ;;  %v8780_v22 = vsel %vm1049_vm3, %v1948_v56, %v1949_v37  ;;  %v3961_v44 = vor.u32 %v3960_v9, %v3957_v45 }
 0x1cc   : > { %7074 = vmatprep.subr.bf16.mxu1 %v8050_v15  ;;  %v3965_v30 = vrot.slane %v3963_v38, 3  ;;  %v3968_v41 = vrot.slane %v3966_v17, 4  ;;  %v990_v11 = vmax.f32 %v918_v47, 0.0  ;;  %v921_v54 = vadd.f32 %v8748_v12, %v920_v48  ;;  %v922_v42 = vpop.f32.mrb[87].mxu0  ;;  %v8052_v48 = vld [vmem:[%s10038_s3 + $0x110] sm:$0xff]  }
 0x1cd   : > { %v2349_v59 = vor.u32 %v2348_v32, %v2345_v51  ;;  %v8787_v29 = vsel %vm2751_vm5, %v3562_v0, %v3563_v6 }
 0x1ce   : > { %7063 = vmatmul.mubr.bf16.vlgmr.msra.gmra.mrb[0].mxu1 %v8539_v33  ;;  %v1921_v56 = vpack.c.bf16 %v990_v11, %v989_v62  ;;  %v991_v7 = vmax.f32 %v921_v54, 0.0  ;;  %v3969_v5 = vor.u32 %v3968_v41, %v3965_v30 }
 0x1cf   : > { %7066 = vmatprep.mubr.bf16.mxu1 %v8557_v8  ;;  %7075 = vmatpush3.bf16.msra.mxu1 %v8050_v15  ;;  %v8792_v52 = vsel %vm1554_vm4, %v2341_v10, %v2349_v59 }
 0x1d0   : > { %7076 = vmatprep.subr.bf16.mxu1 %v8051_v26  ;;  %v1951_v38 = vrot.slane %v1921_v56, 2  ;;  %v2352_v0 = vshrl.u32 %v1921_v56, 16  ;;  %v2355_v17 = vshll.u32 %v1921_v56, 16  ;;  %v3535_v9 = vpack.c.bf16 %v991_v7, %v990_v11  ;;  %v8053_v11 = vld [vmem:[%s10038_s3 + $0x118] sm:$0xff]  }
 0x1d1   : > { %v925_v45 = vpop.f32.mrb[88].mxu0  ;;  %v8798_v33 = vsel %vm3145_vm6, %v3961_v44, %v3969_v5 }
 0x1d2   : > { %10067 = vst [vmem:[#allocation20_spill] sm:$0xff] %v8798_v33  ;;  %v2354_v62 = vrot.slane %v2352_v0, 2  ;;  %v2357_v47 = vrot.slane %v2355_v17, 3  ;;  %v3565_v8 = vrot.slane %v3535_v9, 3  ;;  %v3972_v15 = vshrl.u32 %v3535_v9, 16  ;;  %v927_v51 = vpop.f32.mrb[89].mxu0 }
 0x1d3   : > { %7077 = vmatpush3.bf16.msra.mxu1 %v8051_v26  ;;  %v3975_v32 = vshll.u32 %v3535_v9, 16  ;;  %v926_v10 = vadd.f32 %v8748_v12, %v925_v45  ;;  %v928_v30 = vpop.f32.mrb[90].mxu0  ;;  %v8802_v41 = vsel %vm1049_vm3, %v1949_v37, %v1951_v38 }
 0x1d4   : > { %7078 = vmatprep.subr.bf16.mxu1 %v8052_v48  ;;  %v2358_v54 = vor.u32 %v2357_v47, %v2354_v62  ;;  %v3974_v42 = vrot.slane %v3972_v15, 3  ;;  %v929_v44 = vadd.f32 %v8748_v12, %v928_v30  ;;  %v930_v56 = vpop.f32.mrb[91].mxu0  ;;  %v8809_v0 = vsel %vm2751_vm5, %v3563_v6, %v3565_v8  ;;  %v8054_v47 = vld [vmem:[%s10038_s3 + $0x120] sm:$0xff]  }
 0x1d5   : > { %v3977_v26 = vrot.slane %v3975_v32, 4  ;;  %v992_v17 = vmax.f32 %v926_v10, 0.0 }
 0x1d6   : > { %7067 = vmatmul.mubr.bf16.gmra.mrb[4].mxu1 %v8575_v23  ;;  %v993_v9 = vmax.f32 %v929_v44, 0.0  ;;  %v8813_v37 = vsel %vm1554_vm4, %v2349_v59, %v2358_v54 }
 0x1d7   : > { %7070 = vmatprep.mubr.bf16.mxu1 %v8601_v3  ;;  %7079 = vmatpush3.bf16.msra.mxu1 %v8052_v48  ;;  %v3978_v45 = vor.u32 %v3977_v26, %v3974_v42  ;;  %v1922_v62 = vpack.c.bf16 %v992_v17, %v991_v7 }
 0x1d8   : > { %7080 = vmatprep.subr.bf16.mxu1 %v8053_v11  ;;  %v3536_v6 = vpack.c.bf16 %v993_v9, %v992_v17  ;;  %v8055_v17 = vld [vmem:[%s10038_s3 + $0x128] sm:$0xff]  }
 0x1d9   : > { %v2361_v15 = vshrl.u32 %v1922_v62, 16  ;;  %v2364_v51 = vshll.u32 %v1922_v62, 16  ;;  %v933_v32 = vpop.f32.mrb[92].mxu0  ;;  %v1953_v10 = vrot.slane %v1922_v62, 2  ;;  %v8820_v23 = vsel %vm3145_vm6, %v3969_v5, %v3978_v45 }
 0x1da   : > { %10068 = vst [vmem:[#allocation21_spill] sm:$0xff] %v8820_v23  ;;  %v3981_v59 = vshrl.u32 %v3536_v6, 16  ;;  %v3984_v30 = vshll.u32 %v3536_v6, 16  ;;  %v934_v3 = vadd.f32 %v8748_v12, %v933_v32  ;;  %v935_v48 = vpop.f32.mrb[93].mxu0  ;;  %v3567_v42 = vrot.slane %v3536_v6, 3 }
 0x1db   : > { %7081 = vmatpush3.bf16.msra.mxu1 %v8053_v11  ;;  %v2363_v7 = vrot.slane %v2361_v15, 2  ;;  %v2366_v44 = vrot.slane %v2364_v51, 3  ;;  %v936_v56 = vpop.f32.mrb[94].mxu0  ;;  %v8824_v26 = vsel %vm1049_vm3, %v1951_v38, %v1953_v10 }
 0x1dc   : > { %7082 = vmatprep.subr.bf16.mxu1 %v8054_v47  ;;  %v3983_v5 = vrot.slane %v3981_v59, 3  ;;  %v3986_v62 = vrot.slane %v3984_v30, 4  ;;  %v994_v23 = vmax.f32 %v934_v3, 0.0  ;;  %v937_v33 = vadd.f32 %v8748_v12, %v936_v56  ;;  %v938_v32 = vpop.f32.mrb[95].mxu0  ;;  %v8056_v59 = vld [vmem:[%s10038_s3 + $0x130] sm:$0xff]  }
 0x1dd   : > { %v2367_v48 = vor.u32 %v2366_v44, %v2363_v7  ;;  %v8831_v11 = vsel %vm2751_vm5, %v3565_v8, %v3567_v42 }
 0x1de   : > { %10069 = vst [vmem:[#allocation22_spill] sm:$0xff] %v8831_v11  ;;  %7071 = vmatmul.mubr.bf16.gmra.mrb[8].mxu1 %v8588_v19  ;;  %v1923_v6 = vpack.c.bf16 %v994_v23, %v993_v9  ;;  %v995_v38 = vmax.f32 %v937_v33, 0.0  ;;  %v3987_v15 = vor.u32 %v3986_v62, %v3983_v5 }
 0x1df   : > { %7083 = vmatpush3.bf16.msra.mxu1 %v8054_v47  ;;  %7090 = vmatprep.mubr.bf16.mxu1 %v8617_v18  ;;  %v8836_v51 = vsel %vm1554_vm4, %v2358_v54, %v2367_v48 }
 0x1e0   : > { %7084 = vmatprep.subr.bf16.mxu1 %v8055_v17  ;;  %v2370_v30 = vshrl.u32 %v1923_v6, 16  ;;  %v2373_v3 = vshll.u32 %v1923_v6, 16  ;;  %v3537_v8 = vpack.c.bf16 %v995_v38, %v994_v23  ;;  %v1955_v7 = vrot.slane %v1923_v6, 2  ;;  %v8057_v23 = vld [vmem:[%s10038_s3 + $0x138] sm:$0xff]  }
 0x1e1   : > { %v941_v44 = vpop.f32.mrb[96].mxu0  ;;  %v8842_v19 = vsel %vm3145_vm6, %v3978_v45, %v3987_v15 }
 0x1e2   : > { %10070 = vst [vmem:[#allocation23_spill] sm:$0xff] %v8842_v19  ;;  %v2372_v33 = vrot.slane %v2370_v30, 2  ;;  %v2375_v9 = vrot.slane %v2373_v3, 3  ;;  %v3990_v47 = vshrl.u32 %v3537_v8, 16  ;;  %v3993_v18 = vshll.u32 %v3537_v8, 16  ;;  %v943_v56 = vpop.f32.mrb[97].mxu0 }
 0x1e3   : > { %7085 = vmatpush3.bf16.msra.mxu1 %v8055_v17  ;;  %v942_v54 = vadd.f32 %v8748_v12, %v941_v44  ;;  %v944_v5 = vpop.f32.mrb[98].mxu0  ;;  %v8846_v62 = vsel %vm1049_vm3, %v1953_v10, %v1955_v7  ;;  %v3569_v32 = vrot.slane %v3537_v8, 3 }
 0x1e4   : > { %7086 = vmatprep.subr.bf16.mxu1 %v8056_v59  ;;  %v3992_v45 = vrot.slane %v3990_v47, 3  ;;  %v3995_v6 = vrot.slane %v3993_v18, 4  ;;  %v945_v30 = vadd.f32 %v8748_v12, %v944_v5  ;;  %v946_v3 = vpop.f32.mrb[99].mxu0  ;;  %v2376_v19 = vor.u32 %v2375_v9, %v2372_v33  ;;  %v8058_v47 = vld [vmem:[%s10038_s3 + $0x140] sm:$0xff]  }
 0x1e5   : > { %v996_v56 = vmax.f32 %v942_v54, 0.0  ;;  %v8853_v17 = vsel %vm2751_vm5, %v3567_v42, %v3569_v32 }
 0x1e6   : > { %v997_v44 = vmax.f32 %v945_v30, 0.0  ;;  %v8856_v10 = vsel %vm1554_vm4, %v2367_v48, %v2376_v19  ;;  %v3996_v8 = vor.u32 %v3995_v6, %v3992_v45 }
 0x1e7   : > { %7087 = vmatpush3.bf16.msra.mxu1 %v8056_v59  ;;  %v8858_v11 = vpack.c.bf16 %v996_v56, %v995_v38 }
 0x1e8   : > { %7088 = vmatprep.subr.bf16.mxu1 %v8057_v23  ;;  %v8863_v12 = vpack.c.bf16 %v997_v44, %v996_v56  ;;  %v8866_v33 = vsel %vm3145_vm6, %v3987_v15, %v3996_v8  ;;  %v8059_v15 = vld [vmem:[%s10038_s3 + $0x148] sm:$0xff]   ;;  %v8060_v56 = vld [vmem:[%s10038_s3 + $0x150] sm:$0xff]   ;;  %v8066_v44 = vld [vmem:[%s10038_s3 + $0x180] sm:$0xff]  }
 0x1e9   : > { %v2379_v42 = vshrl.u32 %v8858_v11, 16  ;;  %v2382_v9 = vshll.u32 %v8858_v11, 16  ;;  %v1957_v48 = vrot.slane %v8858_v11, 2 }
 0x1ea   : > { %v3999_v59 = vshrl.u32 %v8863_v12, 16  ;;  %v4002_v38 = vshll.u32 %v8863_v12, 16  ;;  %v3571_v18 = vrot.slane %v8863_v12, 3  ;;  %v8138_v12 = vld [vmem:[%s10038_s3 + $0x3c0] sm:$0xff]  }
 0x1eb   : > { %7089 = vmatpush3.bf16.msra.mxu1 %v8057_v23  ;;  %v2381_v54 = vrot.slane %v2379_v42, 2  ;;  %v2384_v5 = vrot.slane %v2382_v9, 3  ;;  %v1958_v45 = vsel %vm1049_vm3, %v1955_v7, %v1957_v48  ;;  %v8073_v42 = vld [vmem:[%s10038_s3 + $0x1b8] sm:$0xff]   ;;  %v8074_v9 = vld [vmem:[%s10038_s3 + $0x1c0] sm:$0xff]  }
 0x1ec   : > { %7102 = vmatprep.subr.bf16.mxu1 %v8058_v47  ;;  %v4001_v6 = vrot.slane %v3999_v59, 3  ;;  %v4004_v30 = vrot.slane %v4002_v38, 4  ;;  %v8881_v11 = vsel %vm2751_vm5, %v3569_v32, %v3571_v18  ;;  %v8077_v59 = vld [vmem:[%s10038_s3 + $0x1d8] sm:$0xff]  }
 0x1ed   : > { %v8883_v3 = vor.u32 %v2384_v5, %v2381_v54  ;;  %v8079_v54 = vld [vmem:[%s10038_s3 + $0x1e8] sm:$0xff]   ;;  %v8085_v5 = vld [vmem:[%s10038_s3 + $0x218] sm:$0xff]  }
 0x1ee   : > { %7091 = vmatmul.mubr.bf16.vlgmr.msra.gmra.mrb[0].mxu1 %v8635_v24  ;;  %v8886_v23 = vor.u32 %v4004_v30, %v4001_v6  ;;  %v8061_v24 = vld [vmem:[%s10038_s3 + $0x158] sm:$0xff]   ;;  %v8092_v6 = vld [vmem:[%s10038_s3 + $0x250] sm:$0xff]  }
 0x1ef   : > { %7094 = vmatprep.mubr.bf16.mxu1 %v8655_v14  ;;  %7103 = vmatpush3.bf16.msra.mxu1 %v8058_v47  ;;  %v8891_v7 = vsel %vm1554_vm4, %v2376_v19, %v8883_v3  ;;  %v8062_v14 = vld [vmem:[%s10038_s3 + $0x160] sm:$0xff]   ;;  %v8063_v19 = vld [vmem:[%s10038_s3 + $0x168] sm:$0xff]   ;;  %v8069_v47 = vld [vmem:[%s10038_s3 + $0x198] sm:$0xff]  }
 0x1f0   : > { %7104 = vmatprep.subr.bf16.mxu1 %v8059_v15  ;;  %v8898_v32 = vsel %vm3145_vm6, %v3996_v8, %v8886_v23  ;;  %v8068_v8 = vld [vmem:[%s10038_s3 + $0x190] sm:$0xff]   ;;  %v8093_v30 = vld [vmem:[%s10038_s3 + $0x258] sm:$0xff]   ;;  %vm5796_vm6 = vsmask.f32 7440 }
 0x1f3   : > { %7105 = vmatpush3.bf16.msra.mxu1 %v8059_v15  ;;  %v8090_v15 = vld [vmem:[%s10038_s3 + $0x240] sm:$0xff]  }
 0x1f4   : > { %7106 = vmatprep.subr.bf16.mxu1 %v8060_v56 }
 0x1f6   : > { %7095 = vmatmul.mubr.bf16.gmra.mrb[4].mxu1 %v8677_v16  ;;  %v8064_v16 = vld [vmem:[%s10038_s3 + $0x170] sm:$0xff]  }
 0x1f7   : > { %7098 = vmatprep.mubr.bf16.mxu1 %v8699_v36  ;;  %7107 = vmatpush3.bf16.msra.mxu1 %v8060_v56  ;;  %v8065_v36 = vld [vmem:[%s10038_s3 + $0x178] sm:$0xff]  }
 0x1f8   : > { %7108 = vmatprep.subr.bf16.mxu1 %v8061_v24  ;;  %v8101_v56 = vld [vmem:[%s10038_s3 + $0x298] sm:$0xff]  }
 0x1fb   : > { %7109 = vmatpush3.bf16.msra.mxu1 %v8061_v24  ;;  %v10072_v24 = vrot.slane %v8586_v34, 3  ;;  %v8106_v34 = vld [vmem:[%s10038_s3 + $0x2c0] sm:$0xff]  }
 0x1fc   : > { %7110 = vmatprep.subr.bf16.mxu1 %v8062_v14 }
 0x1fe   : > { %7099 = vmatmul.mubr.bf16.gmra.mrb[8].mxu1 %v8722_v21 }
 0x1ff   : > { %7111 = vmatpush3.bf16.msra.mxu1 %v8062_v14  ;;  %7118 = vmatprep.mubr.bf16.mxu1 %v8780_v22  ;;  %v8067_v22 = vld [vmem:[%s10038_s3 + $0x188] sm:$0xff]   ;;  %v8108_v14 = vld [vmem:[%s10038_s3 + $0x2d0] sm:$0xff]  }
 0x200   : > { %7112 = vmatprep.subr.bf16.mxu1 %v8063_v19 }
 0x203   : > { %7113 = vmatpush3.bf16.msra.mxu1 %v8063_v19  ;;  %v8109_v19 = vld [vmem:[%s10038_s3 + $0x2d8] sm:$0xff]  }
 0x204   : > { %7114 = vmatprep.subr.bf16.mxu1 %v8064_v16 }
 0x207   : > { %7115 = vmatpush3.bf16.msra.mxu1 %v8064_v16  ;;  %v10073_v16 = vld [vmem:[#allocation2_spill] sm:$0xff] }
 0x208   : > { %7116 = vmatprep.subr.bf16.mxu1 %v8065_v36 }
 0x20b   : > { %7117 = vmatpush3.bf16.msra.mxu1 %v8065_v36  ;;  %v8115_v36 = vld [vmem:[%s10038_s3 + $0x308] sm:$0xff]  }
 0x20c   : > { %7130 = vmatprep.subr.bf16.mxu1 %v8066_v44 }
 0x20e   : > { %7119 = vmatmul.mubr.bf16.vlgmr.msra.gmra.mrb[0].mxu1 %v8802_v41  ;;  %v8070_v41 = vld [vmem:[%s10038_s3 + $0x1a0] sm:$0xff]  }
 0x20f   : > { %7122 = vmatprep.mubr.bf16.mxu1 %v8824_v26  ;;  %7131 = vmatpush3.bf16.msra.mxu1 %v8066_v44  ;;  %v8071_v26 = vld [vmem:[%s10038_s3 + $0x1a8] sm:$0xff]  }
 0x210   : > { %7132 = vmatprep.subr.bf16.mxu1 %v8067_v22  ;;  %v10074_v44 = vld [vmem:[#allocation3_spill] sm:$0xff] }
 0x213   : > { %7133 = vmatpush3.bf16.msra.mxu1 %v8067_v22  ;;  %v10075_v22 = vld [vmem:[#allocation4_spill] sm:$0xff] }
 0x214   : > { %7134 = vmatprep.subr.bf16.mxu1 %v8068_v8 }
 0x216   : > { %7123 = vmatmul.mubr.bf16.gmra.mrb[4].mxu1 %v8846_v62  ;;  %v8072_v62 = vld [vmem:[%s10038_s3 + $0x1b0] sm:$0xff]  }
 0x217   : > { %7126 = vmatprep.mubr.bf16.mxu1 %v1958_v45  ;;  %7135 = vmatpush3.bf16.msra.mxu1 %v8068_v8  ;;  %v8089_v45 = vld [vmem:[%s10038_s3 + $0x238] sm:$0xff]   ;;  %v8116_v8 = vld [vmem:[%s10038_s3 + $0x310] sm:$0xff]  }
 0x218   : > { %7136 = vmatprep.subr.bf16.mxu1 %v8069_v47 }
 0x21b   : > { %7137 = vmatpush3.bf16.msra.mxu1 %v8069_v47  ;;  %v8117_v47 = vld [vmem:[%s10038_s3 + $0x318] sm:$0xff]  }
 0x21c   : > { %7138 = vmatprep.subr.bf16.mxu1 %v8070_v41 }
 0x21e   : > { %7127 = vmatmul.mubr.bf16.gmra.mrb[8].mxu1 %v1957_v48  ;;  %v8076_v48 = vld [vmem:[%s10038_s3 + $0x1d0] sm:$0xff]  }
 0x21f   : > { %7139 = vmatpush3.bf16.msra.mxu1 %v8070_v41  ;;  %7146 = vmatprep.mubr.bf16.mxu1 %v8649_v40  ;;  %v8075_v40 = vld [vmem:[%s10038_s3 + $0x1c8] sm:$0xff]   ;;  %v10076_v41 = vld [vmem:[#allocation5_spill] sm:$0xff] }
 0x220   : > { %7140 = vmatprep.subr.bf16.mxu1 %v8071_v26 }
 0x223   : > { %7141 = vmatpush3.bf16.msra.mxu1 %v8071_v26  ;;  %v10077_v26 = vld [vmem:[#allocation7_spill] sm:$0xff] }
 0x224   : > { %7142 = vmatprep.subr.bf16.mxu1 %v8072_v62 }
 0x227   : > { %7143 = vmatpush3.bf16.msra.mxu1 %v8072_v62  ;;  %v8118_v62 = vld [vmem:[%s10038_s3 + $0x320] sm:$0xff]  }
 0x228   : > { %7144 = vmatprep.subr.bf16.mxu1 %v8073_v42 }
 0x22b   : > { %7145 = vmatpush3.bf16.msra.mxu1 %v8073_v42  ;;  %v8119_v42 = vld [vmem:[%s10038_s3 + $0x328] sm:$0xff]  }
 0x22c   : > { %7158 = vmatprep.subr.bf16.mxu1 %v8074_v9 }
 0x22e   : > { %7147 = vmatmul.mubr.bf16.vlgmr.msra.gmra.mrb[0].mxu1 %v8671_v35  ;;  %v2167_v35 = vshrl.u32 %v8722_v21, 16  ;;  %v8081_v21 = vld [vmem:[%s10038_s3 + $0x1f8] sm:$0xff]  }
 0x22f   : > { %7150 = vmatprep.mubr.bf16.mxu1 %v8693_v43  ;;  %7159 = vmatpush3.bf16.msra.mxu1 %v8074_v9  ;;  %v8078_v43 = vld [vmem:[%s10038_s3 + $0x1e0] sm:$0xff]  }
 0x230   : > { %7160 = vmatprep.subr.bf16.mxu1 %v8075_v40  ;;  %v2169_v38 = vor.u32 %v2167_v35, %v8738_v60  ;;  %v8082_v60 = vld [vmem:[%s10038_s3 + $0x200] sm:$0xff]   ;;  %v8228_v35 = vmov 0.0  }
 0x231   : > { %v10078_v9 = vld [vmem:[#allocation6_spill] sm:$0xff]  ;;  %7410 = vmatprep.subr.bf16.mxu0 %v8228_v35  ;;  %7426 = vmatprep.mubr.msk.bf16.mxu0 %vm8229_vm7, %v8228_v35 }
 0x233   : > { %7161 = vmatpush3.bf16.msra.mxu1 %v8075_v40  ;;  %v8146_v40 = vld [vmem:[%s10040_s5 + $0x40] sm:$0xff]  }
 0x234   : > { %7162 = vmatprep.subr.bf16.mxu1 %v8076_v48  ;;  %7411 = vmatpush3.bf16.msra.mxu0 %v8146_v40 }
 0x235   : > { %7412 = vmatprep.subr.bf16.mxu0 %v8228_v35 }
 0x236   : > { %7151 = vmatmul.mubr.bf16.gmra.mrb[4].mxu1 %v8716_v61  ;;  %v8080_v61 = vld [vmem:[%s10038_s3 + $0x1f0] sm:$0xff]  }
 0x237   : > { %7154 = vmatprep.mubr.bf16.mxu1 %v8753_v25  ;;  %7163 = vmatpush3.bf16.msra.mxu1 %v8076_v48  ;;  %v8083_v25 = vld [vmem:[%s10038_s3 + $0x208] sm:$0xff]   ;;  %v10079_v48 = vld [vmem:[#allocation8_spill] sm:$0xff] }
 0x238   : > { %7164 = vmatprep.subr.bf16.mxu1 %v8077_v59 }
 0x23b   : > { %7165 = vmatpush3.bf16.msra.mxu1 %v8077_v59  ;;  %v8120_v59 = vld [vmem:[%s10038_s3 + $0x330] sm:$0xff]  }
 0x23c   : > { %7166 = vmatprep.subr.bf16.mxu1 %v8078_v43 }
 0x23e   : > { %7155 = vmatmul.mubr.bf16.gmra.mrb[8].mxu1 %v2169_v38  ;;  %v8121_v38 = vld [vmem:[%s10038_s3 + $0x338] sm:$0xff]  }
 0x23f   : > { %7167 = vmatpush3.bf16.msra.mxu1 %v8078_v43  ;;  %7174 = vmatprep.mubr.bf16.mxu1 %v8792_v52  ;;  %v8084_v52 = vld [vmem:[%s10038_s3 + $0x210] sm:$0xff]   ;;  %v8147_v43 = vld [vmem:[%s10040_s5 + $0x48] sm:$0xff]  }
 0x240   : > { %7168 = vmatprep.subr.bf16.mxu1 %v8079_v54  ;;  %7413 = vmatpush3.bf16.msra.mxu0 %v8147_v43 }
 0x241   : > { %7414 = vmatprep.subr.bf16.mxu0 %v8228_v35 }
 0x243   : > { %7169 = vmatpush3.bf16.msra.mxu1 %v8079_v54  ;;  %v8148_v54 = vld [vmem:[%s10040_s5 + $0x50] sm:$0xff]  }
 0x244   : > { %7170 = vmatprep.subr.bf16.mxu1 %v8080_v61  ;;  %7415 = vmatpush3.bf16.msra.mxu0 %v8148_v54 }
 0x245   : > { %7416 = vmatprep.subr.bf16.mxu0 %v8228_v35 }
 0x247   : > { %7171 = vmatpush3.bf16.msra.mxu1 %v8080_v61  ;;  %v8122_v61 = vld [vmem:[%s10038_s3 + $0x340] sm:$0xff]  }
 0x248   : > { %7172 = vmatprep.subr.bf16.mxu1 %v8081_v21 }
 0x24b   : > { %7173 = vmatpush3.bf16.msra.mxu1 %v8081_v21  ;;  %v8149_v21 = vld [vmem:[%s10040_s5 + $0x58] sm:$0xff]  }
 0x24c   : > { %7186 = vmatprep.subr.bf16.mxu1 %v8082_v60  ;;  %7417 = vmatpush3.bf16.msra.mxu0 %v8149_v21 }
 0x24d   : > { %7418 = vmatprep.subr.bf16.mxu0 %v8228_v35 }
 0x24e   : > { %7175 = vmatmul.mubr.bf16.vlgmr.msra.gmra.mrb[0].mxu1 %v8813_v37  ;;  %v8086_v37 = vld [vmem:[%s10038_s3 + $0x220] sm:$0xff]  }
 0x24f   : > { %7178 = vmatprep.mubr.bf16.mxu1 %v8836_v51  ;;  %7187 = vmatpush3.bf16.msra.mxu1 %v8082_v60  ;;  %v8087_v51 = vld [vmem:[%s10038_s3 + $0x228] sm:$0xff]  }
 0x250   : > { %7188 = vmatprep.subr.bf16.mxu1 %v8083_v25  ;;  %v8123_v60 = vld [vmem:[%s10038_s3 + $0x348] sm:$0xff]  }
 0x253   : > { %7189 = vmatpush3.bf16.msra.mxu1 %v8083_v25  ;;  %v8150_v25 = vld [vmem:[%s10040_s5 + $0x60] sm:$0xff]  }
 0x254   : > { %7190 = vmatprep.subr.bf16.mxu1 %v8084_v52  ;;  %7419 = vmatpush3.bf16.msra.mxu0 %v8150_v25 }
 0x255   : > { %7420 = vmatprep.subr.bf16.mxu0 %v8228_v35 }
 0x256   : > { %7179 = vmatmul.mubr.bf16.gmra.mrb[4].mxu1 %v8856_v10  ;;  %v8088_v10 = vld [vmem:[%s10038_s3 + $0x230] sm:$0xff]  }
 0x257   : > { %7182 = vmatprep.mubr.bf16.mxu1 %v8891_v7  ;;  %7191 = vmatpush3.bf16.msra.mxu1 %v8084_v52  ;;  %v8100_v7 = vld [vmem:[%s10038_s3 + $0x290] sm:$0xff]   ;;  %v10080_v52 = vld [vmem:[#allocation10_spill] sm:$0xff] }
 0x258   : > { %7192 = vmatprep.subr.bf16.mxu1 %v8085_v5 }
 0x25b   : > { %7193 = vmatpush3.bf16.msra.mxu1 %v8085_v5  ;;  %v10081_v5 = vld [vmem:[#allocation12_spill] sm:$0xff] }
 0x25c   : > { %7194 = vmatprep.subr.bf16.mxu1 %v8086_v37 }
 0x25e   : > { %7183 = vmatmul.mubr.bf16.gmra.mrb[8].mxu1 %v8883_v3  ;;  %v10071_v3 = vrot.slane %v8491_v27, 1  ;;  %v8098_v27 = vld [vmem:[%s10038_s3 + $0x280] sm:$0xff]  }
 0x25f   : > { %7195 = vmatpush3.bf16.msra.mxu1 %v8086_v37  ;;  %7202 = vmatprep.mubr.bf16.mxu1 %v8441_v1  ;;  %v8091_v1 = vld [vmem:[%s10038_s3 + $0x248] sm:$0xff]   ;;  %v8124_v37 = vld [vmem:[%s10038_s3 + $0x350] sm:$0xff]  }
 0x260   : > { %7196 = vmatprep.subr.bf16.mxu1 %v8087_v51 }
 0x263   : > { %7197 = vmatpush3.bf16.msra.mxu1 %v8087_v51  ;;  %v8151_v51 = vld [vmem:[%s10040_s5 + $0x68] sm:$0xff]  }
 0x264   : > { %7198 = vmatprep.subr.bf16.mxu1 %v8088_v10  ;;  %7421 = vmatpush3.bf16.msra.mxu0 %v8151_v51 }
 0x265   : > { %7422 = vmatprep.subr.bf16.mxu0 %v8228_v35 }
 0x267   : > { %7199 = vmatpush3.bf16.msra.mxu1 %v8088_v10  ;;  %v8125_v10 = vld [vmem:[%s10038_s3 + $0x358] sm:$0xff]  }
 0x268   : > { %7200 = vmatprep.subr.bf16.mxu1 %v8089_v45 }
 0x26b   : > { %7201 = vmatpush3.bf16.msra.mxu1 %v8089_v45  ;;  %v8152_v45 = vld [vmem:[%s10040_s5 + $0x70] sm:$0xff]  }
 0x26c   : > { %7214 = vmatprep.subr.bf16.mxu1 %v8090_v15  ;;  %7423 = vmatpush3.bf16.msra.mxu0 %v8152_v45 }
 0x26d   : > { %7424 = vmatprep.subr.bf16.mxu0 %v8228_v35 }
 0x26e   : > { %7203 = vmatmul.mubr.bf16.vlgmr.msra.gmra.mrb[0].mxu1 %v8456_v28  ;;  %v8094_v28 = vld [vmem:[%s10038_s3 + $0x260] sm:$0xff]  }
 0x26f   : > { %7206 = vmatprep.mubr.bf16.mxu1 %v8471_v53  ;;  %7215 = vmatpush3.bf16.msra.mxu1 %v8090_v15  ;;  %v8095_v53 = vld [vmem:[%s10038_s3 + $0x268] sm:$0xff]   ;;  %v10082_v15 = vld [vmem:[#allocation14_spill] sm:$0xff] }
 0x270   : > { %7216 = vmatprep.subr.bf16.mxu1 %v8091_v1 }
 0x273   : > { %7217 = vmatpush3.bf16.msra.mxu1 %v8091_v1  ;;  %v10083_v1 = vld [vmem:[#allocation17_spill] sm:$0xff] }
 0x274   : > { %7218 = vmatprep.subr.bf16.mxu1 %v8092_v6 }
 0x276   : > { %7207 = vmatmul.mubr.bf16.gmra.mrb[4].mxu1 %v8486_v20  ;;  %v8096_v20 = vld [vmem:[%s10038_s3 + $0x270] sm:$0xff]  }
 0x277   : > { %7210 = vmatprep.mubr.bf16.mxu1 %v8507_v46  ;;  %7219 = vmatpush3.bf16.msra.mxu1 %v8092_v6  ;;  %v8097_v46 = vld [vmem:[%s10038_s3 + $0x278] sm:$0xff]   ;;  %v8126_v6 = vld [vmem:[%s10038_s3 + $0x360] sm:$0xff]  }
 0x278   : > { %7220 = vmatprep.subr.bf16.mxu1 %v8093_v30 }
 0x27b   : > { %7221 = vmatpush3.bf16.msra.mxu1 %v8093_v30  ;;  %v8154_v30 = vld [vmem:[%s10040_s5 + $0x78] sm:$0xff]  }
 0x27c   : > { %7222 = vmatprep.subr.bf16.mxu1 %v8094_v28  ;;  %7425 = vmatpush3.bf16.msra.mxu0 %v8154_v30 }
 0x27d   : > { %7446 = vmatprep.subr.bf16.mxu0 %v8228_v35 }
 0x27e   : > { %7211 = vmatmul.mubr.bf16.gmra.mrb[8].mxu1 %v10071_v3 }
 0x27f   : > { %7223 = vmatpush3.bf16.msra.mxu1 %v8094_v28  ;;  %7230 = vmatprep.mubr.bf16.mxu1 %v8524_v2  ;;  %v8099_v2 = vld [vmem:[%s10038_s3 + $0x288] sm:$0xff]  }
 0x280   : > { %7224 = vmatprep.subr.bf16.mxu1 %v8095_v53  ;;  %v8127_v28 = vld [vmem:[%s10038_s3 + $0x368] sm:$0xff]  }
 0x283   : > { %7225 = vmatpush3.bf16.msra.mxu1 %v8095_v53  ;;  %v10084_v53 = vld [vmem:[#allocation15_spill] sm:$0xff] }
 0x284   : > { %7226 = vmatprep.subr.bf16.mxu1 %v8096_v20  ;;  %v10085_v3 = vrot.slane %v10084_v53, 1 }
 0x287   : > { %7227 = vmatpush3.bf16.msra.mxu1 %v8096_v20  ;;  %v8128_v20 = vld [vmem:[%s10038_s3 + $0x370] sm:$0xff]  }
 0x288   : > { %7228 = vmatprep.subr.bf16.mxu1 %v8097_v46 }
 0x28b   : > { %7229 = vmatpush3.bf16.msra.mxu1 %v8097_v46  ;;  %v8129_v46 = vld [vmem:[%s10038_s3 + $0x378] sm:$0xff]  }
 0x28c   : > { %7242 = vmatprep.subr.bf16.mxu1 %v8098_v27 }
 0x28e   : > { %7231 = vmatmul.mubr.bf16.vlgmr.msra.gmra.mrb[0].mxu1 %v8543_v55  ;;  %v8102_v55 = vld [vmem:[%s10038_s3 + $0x2a0] sm:$0xff]  }
 0x28f   : > { %7234 = vmatprep.mubr.bf16.mxu1 %v8561_v4  ;;  %7243 = vmatpush3.bf16.msra.mxu1 %v8098_v27  ;;  %v8103_v4 = vld [vmem:[%s10038_s3 + $0x2a8] sm:$0xff]   ;;  %v8130_v27 = vld [vmem:[%s10038_s3 + $0x380] sm:$0xff]  }
 0x290   : > { %7244 = vmatprep.subr.bf16.mxu1 %v8099_v2 }
 0x293   : > { %7245 = vmatpush3.bf16.msra.mxu1 %v8099_v2  ;;  %v10086_v2 = vld [vmem:[#allocation22_spill] sm:$0xff] }
 0x294   : > { %7246 = vmatprep.subr.bf16.mxu1 %v8100_v7 }
 0x296   : > { %7235 = vmatmul.mubr.bf16.gmra.mrb[4].mxu1 %v8579_v50  ;;  %v8104_v50 = vld [vmem:[%s10038_s3 + $0x2b0] sm:$0xff]  }
 0x297   : > { %7238 = vmatprep.mubr.bf16.mxu1 %v8608_v58  ;;  %7247 = vmatpush3.bf16.msra.mxu1 %v8100_v7  ;;  %v8105_v58 = vld [vmem:[%s10038_s3 + $0x2b8] sm:$0xff]   ;;  %v8132_v7 = vld [vmem:[%s10038_s3 + $0x390] sm:$0xff]  }
 0x298   : > { %7248 = vmatprep.subr.bf16.mxu1 %v8101_v56 }
 0x29b   : > { %7249 = vmatpush3.bf16.msra.mxu1 %v8101_v56  ;;  %v8133_v56 = vld [vmem:[%s10038_s3 + $0x398] sm:$0xff]  }
 0x29c   : > { %7250 = vmatprep.subr.bf16.mxu1 %v8102_v55 }
 0x29e   : > { %7239 = vmatmul.mubr.bf16.gmra.mrb[8].mxu1 %v10072_v24  ;;  %v10088_v24 = vld [vmem:[#allocation11_spill] sm:$0xff] }
 0x29f   : > { %7251 = vmatpush3.bf16.msra.mxu1 %v8102_v55  ;;  %7258 = vmatprep.mubr.bf16.mxu1 %v8448_v13  ;;  %v8107_v13 = vld [vmem:[%s10038_s3 + $0x2c8] sm:$0xff]  }
 0x2a0   : > { %7252 = vmatprep.subr.bf16.mxu1 %v8103_v4  ;;  %v8135_v55 = vld [vmem:[%s10038_s3 + $0x3a8] sm:$0xff]  }
 0x2a3   : > { %7253 = vmatpush3.bf16.msra.mxu1 %v8103_v4  ;;  %v10087_v4 = vld [vmem:[#allocation9_spill] sm:$0xff] }
 0x2a4   : > { %7254 = vmatprep.subr.bf16.mxu1 %v8104_v50 }
 0x2a7   : > { %7255 = vmatpush3.bf16.msra.mxu1 %v8104_v50  ;;  %v10089_v50 = vld [vmem:[#allocation13_spill] sm:$0xff] }
 0x2a8   : > { %7256 = vmatprep.subr.bf16.mxu1 %v8105_v58 }
 0x2ab   : > { %7257 = vmatpush3.bf16.msra.mxu1 %v8105_v58  ;;  %v8140_v58 = vld [vmem:[%s10038_s3 + $0x3d0] sm:$0xff]  }
 0x2ac   : > { %7270 = vmatprep.subr.bf16.mxu1 %v8106_v34 }
 0x2ae   : > { %7259 = vmatmul.mubr.bf16.vlgmr.msra.gmra.mrb[0].mxu1 %v8463_v39  ;;  %v8110_v39 = vld [vmem:[%s10038_s3 + $0x2e0] sm:$0xff]  }
 0x2af   : > { %7262 = vmatprep.mubr.bf16.mxu1 %v8475_v63  ;;  %7271 = vmatpush3.bf16.msra.mxu1 %v8106_v34  ;;  %v8111_v63 = vld [vmem:[%s10038_s3 + $0x2e8] sm:$0xff]   ;;  %v8141_v34 = vld [vmem:[%s10038_s3 + $0x3d8] sm:$0xff]  }
 0x2b0   : > { %7272 = vmatprep.subr.bf16.mxu1 %v8107_v13 }
 0x2b3   : > { %7273 = vmatpush3.bf16.msra.mxu1 %v8107_v13  ;;  %v10090_v13 = vld [vmem:[#allocation16_spill] sm:$0xff] }
 0x2b4   : > { %7274 = vmatprep.subr.bf16.mxu1 %v8108_v14 }
 0x2b6   : > { %7263 = vmatmul.mubr.bf16.gmra.mrb[4].mxu1 %v8498_v31  ;;  %v8112_v31 = vld [vmem:[%s10038_s3 + $0x2f0] sm:$0xff]  }
 0x2b7   : > { %7266 = vmatprep.mubr.bf16.mxu1 %v8514_v57  ;;  %7275 = vmatpush3.bf16.msra.mxu1 %v8108_v14  ;;  %v8113_v57 = vld [vmem:[%s10038_s3 + $0x2f8] sm:$0xff]   ;;  %v10091_v14 = vld [vmem:[#allocation19_spill] sm:$0xff] }
 0x2b8   : > { %7276 = vmatprep.subr.bf16.mxu1 %v8109_v19 }
 0x2bb   : > { %7277 = vmatpush3.bf16.msra.mxu1 %v8109_v19  ;;  %v8142_v19 = vld [vmem:[%s10038_s3 + $0x3e0] sm:$0xff]  }
 0x2bc   : > { %7278 = vmatprep.subr.bf16.mxu1 %v8110_v39 }
 0x2be   : > { %7267 = vmatmul.mubr.bf16.gmra.mrb[8].mxu1 %v8510_v49  ;;  %v8114_v49 = vld [vmem:[%s10038_s3 + $0x300] sm:$0xff]  }
 0x2bf   : > { %7279 = vmatpush3.bf16.msra.mxu1 %v8110_v39  ;;  %7286 = vmatprep.mubr.bf16.mxu1 %v10073_v16  ;;  %v8143_v39 = vld [vmem:[%s10038_s3 + $0x3e8] sm:$0xff]   ;;  %v10093_v16 = vld [vmem:[#allocation20_spill] sm:$0xff] }
 0x2c0   : > { %7280 = vmatprep.subr.bf16.mxu1 %v8111_v63 }
 0x2c3   : > { %7281 = vmatpush3.bf16.msra.mxu1 %v8111_v63  ;;  %v10092_v63 = vld [vmem:[#allocation18_spill] sm:$0xff] }
 0x2c4   : > { %7282 = vmatprep.subr.bf16.mxu1 %v8112_v31 }
 0x2c7   : > { %7283 = vmatpush3.bf16.msra.mxu1 %v8112_v31  ;;  %v8144_v31 = vld [vmem:[%s10038_s3 + $0x3f0] sm:$0xff]  }
 0x2c8   : > { %7284 = vmatprep.subr.bf16.mxu1 %v8113_v57 }
 0x2cb   : > { %7285 = vmatpush3.bf16.msra.mxu1 %v8113_v57  ;;  %v8145_v57 = vld [vmem:[%s10038_s3 + $0x3f8] sm:$0xff]  }
 0x2cc   : > { %7298 = vmatprep.subr.bf16.mxu1 %v8114_v49 }
 0x2ce   : > { %7287 = vmatmul.mubr.bf16.vlgmr.msra.gmra.mrb[0].mxu1 %v10074_v44  ;;  %v10095_v44 = vld [vmem:[#allocation23_spill] sm:$0xff] }
 0x2cf   : > { %7290 = vmatprep.mubr.bf16.mxu1 %v10075_v22  ;;  %7299 = vmatpush3.bf16.msra.mxu1 %v8114_v49  ;;  %v8153_v49 = vld [vmem:[%s10040_s5 + $0x200] sm:$0xff]   ;;  %v8155_v22 = vld [vmem:[%s10040_s5 + $0x208] sm:$0xff]  }
 0x2d0   : > { %7300 = vmatprep.subr.bf16.mxu1 %v8115_v36 }
 0x2d3   : > { %7301 = vmatpush3.bf16.msra.mxu1 %v8115_v36  ;;  %v10094_v36 = vld [vmem:[#allocation21_spill] sm:$0xff] }
 0x2d4   : > { %7302 = vmatprep.subr.bf16.mxu1 %v8116_v8 }
 0x2d6   : > { %7291 = vmatmul.mubr.bf16.gmra.mrb[4].mxu1 %v10076_v41  ;;  %v8158_v41 = vld [vmem:[%s10040_s5 + $0x220] sm:$0xff]  }
 0x2d7   : > { %7294 = vmatprep.mubr.bf16.mxu1 %v10077_v26  ;;  %7303 = vmatpush3.bf16.msra.mxu1 %v8116_v8  ;;  %v8156_v8 = vld [vmem:[%s10040_s5 + $0x210] sm:$0xff]   ;;  %v9299_v26 = vld [vmem:[%s10039_s4] ss:$0 sm:$0xff] }
 0x2d8   : > { %7304 = vmatprep.subr.bf16.mxu1 %v8117_v47 }
 0x2db   : > { %7305 = vmatpush3.bf16.msra.mxu1 %v8117_v47  ;;  %v8157_v47 = vld [vmem:[%s10040_s5 + $0x218] sm:$0xff]  }
 0x2dc   : > { %7306 = vmatprep.subr.bf16.mxu1 %v8118_v62 }
 0x2de   : > { %7295 = vmatmul.mubr.bf16.gmra.mrb[8].mxu1 %v10078_v9 }
 0x2df   : > { %7307 = vmatpush3.bf16.msra.mxu1 %v8118_v62  ;;  %7314 = vmatprep.mubr.bf16.mxu1 %v10079_v48 }
 0x2e0   : > { %7308 = vmatprep.subr.bf16.mxu1 %v8119_v42 }
 0x2e3   : > { %7309 = vmatpush3.bf16.msra.mxu1 %v8119_v42 }
 0x2e4   : > { %7310 = vmatprep.subr.bf16.mxu1 %v8120_v59 }
 0x2e7   : > { %7311 = vmatpush3.bf16.msra.mxu1 %v8120_v59 }
 0x2e8   : > { %7312 = vmatprep.subr.bf16.mxu1 %v8121_v38 }
 0x2eb   : > { %7313 = vmatpush3.bf16.msra.mxu1 %v8121_v38 }
 0x2ec   : > { %7326 = vmatprep.subr.bf16.mxu1 %v8122_v61 }
 0x2ee   : > { %7315 = vmatmul.mubr.bf16.vlgmr.msra.gmra.mrb[0].mxu1 %v10080_v52 }
 0x2ef   : > { %7318 = vmatprep.mubr.bf16.mxu1 %v10081_v5  ;;  %7327 = vmatpush3.bf16.msra.mxu1 %v8122_v61 }
 0x2f0   : > { %7328 = vmatprep.subr.bf16.mxu1 %v8123_v60 }
 0x2f3   : > { %7329 = vmatpush3.bf16.msra.mxu1 %v8123_v60 }
 0x2f4   : > { %7330 = vmatprep.subr.bf16.mxu1 %v8124_v37 }
 0x2f6   : > { %7319 = vmatmul.mubr.bf16.gmra.mrb[4].mxu1 %v10082_v15 }
 0x2f7   : > { %7322 = vmatprep.mubr.bf16.mxu1 %v10083_v1  ;;  %7331 = vmatpush3.bf16.msra.mxu1 %v8124_v37 }
 0x2f8   : > { %7332 = vmatprep.subr.bf16.mxu1 %v8125_v10 }
 0x2fb   : > { %7333 = vmatpush3.bf16.msra.mxu1 %v8125_v10 }
 0x2fc   : > { %7334 = vmatprep.subr.bf16.mxu1 %v8126_v6 }
 0x2fe   : > { %7323 = vmatmul.mubr.bf16.gmra.mrb[8].mxu1 %v10085_v3 }
 0x2ff   : > { %7335 = vmatpush3.bf16.msra.mxu1 %v8126_v6  ;;  %7342 = vmatprep.mubr.bf16.mxu1 %v8787_v29  ;;  %v8131_v29 = vld [vmem:[%s10038_s3 + $0x388] sm:$0xff]  }
 0x300   : > { %7336 = vmatprep.subr.bf16.mxu1 %v8127_v28 }
 0x303   : > { %7337 = vmatpush3.bf16.msra.mxu1 %v8127_v28 }
 0x304   : > { %7338 = vmatprep.subr.bf16.mxu1 %v8128_v20 }
 0x307   : > { %7339 = vmatpush3.bf16.msra.mxu1 %v8128_v20 }
 0x308   : > { %7340 = vmatprep.subr.bf16.mxu1 %v8129_v46 }
 0x30b   : > { %7341 = vmatpush3.bf16.msra.mxu1 %v8129_v46 }
 0x30c   : > { %7354 = vmatprep.subr.bf16.mxu1 %v8130_v27 }
 0x30e   : > { %7343 = vmatmul.mubr.bf16.vlgmr.msra.gmra.mrb[0].mxu1 %v8809_v0  ;;  %v8134_v0 = vld [vmem:[%s10038_s3 + $0x3a0] sm:$0xff]  }
 0x30f   : > { %7346 = vmatprep.mubr.bf16.mxu1 %v10086_v2  ;;  %7355 = vmatpush3.bf16.msra.mxu1 %v8130_v27 }
 0x310   : > { %7356 = vmatprep.subr.bf16.mxu1 %v8131_v29 }
 0x313   : > { %7357 = vmatpush3.bf16.msra.mxu1 %v8131_v29 }
 0x314   : > { %7358 = vmatprep.subr.bf16.mxu1 %v8132_v7 }
 0x316   : > { %7347 = vmatmul.mubr.bf16.gmra.mrb[4].mxu1 %v8853_v17  ;;  %v8136_v17 = vld [vmem:[%s10038_s3 + $0x3b0] sm:$0xff]  }
 0x317   : > { %7350 = vmatprep.mubr.bf16.mxu1 %v8881_v11  ;;  %7359 = vmatpush3.bf16.msra.mxu1 %v8132_v7  ;;  %v8137_v11 = vld [vmem:[%s10038_s3 + $0x3b8] sm:$0xff]  }
 0x318   : > { %7360 = vmatprep.subr.bf16.mxu1 %v8133_v56 }
 0x31b   : > { %7361 = vmatpush3.bf16.msra.mxu1 %v8133_v56 }
 0x31c   : > { %7362 = vmatprep.subr.bf16.mxu1 %v8134_v0 }
 0x31e   : > { %7351 = vmatmul.mubr.bf16.gmra.mrb[8].mxu1 %v3571_v18  ;;  %v8139_v18 = vld [vmem:[%s10038_s3 + $0x3c8] sm:$0xff]  }
 0x31f   : > { %7363 = vmatpush3.bf16.msra.mxu1 %v8134_v0  ;;  %7370 = vmatprep.mubr.bf16.mxu1 %v10087_v4 }
 0x320   : > { %7364 = vmatprep.subr.bf16.mxu1 %v8135_v55 }
 0x323   : > { %7365 = vmatpush3.bf16.msra.mxu1 %v8135_v55 }
 0x324   : > { %7366 = vmatprep.subr.bf16.mxu1 %v8136_v17 }
 0x327   : > { %7367 = vmatpush3.bf16.msra.mxu1 %v8136_v17 }
 0x328   : > { %7368 = vmatprep.subr.bf16.mxu1 %v8137_v11 }
 0x32b   : > { %7369 = vmatpush3.bf16.msra.mxu1 %v8137_v11  ;;  %v8161_v11 = vld [vmem:[%s10040_s5] sm:$0xff]  }
 0x32c   : > { %7382 = vmatprep.subr.bf16.mxu1 %v8138_v12 }
 0x32e   : > { %7371 = vmatmul.mubr.bf16.vlgmr.msra.gmra.mrb[0].mxu1 %v10088_v24 }
 0x32f   : > { %7374 = vmatprep.mubr.bf16.mxu1 %v10089_v50  ;;  %7383 = vmatpush3.bf16.msra.mxu1 %v8138_v12 }
 0x330   : > { %7384 = vmatprep.subr.bf16.mxu1 %v8139_v18 }
 0x333   : > { %7385 = vmatpush3.bf16.msra.mxu1 %v8139_v18 }
 0x334   : > { %7386 = vmatprep.subr.bf16.mxu1 %v8140_v58 }
 0x336   : > { %7375 = vmatmul.mubr.bf16.gmra.mrb[4].mxu1 %v10090_v13 }
 0x337   : > { %7378 = vmatprep.mubr.bf16.mxu1 %v10091_v14  ;;  %7387 = vmatpush3.bf16.msra.mxu1 %v8140_v58 }
 0x338   : > { %7388 = vmatprep.subr.bf16.mxu1 %v8141_v34 }
 0x33b   : > { %7389 = vmatpush3.bf16.msra.mxu1 %v8141_v34 }
 0x33c   : > { %7390 = vmatprep.subr.bf16.mxu1 %v8142_v19 }
 0x33e   : > { %7379 = vmatmul.mubr.bf16.gmra.mrb[8].mxu1 %v10092_v63 }
 0x33f   : > { %7391 = vmatpush3.bf16.msra.mxu1 %v8142_v19  ;;  %7398 = vmatprep.mubr.bf16.mxu1 %v10093_v16 }
 0x340   : > { %7392 = vmatprep.subr.bf16.mxu1 %v8143_v39 }
 0x343   : > { %7393 = vmatpush3.bf16.msra.mxu1 %v8143_v39 }
 0x344   : > { %7394 = vmatprep.subr.bf16.mxu1 %v8144_v31 }
 0x347   : > { %7395 = vmatpush3.bf16.msra.mxu1 %v8144_v31 }
 0x348   : > { %7396 = vmatprep.subr.bf16.mxu1 %v8145_v57 }
 0x34b   : > { %7397 = vmatpush3.bf16.msra.mxu1 %v8145_v57 }
 0x34c   : > { %7698 = vmatprep.subr.bf16.mxu1 %v8228_v35 }
 0x34e   : > { %7399 = vmatmul.mubr.bf16.vlgmr.msra.gmra.mrb[0].mxu1 %v10094_v36 }
 0x34f   : > { %7402 = vmatprep.mubr.bf16.mxu1 %v10095_v44  ;;  %7699 = vmatpush3.bf16.msra.mxu1 %v8153_v49 }
 0x350   : > { %7700 = vmatprep.subr.bf16.mxu1 %v8228_v35 }
 0x353   : > { %7701 = vmatpush3.bf16.msra.mxu1 %v8155_v22 }
 0x354   : > { %7702 = vmatprep.subr.bf16.mxu1 %v8228_v35 }
 0x356   : > { %7403 = vmatmul.mubr.bf16.gmra.mrb[4].mxu1 %v8866_v33  ;;  %v8159_v33 = vld [vmem:[%s10040_s5 + $0x228] sm:$0xff]  }
 0x357   : > { %7406 = vmatprep.mubr.bf16.mxu1 %v8898_v32  ;;  %7703 = vmatpush3.bf16.msra.mxu1 %v8156_v8  ;;  %v8162_v32 = vld [vmem:[%s10040_s5 + $0x238] sm:$0xff]  }
 0x358   : > { %7704 = vmatprep.subr.bf16.mxu1 %v8228_v35 }
 0x35b   : > { %7705 = vmatpush3.bf16.msra.mxu1 %v8157_v47  ;;  %v8163_v47 = vld [vmem:[%s10040_s5 + $0x8] sm:$0xff]  }
 0x35c   : > { %7706 = vmatprep.subr.bf16.mxu1 %v8228_v35 }
 0x35e   : > { %7407 = vmatmul.mubr.bf16.gmra.mrb[8].mxu1 %v8886_v23  ;;  %v8160_v23 = vld [vmem:[%s10040_s5 + $0x230] sm:$0xff]  }
 0x35f   : > { %7707 = vmatpush3.bf16.msra.mxu1 %v8158_v41  ;;  %7714 = vmatprep.mubr.msk.bf16.mxu1 %vm8229_vm7, %v8228_v35 }
 0x360   : > { %7708 = vmatprep.subr.bf16.mxu1 %v8228_v35 }
 0x363   : > { %7709 = vmatpush3.bf16.msra.mxu1 %v8159_v33 }
 0x364   : > { %7710 = vmatprep.subr.bf16.mxu1 %v8228_v35 }
 0x367   : > { %7711 = vmatpush3.bf16.msra.mxu1 %v8160_v23 }
 0x368   : > { %7712 = vmatprep.subr.bf16.mxu1 %v8228_v35 }
 0x36b   : > { %7713 = vmatpush3.bf16.msra.mxu1 %v8162_v32 }
 0x421   : > { %v7400_v62 = vpop.f32.mrb[0].mxu1 }
 0x422   : > { %v4163_v42 = vadd.f32 %v7400_v62, %v9299_v26  ;;  %v4095_v9 = vpop.f32.mrb[1].mxu1 }
 0x423   : > { %v4161_v40 = vadd.f32 %v9299_v26, %v4095_v9  ;;  %v7401_v48 = vpop.f32.mrb[2].mxu1 }
 0x424   : > { %v4164_v59 = vadd.f32 %v7401_v48, %v9299_v26  ;;  %v4098_v43 = vpop.f32.mrb[3].mxu1  ;;  %v4175_v54 = vmax.f32 %v4163_v42, 0.0 }
 0x425   : > { %v4162_v38 = vadd.f32 %v9299_v26, %v4098_v43  ;;  %v4173_v21 = vmax.f32 %v4161_v40, 0.0 }
 0x426   : > { %v4176_v61 = vmax.f32 %v4164_v59, 0.0 }
 0x427   : > { %v4174_v60 = vmax.f32 %v4162_v38, 0.0 }
 0x428   : > { %v9305_v25 = vpack.c.bf16 %v4176_v61, %v4175_v54 }
 0x429   : > { %v9307_v52 = vpack.c.bf16 %v4174_v60, %v4173_v21  ;;  %v9309_v5 = vpack.c.bf16 %v4175_v54, %v4174_v60  ;;  %v7404_v37 = vpop.f32.mrb[4].mxu1 }
 0x42a   : > { %v4167_v51 = vadd.f32 %v7404_v37, %v9299_v26  ;;  %v4111_v10 = vpop.f32.mrb[5].mxu1  ;;  %v4231_v45 = vshll.u32 %v9305_v25, 16  ;;  %v5560_v6 = vrot.slane %v9305_v25, 3  ;;  %v4235_v2 = vshrl.u32 %v9305_v25, 16 }
 0x42b   : > { %v4226_v15 = vshll.u32 %v9307_v52, 16  ;;  %v7405_v1 = vpop.f32.mrb[6].mxu1  ;;  %v4860_v30 = vshrl.u32 %v9309_v5, 16  ;;  %v4863_v28 = vshll.u32 %v9309_v5, 16  ;;  %v4165_v53 = vadd.f32 %v9299_v26, %v4111_v10 }
 0x42c   : > { %v4168_v3 = vadd.f32 %v7405_v1, %v9299_v26  ;;  %v4114_v20 = vpop.f32.mrb[7].mxu1  ;;  %v4224_v46 = vshrl.u32 %v9307_v52, 16  ;;  %v4179_v7 = vmax.f32 %v4167_v51, 0.0  ;;  %v4233_v55 = vrot.slane %v4231_v45, 1 }
 0x42d   : > { %v4228_v27 = vrot.slane %v4226_v15, 1  ;;  %v4166_v29 = vadd.f32 %v9299_v26, %v4114_v20  ;;  %v4177_v56 = vmax.f32 %v4165_v53, 0.0  ;;  %v4529_v12 = vrot.slane %v9307_v52, 1 }
 0x42e   : > { %v4180_v0 = vmax.f32 %v4168_v3, 0.0  ;;  %v4530_v18 = vrot.slane %v9305_v25, 1  ;;  %v9329_v24 = vrot.slane %v4860_v30, 1  ;;  %v9331_v50 = vrot.slane %v4863_v28, 2 }
 0x42f   : > { %v4178_v4 = vmax.f32 %v4166_v29, 0.0  ;;  %v4229_v17 = vor.u32 %v4228_v27, %v4224_v46  ;;  %v9333_v58 = vpack.c.bf16 %v4177_v56, %v4176_v61  ;;  %v4237_v57 = vor.u32 %v4235_v2, %v4233_v55 }
 0x430   : > { %v9335_v34 = vpack.c.bf16 %v4180_v0, %v4179_v7  ;;  %v9345_v63 = vsel %vm2563_vm1, %v4529_v12, %v4530_v18  ;;  %v9348_v49 = vrot.slane %v4235_v2, 2  ;;  %v4699_v33 = vrot.slane %v9309_v5, 1 }
 0x431   : > { %v9337_v13 = vpack.c.bf16 %v4178_v4, %v4177_v56  ;;  %v9339_v14 = vpack.c.bf16 %v4179_v7, %v4178_v4  ;;  %v7408_v19 = vpop.f32.mrb[8].mxu1  ;;  %v4234_v39 = vsel %vm1342_vm0, %v4229_v17, %v4233_v55  ;;  %v4868_v23 = vshrl.u32 %v9333_v58, 16  ;;  %v8165_v7 = vld [vmem:[%s10040_s5 + $0x18] sm:$0xff]  }
 0x432   : > { %v4171_v16 = vadd.f32 %v7408_v19, %v9299_v26  ;;  %v4127_v31 = vpop.f32.mrb[9].mxu1  ;;  %7427 = vmatmul.mubr.bf16.vlgmr.msra.gmra.mrb[100].mxu0 %v4234_v39  ;;  %v5563_v36 = vrot.slane %v9335_v34, 3  ;;  %v4871_v32 = vshll.u32 %v9333_v58, 16  ;;  %v4866_v30 = vor.u32 %v9331_v50, %v9329_v24 }
 0x433   : > { %v4169_v44 = vadd.f32 %v9299_v26, %v4127_v31  ;;  %7447 = vmatpush3.bf16.msra.mxu0 %v8161_v11  ;;  %v7409_v22 = vpop.f32.mrb[10].mxu1  ;;  %v5561_v8 = vrot.slane %v9337_v13, 3  ;;  %7430 = vmatprep.mubr.msk.bf16.mxu0 %vm8229_vm7, %v8228_v35  ;;  %v4239_v41 = vshll.u32 %v9337_v13, 16  ;;  %v4243_v21 = vshrl.u32 %v9337_v13, 16 }
 0x434   : > { %v4183_v62 = vmax.f32 %v4171_v16, 0.0  ;;  %v4172_v42 = vadd.f32 %v7409_v22, %v9299_v26  ;;  %v4130_v9 = vpop.f32.mrb[11].mxu1  ;;  %7448 = vmatprep.subr.bf16.mxu0 %v8228_v35  ;;  %v4870_v15 = vrot.slane %v4868_v23, 1  ;;  %v4873_v1 = vrot.slane %v4871_v32, 2 }
 0x435   : > { %v4181_v40 = vmax.f32 %v4169_v44, 0.0  ;;  %v4170_v48 = vadd.f32 %v9299_v26, %v4130_v9  ;;  %v5562_v59 = vsel %vm2751_vm5, %v5560_v6, %v5561_v8  ;;  %v4241_v43 = vrot.slane %v4239_v41, 1  ;;  %v8164_v26 = vld [vmem:[%s10040_s5 + $0x10] sm:$0xff]  }
 0x436   : > { %v9366_v38 = vpack.c.bf16 %v4183_v62, %v4183_v62  ;;  %v4184_v54 = vmax.f32 %v4172_v42, 0.0  ;;  %7715 = vmatmul.mubr.bf16.vlgmr.msra.gmra.mrb[12].mxu1 %v5562_v59  ;;  %v5564_v61 = vsel %vm2751_vm5, %v5561_v8, %v5563_v36  ;;  %v9387_v53 = vrot.slane %v4239_v41, 3  ;;  %v8166_v8 = vld [vmem:[%s10040_s5 + $0x20] sm:$0xff]  }
 0x437   : > { %v9370_v60 = vpack.c.bf16 %v4181_v40, %v4181_v40  ;;  %v9372_v37 = vpack.c.bf16 %v4181_v40, %v4180_v0  ;;  %v4182_v51 = vmax.f32 %v4170_v48, 0.0  ;;  %7449 = vmatpush3.bf16.msra.mxu0 %v8163_v47  ;;  %v4242_v10 = vsel %vm1342_vm0, %v4237_v57, %v4241_v43  ;;  %7718 = vmatprep.mubr.msk.bf16.mxu1 %vm8229_vm7, %v8228_v35 }
 0x438   : > { %v9380_v6 = vpack.c.bf16 %v4184_v54, %v4183_v62  ;;  %7450 = vmatprep.subr.bf16.mxu0 %v8228_v35  ;;  %v4245_v3 = vor.u32 %v4243_v21, %v4241_v43  ;;  %v4247_v20 = vshll.u32 %v9335_v34, 16  ;;  %v5399_v46 = vshrl.u32 %v9366_v38, 16 }
 0x439   : > { %v9385_v28 = vpack.c.bf16 %v4182_v51, %v4181_v40  ;;  %v5402_v27 = vshll.u32 %v9366_v38, 16  ;;  %v9393_v2 = vpack.c.bf16 %v4182_v51, %v4182_v51  ;;  %v4251_v55 = vshrl.u32 %v9335_v34, 16 }
 0x43a   : > { %v5567_v29 = vrot.slane %v9380_v6, 3  ;;  %7431 = vmatmul.mubr.bf16.gmra.mrb[104].mxu0 %v4242_v10  ;;  %v4249_v56 = vrot.slane %v4247_v20, 1  ;;  %v4255_v4 = vshll.u32 %v9370_v60, 16  ;;  %v4532_v17 = vrot.slane %v9337_v13, 1  ;;  %v8172_v6 = vld [vmem:[%s10040_s5 + $0x90] sm:$0xff]  }
 0x43b   : > { %7451 = vmatpush3.bf16.msra.mxu0 %v8164_v26  ;;  %7434 = vmatprep.mubr.msk.bf16.mxu0 %vm8229_vm7, %v8228_v35  ;;  %v5565_v0 = vrot.slane %v9385_v28, 3  ;;  %v4534_v11 = vrot.slane %v9335_v34, 1  ;;  %v4536_v12 = vrot.slane %v9370_v60, 1  ;;  %v4700_v24 = vrot.slane %v9333_v58, 1 }
 0x43c   : > { %7452 = vmatprep.subr.bf16.mxu0 %v8228_v35  ;;  %v4250_v50 = vsel %vm1342_vm0, %v4245_v3, %v4249_v56  ;;  %v4253_v39 = vor.u32 %v4251_v55, %v4249_v56  ;;  %v9414_v16 = vrot.slane %v4255_v4, 1  ;;  %v9424_v57 = vsel %vm2563_vm1, %v4530_v18, %v4532_v17 }
 0x43d   : > { %v5566_v19 = vsel %vm2751_vm5, %v5563_v36, %v5565_v0  ;;  %v9419_v31 = vsel %vm2751_vm5, %v5565_v0, %v5567_v29  ;;  %v9427_v44 = vsel %vm2563_vm1, %v4532_v17, %v4534_v11  ;;  %v9432_v36 = vsel %vm2563_vm1, %v4534_v11, %v4536_v12 }
 0x43e   : > { %7719 = vmatmul.mubr.bf16.gmra.mrb[16].mxu1 %v5564_v61  ;;  %v5381_v22 = vrot.slane %v4243_v21, 2  ;;  %v4258_v18 = vsel %vm1342_vm0, %v4253_v39, %v9414_v16  ;;  %v9444_v47 = vsel %vm2563_vm1, %v4699_v33, %v4700_v24  ;;  %v4702_v41 = vrot.slane %v9339_v14, 1  ;;  %v8167_v21 = vld [vmem:[%s10040_s5 + $0x28] sm:$0xff]  }
 0x43f   : > { %7453 = vmatpush3.bf16.msra.mxu0 %v8165_v7  ;;  %7722 = vmatprep.mubr.msk.bf16.mxu1 %vm8229_vm7, %v8228_v35  ;;  %v4704_v23 = vrot.slane %v9372_v37, 1  ;;  %v4706_v32 = vrot.slane %v9393_v2, 1  ;;  %v4874_v62 = vor.u32 %v4873_v1, %v4870_v15  ;;  %v4877_v42 = vshrl.u32 %v9339_v14, 16 }
 0x440   : > { %7454 = vmatprep.subr.bf16.mxu0 %v8228_v35  ;;  %v9452_v9 = vsel %vm2563_vm1, %v4700_v24, %v4702_v41  ;;  %v4880_v40 = vshll.u32 %v9339_v14, 16  ;;  %v4886_v48 = vshrl.u32 %v9372_v37, 16  ;;  %v4889_v33 = vshll.u32 %v9372_v37, 16 }
 0x441   : > { %v9458_v59 = vsel %vm2563_vm1, %v4702_v41, %v4704_v23  ;;  %v9463_v43 = vsel %vm2563_vm1, %v4704_v23, %v4706_v32  ;;  %v9466_v54 = vsel %vm2927_vm2, %v4866_v30, %v4874_v62  ;;  %v4879_v61 = vrot.slane %v4877_v42, 1  ;;  %vm9950_vm1 = vmand %vm5760_vm11, %vm5761_vm12 }
 0x442   : > { %7435 = vmatmul.mubr.bf16.gmra.mrb[108].mxu0 %v4250_v50  ;;  %v4882_v51 = vrot.slane %v4880_v40, 2  ;;  %v4888_v10 = vrot.slane %v4886_v48, 1  ;;  %v4891_v26 = vrot.slane %v4889_v33, 2  ;;  %v4895_v15 = vshrl.u32 %v9393_v2, 16  ;;  %vm9992_vm12 = vmor %vm5730_vm9, %vm5796_vm6 }
 0x443   : > { %7455 = vmatpush3.bf16.msra.mxu0 %v8166_v8  ;;  %7438 = vmatprep.mubr.msk.bf16.mxu0 %vm8229_vm7, %v8228_v35  ;;  %v4898_v1 = vshll.u32 %v9393_v2, 16  ;;  %v5054_v30 = vrot.slane %v9309_v5, 2  ;;  %v5055_v3 = vrot.slane %v9333_v58, 2  ;;  %v5057_v7 = vrot.slane %v9339_v14, 2  ;;  %v8168_v5 = vld [vmem:[%s10040_s5 + $0x30] sm:$0xff]  }
 0x444   : > { %7456 = vmatprep.subr.bf16.mxu0 %v8228_v35  ;;  %v4883_v56 = vor.u32 %v4882_v51, %v4879_v61  ;;  %v4892_v0 = vor.u32 %v4891_v26, %v4888_v10  ;;  %v4897_v4 = vrot.slane %v4895_v15, 1  ;;  %v5059_v17 = vrot.slane %v9372_v37, 2 }
 0x445   : > { %v4900_v11 = vrot.slane %v4898_v1, 2  ;;  %v9481_v24 = vsel %vm1049_vm3, %v5054_v30, %v5055_v3  ;;  %v9484_v50 = vsel %vm1049_vm3, %v5055_v3, %v5057_v7  ;;  %v5061_v39 = vrot.slane %v9393_v2, 2 }
 0x446   : > { %7723 = vmatmul.mubr.bf16.gmra.mrb[20].mxu1 %v5566_v19  ;;  %v9493_v58 = vsel %vm2927_vm2, %v4874_v62, %v4883_v56  ;;  %v9496_v14 = vsel %vm2927_vm2, %v4883_v56, %v4892_v0  ;;  %v9499_v37 = vsel %vm1049_vm3, %v5057_v7, %v5059_v17  ;;  %v5218_v19 = vrot.slane %v9305_v25, 2 }
 0x447   : > { %7457 = vmatpush3.bf16.msra.mxu0 %v8167_v21  ;;  %7726 = vmatprep.mubr.msk.bf16.mxu1 %vm8229_vm7, %v8228_v35  ;;  %v9503_v8 = vor.u32 %v4900_v11, %v4897_v4  ;;  %v9508_v41 = vsel %vm1049_vm3, %v5059_v17, %v5061_v39  ;;  %v5219_v23 = vrot.slane %v9337_v13, 2  ;;  %v5221_v62 = vrot.slane %v9335_v34, 2  ;;  %v8171_v17 = vld [vmem:[%s10040_s5 + $0x88] sm:$0xff]   ;;  %v8176_v11 = vld [vmem:[%s10040_s5 + $0xb0] sm:$0xff]  }
 0x448   : > { %7458 = vmatprep.subr.bf16.mxu0 %v8228_v35  ;;  %v5223_v42 = vrot.slane %v9385_v28, 2  ;;  %v5225_v40 = vrot.slane %v9366_v38, 2  ;;  %v5379_v48 = vrot.slane %v4231_v45, 3  ;;  %v5383_v33 = vor.u32 %v9387_v53, %v5381_v22  ;;  %v8169_v45 = vld [vmem:[%s10040_s5 + $0x38] sm:$0xff]  }
 0x449   : > { %v9519_v61 = vsel %vm2927_vm2, %v4892_v0, %v9503_v8  ;;  %v9522_v21 = vsel %vm1049_vm3, %v5218_v19, %v5219_v23  ;;  %v9525_v51 = vsel %vm1049_vm3, %v5219_v23, %v5221_v62  ;;  %v5385_v10 = vrot.slane %v4251_v55, 2  ;;  %v8180_v19 = vld [vmem:[%s10040_s5 + $0xd0] sm:$0xff]   ;;  %v8182_v23 = vld [vmem:[%s10040_s5 + $0xe0] sm:$0xff]  }
 0x44a   : > { %7439 = vmatmul.mubr.bf16.gmra.mrb[112].mxu0 %v4258_v18  ;;  %v9535_v53 = vsel %vm1049_vm3, %v5221_v62, %v5223_v42  ;;  %v9540_v22 = vsel %vm1049_vm3, %v5223_v42, %v5225_v40  ;;  %v5380_v18 = vor.u32 %v5379_v48, %v9348_v49  ;;  %v5386_v55 = vrot.slane %v4247_v20, 3  ;;  %v8184_v62 = vld [vmem:[%s10040_s5 + $0xf0] sm:$0xff]   ;;  %v8187_v42 = vld [vmem:[%s10040_s5 + $0x108] sm:$0xff]   ;;  %vm9957_vm3 = vmor %vm5741_vm13, %vm5742_vm14 }
 0x44b   : > { %7459 = vmatpush3.bf16.msra.mxu0 %v8168_v5  ;;  %7442 = vmatprep.mubr.msk.bf16.mxu0 %vm8229_vm7, %v8228_v35  ;;  %v5401_v26 = vrot.slane %v5399_v46, 2  ;;  %v5404_v15 = vrot.slane %v5402_v27, 3  ;;  %v5390_v1 = vshrl.u32 %v9385_v28, 16  ;;  %v5393_v30 = vshll.u32 %v9385_v28, 16  ;;  %v8179_v5 = vld [vmem:[%s10040_s5 + $0xc8] sm:$0xff]   ;;  %v8192_v48 = vld [vmem:[%s10040_s5 + $0x130] sm:$0xff]  }
 0x44c   : > { %7460 = vmatprep.subr.bf16.mxu0 %v8228_v35  ;;  %v9553_v3 = vsel %vm1554_vm4, %v5380_v18, %v5383_v33  ;;  %v5387_v7 = vor.u32 %v5386_v55, %v5385_v10  ;;  %v4259_v49 = vshrl.u32 %v9370_v60, 16  ;;  %v8198_v10 = vld [vmem:[%s10040_s5 + $0x160] sm:$0xff]   ;;  %v8203_v18 = vld [vmem:[%s10040_s5 + $0x188] sm:$0xff]   ;;  %vm5775_vm0 = vcmask 1044484  }
 0x44d   : > { %v5392_v20 = vrot.slane %v5390_v1, 2  ;;  %v5395_v56 = vrot.slane %v5393_v30, 3  ;;  %v9564_v0 = vor.u32 %v5404_v15, %v5401_v26  ;;  %vm5766_vm2 = vcmask 518144  }
 0x44e   : > { %7727 = vmatmul.mubr.bf16.gmra.mrb[24].mxu1 %v9419_v31  ;;  %v9560_v46 = vsel %vm1554_vm4, %v5383_v33, %v5387_v7  ;;  %v4261_v27 = vor.u32 %v4259_v49, %v9414_v16  ;;  %v8170_v16 = vld [vmem:[%s10040_s5 + $0x80] sm:$0xff]   ;;  %v8195_v33 = vld [vmem:[%s10040_s5 + $0x148] sm:$0xff]   ;;  %vm9972_vm5 = vmand %vm5766_vm2, %vm5741_vm13  ;;  %vm5849_vm9 = vsmask.f32 256 }
 0x44f   : > { %7461 = vmatpush3.bf16.msra.mxu0 %v8169_v45  ;;  %7730 = vmatprep.mubr.msk.bf16.mxu1 %vm8229_vm7, %v8228_v35  ;;  %v5396_v28 = vor.u32 %v5395_v56, %v5392_v20  ;;  %v8200_v45 = vld [vmem:[%s10040_s5 + $0x170] sm:$0xff]   ;;  %v8207_v20 = vld [vmem:[%s10040_s5 + $0x1a8] sm:$0xff]  }
 0x450   : > { %7482 = vmatprep.subr.bf16.mxu0 %v8228_v35 }
 0x451   : > { %v9567_v31 = vsel %vm1554_vm4, %v5387_v7, %v5396_v28  ;;  %v9571_v4 = vsel %vm1554_vm4, %v5396_v28, %v9564_v0  ;;  %vm5776_vm4 = vmor %vm5774_vm15, %vm5775_vm0  ;;  %vm5850_vm15 = vsmask.f32 4368  ;;  %vm5866_vm0 = vcmask 519169  }
 0x452   : > { %7443 = vmatmul.mubr.bf16.gmra.mrb[116].mxu0 %v4261_v27 }
 0x453   : > { %7462 = vmatprep.mubr.msk.bf16.mxu0 %vm8229_vm7, %v8228_v35 }
 0x456   : > { %7731 = vmatmul.mubr.bf16.gmra.mrb[28].mxu1 %v5567_v29  ;;  %v8174_v29 = vld [vmem:[%s10040_s5 + $0xa0] sm:$0xff]  }
 0x45a   : > { %7463 = vmatmul.mubr.bf16.vlgmr.msra.gmra.mrb[120].mxu0 %v9307_v52  ;;  %v8173_v52 = vld [vmem:[%s10040_s5 + $0x98] sm:$0xff]  }
 0x45b   : > { %7483 = vmatpush3.bf16.msra.mxu0 %v8170_v16  ;;  %7466 = vmatprep.mubr.msk.bf16.mxu0 %vm8229_vm7, %v8228_v35 }
 0x45c   : > { %7484 = vmatprep.subr.bf16.mxu0 %v8228_v35 }
 0x45f   : > { %7485 = vmatpush3.bf16.msra.mxu0 %v8171_v17 }
 0x460   : > { %7486 = vmatprep.subr.bf16.mxu0 %v8228_v35 }
 0x462   : > { %7467 = vmatmul.mubr.bf16.gmra.mrb[124].mxu0 %v9305_v25  ;;  %v8175_v25 = vld [vmem:[%s10040_s5 + $0xa8] sm:$0xff]  }
 0x463   : > { %7487 = vmatpush3.bf16.msra.mxu0 %v8172_v6  ;;  %7470 = vmatprep.mubr.msk.bf16.mxu0 %vm8229_vm7, %v8228_v35 }
 0x464   : > { %7488 = vmatprep.subr.bf16.mxu0 %v8228_v35 }
 0x467   : > { %7489 = vmatpush3.bf16.msra.mxu0 %v8173_v52 }
 0x468   : > { %7490 = vmatprep.subr.bf16.mxu0 %v8228_v35 }
 0x46a   : > { %7471 = vmatmul.mubr.bf16.gmra.mrb[128].mxu0 %v9337_v13  ;;  %v8177_v13 = vld [vmem:[%s10040_s5 + $0xb8] sm:$0xff]  }
 0x46b   : > { %7491 = vmatpush3.bf16.msra.mxu0 %v8174_v29  ;;  %7474 = vmatprep.mubr.msk.bf16.mxu0 %vm8229_vm7, %v8228_v35 }
 0x46c   : > { %7492 = vmatprep.subr.bf16.mxu0 %v8228_v35 }
 0x46f   : > { %7493 = vmatpush3.bf16.msra.mxu0 %v8175_v25  ;;  %v8209_v25 = vld [vmem:[%s10040_s5 + $0x1b8] sm:$0xff]  }
 0x470   : > { %7494 = vmatprep.subr.bf16.mxu0 %v8228_v35 }
 0x472   : > { %7475 = vmatmul.mubr.bf16.gmra.mrb[132].mxu0 %v9335_v34  ;;  %v8178_v34 = vld [vmem:[%s10040_s5 + $0xc0] sm:$0xff]  }
 0x473   : > { %7495 = vmatpush3.bf16.msra.mxu0 %v8176_v11  ;;  %7478 = vmatprep.mubr.msk.bf16.mxu0 %vm8229_vm7, %v8228_v35 }
 0x474   : > { %7496 = vmatprep.subr.bf16.mxu0 %v8228_v35 }
 0x477   : > { %7497 = vmatpush3.bf16.msra.mxu0 %v8177_v13 }
 0x478   : > { %7518 = vmatprep.subr.bf16.mxu0 %v8228_v35 }
 0x47a   : > { %7479 = vmatmul.mubr.bf16.gmra.mrb[136].mxu0 %v9370_v60  ;;  %v8188_v60 = vld [vmem:[%s10040_s5 + $0x110] sm:$0xff]  }
 0x47b   : > { %7498 = vmatprep.mubr.msk.bf16.mxu0 %vm8229_vm7, %v8228_v35 }
 0x482   : > { %7499 = vmatmul.mubr.bf16.vlgmr.msra.gmra.mrb[140].mxu0 %v9345_v63  ;;  %v8181_v63 = vld [vmem:[%s10040_s5 + $0xd8] sm:$0xff]  }
 0x483   : > { %7519 = vmatpush3.bf16.msra.mxu0 %v8178_v34  ;;  %7502 = vmatprep.mubr.msk.bf16.mxu0 %vm8229_vm7, %v8228_v35 }
 0x484   : > { %7520 = vmatprep.subr.bf16.mxu0 %v8228_v35 }
 0x487   : > { %7521 = vmatpush3.bf16.msra.mxu0 %v8179_v5 }
 0x488   : > { %7522 = vmatprep.subr.bf16.mxu0 %v8228_v35 }
 0x48a   : > { %7503 = vmatmul.mubr.bf16.gmra.mrb[144].mxu0 %v9424_v57  ;;  %v8183_v57 = vld [vmem:[%s10040_s5 + $0xe8] sm:$0xff]  }
 0x48b   : > { %7523 = vmatpush3.bf16.msra.mxu0 %v8180_v19  ;;  %7506 = vmatprep.mubr.msk.bf16.mxu0 %vm8229_vm7, %v8228_v35 }
 0x48c   : > { %7524 = vmatprep.subr.bf16.mxu0 %v8228_v35 }
 0x48f   : > { %7525 = vmatpush3.bf16.msra.mxu0 %v8181_v63 }
 0x490   : > { %7526 = vmatprep.subr.bf16.mxu0 %v8228_v35 }
 0x492   : > { %7507 = vmatmul.mubr.bf16.gmra.mrb[148].mxu0 %v9427_v44  ;;  %v8185_v44 = vld [vmem:[%s10040_s5 + $0xf8] sm:$0xff]  }
 0x493   : > { %7527 = vmatpush3.bf16.msra.mxu0 %v8182_v23  ;;  %7510 = vmatprep.mubr.msk.bf16.mxu0 %vm8229_vm7, %v8228_v35 }
 0x494   : > { %7528 = vmatprep.subr.bf16.mxu0 %v8228_v35 }
 0x497   : > { %7529 = vmatpush3.bf16.msra.mxu0 %v8183_v57 }
 0x498   : > { %7530 = vmatprep.subr.bf16.mxu0 %v8228_v35 }
 0x49a   : > { %7511 = vmatmul.mubr.bf16.gmra.mrb[152].mxu0 %v9432_v36  ;;  %v8186_v36 = vld [vmem:[%s10040_s5 + $0x100] sm:$0xff]  }
 0x49b   : > { %7531 = vmatpush3.bf16.msra.mxu0 %v8184_v62  ;;  %7514 = vmatprep.mubr.msk.bf16.mxu0 %vm8229_vm7, %v8228_v35 }
 0x49c   : > { %7532 = vmatprep.subr.bf16.mxu0 %v8228_v35 }
 0x49f   : > { %7533 = vmatpush3.bf16.msra.mxu0 %v8185_v44 }
 0x4a0   : > { %7554 = vmatprep.subr.bf16.mxu0 %v8228_v35 }
 0x4a2   : > { %7515 = vmatmul.mubr.bf16.gmra.mrb[156].mxu0 %v4536_v12  ;;  %v8189_v12 = vld [vmem:[%s10040_s5 + $0x118] sm:$0xff]  }
 0x4a3   : > { %7534 = vmatprep.mubr.msk.bf16.mxu0 %vm8229_vm7, %v8228_v35 }
 0x4aa   : > { %7535 = vmatmul.mubr.bf16.vlgmr.msra.gmra.mrb[160].mxu0 %v9444_v47  ;;  %v8190_v47 = vld [vmem:[%s10040_s5 + $0x120] sm:$0xff]  }
 0x4ab   : > { %7555 = vmatpush3.bf16.msra.mxu0 %v8186_v36  ;;  %7538 = vmatprep.mubr.msk.bf16.mxu0 %vm8229_vm7, %v8228_v35 }
 0x4ac   : > { %7556 = vmatprep.subr.bf16.mxu0 %v8228_v35 }
 0x4af   : > { %7557 = vmatpush3.bf16.msra.mxu0 %v8187_v42  ;;  %v8210_v42 = vld [vmem:[%s10040_s5 + $0x1c0] sm:$0xff]  }
 0x4b0   : > { %7558 = vmatprep.subr.bf16.mxu0 %v8228_v35 }
 0x4b2   : > { %7539 = vmatmul.mubr.bf16.gmra.mrb[164].mxu0 %v9452_v9  ;;  %v8191_v9 = vld [vmem:[%s10040_s5 + $0x128] sm:$0xff]  }
 0x4b3   : > { %7559 = vmatpush3.bf16.msra.mxu0 %v8188_v60  ;;  %7542 = vmatprep.mubr.msk.bf16.mxu0 %vm8229_vm7, %v8228_v35 }
 0x4b4   : > { %7560 = vmatprep.subr.bf16.mxu0 %v8228_v35 }
 0x4b7   : > { %7561 = vmatpush3.bf16.msra.mxu0 %v8189_v12 }
 0x4b8   : > { %7562 = vmatprep.subr.bf16.mxu0 %v8228_v35 }
 0x4ba   : > { %7543 = vmatmul.mubr.bf16.gmra.mrb[168].mxu0 %v9458_v59  ;;  %v8193_v59 = vld [vmem:[%s10040_s5 + $0x138] sm:$0xff]  }
 0x4bb   : > { %7563 = vmatpush3.bf16.msra.mxu0 %v8190_v47  ;;  %7546 = vmatprep.mubr.msk.bf16.mxu0 %vm8229_vm7, %v8228_v35  ;;  %v8211_v47 = vld [vmem:[%s10040_s5 + $0x1c8] sm:$0xff]  }
 0x4bc   : > { %7564 = vmatprep.subr.bf16.mxu0 %v8228_v35 }
 0x4bf   : > { %7565 = vmatpush3.bf16.msra.mxu0 %v8191_v9 }
 0x4c0   : > { %7566 = vmatprep.subr.bf16.mxu0 %v8228_v35 }
 0x4c2   : > { %7547 = vmatmul.mubr.bf16.gmra.mrb[172].mxu0 %v9463_v43  ;;  %v8194_v43 = vld [vmem:[%s10040_s5 + $0x140] sm:$0xff]  }
 0x4c3   : > { %7567 = vmatpush3.bf16.msra.mxu0 %v8192_v48  ;;  %7550 = vmatprep.mubr.msk.bf16.mxu0 %vm8229_vm7, %v8228_v35 }
 0x4c4   : > { %7568 = vmatprep.subr.bf16.mxu0 %v8228_v35 }
 0x4c7   : > { %7569 = vmatpush3.bf16.msra.mxu0 %v8193_v59 }
 0x4c8   : > { %7590 = vmatprep.subr.bf16.mxu0 %v8228_v35 }
 0x4ca   : > { %7551 = vmatmul.mubr.bf16.gmra.mrb[176].mxu0 %v4706_v32  ;;  %v8196_v32 = vld [vmem:[%s10040_s5 + $0x150] sm:$0xff]  }
 0x4cb   : > { %7570 = vmatprep.mubr.msk.bf16.mxu0 %vm8229_vm7, %v8228_v35 }
 0x4d2   : > { %7571 = vmatmul.mubr.bf16.vlgmr.msra.gmra.mrb[180].mxu0 %v9466_v54  ;;  %v8197_v54 = vld [vmem:[%s10040_s5 + $0x158] sm:$0xff]  }
 0x4d3   : > { %7591 = vmatpush3.bf16.msra.mxu0 %v8194_v43  ;;  %7574 = vmatprep.mubr.msk.bf16.mxu0 %vm8229_vm7, %v8228_v35 }
 0x4d4   : > { %7592 = vmatprep.subr.bf16.mxu0 %v8228_v35 }
 0x4d7   : > { %7593 = vmatpush3.bf16.msra.mxu0 %v8195_v33 }
 0x4d8   : > { %7594 = vmatprep.subr.bf16.mxu0 %v8228_v35 }
 0x4da   : > { %7575 = vmatmul.mubr.bf16.gmra.mrb[184].mxu0 %v9493_v58  ;;  %v8199_v58 = vld [vmem:[%s10040_s5 + $0x168] sm:$0xff]  }
 0x4db   : > { %7595 = vmatpush3.bf16.msra.mxu0 %v8196_v32  ;;  %7578 = vmatprep.mubr.msk.bf16.mxu0 %vm8229_vm7, %v8228_v35 }
 0x4dc   : > { %7596 = vmatprep.subr.bf16.mxu0 %v8228_v35 }
 0x4df   : > { %7597 = vmatpush3.bf16.msra.mxu0 %v8197_v54 }
 0x4e0   : > { %7598 = vmatprep.subr.bf16.mxu0 %v8228_v35 }
 0x4e2   : > { %7579 = vmatmul.mubr.bf16.gmra.mrb[188].mxu0 %v9496_v14  ;;  %v8201_v14 = vld [vmem:[%s10040_s5 + $0x178] sm:$0xff]  }
 0x4e3   : > { %7599 = vmatpush3.bf16.msra.mxu0 %v8198_v10  ;;  %7582 = vmatprep.mubr.msk.bf16.mxu0 %vm8229_vm7, %v8228_v35 }
 0x4e4   : > { %7600 = vmatprep.subr.bf16.mxu0 %v8228_v35 }
 0x4e7   : > { %7601 = vmatpush3.bf16.msra.mxu0 %v8199_v58  ;;  %v8213_v58 = vld [vmem:[%s10040_s5 + $0x1d8] sm:$0xff]  }
 0x4e8   : > { %7602 = vmatprep.subr.bf16.mxu0 %v8228_v35 }
 0x4ea   : > { %7583 = vmatmul.mubr.bf16.gmra.mrb[192].mxu0 %v9519_v61  ;;  %v8202_v61 = vld [vmem:[%s10040_s5 + $0x180] sm:$0xff]  }
 0x4eb   : > { %7603 = vmatpush3.bf16.msra.mxu0 %v8200_v45  ;;  %7586 = vmatprep.mubr.msk.bf16.mxu0 %vm8229_vm7, %v8228_v35 }
 0x4ec   : > { %7604 = vmatprep.subr.bf16.mxu0 %v8228_v35 }
 0x4ef   : > { %7605 = vmatpush3.bf16.msra.mxu0 %v8201_v14 }
 0x4f0   : > { %7626 = vmatprep.subr.bf16.mxu0 %v8228_v35 }
 0x4f2   : > { %7587 = vmatmul.mubr.bf16.gmra.mrb[196].mxu0 %v9503_v8  ;;  %v8204_v8 = vld [vmem:[%s10040_s5 + $0x190] sm:$0xff]  }
 0x4f3   : > { %7606 = vmatprep.mubr.msk.bf16.mxu0 %vm8229_vm7, %v8228_v35 }
 0x4fa   : > { %7607 = vmatmul.mubr.bf16.vlgmr.msra.gmra.mrb[200].mxu0 %v9481_v24  ;;  %v8205_v24 = vld [vmem:[%s10040_s5 + $0x198] sm:$0xff]  }
 0x4fb   : > { %7627 = vmatpush3.bf16.msra.mxu0 %v8202_v61  ;;  %7610 = vmatprep.mubr.msk.bf16.mxu0 %vm8229_vm7, %v8228_v35 }
 0x4fc   : > { %7628 = vmatprep.subr.bf16.mxu0 %v8228_v35 }
 0x4ff   : > { %7629 = vmatpush3.bf16.msra.mxu0 %v8203_v18 }
 0x500   : > { %7630 = vmatprep.subr.bf16.mxu0 %v8228_v35 }
 0x502   : > { %7611 = vmatmul.mubr.bf16.gmra.mrb[204].mxu0 %v9484_v50  ;;  %v8206_v50 = vld [vmem:[%s10040_s5 + $0x1a0] sm:$0xff]  }
 0x503   : > { %7631 = vmatpush3.bf16.msra.mxu0 %v8204_v8  ;;  %7614 = vmatprep.mubr.msk.bf16.mxu0 %vm8229_vm7, %v8228_v35 }
 0x504   : > { %7632 = vmatprep.subr.bf16.mxu0 %v8228_v35 }
 0x505   : > { %v9788_v55 = vpop.f32.mrb[100].mxu0 }
 0x506   : > { %v7428_v26 = vpop.f32.mrb[101].mxu0 }
 0x507   : > { %v9790_v15 = vpop.f32.mrb[102].mxu0  ;;  %7633 = vmatpush3.bf16.msra.mxu0 %v8205_v24 }
 0x508   : > { %v7429_v1 = vpop.f32.mrb[103].mxu0  ;;  %7634 = vmatprep.subr.bf16.mxu0 %v8228_v35 }
 0x509   : > { %v9796_v30 = vpop.f32.mrb[12].mxu1 }
 0x50a   : > { %7615 = vmatmul.mubr.bf16.gmra.mrb[208].mxu0 %v9499_v37  ;;  %v7716_v7 = vpop.f32.mrb[13].mxu1  ;;  %v8208_v37 = vld [vmem:[%s10040_s5 + $0x1b0] sm:$0xff]  }
 0x50b   : > { %v9799_v49 = vpop.f32.mrb[14].mxu1  ;;  %7635 = vmatpush3.bf16.msra.mxu0 %v8206_v50  ;;  %7618 = vmatprep.mubr.msk.bf16.mxu0 %vm8229_vm7, %v8228_v35 }
 0x50c   : > { %v7717_v56 = vpop.f32.mrb[15].mxu1  ;;  %7636 = vmatprep.subr.bf16.mxu0 %v8228_v35 }
 0x50d   : > { %v9807_v27 = vpop.f32.mrb[104].mxu0 }
 0x50e   : > { %v7432_v28 = vpop.f32.mrb[105].mxu0 }
 0x50f   : > { %v9809_v16 = vpop.f32.mrb[106].mxu0  ;;  %7637 = vmatpush3.bf16.msra.mxu0 %v8207_v20 }
 0x510   : > { %v7433_v17 = vpop.f32.mrb[107].mxu0  ;;  %7638 = vmatprep.subr.bf16.mxu0 %v8228_v35 }
 0x511   : > { %v9815_v6 = vpop.f32.mrb[16].mxu1 }
 0x512   : > { %7619 = vmatmul.mubr.bf16.gmra.mrb[212].mxu0 %v9508_v41  ;;  %v7720_v52 = vpop.f32.mrb[17].mxu1 }
 0x513   : > { %v9818_v29 = vpop.f32.mrb[18].mxu1  ;;  %7639 = vmatpush3.bf16.msra.mxu0 %v8208_v37  ;;  %7622 = vmatprep.mubr.msk.bf16.mxu0 %vm8229_vm7, %v8228_v35 }
 0x514   : > { %v7721_v11 = vpop.f32.mrb[19].mxu1  ;;  %7640 = vmatprep.subr.bf16.mxu0 %v8228_v35 }
 0x515   : > { %v9826_v13 = vpop.f32.mrb[108].mxu0 }
 0x516   : > { %v7436_v34 = vpop.f32.mrb[109].mxu0 }
 0x517   : > { %v9828_v5 = vpop.f32.mrb[110].mxu0  ;;  %7641 = vmatpush3.bf16.msra.mxu0 %v8209_v25 }
 0x518   : > { %v7437_v41 = vpop.f32.mrb[111].mxu0  ;;  %7662 = vmatprep.subr.bf16.mxu0 %v8228_v35 }
 0x519   : > { %v9831_v19 = vpop.f32.mrb[20].mxu1 }
 0x51a   : > { %7623 = vmatmul.mubr.bf16.gmra.mrb[216].mxu0 %v5061_v39  ;;  %v7724_v63 = vpop.f32.mrb[21].mxu1 }
 0x51b   : > { %v9835_v23 = vpop.f32.mrb[22].mxu1  ;;  %7642 = vmatprep.mubr.msk.bf16.mxu0 %vm8229_vm7, %v8228_v35 }
 0x51c   : > { %v7725_v57 = vpop.f32.mrb[23].mxu1 }
 0x51d   : > { %v9839_v62 = vpop.f32.mrb[112].mxu0 }
 0x51e   : > { %v7440_v44 = vpop.f32.mrb[113].mxu0 }
 0x51f   : > { %v9841_v36 = vpop.f32.mrb[114].mxu0 }
 0x520   : > { %v7441_v60 = vpop.f32.mrb[115].mxu0 }
 0x521   : > { %v9846_v12 = vpop.f32.mrb[24].mxu1 }
 0x522   : > { %7643 = vmatmul.mubr.bf16.vlgmr.msra.gmra.mrb[220].mxu0 %v9522_v21  ;;  %v7728_v2 = vpop.f32.mrb[25].mxu1  ;;  %v8212_v21 = vld [vmem:[%s10040_s5 + $0x1d0] sm:$0xff]  }
 0x523   : > { %7663 = vmatpush3.bf16.msra.mxu0 %v8210_v42  ;;  %v9849_v39 = vpop.f32.mrb[26].mxu1  ;;  %7646 = vmatprep.mubr.msk.bf16.mxu0 %vm8229_vm7, %v8228_v35 }
 0x524   : > { %v7729_v9 = vpop.f32.mrb[27].mxu1  ;;  %7664 = vmatprep.subr.bf16.mxu0 %v8228_v35 }
 0x525   : > { %v4381_v48 = vpop.f32.mrb[116].mxu0 }
 0x526   : > { %v7444_v59 = vpop.f32.mrb[117].mxu0 }
 0x527   : > { %v4384_v43 = vpop.f32.mrb[118].mxu0  ;;  %7665 = vmatpush3.bf16.msra.mxu0 %v8211_v47 }
 0x528   : > { %v7445_v33 = vpop.f32.mrb[119].mxu0  ;;  %7666 = vmatprep.subr.bf16.mxu0 %v8228_v35 }
 0x529   : > { %v9861_v32 = vpop.f32.mrb[28].mxu1 }
 0x52a   : > { %7647 = vmatmul.mubr.bf16.gmra.mrb[224].mxu0 %v9525_v51  ;;  %v7732_v54 = vpop.f32.mrb[29].mxu1  ;;  %v8214_v51 = vld [vmem:[%s10040_s5 + $0x1e0] sm:$0xff]  }
 0x52b   : > { %v5691_v10 = vpop.f32.mrb[30].mxu1  ;;  %7667 = vmatpush3.bf16.msra.mxu0 %v8212_v21  ;;  %7650 = vmatprep.mubr.msk.bf16.mxu0 %vm8229_vm7, %v8228_v35 }
 0x52c   : > { %v7733_v45 = vpop.f32.mrb[31].mxu1  ;;  %7668 = vmatprep.subr.bf16.mxu0 %v8228_v35 }
 0x52d   : > { %v4469_v14 = vpop.f32.mrb[120].mxu0 }
 0x52e   : > { %v4470_v61 = vadd.f32 %v4469_v14, %v9788_v55  ;;  %v7464_v18 = vpop.f32.mrb[121].mxu0  ;;  %v8215_v55 = vld [vmem:[%s10040_s5 + $0x1e8] sm:$0xff]  }
 0x52f   : > { %v4472_v8 = vpop.f32.mrb[122].mxu0  ;;  %7669 = vmatpush3.bf16.msra.mxu0 %v8213_v58 }
 0x530   : > { %v4473_v24 = vadd.f32 %v4472_v8, %v9790_v15  ;;  %v7465_v26 = vpop.f32.mrb[123].mxu0  ;;  %7670 = vmatprep.subr.bf16.mxu0 %v8228_v35 }
 0x532   : > { %7651 = vmatmul.mubr.bf16.gmra.mrb[228].mxu0 %v9535_v53  ;;  %v8216_v53 = vld [vmem:[%s10040_s5 + $0x1f0] sm:$0xff]  }
 0x533   : > { %7671 = vmatpush3.bf16.msra.mxu0 %v8214_v51  ;;  %7654 = vmatprep.mubr.msk.bf16.mxu0 %vm8229_vm7, %v8228_v35 }
 0x534   : > { %7672 = vmatprep.subr.bf16.mxu0 %v8228_v35 }
 0x535   : > { %v4477_v50 = vpop.f32.mrb[124].mxu0 }
 0x536   : > { %v4478_v1 = vadd.f32 %v4477_v50, %v9807_v27  ;;  %v7468_v7 = vpop.f32.mrb[125].mxu0  ;;  %v8217_v27 = vld [vmem:[%s10040_s5 + $0x1f8] sm:$0xff]  }
 0x537   : > { %v4480_v15 = vpop.f32.mrb[126].mxu0  ;;  %7673 = vmatpush3.bf16.msra.mxu0 %v8215_v55 }
 0x538   : > { %v4481_v20 = vadd.f32 %v4480_v15, %v9809_v16  ;;  %v7469_v56 = vpop.f32.mrb[127].mxu0  ;;  %7674 = vmatprep.subr.bf16.mxu0 %v8228_v35 }
 0x53a   : > { %7655 = vmatmul.mubr.bf16.gmra.mrb[232].mxu0 %v9540_v22 }
 0x53b   : > { %7675 = vmatpush3.bf16.msra.mxu0 %v8216_v53  ;;  %7658 = vmatprep.mubr.msk.bf16.mxu0 %vm8229_vm7, %v8228_v35 }
 0x53c   : > { %7676 = vmatprep.subr.bf16.mxu0 %v8228_v35 }
 0x53d   : > { %v4485_v28 = vpop.f32.mrb[128].mxu0 }
 0x53e   : > { %v4486_v37 = vadd.f32 %v4485_v28, %v9826_v13  ;;  %v7472_v17 = vpop.f32.mrb[129].mxu0 }
 0x53f   : > { %v4488_v16 = vpop.f32.mrb[130].mxu0  ;;  %7677 = vmatpush3.bf16.msra.mxu0 %v8217_v27 }
 0x540   : > { %v4489_v52 = vadd.f32 %v4488_v16, %v9828_v5  ;;  %v7473_v25 = vpop.f32.mrb[131].mxu0 }
 0x542   : > { %7659 = vmatmul.mubr.bf16.gmra.mrb[236].mxu0 %v5225_v40 }
 0x543   : > { %7678 = vmatprep.mubr.msk.bf16.mxu0 %vm8229_vm7, %v8228_v35 }
 0x545   : > { %v4493_v22 = vpop.f32.mrb[132].mxu0 }
 0x546   : > { %v4494_v11 = vadd.f32 %v4493_v22, %v9839_v62  ;;  %v7476_v34 = vpop.f32.mrb[133].mxu0 }
 0x547   : > { %v4496_v41 = vpop.f32.mrb[134].mxu0 }
 0x548   : > { %v4497_v63 = vadd.f32 %v4496_v41, %v9841_v36  ;;  %v7477_v13 = vpop.f32.mrb[135].mxu0 }
 0x54a   : > { %7679 = vmatmul.mubr.bf16.vlgmr.msra.gmra.mrb[240].mxu0 %v9553_v3 }
 0x54b   : > { %7682 = vmatprep.mubr.msk.bf16.mxu0 %vm8229_vm7, %v8228_v35 }
 0x54d   : > { %v4501_v5 = vpop.f32.mrb[136].mxu0 }
 0x54e   : > { %v4502_v57 = vadd.f32 %v4501_v5, %v4381_v48  ;;  %v7480_v38 = vpop.f32.mrb[137].mxu0 }
 0x54f   : > { %v4504_v40 = vpop.f32.mrb[138].mxu0 }
 0x550   : > { %v7481_v44 = vpop.f32.mrb[139].mxu0 }
 0x552   : > { %7683 = vmatmul.mubr.bf16.gmra.mrb[244].mxu0 %v9560_v46 }
 0x553   : > { %7686 = vmatprep.mubr.msk.bf16.mxu0 %vm8229_vm7, %v8228_v35 }
 0x555   : > { %v4625_v62 = vpop.f32.mrb[140].mxu0 }
 0x556   : > { %v4663_v42 = vadd.f32 %v4625_v62, %v4470_v61  ;;  %v7500_v60 = vpop.f32.mrb[141].mxu0 }
 0x557   : > { %v4628_v36 = vpop.f32.mrb[142].mxu0 }
 0x558   : > { %v4664_v2 = vadd.f32 %v4628_v36, %v4473_v24  ;;  %v7501_v47 = vpop.f32.mrb[143].mxu0 }
 0x55a   : > { %7687 = vmatmul.mubr.bf16.gmra.mrb[248].mxu0 %v9567_v31 }
 0x55b   : > { %7690 = vmatprep.mubr.msk.bf16.mxu0 %vm8229_vm7, %v8228_v35 }
 0x55d   : > { %v4633_v3 = vpop.f32.mrb[144].mxu0 }
 0x55e   : > { %v4665_v9 = vadd.f32 %v4633_v3, %v4478_v1  ;;  %v7504_v48 = vpop.f32.mrb[145].mxu0 }
 0x55f   : > { %v4636_v59 = vpop.f32.mrb[146].mxu0 }
 0x560   : > { %v4666_v43 = vadd.f32 %v4636_v59, %v4481_v20  ;;  %v7505_v46 = vpop.f32.mrb[147].mxu0 }
 0x562   : > { %7691 = vmatmul.mubr.bf16.gmra.mrb[252].mxu0 %v9571_v4 }
 0x563   : > { %7694 = vmatprep.mubr.msk.bf16.mxu0 %vm8229_vm7, %v8228_v35  ;;  %vm5825_vm7 = vcmask 517120  }
 0x565   : > { %v4641_v21 = vpop.f32.mrb[148].mxu0 }
 0x566   : > { %v4667_v33 = vadd.f32 %v4641_v21, %v4486_v37  ;;  %v7508_v54 = vpop.f32.mrb[149].mxu0 }
 0x567   : > { %v4644_v10 = vpop.f32.mrb[150].mxu0 }
 0x568   : > { %v4668_v58 = vadd.f32 %v4644_v10, %v4489_v52  ;;  %v7509_v31 = vpop.f32.mrb[151].mxu0 }
 0x56a   : > { %7695 = vmatmul.mubr.bf16.gmra.mrb[0].mxu0 %v9564_v0 }
 0x56d   : > { %v4649_v45 = vpop.f32.mrb[152].mxu0 }
 0x56e   : > { %v4669_v14 = vadd.f32 %v4649_v45, %v4494_v11  ;;  %v7512_v61 = vpop.f32.mrb[153].mxu0 }
 0x56f   : > { %v4652_v18 = vpop.f32.mrb[154].mxu0 }
 0x570   : > { %v4670_v8 = vadd.f32 %v4652_v18, %v4497_v63  ;;  %v7513_v51 = vpop.f32.mrb[155].mxu0 }
 0x575   : > { %v4657_v24 = vpop.f32.mrb[156].mxu0 }
 0x576   : > { %v4671_v26 = vadd.f32 %v4657_v24, %v4502_v57  ;;  %v7516_v4 = vpop.f32.mrb[157].mxu0 }
 0x577   : > { %v4660_v55 = vpop.f32.mrb[158].mxu0 }
 0x578   : > { %v7517_v50 = vpop.f32.mrb[159].mxu0 }
 0x57d   : > { %v4795_v35 = vpop.f32.mrb[160].mxu0 }
 0x57e   : > { %v4833_v1 = vadd.f32 %v4795_v35, %v4663_v42  ;;  %v7536_v7 = vpop.f32.mrb[161].mxu0 }
 0x57f   : > { %v4798_v15 = vpop.f32.mrb[162].mxu0 }
 0x580   : > { %v4834_v53 = vadd.f32 %v4798_v15, %v4664_v2  ;;  %v7537_v20 = vpop.f32.mrb[163].mxu0 }
 0x585   : > { %v4803_v56 = vpop.f32.mrb[164].mxu0 }
 0x586   : > { %v4835_v27 = vadd.f32 %v4803_v56, %v4665_v9  ;;  %v7540_v0 = vpop.f32.mrb[165].mxu0 }
 0x587   : > { %v4806_v28 = vpop.f32.mrb[166].mxu0 }
 0x588   : > { %v4836_v37 = vadd.f32 %v4806_v28, %v4666_v43  ;;  %v7541_v17 = vpop.f32.mrb[167].mxu0 }
 0x58d   : > { %v4811_v16 = vpop.f32.mrb[168].mxu0 }
 0x58e   : > { %v4837_v52 = vadd.f32 %v4811_v16, %v4667_v33  ;;  %v7544_v25 = vpop.f32.mrb[169].mxu0 }
 0x58f   : > { %v4814_v22 = vpop.f32.mrb[170].mxu0 }
 0x590   : > { %v4838_v11 = vadd.f32 %v4814_v22, %v4668_v58  ;;  %v7545_v34 = vpop.f32.mrb[171].mxu0 }
 0x595   : > { %v4819_v41 = vpop.f32.mrb[172].mxu0 }
 0x596   : > { %v4839_v63 = vadd.f32 %v4819_v41, %v4669_v14  ;;  %v7548_v13 = vpop.f32.mrb[173].mxu0 }
 0x597   : > { %v4822_v5 = vpop.f32.mrb[174].mxu0 }
 0x598   : > { %v4840_v57 = vadd.f32 %v4822_v5, %v4670_v8  ;;  %v7549_v38 = vpop.f32.mrb[175].mxu0 }
 0x59d   : > { %v4827_v40 = vpop.f32.mrb[176].mxu0 }
 0x59e   : > { %v4841_v44 = vadd.f32 %v4827_v40, %v4671_v26  ;;  %v7552_v62 = vpop.f32.mrb[177].mxu0 }
 0x59f   : > { %v4830_v42 = vpop.f32.mrb[178].mxu0 }
 0x5a0   : > { %v7553_v60 = vpop.f32.mrb[179].mxu0 }
 0x5a5   : > { %v4990_v36 = vpop.f32.mrb[180].mxu0 }
 0x5a6   : > { %v5028_v2 = vadd.f32 %v4990_v36, %v4833_v1  ;;  %v7572_v47 = vpop.f32.mrb[181].mxu0 }
 0x5a7   : > { %v4993_v3 = vpop.f32.mrb[182].mxu0 }
 0x5a8   : > { %v5029_v9 = vadd.f32 %v4993_v3, %v4834_v53  ;;  %v7573_v48 = vpop.f32.mrb[183].mxu0 }
 0x5ad   : > { %v4998_v59 = vpop.f32.mrb[184].mxu0 }
 0x5ae   : > { %v5030_v43 = vadd.f32 %v4998_v59, %v4835_v27  ;;  %v7576_v46 = vpop.f32.mrb[185].mxu0 }
 0x5af   : > { %v5001_v21 = vpop.f32.mrb[186].mxu0 }
 0x5b0   : > { %v5031_v33 = vadd.f32 %v5001_v21, %v4836_v37  ;;  %v7577_v54 = vpop.f32.mrb[187].mxu0 }
 0x5b5   : > { %v5006_v10 = vpop.f32.mrb[188].mxu0 }
 0x5b6   : > { %v5032_v58 = vadd.f32 %v5006_v10, %v4837_v52  ;;  %v7580_v31 = vpop.f32.mrb[189].mxu0 }
 0x5b7   : > { %v5009_v45 = vpop.f32.mrb[190].mxu0 }
 0x5b8   : > { %v5033_v14 = vadd.f32 %v5009_v45, %v4838_v11  ;;  %v7581_v61 = vpop.f32.mrb[191].mxu0 }
 0x5bd   : > { %v5014_v18 = vpop.f32.mrb[192].mxu0 }
 0x5be   : > { %v5034_v8 = vadd.f32 %v5014_v18, %v4839_v63  ;;  %v7584_v51 = vpop.f32.mrb[193].mxu0 }
 0x5bf   : > { %v5017_v24 = vpop.f32.mrb[194].mxu0 }
 0x5c0   : > { %v5035_v26 = vadd.f32 %v5017_v24, %v4840_v57  ;;  %v7585_v4 = vpop.f32.mrb[195].mxu0 }
 0x5c5   : > { %v5022_v55 = vpop.f32.mrb[196].mxu0 }
 0x5c6   : > { %v5036_v50 = vadd.f32 %v5022_v55, %v4841_v44  ;;  %v7588_v35 = vpop.f32.mrb[197].mxu0 }
 0x5c7   : > { %v5025_v1 = vpop.f32.mrb[198].mxu0 }
 0x5c8   : > { %v7589_v7 = vpop.f32.mrb[199].mxu0 }
 0x5cd   : > { %v5150_v15 = vpop.f32.mrb[200].mxu0 }
 0x5ce   : > { %v5188_v53 = vadd.f32 %v5150_v15, %v5028_v2  ;;  %v7608_v20 = vpop.f32.mrb[201].mxu0 }
 0x5cf   : > { %v5153_v56 = vpop.f32.mrb[202].mxu0 }
 0x5d0   : > { %v5189_v27 = vadd.f32 %v5153_v56, %v5029_v9  ;;  %v7609_v0 = vpop.f32.mrb[203].mxu0 }
 0x5d5   : > { %v5158_v28 = vpop.f32.mrb[204].mxu0 }
 0x5d6   : > { %v5190_v37 = vadd.f32 %v5158_v28, %v5030_v43  ;;  %v7612_v17 = vpop.f32.mrb[205].mxu0  ;;  %v9931_v28 = vld [vmem:[%s10041_s6] ss:$0 sm:$0xff] }
 0x5d7   : > { %v5161_v16 = vpop.f32.mrb[206].mxu0 }
 0x5d8   : > { %v5191_v52 = vadd.f32 %v5161_v16, %v5031_v33  ;;  %v7613_v25 = vpop.f32.mrb[207].mxu0 }
 0x5dd   : > { %v5166_v22 = vpop.f32.mrb[208].mxu0 }
 0x5de   : > { %v5192_v11 = vadd.f32 %v5166_v22, %v5032_v58  ;;  %v7616_v34 = vpop.f32.mrb[209].mxu0 }
 0x5df   : > { %v5169_v41 = vpop.f32.mrb[210].mxu0 }
 0x5e0   : > { %v5193_v63 = vadd.f32 %v5169_v41, %v5033_v14  ;;  %v7617_v13 = vpop.f32.mrb[211].mxu0 }
 0x5e5   : > { %v5174_v5 = vpop.f32.mrb[212].mxu0 }
 0x5e6   : > { %v5194_v57 = vadd.f32 %v5174_v5, %v5034_v8  ;;  %v7620_v38 = vpop.f32.mrb[213].mxu0 }
 0x5e7   : > { %v5177_v40 = vpop.f32.mrb[214].mxu0 }
 0x5e8   : > { %v5195_v44 = vadd.f32 %v5177_v40, %v5035_v26  ;;  %v7621_v62 = vpop.f32.mrb[215].mxu0 }
 0x5ed   : > { %v5182_v42 = vpop.f32.mrb[216].mxu0 }
 0x5ee   : > { %v5196_v60 = vadd.f32 %v5182_v42, %v5036_v50  ;;  %v7624_v36 = vpop.f32.mrb[217].mxu0 }
 0x5ef   : > { %v5185_v2 = vpop.f32.mrb[218].mxu0 }
 0x5f0   : > { %v7625_v47 = vpop.f32.mrb[219].mxu0 }
 0x5f5   : > { %v5314_v3 = vpop.f32.mrb[220].mxu0 }
 0x5f6   : > { %v5352_v9 = vadd.f32 %v5314_v3, %v5188_v53  ;;  %v7644_v48 = vpop.f32.mrb[221].mxu0 }
 0x5f7   : > { %v5317_v59 = vpop.f32.mrb[222].mxu0 }
 0x5f8   : > { %v5353_v43 = vadd.f32 %v5317_v59, %v5189_v27  ;;  %v7645_v46 = vpop.f32.mrb[223].mxu0 }
 0x5fd   : > { %v5322_v21 = vpop.f32.mrb[224].mxu0 }
 0x5fe   : > { %v5354_v33 = vadd.f32 %v5322_v21, %v5190_v37  ;;  %v7648_v54 = vpop.f32.mrb[225].mxu0 }
 0x5ff   : > { %v5325_v10 = vpop.f32.mrb[226].mxu0 }
 0x600   : > { %v5355_v58 = vadd.f32 %v5325_v10, %v5191_v52  ;;  %v7649_v31 = vpop.f32.mrb[227].mxu0 }
 0x605   : > { %v5330_v45 = vpop.f32.mrb[228].mxu0 }
 0x606   : > { %v9917_v14 = vadd.f32 %v5330_v45, %v5192_v11  ;;  %v7652_v61 = vpop.f32.mrb[229].mxu0 }
 0x607   : > { %v5333_v18 = vpop.f32.mrb[230].mxu0 }
 0x608   : > { %v9919_v8 = vadd.f32 %v5333_v18, %v5193_v63  ;;  %v7653_v51 = vpop.f32.mrb[231].mxu0 }
 0x60d   : > { %v5338_v24 = vpop.f32.mrb[232].mxu0 }
 0x60e   : > { %v9921_v26 = vadd.f32 %v5338_v24, %v5194_v57  ;;  %v7656_v4 = vpop.f32.mrb[233].mxu0 }
 0x60f   : > { %v5341_v55 = vpop.f32.mrb[234].mxu0 }
 0x610   : > { %v9923_v50 = vadd.f32 %v5341_v55, %v5195_v44  ;;  %v7657_v35 = vpop.f32.mrb[235].mxu0 }
 0x615   : > { %v5346_v1 = vpop.f32.mrb[236].mxu0 }
 0x616   : > { %v9925_v7 = vadd.f32 %v5346_v1, %v5196_v60  ;;  %v7660_v15 = vpop.f32.mrb[237].mxu0 }
 0x617   : > { %v5349_v53 = vpop.f32.mrb[238].mxu0 }
 0x618   : > { %v7661_v20 = vpop.f32.mrb[239].mxu0 }
 0x619   : > { %v5787_v20 = vld [vmem:[%s9937_s10 + $0x8] sm:$0x7] }
 0x61d   : > { %v5494_v56 = vpop.f32.mrb[240].mxu0 }
 0x61e   : > { %v5532_v27 = vadd.f32 %v5494_v56, %v5352_v9  ;;  %v7680_v0 = vpop.f32.mrb[241].mxu0 }
 0x61f   : > { %v5497_v37 = vpop.f32.mrb[242].mxu0 }
 0x620   : > { %v5694_v17 = vadd.f32 %v9796_v30, %v5532_v27  ;;  %v5533_v16 = vadd.f32 %v5497_v37, %v5353_v43  ;;  %v7681_v52 = vpop.f32.mrb[243].mxu0  ;;  %v5732_v30 = vld [vmem:[%s9937_s10] sm:$0xf] }
 0x622   : > { %v5710_v25 = vadd.f32 %v9931_v28, %v5694_v17  ;;  %v5695_v22 = vadd.f32 %v9799_v49, %v5533_v16 }
 0x624   : > { %v5719_v11 = vmax.f32 %v5710_v25, 0.0  ;;  %v5711_v34 = vadd.f32 %v9931_v28, %v5695_v22 }
 0x625   : > { %v5502_v41 = vpop.f32.mrb[244].mxu0 }
 0x626   : > { %v5728_v63 = vpack.c.bf16 %v5719_v11, %v5719_v11  ;;  %v5720_v13 = vmax.f32 %v5711_v34, 0.0  ;;  %v5534_v5 = vadd.f32 %v5502_v41, %v5354_v33  ;;  %v7684_v57 = vpop.f32.mrb[245].mxu0 }
 0x627   : > { %v5505_v38 = vpop.f32.mrb[246].mxu0 }
 0x628   : > { %v5733_v40 = vsel %vm5731_vm10, %v5728_v63, %v5732_v30  ;;  %v6610_v44 = vpack.c.bf16 %v5720_v13, %v5720_v13  ;;  %v5696_v62 = vadd.f32 %v9815_v6, %v5534_v5  ;;  %v5535_v42 = vadd.f32 %v5505_v38, %v5355_v58  ;;  %v7685_v60 = vpop.f32.mrb[247].mxu0 }
 0x629   : > { %5734 = vst [vmem:[%s9937_s10] sm:$0xf] %v5733_v40  ;;  %vm5820_vm10 = vsmask.f32 7946 }
 0x62a   : > { %v5745_v49 = vshll.u32 %v6610_v44, 16  ;;  %v5748_v36 = vshrl.u32 %v6610_v44, 16  ;;  %v5712_v2 = vadd.f32 %v9931_v28, %v5696_v62  ;;  %v5697_v47 = vadd.f32 %v9818_v29, %v5535_v42  ;;  %vm5821_vm13 = vmand %vm5819_vm8, %vm5820_vm10 }
 0x62c   : > { %v5747_v3 = vrot.slane %v5745_v49, 6  ;;  %v5750_v9 = vrot.slane %v5748_v36, 5  ;;  %v5721_v48 = vmax.f32 %v5712_v2, 0.0  ;;  %v5713_v59 = vadd.f32 %v9931_v28, %v5697_v47  ;;  %v5840_v47 = vld [vmem:[%s9937_s10 + $0x10] sm:$0x3] }
 0x62d   : > { %v5510_v6 = vpop.f32.mrb[248].mxu0 }
 0x62e   : > { %v5751_v43 = vor.u32 %v5750_v9, %v5747_v3  ;;  %v6611_v29 = vpack.c.bf16 %v5721_v48, %v5721_v48  ;;  %v5722_v21 = vmax.f32 %v5713_v59, 0.0  ;;  %v5536_v33 = vadd.f32 %v5510_v6, %v9917_v14  ;;  %v7688_v54 = vpop.f32.mrb[249].mxu0 }
 0x62f   : > { %v5513_v10 = vpop.f32.mrb[250].mxu0 }
 0x630   : > { %v5763_v58 = vld [vmem:[%s9937_s10] sm:$0x8]  ;;  %v5754_v45 = vshll.u32 %v6611_v29, 16  ;;  %v5777_v61 = vrot.slane %v6611_v29, 7  ;;  %v6613_v18 = vpack.c.bf16 %v5722_v21, %v5722_v21  ;;  %v7689_v51 = vpop.f32.mrb[251].mxu0  ;;  %v5752_v24 = vrot.slane %v5751_v43, 4 }
 0x631   : > { %v5764_v4 = vsel %vm9950_vm1, %v5747_v3, %v5763_v58  ;;  %v5698_v14 = vadd.f32 %v9831_v19, %v5536_v33  ;;  %v5537_v55 = vadd.f32 %v5513_v10, %v9919_v8  ;;  %vm5867_vm1 = vsmask.f32 7942 }
 0x632   : > { %5765 = vst [vmem:[%s9937_s10] sm:$0x8] %v5764_v4  ;;  %v5756_v35 = vrot.slane %v5754_v45, 6  ;;  %v5778_v1 = vrot.slane %v5777_v61, 4  ;;  %5784 = vst.msk [vmem:[%s9937_s10 + $0x4] sm:$0x8] %vm5760_vm11, %v5777_v61  ;;  %v5779_v53 = vrot.slane %v6613_v18, 7 }
 0x633   : > { %v5799_v56 = vshrl.u32 %v6613_v18, 16  ;;  %v5802_v27 = vshll.u32 %v6613_v18, 16  ;;  %v5714_v19 = vadd.f32 %v9931_v28, %v5698_v14  ;;  %v5699_v8 = vadd.f32 %v9835_v23, %v5537_v55  ;;  %vm5868_vm6 = vmand %vm5866_vm0, %vm5867_vm1 }
 0x634   : > { %v5757_v0 = vsel %vm9957_vm3, %v5752_v24, %v5756_v35  ;;  %v5780_v37 = vsel %vm5776_vm4, %v5778_v1, %v5779_v53  ;;  %vm5838_vm11 = vsmask.f32 1280  ;;  %vm5872_vm3 = vcmask 516096  }
 0x635   : > { %v5801_v17 = vrot.slane %v5799_v56, 4  ;;  %5767 = vst.msk [vmem:[%s9937_s10 + $0x4] sm:$0x7] %vm5766_vm2, %v5757_v0  ;;  %v5788_v16 = vsel %vm9972_vm5, %v5780_v37, %v5787_v20  ;;  %v5804_v52 = vrot.slane %v5802_v27, 5  ;;  %v5723_v25 = vmax.f32 %v5714_v19, 0.0  ;;  %v5518_v11 = vpop.f32.mrb[252].mxu0  ;;  %vm10000_vm14 = vmand %vm5825_vm7, %vm5838_vm11 }
 0x636   : > { %v5715_v22 = vadd.f32 %v9931_v28, %v5699_v8  ;;  %5789 = vst [vmem:[%s9937_s10 + $0x8] sm:$0x7] %v5788_v16  ;;  %v5538_v34 = vadd.f32 %v5518_v11, %v9921_v26  ;;  %v7692_v23 = vpop.f32.mrb[253].mxu0  ;;  %vm5851_vm2 = vmor %vm5849_vm9, %vm5850_vm15  ;;  %vm5880_vm4 = vcmask 1042432   ;;  %vm5881_vm5 = vcmask 1046532  }
 0x637   : > { %v5805_v30 = vor.u32 %v5804_v52, %v5801_v17  ;;  %v6615_v41 = vpack.c.bf16 %v5723_v25, %v5723_v25  ;;  %v5521_v13 = vpop.f32.mrb[254].mxu0  ;;  %v5894_v27 = vld [vmem:[%s9937_s10 + $0x18] sm:$0x1] }
 0x638   : > { %v5724_v63 = vmax.f32 %v5715_v22, 0.0  ;;  %v5700_v5 = vadd.f32 %v9846_v12, %v5538_v34  ;;  %v5539_v57 = vadd.f32 %v5521_v13, %v9923_v50  ;;  %v7693_v38 = vpop.f32.mrb[255].mxu0 }
 0x639   : > { %v5808_v40 = vshll.u32 %v6615_v41, 16  ;;  %v5812_v44 = vshrl.u32 %v6615_v41, 16  ;;  %v5806_v60 = vrot.slane %v5805_v30, 4 }
 0x63a   : > { %v6616_v62 = vpack.c.bf16 %v5724_v63, %v5724_v63  ;;  %v5716_v42 = vadd.f32 %v9931_v28, %v5700_v5  ;;  %v5701_v12 = vadd.f32 %v9849_v39, %v5539_v57 }
 0x63b   : > { %v5810_v49 = vrot.slane %v5808_v40, 5  ;;  %v5814_v50 = vrot.slane %v5812_v44, 4 }
 0x63c   : > { %v5831_v36 = vrot.slane %v6616_v62, 6  ;;  %v5725_v3 = vmax.f32 %v5716_v42, 0.0  ;;  %v5717_v9 = vadd.f32 %v9931_v28, %v5701_v12 }
 0x63d   : > { %v5811_v48 = vsel %vm9992_vm12, %v5806_v60, %v5810_v49  ;;  %v5815_v39 = vor.u32 %v5814_v50, %v5810_v49  ;;  %v5822_v59 = vld [vmem:[%s9937_s10 + $0x8] sm:$0xc]  ;;  %v5526_v43 = vpop.f32.mrb[0].mxu0 }
 0x63e   : > { %v5832_v6 = vrot.slane %v5831_v36, 4  ;;  %5836 = vst.msk [vmem:[%s9937_s10 + $0xc] sm:$0xc] %vm5819_vm8, %v5831_v36  ;;  %v5823_v46 = vsel %vm5821_vm13, %v5811_v48, %v5822_v59  ;;  %v6617_v29 = vpack.c.bf16 %v5725_v3, %v5725_v3  ;;  %v5726_v21 = vmax.f32 %v5717_v9, 0.0  ;;  %v7696_v54 = vpop.f32.mrb[1].mxu0  ;;  %vm5893_vm8 = vmand %vm5872_vm3, %vm5849_vm9 }
 0x63f   : > { %v5540_v33 = vadd.f32 %v5526_v43, %v9925_v7  ;;  %v5816_v10 = vrot.slane %v5815_v39, 4  ;;  %5824 = vst [vmem:[%s9937_s10 + $0x8] sm:$0xc] %v5823_v46  ;;  %v5529_v31 = vpop.f32.mrb[2].mxu0 }
 0x640   : > { %v5841_v58 = vsel %vm10000_vm14, %v5832_v6, %v5840_v47  ;;  %v5853_v45 = vshrl.u32 %v6617_v29, 16  ;;  %v6618_v61 = vpack.c.bf16 %v5726_v21, %v5726_v21  ;;  %v7697_v51 = vpop.f32.mrb[3].mxu0  ;;  %v5856_v24 = vshll.u32 %v6617_v29, 16 }
 0x641   : > { %5842 = vst [vmem:[%s9937_s10 + $0x10] sm:$0x3] %v5841_v58  ;;  %v5702_v18 = vadd.f32 %v9861_v32, %v5540_v33  ;;  %5826 = vst.msk [vmem:[%s9937_s10 + $0xc] sm:$0x3] %vm5825_vm7, %v5816_v10 }
 0x642   : > { %v5855_v7 = vrot.slane %v5853_v45, 7  ;;  %v5861_v55 = vshll.u32 %v6618_v61, 16  ;;  %vm5882_vm7 = vmor %vm5880_vm4, %vm5881_vm5  ;;  %v6607_v20 = vrot.slane %v6618_v61, 9 }
 0x643   : > { %v5718_v4 = vadd.f32 %v9931_v28, %v5702_v18 }
 0x644   : > { %v5858_v14 = vor.u32 %v5856_v24, %v5855_v7  ;;  %v5859_v32 = vrot.slane %v5855_v7, 4 }
 0x645   : > { %v5727_v35 = vmax.f32 %v5718_v4, 0.0 }
 0x646   : > { %v5863_v1 = vsel %vm5851_vm2, %v5859_v32, %v5861_v55 }
 0x647   : > { %v6620_v15 = vpack.c.bf16 %v5727_v35, %v5727_v35  ;;  %5873 = vst.msk [vmem:[%s9937_s10 + $0x14] sm:$0x1] %vm5872_vm3, %v5863_v1 }
 0x648   : > { %v5869_v53 = vld [vmem:[%s9937_s10 + $0x10] sm:$0xe] }
 0x649   : > { %v5870_v28 = vsel %vm5868_vm6, %v5858_v14, %v5869_v53  ;;  %v5885_v56 = vrot.slane %v6620_v15, 5 }
 0x64a   : > { %5871 = vst [vmem:[%s9937_s10 + $0x10] sm:$0xe] %v5870_v28 }
 0x64b   : > { %v5886_v19 = vsel %vm5882_vm7, %v6607_v20, %v5885_v56  ;;  %v5887_v8 = vrot.slane %v5885_v56, 4 }
 0x64c   : > { %5891 = vst.msk [vmem:[%s9937_s10 + $0x14] sm:$0xe] %vm5866_vm0, %v5886_v19 }
 0x64d   : > { %v5895_v0 = vsel %vm5893_vm8, %v5887_v8, %v5894_v27 }
 0x64e   : > { %5896 = vst [vmem:[%s9937_s10 + $0x18] sm:$0x1] %v5895_v0 }
 0x64f PF: > { %s17_s24 = sadd.s32 1, %s8225_s24  }
 0x650   : > { %p14_p4 = scmp.ge.s32.totalorder %s17_s24, 4  }
 0x652   :  { %16 = sbr.rel (!%p14_p4) target bundleno = 1 (0x1), region = 101 }

</bundles_post_ra>
